<compile_context>
chip_gen: v7x
topology: tpu7x:2x2x1
jax: 0.10.0
libtpu: 0.0.40
codegen_flags: <defaults>
</compile_context>

<pallas_src>
import functools

import numpy as np
import jax
import jax.numpy as jnp
from jax.experimental import pallas as pl
from jax.experimental.pallas import tpu as pltpu

LRELU_SLOPE = 0.2
# decoder stages: gather-first (cin <= cout) vs mix-first (cout < cin)
_DEC_GF = (True, True, False, False)


# ---------------------------------------------------------------------------
# In-kernel helpers
# ---------------------------------------------------------------------------
def _lrelu(x):
    return jnp.where(x >= 0, x, LRELU_SLOPE * x)


def _bf(x):
    return x.astype(jnp.bfloat16)


def _gdot(a, g):
    """bf16 (m,k) @ bf16 (k,n) -> f32.  K==1 degenerates to broadcast mult."""
    if a.shape[1] == 1:
        return a.astype(jnp.float32) * g.astype(jnp.float32)
    return jnp.dot(a, g, preferred_element_type=jnp.float32)


def _stack_batch(x, B, p):
    """(c, B*p) -> (B*c, p): move batch onto the sublane/M axis."""
    if B == 1:
        return x
    return jnp.concatenate([x[:, b * p:(b + 1) * p] for b in range(B)], axis=0)


def _unstack_batch(x, B, c):
    """(B*c, p) -> (c, B*p): move batch back onto the lane/N axis."""
    if B == 1:
        return x
    return jnp.concatenate([x[b * c:(b + 1) * c, :] for b in range(B)], axis=1)


def _expand_cols(v, p, B):
    """(c, B) -> (c, B*p): repeat each sample's column across its p lanes."""
    if p == 1:
        return v
    return jnp.concatenate(
        [jnp.broadcast_to(v[:, b:b + 1], (v.shape[0], p)) for b in range(B)],
        axis=1)


def _conv_roll(x, w_ref, b_ref, mask_ref, W_img):
    """Stride-1 3x3 conv (pad=1) on the flattened (cin, B*H*W) map using
    pltpu.roll tap shifts + boundary masks, with all 9 taps K-stacked into a
    single (cout, 9*cin) MXU dot (batch rides the lane axis)."""
    P = x.shape[1]
    taps, t = [], 0
    for dy in (-1, 0, 1):
        for dx in (-1, 0, 1):
            sft = dy * W_img + dx
            if sft == 0:
                taps.append(x)
            else:
                r = pltpu.roll(x, shift=(-sft) % P, axis=1)   # out[q] = x[q+sft]
                taps.append(r * mask_ref[t])                  # kill out-of-frame reads
            t += 1
    xg = _bf(jnp.concatenate(taps, axis=0))                   # (9*cin, B*HW)
    return jnp.dot(w_ref[...], xg, preferred_element_type=jnp.float32) + b_ref[...]


def _conv_gf(h, w_ref, g_ref, b_ref, B):
    """Gather-first conv (use when cin <= cout): 9 gather dots with batch on
    the M axis, K-stacked, then ONE (cout, 9*cin) channel-mix dot (batch on N)."""
    cin = w_ref.shape[1] // 9
    pin = g_ref.shape[1]
    h_stk = _stack_batch(_bf(h), B, pin)                      # (B*cin, pin) bf16
    taps = []
    for t in range(9):
        xg = _gdot(h_stk, g_ref[t])                           # (B*cin, pout) f32
        taps.append(_unstack_batch(xg, B, cin))               # (cin, B*pout)
    xg_all = _bf(jnp.concatenate(taps, axis=0))               # (9*cin, B*pout)
    return jnp.dot(w_ref[...], xg_all, preferred_element_type=jnp.float32) + b_ref[...]


def _conv_mf(h, w_ref, g_ref, b_ref, B):
    """Mix-first conv (use when cout < cin): ONE K-stacked (9*cout, cin)
    channel-mix dot (batch on N), then 9 gather dots with batch on M."""
    cout = w_ref.shape[0] // 9
    pin = g_ref.shape[1]
    zs = _bf(jnp.dot(w_ref[...], _bf(h),
                     preferred_element_type=jnp.float32))     # (9*cout, B*pin)
    acc = None
    for t in range(9):
        z_stk = _stack_batch(zs[t * cout:(t + 1) * cout, :], B, pin)  # (B*cout, pin)
        part = _gdot(z_stk, g_ref[t])                                 # (B*cout, pout)
        acc = part if acc is None else acc + part
    return _unstack_batch(acc, B, cout) + b_ref[...]                  # (cout, B*pout)


# ---------------------------------------------------------------------------
# The single fused kernel: encoder -> latent bank -> decoder
# ---------------------------------------------------------------------------
def _fused_kernel(*refs, B, W_img, step, bank):
    it = iter(refs)
    x_ref, gen_ref, mask_ref = next(it), next(it), next(it)
    enc_w = [next(it) for _ in range(5)]
    enc_b = [next(it) for _ in range(5)]
    enc_g = [next(it) for _ in range(4)]
    tc_w, tc_b = next(it), next(it)
    lb_in_w, lb_in_b = next(it), next(it)
    lb_w, lb_b = next(it), next(it)
    film_w, film_b = next(it), next(it)
    dec_w = [next(it) for _ in range(4)]
    dec_b = [next(it) for _ in range(4)]
    dec_g = [next(it) for _ in range(4)]
    out_ref = next(it)

    # ----- encoder: 5 convs (+lrelu) + to_code -------------------------------
    h = _lrelu(_conv_roll(x_ref[...], enc_w[0], enc_b[0], mask_ref, W_img))
    feats = []
    for i in range(1, 5):
        h = _lrelu(_conv_gf(h, enc_w[i], enc_g[i - 1], enc_b[i], B))
        feats.append(h)
    f2, f3, f4, f5 = feats                                    # f5: (32, B)

    codes = (jnp.dot(tc_w[...], _bf(f5), preferred_element_type=jnp.float32)
             + tc_b[...])                                     # (code_dim, B)

    # ----- latent bank MLP + all FiLM projections ----------------------------
    z = jnp.concatenate(
        [gen_ref[...], codes if bank else jnp.zeros_like(codes)], axis=0)
    hb = _lrelu(jnp.dot(lb_in_w[...], _bf(z),
                        preferred_element_type=jnp.float32) + lb_in_b[...])
    for k in range(step):
        hb = _lrelu(jnp.dot(lb_w[k], _bf(hb),
                            preferred_element_type=jnp.float32) + lb_b[k])
    st = (jnp.dot(film_w[...], _bf(hb), preferred_element_type=jnp.float32)
          + film_b[...])                                      # (224, B)

    # ----- decoder: 4x (FiLM -> 2x up + conv3x3 -> skip add -> lrelu) --------
    skips = [f4, f3, f2, None]
    y, off = f5, 0
    for i in range(4):
        g = dec_g[i]
        pin = g.shape[1]
        cin = dec_w[i].shape[1] // 9 if _DEC_GF[i] else dec_w[i].shape[1]
        s = _expand_cols(st[off:off + cin, :], pin, B)
        tsh = _expand_cols(st[off + cin:off + 2 * cin, :], pin, B)
        off += 2 * cin
        ym = _lrelu(y * (1.0 + s) + tsh)                      # FiLM + lrelu
        conv = _conv_gf if _DEC_GF[i] else _conv_mf
        acc = conv(ym, dec_w[i], g, dec_b[i], B)              # up+pad+conv fused
        if skips[i] is not None:
            acc = _lrelu(_lrelu(acc) + skips[i])              # conv act + skip act
        y = acc
    out_ref[...] = y.astype(out_ref.dtype)                    # (C_out, B*HW) lane-dense


# ---------------------------------------------------------------------------
# Constant 0/1 gather matrices / masks (numpy, built once)
# ---------------------------------------------------------------------------
def _conv_gather(H, W, stride):
    Ho = (H + 2 - 3) // stride + 1
    Wo = (W + 2 - 3) // stride + 1
    G = np.zeros((9, H * W, Ho * Wo), np.float32)
    for dy in range(3):
        for dx in range(3):
            t = dy * 3 + dx
            for i in range(Ho):
                yy = i * stride + dy - 1
                if not (0 <= yy < H):
                    continue
                for j in range(Wo):
                    xx = j * stride + dx - 1
                    if 0 <= xx < W:
                        G[t, yy * W + xx, i * Wo + j] = 1.0
    return G, Ho, Wo


def _upconv_gather(h, w):
    """(9, h*w, 4*h*w): fuses 2x nearest upsample + 3x3 conv (pad=1)."""
    Ho, Wo = 2 * h, 2 * w
    G = np.zeros((9, h * w, Ho * Wo), np.float32)
    for dy in range(3):
        for dx in range(3):
            t = dy * 3 + dx
            for i in range(Ho):
                yy = i + dy - 1
                if not (0 <= yy < Ho):
                    continue
                for j in range(Wo):
                    xx = j + dx - 1
                    if 0 <= xx < Wo:
                        G[t, (yy // 2) * w + (xx // 2), i * Wo + j] = 1.0
    return G


def _l1_masks(H, W):
    """(9, 1, H*W) validity mask per tap for the roll-based stride-1 conv."""
    m = np.zeros((9, 1, H * W), np.float32)
    t = 0
    for dy in (-1, 0, 1):
        for dx in (-1, 0, 1):
            for i in range(H):
                for j in range(W):
                    if 0 <= i + dy < H and 0 <= j + dx < W:
                        m[t, 0, i * W + j] = 1.0
            t += 1
    return m


# ---------------------------------------------------------------------------
# Parameters (built once in their final kernel layouts)
# ---------------------------------------------------------------------------
def init_params(key, in_ch=4, code_dim=32, step=6, H=16, W=16):
    enc_ch = [in_ch, 8, 16, 32, 32, 32]
    strides = [1, 2, 2, 2, 2]
    keys = jax.random.split(key, 64)
    ki = iter(range(64))

    def conv_w_gf(k, cin, cout):      # (cout, 9*cin): gather-first channel mix
        w = jax.random.normal(k, (9, cout, cin), jnp.float32) / np.sqrt(9 * cin)
        return jnp.transpose(w, (1, 0, 2)).reshape(cout, 9 * cin).astype(jnp.bfloat16)

    def conv_w_mf(k, cin, cout):      # (9*cout, cin): mix-first channel mix
        w = jax.random.normal(k, (9, cout, cin), jnp.float32) / np.sqrt(9 * cin)
        return w.reshape(9 * cout, cin).astype(jnp.bfloat16)

    def lin_w(k, cin, cout):
        return (jax.random.normal(k, (cout, cin), jnp.float32)
                / np.sqrt(cin)).astype(jnp.bfloat16)

    p = {"enc_w": [], "enc_b": [], "enc_g": []}
    h, w = H, W
    for i in range(5):
        cin, cout = enc_ch[i], enc_ch[i + 1]
        p["enc_w"].append(conv_w_gf(keys[next(ki)], cin, cout))
        p["enc_b"].append(jnp.zeros((cout, 1), jnp.float32))
        if i == 0:
            p["l1_mask"] = jnp.asarray(_l1_masks(h, w), jnp.float32)  # stride 1
        else:
            G, h, w = _conv_gather(h, w, strides[i])
            p["enc_g"].append(jnp.asarray(G, jnp.bfloat16))
    p["tc_w"] = lin_w(keys[next(ki)], enc_ch[5], code_dim)
    p["tc_b"] = jnp.zeros((code_dim, 1), jnp.float32)

    # latent bank MLP (stacked so the whole MLP is static-indexed in-kernel)
    p["lb_in_w"] = lin_w(keys[next(ki)], 2 * code_dim, code_dim)
    p["lb_in_b"] = jnp.zeros((code_dim, 1), jnp.float32)
    p["lb_w"] = jnp.stack([lin_w(keys[next(ki)], code_dim, code_dim)
                           for _ in range(step)])
    p["lb_b"] = jnp.zeros((step, code_dim, 1), jnp.float32)

    # decoder: 4 stages; FiLM heads concatenated into one 224-wide projection
    dec_ch = [32, 32, 32, 16]
    dec_hw = [(1, 1), (2, 2), (4, 4), (8, 8)]
    film_ws, film_bs = [], []
    p["dec_w"], p["dec_b"], p["dec_g"] = [], [], []
    for i in range(4):
        cin = dec_ch[i]
        cout = dec_ch[i + 1] if i < 3 else in_ch
        film_ws.append(lin_w(keys[next(ki)], code_dim, 2 * cin))
        film_bs.append(jnp.zeros((2 * cin, 1), jnp.float32))
        wfn = conv_w_gf if _DEC_GF[i] else conv_w_mf
        p["dec_w"].append(wfn(keys[next(ki)], cin, cout))
        p["dec_b"].append(jnp.zeros((cout, 1), jnp.float32))
        p["dec_g"].append(jnp.asarray(_upconv_gather(*dec_hw[i]), jnp.bfloat16))
    p["film_w"] = jnp.concatenate(film_ws, axis=0)     # (224, code_dim) bf16
    p["film_b"] = jnp.concatenate(film_bs, axis=0)     # (224, 1) f32
    return p


# ---------------------------------------------------------------------------
# pallas_call wrapper == EDLatentBank.forward
# ---------------------------------------------------------------------------
def _full_spec(shape):
    zeros = (0,) * len(shape)
    return pl.BlockSpec(tuple(shape), lambda i, _z=zeros: _z)


@functools.partial(jax.jit, static_argnames=("step", "bank"))
def ed_latent_bank_forward(params, img_nchw, gen_key, step=6, bank=True):
    B, C, H, W = img_nchw.shape
    code_dim = params["tc_w"].shape[0]
    P = H * W

    # NCHW -> channel-major with batch folded onto the lane axis: (C, B*H*W)
    x_all = jnp.transpose(img_nchw.reshape(B, C, P).astype(jnp.float32),
                          (1, 0, 2)).reshape(C, B * P)
    # gen = torch.randn(B, code_dim)  (channel-major layout: (code_dim, B))
    gen = jax.random.normal(gen_key, (code_dim, B), jnp.float32)
    mask_b = jnp.tile(params["l1_mask"], (1, 1, B))            # (9, 1, B*HW)

    inputs = [x_all, gen, mask_b]
    inputs += list(params["enc_w"]) + list(params["enc_b"]) + list(params["enc_g"])
    inputs += [params["tc_w"], params["tc_b"],
               params["lb_in_w"], params["lb_in_b"],
               params["lb_w"], params["lb_b"],
               params["film_w"], params["film_b"]]
    inputs += list(params["dec_w"]) + list(params["dec_b"]) + list(params["dec_g"])

    out_ch = params["dec_b"][3].shape[0]
    out_shape = jax.ShapeDtypeStruct((out_ch, B * P), jnp.float32)

    out_all = pl.pallas_call(
        functools.partial(_fused_kernel, B=B, W_img=W, step=step, bank=bank),
        out_shape=out_shape,
        grid=(1,),
        in_specs=[_full_spec(a.shape) for a in inputs],
        out_specs=_full_spec(out_shape.shape),
        compiler_params=pltpu.CompilerParams(
            dimension_semantics=("arbitrary",)),
    )(*inputs)

    # (C, B*HW) -> NCHW
    return jnp.transpose(out_all.reshape(out_ch, B, P),
                         (1, 0, 2)).reshape(B, out_ch, H, W)


# ---------------------------------------------------------------------------
if __name__ == "__main__":
    B, C, H, W = 2, 4, 16, 16
    CODE_DIM, STEP = 32, 6

    root = jax.random.PRNGKey(0)
    k_img, k_gen, k_par = jax.random.split(root, 3)
    img = jax.random.normal(k_img, (B, C, H, W), jnp.float32)
    params = init_params(k_par, in_ch=C, code_dim=CODE_DIM, step=STEP, H=H, W=W)

    out = ed_latent_bank_forward(params, img, k_gen, step=STEP, bank=True)
    out = jax.block_until_ready(out)
    assert out.shape == (B, C, H, W), out.shape
    assert bool(jnp.all(jnp.isfinite(out)))
    print("KERNEL_OK")
</pallas_src>

<mosaic_0001>
module attributes {stable_mosaic.version = 11 : i64} {
  func.func @_fused_kernel(%arg0: i32, %arg1: memref<4x512xf32, #tpu.memory_space<vmem>>, %arg2: memref<32x2xf32, #tpu.memory_space<vmem>>, %arg3: memref<9x1x512xf32, #tpu.memory_space<vmem>>, %arg4: memref<8x36xbf16, #tpu.memory_space<vmem>>, %arg5: memref<16x72xbf16, #tpu.memory_space<vmem>>, %arg6: memref<32x144xbf16, #tpu.memory_space<vmem>>, %arg7: memref<32x288xbf16, #tpu.memory_space<vmem>>, %arg8: memref<32x288xbf16, #tpu.memory_space<vmem>>, %arg9: memref<8x1xf32, #tpu.memory_space<vmem>>, %arg10: memref<16x1xf32, #tpu.memory_space<vmem>>, %arg11: memref<32x1xf32, #tpu.memory_space<vmem>>, %arg12: memref<32x1xf32, #tpu.memory_space<vmem>>, %arg13: memref<32x1xf32, #tpu.memory_space<vmem>>, %arg14: memref<9x256x64xbf16, #tpu.memory_space<vmem>>, %arg15: memref<9x64x16xbf16, #tpu.memory_space<vmem>>, %arg16: memref<9x16x4xbf16, #tpu.memory_space<vmem>>, %arg17: memref<9x4x1xbf16, #tpu.memory_space<vmem>>, %arg18: memref<32x32xbf16, #tpu.memory_space<vmem>>, %arg19: memref<32x1xf32, #tpu.memory_space<vmem>>, %arg20: memref<32x64xbf16, #tpu.memory_space<vmem>>, %arg21: memref<32x1xf32, #tpu.memory_space<vmem>>, %arg22: memref<6x32x32xbf16, #tpu.memory_space<vmem>>, %arg23: memref<6x32x1xf32, #tpu.memory_space<vmem>>, %arg24: memref<224x32xbf16, #tpu.memory_space<vmem>>, %arg25: memref<224x1xf32, #tpu.memory_space<vmem>>, %arg26: memref<32x288xbf16, #tpu.memory_space<vmem>>, %arg27: memref<32x288xbf16, #tpu.memory_space<vmem>>, %arg28: memref<144x32xbf16, #tpu.memory_space<vmem>>, %arg29: memref<36x16xbf16, #tpu.memory_space<vmem>>, %arg30: memref<32x1xf32, #tpu.memory_space<vmem>>, %arg31: memref<32x1xf32, #tpu.memory_space<vmem>>, %arg32: memref<16x1xf32, #tpu.memory_space<vmem>>, %arg33: memref<4x1xf32, #tpu.memory_space<vmem>>, %arg34: memref<9x1x4xbf16, #tpu.memory_space<vmem>>, %arg35: memref<9x4x16xbf16, #tpu.memory_space<vmem>>, %arg36: memref<9x16x64xbf16, #tpu.memory_space<vmem>>, %arg37: memref<9x64x256xbf16, #tpu.memory_space<vmem>>, %arg38: memref<4x512xf32, #tpu.memory_space<vmem>>) attributes {dimension_semantics = [#tpu.dimension_semantics<arbitrary>], iteration_bounds = array<i64: 1>, scalar_prefetch = 0 : i64, scratch_operands = 0 : i64, tpu.core_type = #tpu.core_type<tc>, window_params = [{pipeline_mode = #tpu.pipeline_mode<synchronous>, transform_indices = @transform_0, window_bounds = array<i64: 4, 512>}, {pipeline_mode = #tpu.pipeline_mode<synchronous>, transform_indices = @transform_1, window_bounds = array<i64: 32, 2>}, {pipeline_mode = #tpu.pipeline_mode<synchronous>, transform_indices = @transform_2, window_bounds = array<i64: 9, 1, 512>}, {pipeline_mode = #tpu.pipeline_mode<synchronous>, transform_indices = @transform_3, window_bounds = array<i64: 8, 36>}, {pipeline_mode = #tpu.pipeline_mode<synchronous>, transform_indices = @transform_4, window_bounds = array<i64: 16, 72>}, {pipeline_mode = #tpu.pipeline_mode<synchronous>, transform_indices = @transform_5, window_bounds = array<i64: 32, 144>}, {pipeline_mode = #tpu.pipeline_mode<synchronous>, transform_indices = @transform_6, window_bounds = array<i64: 32, 288>}, {pipeline_mode = #tpu.pipeline_mode<synchronous>, transform_indices = @transform_7, window_bounds = array<i64: 32, 288>}, {pipeline_mode = #tpu.pipeline_mode<synchronous>, transform_indices = @transform_8, window_bounds = array<i64: 8, 1>}, {pipeline_mode = #tpu.pipeline_mode<synchronous>, transform_indices = @transform_9, window_bounds = array<i64: 16, 1>}, {pipeline_mode = #tpu.pipeline_mode<synchronous>, transform_indices = @transform_10, window_bounds = array<i64: 32, 1>}, {pipeline_mode = #tpu.pipeline_mode<synchronous>, transform_indices = @transform_11, window_bounds = array<i64: 32, 1>}, {pipeline_mode = #tpu.pipeline_mode<synchronous>, transform_indices = @transform_12, window_bounds = array<i64: 32, 1>}, {pipeline_mode = #tpu.pipeline_mode<synchronous>, transform_indices = @transform_13, window_bounds = array<i64: 9, 256, 64>}, {pipeline_mode = #tpu.pipeline_mode<synchronous>, transform_indices = @transform_14, window_bounds = array<i64: 9, 64, 16>}, {pipeline_mode = #tpu.pipeline_mode<synchronous>, transform_indices = @transform_15, window_bounds = array<i64: 9, 16, 4>}, {pipeline_mode = #tpu.pipeline_mode<synchronous>, transform_indices = @transform_16, window_bounds = array<i64: 9, 4, 1>}, {pipeline_mode = #tpu.pipeline_mode<synchronous>, transform_indices = @transform_17, window_bounds = array<i64: 32, 32>}, {pipeline_mode = #tpu.pipeline_mode<synchronous>, transform_indices = @transform_18, window_bounds = array<i64: 32, 1>}, {pipeline_mode = #tpu.pipeline_mode<synchronous>, transform_indices = @transform_19, window_bounds = array<i64: 32, 64>}, {pipeline_mode = #tpu.pipeline_mode<synchronous>, transform_indices = @transform_20, window_bounds = array<i64: 32, 1>}, {pipeline_mode = #tpu.pipeline_mode<synchronous>, transform_indices = @transform_21, window_bounds = array<i64: 6, 32, 32>}, {pipeline_mode = #tpu.pipeline_mode<synchronous>, transform_indices = @transform_22, window_bounds = array<i64: 6, 32, 1>}, {pipeline_mode = #tpu.pipeline_mode<synchronous>, transform_indices = @transform_23, window_bounds = array<i64: 224, 32>}, {pipeline_mode = #tpu.pipeline_mode<synchronous>, transform_indices = @transform_24, window_bounds = array<i64: 224, 1>}, {pipeline_mode = #tpu.pipeline_mode<synchronous>, transform_indices = @transform_25, window_bounds = array<i64: 32, 288>}, {pipeline_mode = #tpu.pipeline_mode<synchronous>, transform_indices = @transform_26, window_bounds = array<i64: 32, 288>}, {pipeline_mode = #tpu.pipeline_mode<synchronous>, transform_indices = @transform_27, window_bounds = array<i64: 144, 32>}, {pipeline_mode = #tpu.pipeline_mode<synchronous>, transform_indices = @transform_28, window_bounds = array<i64: 36, 16>}, {pipeline_mode = #tpu.pipeline_mode<synchronous>, transform_indices = @transform_29, window_bounds = array<i64: 32, 1>}, {pipeline_mode = #tpu.pipeline_mode<synchronous>, transform_indices = @transform_30, window_bounds = array<i64: 32, 1>}, {pipeline_mode = #tpu.pipeline_mode<synchronous>, transform_indices = @transform_31, window_bounds = array<i64: 16, 1>}, {pipeline_mode = #tpu.pipeline_mode<synchronous>, transform_indices = @transform_32, window_bounds = array<i64: 4, 1>}, {pipeline_mode = #tpu.pipeline_mode<synchronous>, transform_indices = @transform_33, window_bounds = array<i64: 9, 1, 4>}, {pipeline_mode = #tpu.pipeline_mode<synchronous>, transform_indices = @transform_34, window_bounds = array<i64: 9, 4, 16>}, {pipeline_mode = #tpu.pipeline_mode<synchronous>, transform_indices = @transform_35, window_bounds = array<i64: 9, 16, 64>}, {pipeline_mode = #tpu.pipeline_mode<synchronous>, transform_indices = @transform_36, window_bounds = array<i64: 9, 64, 256>}, {pipeline_mode = #tpu.pipeline_mode<synchronous>, transform_indices = @transform_37, window_bounds = array<i64: 4, 512>}]} {
    %c0 = arith.constant 0 : index
    %c0_0 = arith.constant 0 : index
    %0 = vector.load %arg1[%c0, %c0_0] : memref<4x512xf32, #tpu.memory_space<vmem>>, vector<4x512xf32>
    %c17_i32 = arith.constant 17 : i32
    %1 = tpu.dynamic_rotate %0 by %c17_i32 dim 1 : vector<4x512xf32>, i32 -> vector<4x512xf32>
    %c0_1 = arith.constant 0 : index
    %c0_2 = arith.constant 0 : index
    %c0_3 = arith.constant 0 : index
    %2 = vector.load %arg3[%c0_1, %c0_2, %c0_3] : memref<9x1x512xf32, #tpu.memory_space<vmem>>, vector<1x1x512xf32>
    %3 = vector.shape_cast %2 : vector<1x1x512xf32> to vector<1x512xf32>
    %4 = vector.broadcast %3 : vector<1x512xf32> to vector<4x512xf32>
    %5 = arith.mulf %1, %4 : vector<4x512xf32>
    %c16_i32 = arith.constant 16 : i32
    %6 = tpu.dynamic_rotate %0 by %c16_i32 dim 1 : vector<4x512xf32>, i32 -> vector<4x512xf32>
    %c1 = arith.constant 1 : index
    %c0_4 = arith.constant 0 : index
    %c0_5 = arith.constant 0 : index
    %7 = vector.load %arg3[%c1, %c0_4, %c0_5] : memref<9x1x512xf32, #tpu.memory_space<vmem>>, vector<1x1x512xf32>
    %8 = vector.shape_cast %7 : vector<1x1x512xf32> to vector<1x512xf32>
    %9 = vector.broadcast %8 : vector<1x512xf32> to vector<4x512xf32>
    %10 = arith.mulf %6, %9 : vector<4x512xf32>
    %c15_i32 = arith.constant 15 : i32
    %11 = tpu.dynamic_rotate %0 by %c15_i32 dim 1 : vector<4x512xf32>, i32 -> vector<4x512xf32>
    %c2 = arith.constant 2 : index
    %c0_6 = arith.constant 0 : index
    %c0_7 = arith.constant 0 : index
    %12 = vector.load %arg3[%c2, %c0_6, %c0_7] : memref<9x1x512xf32, #tpu.memory_space<vmem>>, vector<1x1x512xf32>
    %13 = vector.shape_cast %12 : vector<1x1x512xf32> to vector<1x512xf32>
    %14 = vector.broadcast %13 : vector<1x512xf32> to vector<4x512xf32>
    %15 = arith.mulf %11, %14 : vector<4x512xf32>
    %c1_i32 = arith.constant 1 : i32
    %16 = tpu.dynamic_rotate %0 by %c1_i32 dim 1 : vector<4x512xf32>, i32 -> vector<4x512xf32>
    %c3 = arith.constant 3 : index
    %c0_8 = arith.constant 0 : index
    %c0_9 = arith.constant 0 : index
    %17 = vector.load %arg3[%c3, %c0_8, %c0_9] : memref<9x1x512xf32, #tpu.memory_space<vmem>>, vector<1x1x512xf32>
    %18 = vector.shape_cast %17 : vector<1x1x512xf32> to vector<1x512xf32>
    %19 = vector.broadcast %18 : vector<1x512xf32> to vector<4x512xf32>
    %20 = arith.mulf %16, %19 : vector<4x512xf32>
    %c511_i32 = arith.constant 511 : i32
    %21 = tpu.dynamic_rotate %0 by %c511_i32 dim 1 : vector<4x512xf32>, i32 -> vector<4x512xf32>
    %c5 = arith.constant 5 : index
    %c0_10 = arith.constant 0 : index
    %c0_11 = arith.constant 0 : index
    %22 = vector.load %arg3[%c5, %c0_10, %c0_11] : memref<9x1x512xf32, #tpu.memory_space<vmem>>, vector<1x1x512xf32>
    %23 = vector.shape_cast %22 : vector<1x1x512xf32> to vector<1x512xf32>
    %24 = vector.broadcast %23 : vector<1x512xf32> to vector<4x512xf32>
    %25 = arith.mulf %21, %24 : vector<4x512xf32>
    %c497_i32 = arith.constant 497 : i32
    %26 = tpu.dynamic_rotate %0 by %c497_i32 dim 1 : vector<4x512xf32>, i32 -> vector<4x512xf32>
    %c6 = arith.constant 6 : index
    %c0_12 = arith.constant 0 : index
    %c0_13 = arith.constant 0 : index
    %27 = vector.load %arg3[%c6, %c0_12, %c0_13] : memref<9x1x512xf32, #tpu.memory_space<vmem>>, vector<1x1x512xf32>
    %28 = vector.shape_cast %27 : vector<1x1x512xf32> to vector<1x512xf32>
    %29 = vector.broadcast %28 : vector<1x512xf32> to vector<4x512xf32>
    %30 = arith.mulf %26, %29 : vector<4x512xf32>
    %c496_i32 = arith.constant 496 : i32
    %31 = tpu.dynamic_rotate %0 by %c496_i32 dim 1 : vector<4x512xf32>, i32 -> vector<4x512xf32>
    %c7 = arith.constant 7 : index
    %c0_14 = arith.constant 0 : index
    %c0_15 = arith.constant 0 : index
    %32 = vector.load %arg3[%c7, %c0_14, %c0_15] : memref<9x1x512xf32, #tpu.memory_space<vmem>>, vector<1x1x512xf32>
    %33 = vector.shape_cast %32 : vector<1x1x512xf32> to vector<1x512xf32>
    %34 = vector.broadcast %33 : vector<1x512xf32> to vector<4x512xf32>
    %35 = arith.mulf %31, %34 : vector<4x512xf32>
    %c495_i32 = arith.constant 495 : i32
    %36 = tpu.dynamic_rotate %0 by %c495_i32 dim 1 : vector<4x512xf32>, i32 -> vector<4x512xf32>
    %c8 = arith.constant 8 : index
    %c0_16 = arith.constant 0 : index
    %c0_17 = arith.constant 0 : index
    %37 = vector.load %arg3[%c8, %c0_16, %c0_17] : memref<9x1x512xf32, #tpu.memory_space<vmem>>, vector<1x1x512xf32>
    %38 = vector.shape_cast %37 : vector<1x1x512xf32> to vector<1x512xf32>
    %39 = vector.broadcast %38 : vector<1x512xf32> to vector<4x512xf32>
    %40 = arith.mulf %36, %39 : vector<4x512xf32>
    %41 = tpu.concatenate %5, %10, %15, %20, %0, %25, %30, %35, %40 in 0 : vector<4x512xf32>, vector<4x512xf32>, vector<4x512xf32>, vector<4x512xf32>, vector<4x512xf32>, vector<4x512xf32>, vector<4x512xf32>, vector<4x512xf32>, vector<4x512xf32> -> vector<36x512xf32>
    %42 = arith.truncf %41 : vector<36x512xf32> to vector<36x512xbf16>
    %c0_18 = arith.constant 0 : index
    %c0_19 = arith.constant 0 : index
    %43 = vector.load %arg4[%c0_18, %c0_19] : memref<8x36xbf16, #tpu.memory_space<vmem>>, vector<8x36xbf16>
    %cst = arith.constant dense<0.000000e+00> : vector<8x512xf32>
    %44 = tpu.matmul %43, %42, %cst {dimension_numbers = #tpu.dot_dimension_numbers<[1], [0], [0], [1], [0, 0, 1, 1], [], []>} : vector<8x36xbf16>, vector<36x512xbf16>, vector<8x512xf32> -> vector<8x512xf32>
    %c0_20 = arith.constant 0 : index
    %c0_21 = arith.constant 0 : index
    %45 = vector.load %arg9[%c0_20, %c0_21] : memref<8x1xf32, #tpu.memory_space<vmem>>, vector<8x1xf32>
    %46 = vector.broadcast %45 : vector<8x1xf32> to vector<8x512xf32>
    %47 = arith.addf %44, %46 : vector<8x512xf32>
    %cst_22 = arith.constant 0.000000e+00 : f32
    %48 = vector.broadcast %cst_22 : f32 to vector<8x512xf32>
    %49 = arith.cmpf oge, %47, %48 : vector<8x512xf32>
    %cst_23 = arith.constant 2.000000e-01 : f32
    %50 = vector.broadcast %cst_23 : f32 to vector<8x512xf32>
    %51 = arith.mulf %50, %47 : vector<8x512xf32>
    %52 = arith.select %49, %47, %51 : vector<8x512xi1>, vector<8x512xf32>
    %53 = arith.truncf %52 : vector<8x512xf32> to vector<8x512xbf16>
    %54 = vector.extract_strided_slice %53 {offsets = [0, 0], sizes = [8, 256], strides = [1, 1]} : vector<8x512xbf16> to vector<8x256xbf16>
    %55 = vector.extract_strided_slice %53 {offsets = [0, 256], sizes = [8, 256], strides = [1, 1]} : vector<8x512xbf16> to vector<8x256xbf16>
    %56 = tpu.concatenate %54, %55 in 0 : vector<8x256xbf16>, vector<8x256xbf16> -> vector<16x256xbf16>
    %c0_24 = arith.constant 0 : index
    %c0_25 = arith.constant 0 : index
    %c0_26 = arith.constant 0 : index
    %57 = vector.load %arg14[%c0_24, %c0_25, %c0_26] : memref<9x256x64xbf16, #tpu.memory_space<vmem>>, vector<1x256x64xbf16>
    %58 = vector.shape_cast %57 : vector<1x256x64xbf16> to vector<256x64xbf16>
    %cst_27 = arith.constant dense<0.000000e+00> : vector<16x64xf32>
    %59 = tpu.matmul %56, %58, %cst_27 {dimension_numbers = #tpu.dot_dimension_numbers<[1], [0], [0], [1], [0, 0, 1, 1], [], []>} : vector<16x256xbf16>, vector<256x64xbf16>, vector<16x64xf32> -> vector<16x64xf32>
    %60 = vector.extract_strided_slice %59 {offsets = [0, 0], sizes = [8, 64], strides = [1, 1]} : vector<16x64xf32> to vector<8x64xf32>
    %61 = vector.extract_strided_slice %59 {offsets = [8, 0], sizes = [8, 64], strides = [1, 1]} : vector<16x64xf32> to vector<8x64xf32>
    %62 = tpu.concatenate %60, %61 in 1 : vector<8x64xf32>, vector<8x64xf32> -> vector<8x128xf32>
    %c1_28 = arith.constant 1 : index
    %c0_29 = arith.constant 0 : index
    %c0_30 = arith.constant 0 : index
    %63 = vector.load %arg14[%c1_28, %c0_29, %c0_30] : memref<9x256x64xbf16, #tpu.memory_space<vmem>>, vector<1x256x64xbf16>
    %64 = vector.shape_cast %63 : vector<1x256x64xbf16> to vector<256x64xbf16>
    %cst_31 = arith.constant dense<0.000000e+00> : vector<16x64xf32>
    %65 = tpu.matmul %56, %64, %cst_31 {dimension_numbers = #tpu.dot_dimension_numbers<[1], [0], [0], [1], [0, 0, 1, 1], [], []>} : vector<16x256xbf16>, vector<256x64xbf16>, vector<16x64xf32> -> vector<16x64xf32>
    %66 = vector.extract_strided_slice %65 {offsets = [0, 0], sizes = [8, 64], strides = [1, 1]} : vector<16x64xf32> to vector<8x64xf32>
    %67 = vector.extract_strided_slice %65 {offsets = [8, 0], sizes = [8, 64], strides = [1, 1]} : vector<16x64xf32> to vector<8x64xf32>
    %68 = tpu.concatenate %66, %67 in 1 : vector<8x64xf32>, vector<8x64xf32> -> vector<8x128xf32>
    %c2_32 = arith.constant 2 : index
    %c0_33 = arith.constant 0 : index
    %c0_34 = arith.constant 0 : index
    %69 = vector.load %arg14[%c2_32, %c0_33, %c0_34] : memref<9x256x64xbf16, #tpu.memory_space<vmem>>, vector<1x256x64xbf16>
    %70 = vector.shape_cast %69 : vector<1x256x64xbf16> to vector<256x64xbf16>
    %cst_35 = arith.constant dense<0.000000e+00> : vector<16x64xf32>
    %71 = tpu.matmul %56, %70, %cst_35 {dimension_numbers = #tpu.dot_dimension_numbers<[1], [0], [0], [1], [0, 0, 1, 1], [], []>} : vector<16x256xbf16>, vector<256x64xbf16>, vector<16x64xf32> -> vector<16x64xf32>
    %72 = vector.extract_strided_slice %71 {offsets = [0, 0], sizes = [8, 64], strides = [1, 1]} : vector<16x64xf32> to vector<8x64xf32>
    %73 = vector.extract_strided_slice %71 {offsets = [8, 0], sizes = [8, 64], strides = [1, 1]} : vector<16x64xf32> to vector<8x64xf32>
    %74 = tpu.concatenate %72, %73 in 1 : vector<8x64xf32>, vector<8x64xf32> -> vector<8x128xf32>
    %c3_36 = arith.constant 3 : index
    %c0_37 = arith.constant 0 : index
    %c0_38 = arith.constant 0 : index
    %75 = vector.load %arg14[%c3_36, %c0_37, %c0_38] : memref<9x256x64xbf16, #tpu.memory_space<vmem>>, vector<1x256x64xbf16>
    %76 = vector.shape_cast %75 : vector<1x256x64xbf16> to vector<256x64xbf16>
    %cst_39 = arith.constant dense<0.000000e+00> : vector<16x64xf32>
    %77 = tpu.matmul %56, %76, %cst_39 {dimension_numbers = #tpu.dot_dimension_numbers<[1], [0], [0], [1], [0, 0, 1, 1], [], []>} : vector<16x256xbf16>, vector<256x64xbf16>, vector<16x64xf32> -> vector<16x64xf32>
    %78 = vector.extract_strided_slice %77 {offsets = [0, 0], sizes = [8, 64], strides = [1, 1]} : vector<16x64xf32> to vector<8x64xf32>
    %79 = vector.extract_strided_slice %77 {offsets = [8, 0], sizes = [8, 64], strides = [1, 1]} : vector<16x64xf32> to vector<8x64xf32>
    %80 = tpu.concatenate %78, %79 in 1 : vector<8x64xf32>, vector<8x64xf32> -> vector<8x128xf32>
    %c4 = arith.constant 4 : index
    %c0_40 = arith.constant 0 : index
    %c0_41 = arith.constant 0 : index
    %81 = vector.load %arg14[%c4, %c0_40, %c0_41] : memref<9x256x64xbf16, #tpu.memory_space<vmem>>, vector<1x256x64xbf16>
    %82 = vector.shape_cast %81 : vector<1x256x64xbf16> to vector<256x64xbf16>
    %cst_42 = arith.constant dense<0.000000e+00> : vector<16x64xf32>
    %83 = tpu.matmul %56, %82, %cst_42 {dimension_numbers = #tpu.dot_dimension_numbers<[1], [0], [0], [1], [0, 0, 1, 1], [], []>} : vector<16x256xbf16>, vector<256x64xbf16>, vector<16x64xf32> -> vector<16x64xf32>
    %84 = vector.extract_strided_slice %83 {offsets = [0, 0], sizes = [8, 64], strides = [1, 1]} : vector<16x64xf32> to vector<8x64xf32>
    %85 = vector.extract_strided_slice %83 {offsets = [8, 0], sizes = [8, 64], strides = [1, 1]} : vector<16x64xf32> to vector<8x64xf32>
    %86 = tpu.concatenate %84, %85 in 1 : vector<8x64xf32>, vector<8x64xf32> -> vector<8x128xf32>
    %c5_43 = arith.constant 5 : index
    %c0_44 = arith.constant 0 : index
    %c0_45 = arith.constant 0 : index
    %87 = vector.load %arg14[%c5_43, %c0_44, %c0_45] : memref<9x256x64xbf16, #tpu.memory_space<vmem>>, vector<1x256x64xbf16>
    %88 = vector.shape_cast %87 : vector<1x256x64xbf16> to vector<256x64xbf16>
    %cst_46 = arith.constant dense<0.000000e+00> : vector<16x64xf32>
    %89 = tpu.matmul %56, %88, %cst_46 {dimension_numbers = #tpu.dot_dimension_numbers<[1], [0], [0], [1], [0, 0, 1, 1], [], []>} : vector<16x256xbf16>, vector<256x64xbf16>, vector<16x64xf32> -> vector<16x64xf32>
    %90 = vector.extract_strided_slice %89 {offsets = [0, 0], sizes = [8, 64], strides = [1, 1]} : vector<16x64xf32> to vector<8x64xf32>
    %91 = vector.extract_strided_slice %89 {offsets = [8, 0], sizes = [8, 64], strides = [1, 1]} : vector<16x64xf32> to vector<8x64xf32>
    %92 = tpu.concatenate %90, %91 in 1 : vector<8x64xf32>, vector<8x64xf32> -> vector<8x128xf32>
    %c6_47 = arith.constant 6 : index
    %c0_48 = arith.constant 0 : index
    %c0_49 = arith.constant 0 : index
    %93 = vector.load %arg14[%c6_47, %c0_48, %c0_49] : memref<9x256x64xbf16, #tpu.memory_space<vmem>>, vector<1x256x64xbf16>
    %94 = vector.shape_cast %93 : vector<1x256x64xbf16> to vector<256x64xbf16>
    %cst_50 = arith.constant dense<0.000000e+00> : vector<16x64xf32>
    %95 = tpu.matmul %56, %94, %cst_50 {dimension_numbers = #tpu.dot_dimension_numbers<[1], [0], [0], [1], [0, 0, 1, 1], [], []>} : vector<16x256xbf16>, vector<256x64xbf16>, vector<16x64xf32> -> vector<16x64xf32>
    %96 = vector.extract_strided_slice %95 {offsets = [0, 0], sizes = [8, 64], strides = [1, 1]} : vector<16x64xf32> to vector<8x64xf32>
    %97 = vector.extract_strided_slice %95 {offsets = [8, 0], sizes = [8, 64], strides = [1, 1]} : vector<16x64xf32> to vector<8x64xf32>
    %98 = tpu.concatenate %96, %97 in 1 : vector<8x64xf32>, vector<8x64xf32> -> vector<8x128xf32>
    %c7_51 = arith.constant 7 : index
    %c0_52 = arith.constant 0 : index
    %c0_53 = arith.constant 0 : index
    %99 = vector.load %arg14[%c7_51, %c0_52, %c0_53] : memref<9x256x64xbf16, #tpu.memory_space<vmem>>, vector<1x256x64xbf16>
    %100 = vector.shape_cast %99 : vector<1x256x64xbf16> to vector<256x64xbf16>
    %cst_54 = arith.constant dense<0.000000e+00> : vector<16x64xf32>
    %101 = tpu.matmul %56, %100, %cst_54 {dimension_numbers = #tpu.dot_dimension_numbers<[1], [0], [0], [1], [0, 0, 1, 1], [], []>} : vector<16x256xbf16>, vector<256x64xbf16>, vector<16x64xf32> -> vector<16x64xf32>
    %102 = vector.extract_strided_slice %101 {offsets = [0, 0], sizes = [8, 64], strides = [1, 1]} : vector<16x64xf32> to vector<8x64xf32>
    %103 = vector.extract_strided_slice %101 {offsets = [8, 0], sizes = [8, 64], strides = [1, 1]} : vector<16x64xf32> to vector<8x64xf32>
    %104 = tpu.concatenate %102, %103 in 1 : vector<8x64xf32>, vector<8x64xf32> -> vector<8x128xf32>
    %c8_55 = arith.constant 8 : index
    %c0_56 = arith.constant 0 : index
    %c0_57 = arith.constant 0 : index
    %105 = vector.load %arg14[%c8_55, %c0_56, %c0_57] : memref<9x256x64xbf16, #tpu.memory_space<vmem>>, vector<1x256x64xbf16>
    %106 = vector.shape_cast %105 : vector<1x256x64xbf16> to vector<256x64xbf16>
    %cst_58 = arith.constant dense<0.000000e+00> : vector<16x64xf32>
    %107 = tpu.matmul %56, %106, %cst_58 {dimension_numbers = #tpu.dot_dimension_numbers<[1], [0], [0], [1], [0, 0, 1, 1], [], []>} : vector<16x256xbf16>, vector<256x64xbf16>, vector<16x64xf32> -> vector<16x64xf32>
    %108 = vector.extract_strided_slice %107 {offsets = [0, 0], sizes = [8, 64], strides = [1, 1]} : vector<16x64xf32> to vector<8x64xf32>
    %109 = vector.extract_strided_slice %107 {offsets = [8, 0], sizes = [8, 64], strides = [1, 1]} : vector<16x64xf32> to vector<8x64xf32>
    %110 = tpu.concatenate %108, %109 in 1 : vector<8x64xf32>, vector<8x64xf32> -> vector<8x128xf32>
    %111 = tpu.concatenate %62, %68, %74, %80, %86, %92, %98, %104, %110 in 0 : vector<8x128xf32>, vector<8x128xf32>, vector<8x128xf32>, vector<8x128xf32>, vector<8x128xf32>, vector<8x128xf32>, vector<8x128xf32>, vector<8x128xf32>, vector<8x128xf32> -> vector<72x128xf32>
    %112 = arith.truncf %111 : vector<72x128xf32> to vector<72x128xbf16>
    %c0_59 = arith.constant 0 : index
    %c0_60 = arith.constant 0 : index
    %113 = vector.load %arg5[%c0_59, %c0_60] : memref<16x72xbf16, #tpu.memory_space<vmem>>, vector<16x72xbf16>
    %cst_61 = arith.constant dense<0.000000e+00> : vector<16x128xf32>
    %114 = tpu.matmul %113, %112, %cst_61 {dimension_numbers = #tpu.dot_dimension_numbers<[1], [0], [0], [1], [0, 0, 1, 1], [], []>} : vector<16x72xbf16>, vector<72x128xbf16>, vector<16x128xf32> -> vector<16x128xf32>
    %c0_62 = arith.constant 0 : index
    %c0_63 = arith.constant 0 : index
    %115 = vector.load %arg10[%c0_62, %c0_63] : memref<16x1xf32, #tpu.memory_space<vmem>>, vector<16x1xf32>
    %116 = vector.broadcast %115 : vector<16x1xf32> to vector<16x128xf32>
    %117 = arith.addf %114, %116 : vector<16x128xf32>
    %cst_64 = arith.constant 0.000000e+00 : f32
    %118 = vector.broadcast %cst_64 : f32 to vector<16x128xf32>
    %119 = arith.cmpf oge, %117, %118 : vector<16x128xf32>
    %cst_65 = arith.constant 2.000000e-01 : f32
    %120 = vector.broadcast %cst_65 : f32 to vector<16x128xf32>
    %121 = arith.mulf %120, %117 : vector<16x128xf32>
    %122 = arith.select %119, %117, %121 : vector<16x128xi1>, vector<16x128xf32>
    %123 = arith.truncf %122 : vector<16x128xf32> to vector<16x128xbf16>
    %124 = vector.extract_strided_slice %123 {offsets = [0, 0], sizes = [16, 64], strides = [1, 1]} : vector<16x128xbf16> to vector<16x64xbf16>
    %125 = vector.extract_strided_slice %123 {offsets = [0, 64], sizes = [16, 64], strides = [1, 1]} : vector<16x128xbf16> to vector<16x64xbf16>
    %126 = tpu.concatenate %124, %125 in 0 : vector<16x64xbf16>, vector<16x64xbf16> -> vector<32x64xbf16>
    %c0_66 = arith.constant 0 : index
    %c0_67 = arith.constant 0 : index
    %c0_68 = arith.constant 0 : index
    %127 = vector.load %arg15[%c0_66, %c0_67, %c0_68] : memref<9x64x16xbf16, #tpu.memory_space<vmem>>, vector<1x64x16xbf16>
    %128 = vector.shape_cast %127 : vector<1x64x16xbf16> to vector<64x16xbf16>
    %cst_69 = arith.constant dense<0.000000e+00> : vector<32x16xf32>
    %129 = tpu.matmul %126, %128, %cst_69 {dimension_numbers = #tpu.dot_dimension_numbers<[1], [0], [0], [1], [0, 0, 1, 1], [], []>} : vector<32x64xbf16>, vector<64x16xbf16>, vector<32x16xf32> -> vector<32x16xf32>
    %130 = vector.extract_strided_slice %129 {offsets = [0, 0], sizes = [16, 16], strides = [1, 1]} : vector<32x16xf32> to vector<16x16xf32>
    %131 = vector.extract_strided_slice %129 {offsets = [16, 0], sizes = [16, 16], strides = [1, 1]} : vector<32x16xf32> to vector<16x16xf32>
    %132 = tpu.concatenate %130, %131 in 1 : vector<16x16xf32>, vector<16x16xf32> -> vector<16x32xf32>
    %c1_70 = arith.constant 1 : index
    %c0_71 = arith.constant 0 : index
    %c0_72 = arith.constant 0 : index
    %133 = vector.load %arg15[%c1_70, %c0_71, %c0_72] : memref<9x64x16xbf16, #tpu.memory_space<vmem>>, vector<1x64x16xbf16>
    %134 = vector.shape_cast %133 : vector<1x64x16xbf16> to vector<64x16xbf16>
    %cst_73 = arith.constant dense<0.000000e+00> : vector<32x16xf32>
    %135 = tpu.matmul %126, %134, %cst_73 {dimension_numbers = #tpu.dot_dimension_numbers<[1], [0], [0], [1], [0, 0, 1, 1], [], []>} : vector<32x64xbf16>, vector<64x16xbf16>, vector<32x16xf32> -> vector<32x16xf32>
    %136 = vector.extract_strided_slice %135 {offsets = [0, 0], sizes = [16, 16], strides = [1, 1]} : vector<32x16xf32> to vector<16x16xf32>
    %137 = vector.extract_strided_slice %135 {offsets = [16, 0], sizes = [16, 16], strides = [1, 1]} : vector<32x16xf32> to vector<16x16xf32>
    %138 = tpu.concatenate %136, %137 in 1 : vector<16x16xf32>, vector<16x16xf32> -> vector<16x32xf32>
    %c2_74 = arith.constant 2 : index
    %c0_75 = arith.constant 0 : index
    %c0_76 = arith.constant 0 : index
    %139 = vector.load %arg15[%c2_74, %c0_75, %c0_76] : memref<9x64x16xbf16, #tpu.memory_space<vmem>>, vector<1x64x16xbf16>
    %140 = vector.shape_cast %139 : vector<1x64x16xbf16> to vector<64x16xbf16>
    %cst_77 = arith.constant dense<0.000000e+00> : vector<32x16xf32>
    %141 = tpu.matmul %126, %140, %cst_77 {dimension_numbers = #tpu.dot_dimension_numbers<[1], [0], [0], [1], [0, 0, 1, 1], [], []>} : vector<32x64xbf16>, vector<64x16xbf16>, vector<32x16xf32> -> vector<32x16xf32>
    %142 = vector.extract_strided_slice %141 {offsets = [0, 0], sizes = [16, 16], strides = [1, 1]} : vector<32x16xf32> to vector<16x16xf32>
    %143 = vector.extract_strided_slice %141 {offsets = [16, 0], sizes = [16, 16], strides = [1, 1]} : vector<32x16xf32> to vector<16x16xf32>
    %144 = tpu.concatenate %142, %143 in 1 : vector<16x16xf32>, vector<16x16xf32> -> vector<16x32xf32>
    %c3_78 = arith.constant 3 : index
    %c0_79 = arith.constant 0 : index
    %c0_80 = arith.constant 0 : index
    %145 = vector.load %arg15[%c3_78, %c0_79, %c0_80] : memref<9x64x16xbf16, #tpu.memory_space<vmem>>, vector<1x64x16xbf16>
    %146 = vector.shape_cast %145 : vector<1x64x16xbf16> to vector<64x16xbf16>
    %cst_81 = arith.constant dense<0.000000e+00> : vector<32x16xf32>
    %147 = tpu.matmul %126, %146, %cst_81 {dimension_numbers = #tpu.dot_dimension_numbers<[1], [0], [0], [1], [0, 0, 1, 1], [], []>} : vector<32x64xbf16>, vector<64x16xbf16>, vector<32x16xf32> -> vector<32x16xf32>
    %148 = vector.extract_strided_slice %147 {offsets = [0, 0], sizes = [16, 16], strides = [1, 1]} : vector<32x16xf32> to vector<16x16xf32>
    %149 = vector.extract_strided_slice %147 {offsets = [16, 0], sizes = [16, 16], strides = [1, 1]} : vector<32x16xf32> to vector<16x16xf32>
    %150 = tpu.concatenate %148, %149 in 1 : vector<16x16xf32>, vector<16x16xf32> -> vector<16x32xf32>
    %c4_82 = arith.constant 4 : index
    %c0_83 = arith.constant 0 : index
    %c0_84 = arith.constant 0 : index
    %151 = vector.load %arg15[%c4_82, %c0_83, %c0_84] : memref<9x64x16xbf16, #tpu.memory_space<vmem>>, vector<1x64x16xbf16>
    %152 = vector.shape_cast %151 : vector<1x64x16xbf16> to vector<64x16xbf16>
    %cst_85 = arith.constant dense<0.000000e+00> : vector<32x16xf32>
    %153 = tpu.matmul %126, %152, %cst_85 {dimension_numbers = #tpu.dot_dimension_numbers<[1], [0], [0], [1], [0, 0, 1, 1], [], []>} : vector<32x64xbf16>, vector<64x16xbf16>, vector<32x16xf32> -> vector<32x16xf32>
    %154 = vector.extract_strided_slice %153 {offsets = [0, 0], sizes = [16, 16], strides = [1, 1]} : vector<32x16xf32> to vector<16x16xf32>
    %155 = vector.extract_strided_slice %153 {offsets = [16, 0], sizes = [16, 16], strides = [1, 1]} : vector<32x16xf32> to vector<16x16xf32>
    %156 = tpu.concatenate %154, %155 in 1 : vector<16x16xf32>, vector<16x16xf32> -> vector<16x32xf32>
    %c5_86 = arith.constant 5 : index
    %c0_87 = arith.constant 0 : index
    %c0_88 = arith.constant 0 : index
    %157 = vector.load %arg15[%c5_86, %c0_87, %c0_88] : memref<9x64x16xbf16, #tpu.memory_space<vmem>>, vector<1x64x16xbf16>
    %158 = vector.shape_cast %157 : vector<1x64x16xbf16> to vector<64x16xbf16>
    %cst_89 = arith.constant dense<0.000000e+00> : vector<32x16xf32>
    %159 = tpu.matmul %126, %158, %cst_89 {dimension_numbers = #tpu.dot_dimension_numbers<[1], [0], [0], [1], [0, 0, 1, 1], [], []>} : vector<32x64xbf16>, vector<64x16xbf16>, vector<32x16xf32> -> vector<32x16xf32>
    %160 = vector.extract_strided_slice %159 {offsets = [0, 0], sizes = [16, 16], strides = [1, 1]} : vector<32x16xf32> to vector<16x16xf32>
    %161 = vector.extract_strided_slice %159 {offsets = [16, 0], sizes = [16, 16], strides = [1, 1]} : vector<32x16xf32> to vector<16x16xf32>
    %162 = tpu.concatenate %160, %161 in 1 : vector<16x16xf32>, vector<16x16xf32> -> vector<16x32xf32>
    %c6_90 = arith.constant 6 : index
    %c0_91 = arith.constant 0 : index
    %c0_92 = arith.constant 0 : index
    %163 = vector.load %arg15[%c6_90, %c0_91, %c0_92] : memref<9x64x16xbf16, #tpu.memory_space<vmem>>, vector<1x64x16xbf16>
    %164 = vector.shape_cast %163 : vector<1x64x16xbf16> to vector<64x16xbf16>
    %cst_93 = arith.constant dense<0.000000e+00> : vector<32x16xf32>
    %165 = tpu.matmul %126, %164, %cst_93 {dimension_numbers = #tpu.dot_dimension_numbers<[1], [0], [0], [1], [0, 0, 1, 1], [], []>} : vector<32x64xbf16>, vector<64x16xbf16>, vector<32x16xf32> -> vector<32x16xf32>
    %166 = vector.extract_strided_slice %165 {offsets = [0, 0], sizes = [16, 16], strides = [1, 1]} : vector<32x16xf32> to vector<16x16xf32>
    %167 = vector.extract_strided_slice %165 {offsets = [16, 0], sizes = [16, 16], strides = [1, 1]} : vector<32x16xf32> to vector<16x16xf32>
    %168 = tpu.concatenate %166, %167 in 1 : vector<16x16xf32>, vector<16x16xf32> -> vector<16x32xf32>
    %c7_94 = arith.constant 7 : index
    %c0_95 = arith.constant 0 : index
    %c0_96 = arith.constant 0 : index
    %169 = vector.load %arg15[%c7_94, %c0_95, %c0_96] : memref<9x64x16xbf16, #tpu.memory_space<vmem>>, vector<1x64x16xbf16>
    %170 = vector.shape_cast %169 : vector<1x64x16xbf16> to vector<64x16xbf16>
    %cst_97 = arith.constant dense<0.000000e+00> : vector<32x16xf32>
    %171 = tpu.matmul %126, %170, %cst_97 {dimension_numbers = #tpu.dot_dimension_numbers<[1], [0], [0], [1], [0, 0, 1, 1], [], []>} : vector<32x64xbf16>, vector<64x16xbf16>, vector<32x16xf32> -> vector<32x16xf32>
    %172 = vector.extract_strided_slice %171 {offsets = [0, 0], sizes = [16, 16], strides = [1, 1]} : vector<32x16xf32> to vector<16x16xf32>
    %173 = vector.extract_strided_slice %171 {offsets = [16, 0], sizes = [16, 16], strides = [1, 1]} : vector<32x16xf32> to vector<16x16xf32>
    %174 = tpu.concatenate %172, %173 in 1 : vector<16x16xf32>, vector<16x16xf32> -> vector<16x32xf32>
    %c8_98 = arith.constant 8 : index
    %c0_99 = arith.constant 0 : index
    %c0_100 = arith.constant 0 : index
    %175 = vector.load %arg15[%c8_98, %c0_99, %c0_100] : memref<9x64x16xbf16, #tpu.memory_space<vmem>>, vector<1x64x16xbf16>
    %176 = vector.shape_cast %175 : vector<1x64x16xbf16> to vector<64x16xbf16>
    %cst_101 = arith.constant dense<0.000000e+00> : vector<32x16xf32>
    %177 = tpu.matmul %126, %176, %cst_101 {dimension_numbers = #tpu.dot_dimension_numbers<[1], [0], [0], [1], [0, 0, 1, 1], [], []>} : vector<32x64xbf16>, vector<64x16xbf16>, vector<32x16xf32> -> vector<32x16xf32>
    %178 = vector.extract_strided_slice %177 {offsets = [0, 0], sizes = [16, 16], strides = [1, 1]} : vector<32x16xf32> to vector<16x16xf32>
    %179 = vector.extract_strided_slice %177 {offsets = [16, 0], sizes = [16, 16], strides = [1, 1]} : vector<32x16xf32> to vector<16x16xf32>
    %180 = tpu.concatenate %178, %179 in 1 : vector<16x16xf32>, vector<16x16xf32> -> vector<16x32xf32>
    %181 = tpu.concatenate %132, %138, %144, %150, %156, %162, %168, %174, %180 in 0 : vector<16x32xf32>, vector<16x32xf32>, vector<16x32xf32>, vector<16x32xf32>, vector<16x32xf32>, vector<16x32xf32>, vector<16x32xf32>, vector<16x32xf32>, vector<16x32xf32> -> vector<144x32xf32>
    %182 = arith.truncf %181 : vector<144x32xf32> to vector<144x32xbf16>
    %c0_102 = arith.constant 0 : index
    %c0_103 = arith.constant 0 : index
    %183 = vector.load %arg6[%c0_102, %c0_103] : memref<32x144xbf16, #tpu.memory_space<vmem>>, vector<32x144xbf16>
    %cst_104 = arith.constant dense<0.000000e+00> : vector<32x32xf32>
    %184 = tpu.matmul %183, %182, %cst_104 {dimension_numbers = #tpu.dot_dimension_numbers<[1], [0], [0], [1], [0, 0, 1, 1], [], []>} : vector<32x144xbf16>, vector<144x32xbf16>, vector<32x32xf32> -> vector<32x32xf32>
    %c0_105 = arith.constant 0 : index
    %c0_106 = arith.constant 0 : index
    %185 = vector.load %arg11[%c0_105, %c0_106] : memref<32x1xf32, #tpu.memory_space<vmem>>, vector<32x1xf32>
    %186 = vector.broadcast %185 : vector<32x1xf32> to vector<32x32xf32>
    %187 = arith.addf %184, %186 : vector<32x32xf32>
    %cst_107 = arith.constant 0.000000e+00 : f32
    %188 = vector.broadcast %cst_107 : f32 to vector<32x32xf32>
    %189 = arith.cmpf oge, %187, %188 : vector<32x32xf32>
    %cst_108 = arith.constant 2.000000e-01 : f32
    %190 = vector.broadcast %cst_108 : f32 to vector<32x32xf32>
    %191 = arith.mulf %190, %187 : vector<32x32xf32>
    %192 = arith.select %189, %187, %191 : vector<32x32xi1>, vector<32x32xf32>
    %193 = arith.truncf %192 : vector<32x32xf32> to vector<32x32xbf16>
    %194 = vector.extract_strided_slice %193 {offsets = [0, 0], sizes = [32, 16], strides = [1, 1]} : vector<32x32xbf16> to vector<32x16xbf16>
    %195 = vector.extract_strided_slice %193 {offsets = [0, 16], sizes = [32, 16], strides = [1, 1]} : vector<32x32xbf16> to vector<32x16xbf16>
    %196 = tpu.concatenate %194, %195 in 0 : vector<32x16xbf16>, vector<32x16xbf16> -> vector<64x16xbf16>
    %c0_109 = arith.constant 0 : index
    %c0_110 = arith.constant 0 : index
    %c0_111 = arith.constant 0 : index
    %197 = vector.load %arg16[%c0_109, %c0_110, %c0_111] : memref<9x16x4xbf16, #tpu.memory_space<vmem>>, vector<1x16x4xbf16>
    %198 = vector.shape_cast %197 : vector<1x16x4xbf16> to vector<16x4xbf16>
    %cst_112 = arith.constant dense<0.000000e+00> : vector<64x4xf32>
    %199 = tpu.matmul %196, %198, %cst_112 {dimension_numbers = #tpu.dot_dimension_numbers<[1], [0], [0], [1], [0, 0, 1, 1], [], []>} : vector<64x16xbf16>, vector<16x4xbf16>, vector<64x4xf32> -> vector<64x4xf32>
    %200 = vector.extract_strided_slice %199 {offsets = [0, 0], sizes = [32, 4], strides = [1, 1]} : vector<64x4xf32> to vector<32x4xf32>
    %201 = vector.extract_strided_slice %199 {offsets = [32, 0], sizes = [32, 4], strides = [1, 1]} : vector<64x4xf32> to vector<32x4xf32>
    %202 = tpu.concatenate %200, %201 in 1 : vector<32x4xf32>, vector<32x4xf32> -> vector<32x8xf32>
    %c1_113 = arith.constant 1 : index
    %c0_114 = arith.constant 0 : index
    %c0_115 = arith.constant 0 : index
    %203 = vector.load %arg16[%c1_113, %c0_114, %c0_115] : memref<9x16x4xbf16, #tpu.memory_space<vmem>>, vector<1x16x4xbf16>
    %204 = vector.shape_cast %203 : vector<1x16x4xbf16> to vector<16x4xbf16>
    %cst_116 = arith.constant dense<0.000000e+00> : vector<64x4xf32>
    %205 = tpu.matmul %196, %204, %cst_116 {dimension_numbers = #tpu.dot_dimension_numbers<[1], [0], [0], [1], [0, 0, 1, 1], [], []>} : vector<64x16xbf16>, vector<16x4xbf16>, vector<64x4xf32> -> vector<64x4xf32>
    %206 = vector.extract_strided_slice %205 {offsets = [0, 0], sizes = [32, 4], strides = [1, 1]} : vector<64x4xf32> to vector<32x4xf32>
    %207 = vector.extract_strided_slice %205 {offsets = [32, 0], sizes = [32, 4], strides = [1, 1]} : vector<64x4xf32> to vector<32x4xf32>
    %208 = tpu.concatenate %206, %207 in 1 : vector<32x4xf32>, vector<32x4xf32> -> vector<32x8xf32>
    %c2_117 = arith.constant 2 : index
    %c0_118 = arith.constant 0 : index
    %c0_119 = arith.constant 0 : index
    %209 = vector.load %arg16[%c2_117, %c0_118, %c0_119] : memref<9x16x4xbf16, #tpu.memory_space<vmem>>, vector<1x16x4xbf16>
    %210 = vector.shape_cast %209 : vector<1x16x4xbf16> to vector<16x4xbf16>
    %cst_120 = arith.constant dense<0.000000e+00> : vector<64x4xf32>
    %211 = tpu.matmul %196, %210, %cst_120 {dimension_numbers = #tpu.dot_dimension_numbers<[1], [0], [0], [1], [0, 0, 1, 1], [], []>} : vector<64x16xbf16>, vector<16x4xbf16>, vector<64x4xf32> -> vector<64x4xf32>
    %212 = vector.extract_strided_slice %211 {offsets = [0, 0], sizes = [32, 4], strides = [1, 1]} : vector<64x4xf32> to vector<32x4xf32>
    %213 = vector.extract_strided_slice %211 {offsets = [32, 0], sizes = [32, 4], strides = [1, 1]} : vector<64x4xf32> to vector<32x4xf32>
    %214 = tpu.concatenate %212, %213 in 1 : vector<32x4xf32>, vector<32x4xf32> -> vector<32x8xf32>
    %c3_121 = arith.constant 3 : index
    %c0_122 = arith.constant 0 : index
    %c0_123 = arith.constant 0 : index
    %215 = vector.load %arg16[%c3_121, %c0_122, %c0_123] : memref<9x16x4xbf16, #tpu.memory_space<vmem>>, vector<1x16x4xbf16>
    %216 = vector.shape_cast %215 : vector<1x16x4xbf16> to vector<16x4xbf16>
    %cst_124 = arith.constant dense<0.000000e+00> : vector<64x4xf32>
    %217 = tpu.matmul %196, %216, %cst_124 {dimension_numbers = #tpu.dot_dimension_numbers<[1], [0], [0], [1], [0, 0, 1, 1], [], []>} : vector<64x16xbf16>, vector<16x4xbf16>, vector<64x4xf32> -> vector<64x4xf32>
    %218 = vector.extract_strided_slice %217 {offsets = [0, 0], sizes = [32, 4], strides = [1, 1]} : vector<64x4xf32> to vector<32x4xf32>
    %219 = vector.extract_strided_slice %217 {offsets = [32, 0], sizes = [32, 4], strides = [1, 1]} : vector<64x4xf32> to vector<32x4xf32>
    %220 = tpu.concatenate %218, %219 in 1 : vector<32x4xf32>, vector<32x4xf32> -> vector<32x8xf32>
    %c4_125 = arith.constant 4 : index
    %c0_126 = arith.constant 0 : index
    %c0_127 = arith.constant 0 : index
    %221 = vector.load %arg16[%c4_125, %c0_126, %c0_127] : memref<9x16x4xbf16, #tpu.memory_space<vmem>>, vector<1x16x4xbf16>
    %222 = vector.shape_cast %221 : vector<1x16x4xbf16> to vector<16x4xbf16>
    %cst_128 = arith.constant dense<0.000000e+00> : vector<64x4xf32>
    %223 = tpu.matmul %196, %222, %cst_128 {dimension_numbers = #tpu.dot_dimension_numbers<[1], [0], [0], [1], [0, 0, 1, 1], [], []>} : vector<64x16xbf16>, vector<16x4xbf16>, vector<64x4xf32> -> vector<64x4xf32>
    %224 = vector.extract_strided_slice %223 {offsets = [0, 0], sizes = [32, 4], strides = [1, 1]} : vector<64x4xf32> to vector<32x4xf32>
    %225 = vector.extract_strided_slice %223 {offsets = [32, 0], sizes = [32, 4], strides = [1, 1]} : vector<64x4xf32> to vector<32x4xf32>
    %226 = tpu.concatenate %224, %225 in 1 : vector<32x4xf32>, vector<32x4xf32> -> vector<32x8xf32>
    %c5_129 = arith.constant 5 : index
    %c0_130 = arith.constant 0 : index
    %c0_131 = arith.constant 0 : index
    %227 = vector.load %arg16[%c5_129, %c0_130, %c0_131] : memref<9x16x4xbf16, #tpu.memory_space<vmem>>, vector<1x16x4xbf16>
    %228 = vector.shape_cast %227 : vector<1x16x4xbf16> to vector<16x4xbf16>
    %cst_132 = arith.constant dense<0.000000e+00> : vector<64x4xf32>
    %229 = tpu.matmul %196, %228, %cst_132 {dimension_numbers = #tpu.dot_dimension_numbers<[1], [0], [0], [1], [0, 0, 1, 1], [], []>} : vector<64x16xbf16>, vector<16x4xbf16>, vector<64x4xf32> -> vector<64x4xf32>
    %230 = vector.extract_strided_slice %229 {offsets = [0, 0], sizes = [32, 4], strides = [1, 1]} : vector<64x4xf32> to vector<32x4xf32>
    %231 = vector.extract_strided_slice %229 {offsets = [32, 0], sizes = [32, 4], strides = [1, 1]} : vector<64x4xf32> to vector<32x4xf32>
    %232 = tpu.concatenate %230, %231 in 1 : vector<32x4xf32>, vector<32x4xf32> -> vector<32x8xf32>
    %c6_133 = arith.constant 6 : index
    %c0_134 = arith.constant 0 : index
    %c0_135 = arith.constant 0 : index
    %233 = vector.load %arg16[%c6_133, %c0_134, %c0_135] : memref<9x16x4xbf16, #tpu.memory_space<vmem>>, vector<1x16x4xbf16>
    %234 = vector.shape_cast %233 : vector<1x16x4xbf16> to vector<16x4xbf16>
    %cst_136 = arith.constant dense<0.000000e+00> : vector<64x4xf32>
    %235 = tpu.matmul %196, %234, %cst_136 {dimension_numbers = #tpu.dot_dimension_numbers<[1], [0], [0], [1], [0, 0, 1, 1], [], []>} : vector<64x16xbf16>, vector<16x4xbf16>, vector<64x4xf32> -> vector<64x4xf32>
    %236 = vector.extract_strided_slice %235 {offsets = [0, 0], sizes = [32, 4], strides = [1, 1]} : vector<64x4xf32> to vector<32x4xf32>
    %237 = vector.extract_strided_slice %235 {offsets = [32, 0], sizes = [32, 4], strides = [1, 1]} : vector<64x4xf32> to vector<32x4xf32>
    %238 = tpu.concatenate %236, %237 in 1 : vector<32x4xf32>, vector<32x4xf32> -> vector<32x8xf32>
    %c7_137 = arith.constant 7 : index
    %c0_138 = arith.constant 0 : index
    %c0_139 = arith.constant 0 : index
    %239 = vector.load %arg16[%c7_137, %c0_138, %c0_139] : memref<9x16x4xbf16, #tpu.memory_space<vmem>>, vector<1x16x4xbf16>
    %240 = vector.shape_cast %239 : vector<1x16x4xbf16> to vector<16x4xbf16>
    %cst_140 = arith.constant dense<0.000000e+00> : vector<64x4xf32>
    %241 = tpu.matmul %196, %240, %cst_140 {dimension_numbers = #tpu.dot_dimension_numbers<[1], [0], [0], [1], [0, 0, 1, 1], [], []>} : vector<64x16xbf16>, vector<16x4xbf16>, vector<64x4xf32> -> vector<64x4xf32>
    %242 = vector.extract_strided_slice %241 {offsets = [0, 0], sizes = [32, 4], strides = [1, 1]} : vector<64x4xf32> to vector<32x4xf32>
    %243 = vector.extract_strided_slice %241 {offsets = [32, 0], sizes = [32, 4], strides = [1, 1]} : vector<64x4xf32> to vector<32x4xf32>
    %244 = tpu.concatenate %242, %243 in 1 : vector<32x4xf32>, vector<32x4xf32> -> vector<32x8xf32>
    %c8_141 = arith.constant 8 : index
    %c0_142 = arith.constant 0 : index
    %c0_143 = arith.constant 0 : index
    %245 = vector.load %arg16[%c8_141, %c0_142, %c0_143] : memref<9x16x4xbf16, #tpu.memory_space<vmem>>, vector<1x16x4xbf16>
    %246 = vector.shape_cast %245 : vector<1x16x4xbf16> to vector<16x4xbf16>
    %cst_144 = arith.constant dense<0.000000e+00> : vector<64x4xf32>
    %247 = tpu.matmul %196, %246, %cst_144 {dimension_numbers = #tpu.dot_dimension_numbers<[1], [0], [0], [1], [0, 0, 1, 1], [], []>} : vector<64x16xbf16>, vector<16x4xbf16>, vector<64x4xf32> -> vector<64x4xf32>
    %248 = vector.extract_strided_slice %247 {offsets = [0, 0], sizes = [32, 4], strides = [1, 1]} : vector<64x4xf32> to vector<32x4xf32>
    %249 = vector.extract_strided_slice %247 {offsets = [32, 0], sizes = [32, 4], strides = [1, 1]} : vector<64x4xf32> to vector<32x4xf32>
    %250 = tpu.concatenate %248, %249 in 1 : vector<32x4xf32>, vector<32x4xf32> -> vector<32x8xf32>
    %251 = tpu.concatenate %202, %208, %214, %220, %226, %232, %238, %244, %250 in 0 : vector<32x8xf32>, vector<32x8xf32>, vector<32x8xf32>, vector<32x8xf32>, vector<32x8xf32>, vector<32x8xf32>, vector<32x8xf32>, vector<32x8xf32>, vector<32x8xf32> -> vector<288x8xf32>
    %252 = arith.truncf %251 : vector<288x8xf32> to vector<288x8xbf16>
    %c0_145 = arith.constant 0 : index
    %c0_146 = arith.constant 0 : index
    %253 = vector.load %arg7[%c0_145, %c0_146] : memref<32x288xbf16, #tpu.memory_space<vmem>>, vector<32x288xbf16>
    %cst_147 = arith.constant dense<0.000000e+00> : vector<32x8xf32>
    %254 = tpu.matmul %253, %252, %cst_147 {dimension_numbers = #tpu.dot_dimension_numbers<[1], [0], [0], [1], [0, 0, 1, 1], [], []>} : vector<32x288xbf16>, vector<288x8xbf16>, vector<32x8xf32> -> vector<32x8xf32>
    %c0_148 = arith.constant 0 : index
    %c0_149 = arith.constant 0 : index
    %255 = vector.load %arg12[%c0_148, %c0_149] : memref<32x1xf32, #tpu.memory_space<vmem>>, vector<32x1xf32>
    %256 = vector.broadcast %255 : vector<32x1xf32> to vector<32x8xf32>
    %257 = arith.addf %254, %256 : vector<32x8xf32>
    %cst_150 = arith.constant 0.000000e+00 : f32
    %258 = vector.broadcast %cst_150 : f32 to vector<32x8xf32>
    %259 = arith.cmpf oge, %257, %258 : vector<32x8xf32>
    %cst_151 = arith.constant 2.000000e-01 : f32
    %260 = vector.broadcast %cst_151 : f32 to vector<32x8xf32>
    %261 = arith.mulf %260, %257 : vector<32x8xf32>
    %262 = arith.select %259, %257, %261 : vector<32x8xi1>, vector<32x8xf32>
    %263 = arith.truncf %262 : vector<32x8xf32> to vector<32x8xbf16>
    %264 = vector.extract_strided_slice %263 {offsets = [0, 0], sizes = [32, 4], strides = [1, 1]} : vector<32x8xbf16> to vector<32x4xbf16>
    %265 = vector.extract_strided_slice %263 {offsets = [0, 4], sizes = [32, 4], strides = [1, 1]} : vector<32x8xbf16> to vector<32x4xbf16>
    %266 = tpu.concatenate %264, %265 in 0 : vector<32x4xbf16>, vector<32x4xbf16> -> vector<64x4xbf16>
    %c0_152 = arith.constant 0 : index
    %c0_153 = arith.constant 0 : index
    %c0_154 = arith.constant 0 : index
    %267 = vector.load %arg17[%c0_152, %c0_153, %c0_154] : memref<9x4x1xbf16, #tpu.memory_space<vmem>>, vector<1x4x1xbf16>
    %268 = vector.shape_cast %267 : vector<1x4x1xbf16> to vector<4x1xbf16>
    %cst_155 = arith.constant dense<0.000000e+00> : vector<64x1xf32>
    %269 = tpu.matmul %266, %268, %cst_155 {dimension_numbers = #tpu.dot_dimension_numbers<[1], [0], [0], [1], [0, 0, 1, 1], [], []>} : vector<64x4xbf16>, vector<4x1xbf16>, vector<64x1xf32> -> vector<64x1xf32>
    %270 = vector.extract_strided_slice %269 {offsets = [0, 0], sizes = [32, 1], strides = [1, 1]} : vector<64x1xf32> to vector<32x1xf32>
    %271 = vector.extract_strided_slice %269 {offsets = [32, 0], sizes = [32, 1], strides = [1, 1]} : vector<64x1xf32> to vector<32x1xf32>
    %272 = tpu.concatenate %270, %271 in 1 : vector<32x1xf32>, vector<32x1xf32> -> vector<32x2xf32>
    %c1_156 = arith.constant 1 : index
    %c0_157 = arith.constant 0 : index
    %c0_158 = arith.constant 0 : index
    %273 = vector.load %arg17[%c1_156, %c0_157, %c0_158] : memref<9x4x1xbf16, #tpu.memory_space<vmem>>, vector<1x4x1xbf16>
    %274 = vector.shape_cast %273 : vector<1x4x1xbf16> to vector<4x1xbf16>
    %cst_159 = arith.constant dense<0.000000e+00> : vector<64x1xf32>
    %275 = tpu.matmul %266, %274, %cst_159 {dimension_numbers = #tpu.dot_dimension_numbers<[1], [0], [0], [1], [0, 0, 1, 1], [], []>} : vector<64x4xbf16>, vector<4x1xbf16>, vector<64x1xf32> -> vector<64x1xf32>
    %276 = vector.extract_strided_slice %275 {offsets = [0, 0], sizes = [32, 1], strides = [1, 1]} : vector<64x1xf32> to vector<32x1xf32>
    %277 = vector.extract_strided_slice %275 {offsets = [32, 0], sizes = [32, 1], strides = [1, 1]} : vector<64x1xf32> to vector<32x1xf32>
    %278 = tpu.concatenate %276, %277 in 1 : vector<32x1xf32>, vector<32x1xf32> -> vector<32x2xf32>
    %c2_160 = arith.constant 2 : index
    %c0_161 = arith.constant 0 : index
    %c0_162 = arith.constant 0 : index
    %279 = vector.load %arg17[%c2_160, %c0_161, %c0_162] : memref<9x4x1xbf16, #tpu.memory_space<vmem>>, vector<1x4x1xbf16>
    %280 = vector.shape_cast %279 : vector<1x4x1xbf16> to vector<4x1xbf16>
    %cst_163 = arith.constant dense<0.000000e+00> : vector<64x1xf32>
    %281 = tpu.matmul %266, %280, %cst_163 {dimension_numbers = #tpu.dot_dimension_numbers<[1], [0], [0], [1], [0, 0, 1, 1], [], []>} : vector<64x4xbf16>, vector<4x1xbf16>, vector<64x1xf32> -> vector<64x1xf32>
    %282 = vector.extract_strided_slice %281 {offsets = [0, 0], sizes = [32, 1], strides = [1, 1]} : vector<64x1xf32> to vector<32x1xf32>
    %283 = vector.extract_strided_slice %281 {offsets = [32, 0], sizes = [32, 1], strides = [1, 1]} : vector<64x1xf32> to vector<32x1xf32>
    %284 = tpu.concatenate %282, %283 in 1 : vector<32x1xf32>, vector<32x1xf32> -> vector<32x2xf32>
    %c3_164 = arith.constant 3 : index
    %c0_165 = arith.constant 0 : index
    %c0_166 = arith.constant 0 : index
    %285 = vector.load %arg17[%c3_164, %c0_165, %c0_166] : memref<9x4x1xbf16, #tpu.memory_space<vmem>>, vector<1x4x1xbf16>
    %286 = vector.shape_cast %285 : vector<1x4x1xbf16> to vector<4x1xbf16>
    %cst_167 = arith.constant dense<0.000000e+00> : vector<64x1xf32>
    %287 = tpu.matmul %266, %286, %cst_167 {dimension_numbers = #tpu.dot_dimension_numbers<[1], [0], [0], [1], [0, 0, 1, 1], [], []>} : vector<64x4xbf16>, vector<4x1xbf16>, vector<64x1xf32> -> vector<64x1xf32>
    %288 = vector.extract_strided_slice %287 {offsets = [0, 0], sizes = [32, 1], strides = [1, 1]} : vector<64x1xf32> to vector<32x1xf32>
    %289 = vector.extract_strided_slice %287 {offsets = [32, 0], sizes = [32, 1], strides = [1, 1]} : vector<64x1xf32> to vector<32x1xf32>
    %290 = tpu.concatenate %288, %289 in 1 : vector<32x1xf32>, vector<32x1xf32> -> vector<32x2xf32>
    %c4_168 = arith.constant 4 : index
    %c0_169 = arith.constant 0 : index
    %c0_170 = arith.constant 0 : index
    %291 = vector.load %arg17[%c4_168, %c0_169, %c0_170] : memref<9x4x1xbf16, #tpu.memory_space<vmem>>, vector<1x4x1xbf16>
    %292 = vector.shape_cast %291 : vector<1x4x1xbf16> to vector<4x1xbf16>
    %cst_171 = arith.constant dense<0.000000e+00> : vector<64x1xf32>
    %293 = tpu.matmul %266, %292, %cst_171 {dimension_numbers = #tpu.dot_dimension_numbers<[1], [0], [0], [1], [0, 0, 1, 1], [], []>} : vector<64x4xbf16>, vector<4x1xbf16>, vector<64x1xf32> -> vector<64x1xf32>
    %294 = vector.extract_strided_slice %293 {offsets = [0, 0], sizes = [32, 1], strides = [1, 1]} : vector<64x1xf32> to vector<32x1xf32>
    %295 = vector.extract_strided_slice %293 {offsets = [32, 0], sizes = [32, 1], strides = [1, 1]} : vector<64x1xf32> to vector<32x1xf32>
    %296 = tpu.concatenate %294, %295 in 1 : vector<32x1xf32>, vector<32x1xf32> -> vector<32x2xf32>
    %c5_172 = arith.constant 5 : index
    %c0_173 = arith.constant 0 : index
    %c0_174 = arith.constant 0 : index
    %297 = vector.load %arg17[%c5_172, %c0_173, %c0_174] : memref<9x4x1xbf16, #tpu.memory_space<vmem>>, vector<1x4x1xbf16>
    %298 = vector.shape_cast %297 : vector<1x4x1xbf16> to vector<4x1xbf16>
    %cst_175 = arith.constant dense<0.000000e+00> : vector<64x1xf32>
    %299 = tpu.matmul %266, %298, %cst_175 {dimension_numbers = #tpu.dot_dimension_numbers<[1], [0], [0], [1], [0, 0, 1, 1], [], []>} : vector<64x4xbf16>, vector<4x1xbf16>, vector<64x1xf32> -> vector<64x1xf32>
    %300 = vector.extract_strided_slice %299 {offsets = [0, 0], sizes = [32, 1], strides = [1, 1]} : vector<64x1xf32> to vector<32x1xf32>
    %301 = vector.extract_strided_slice %299 {offsets = [32, 0], sizes = [32, 1], strides = [1, 1]} : vector<64x1xf32> to vector<32x1xf32>
    %302 = tpu.concatenate %300, %301 in 1 : vector<32x1xf32>, vector<32x1xf32> -> vector<32x2xf32>
    %c6_176 = arith.constant 6 : index
    %c0_177 = arith.constant 0 : index
    %c0_178 = arith.constant 0 : index
    %303 = vector.load %arg17[%c6_176, %c0_177, %c0_178] : memref<9x4x1xbf16, #tpu.memory_space<vmem>>, vector<1x4x1xbf16>
    %304 = vector.shape_cast %303 : vector<1x4x1xbf16> to vector<4x1xbf16>
    %cst_179 = arith.constant dense<0.000000e+00> : vector<64x1xf32>
    %305 = tpu.matmul %266, %304, %cst_179 {dimension_numbers = #tpu.dot_dimension_numbers<[1], [0], [0], [1], [0, 0, 1, 1], [], []>} : vector<64x4xbf16>, vector<4x1xbf16>, vector<64x1xf32> -> vector<64x1xf32>
    %306 = vector.extract_strided_slice %305 {offsets = [0, 0], sizes = [32, 1], strides = [1, 1]} : vector<64x1xf32> to vector<32x1xf32>
    %307 = vector.extract_strided_slice %305 {offsets = [32, 0], sizes = [32, 1], strides = [1, 1]} : vector<64x1xf32> to vector<32x1xf32>
    %308 = tpu.concatenate %306, %307 in 1 : vector<32x1xf32>, vector<32x1xf32> -> vector<32x2xf32>
    %c7_180 = arith.constant 7 : index
    %c0_181 = arith.constant 0 : index
    %c0_182 = arith.constant 0 : index
    %309 = vector.load %arg17[%c7_180, %c0_181, %c0_182] : memref<9x4x1xbf16, #tpu.memory_space<vmem>>, vector<1x4x1xbf16>
    %310 = vector.shape_cast %309 : vector<1x4x1xbf16> to vector<4x1xbf16>
    %cst_183 = arith.constant dense<0.000000e+00> : vector<64x1xf32>
    %311 = tpu.matmul %266, %310, %cst_183 {dimension_numbers = #tpu.dot_dimension_numbers<[1], [0], [0], [1], [0, 0, 1, 1], [], []>} : vector<64x4xbf16>, vector<4x1xbf16>, vector<64x1xf32> -> vector<64x1xf32>
    %312 = vector.extract_strided_slice %311 {offsets = [0, 0], sizes = [32, 1], strides = [1, 1]} : vector<64x1xf32> to vector<32x1xf32>
    %313 = vector.extract_strided_slice %311 {offsets = [32, 0], sizes = [32, 1], strides = [1, 1]} : vector<64x1xf32> to vector<32x1xf32>
    %314 = tpu.concatenate %312, %313 in 1 : vector<32x1xf32>, vector<32x1xf32> -> vector<32x2xf32>
    %c8_184 = arith.constant 8 : index
    %c0_185 = arith.constant 0 : index
    %c0_186 = arith.constant 0 : index
    %315 = vector.load %arg17[%c8_184, %c0_185, %c0_186] : memref<9x4x1xbf16, #tpu.memory_space<vmem>>, vector<1x4x1xbf16>
    %316 = vector.shape_cast %315 : vector<1x4x1xbf16> to vector<4x1xbf16>
    %cst_187 = arith.constant dense<0.000000e+00> : vector<64x1xf32>
    %317 = tpu.matmul %266, %316, %cst_187 {dimension_numbers = #tpu.dot_dimension_numbers<[1], [0], [0], [1], [0, 0, 1, 1], [], []>} : vector<64x4xbf16>, vector<4x1xbf16>, vector<64x1xf32> -> vector<64x1xf32>
    %318 = vector.extract_strided_slice %317 {offsets = [0, 0], sizes = [32, 1], strides = [1, 1]} : vector<64x1xf32> to vector<32x1xf32>
    %319 = vector.extract_strided_slice %317 {offsets = [32, 0], sizes = [32, 1], strides = [1, 1]} : vector<64x1xf32> to vector<32x1xf32>
    %320 = tpu.concatenate %318, %319 in 1 : vector<32x1xf32>, vector<32x1xf32> -> vector<32x2xf32>
    %321 = tpu.concatenate %272, %278, %284, %290, %296, %302, %308, %314, %320 in 0 : vector<32x2xf32>, vector<32x2xf32>, vector<32x2xf32>, vector<32x2xf32>, vector<32x2xf32>, vector<32x2xf32>, vector<32x2xf32>, vector<32x2xf32>, vector<32x2xf32> -> vector<288x2xf32>
    %322 = arith.truncf %321 : vector<288x2xf32> to vector<288x2xbf16>
    %c0_188 = arith.constant 0 : index
    %c0_189 = arith.constant 0 : index
    %323 = vector.load %arg8[%c0_188, %c0_189] : memref<32x288xbf16, #tpu.memory_space<vmem>>, vector<32x288xbf16>
    %cst_190 = arith.constant dense<0.000000e+00> : vector<32x2xf32>
    %324 = tpu.matmul %323, %322, %cst_190 {dimension_numbers = #tpu.dot_dimension_numbers<[1], [0], [0], [1], [0, 0, 1, 1], [], []>} : vector<32x288xbf16>, vector<288x2xbf16>, vector<32x2xf32> -> vector<32x2xf32>
    %c0_191 = arith.constant 0 : index
    %c0_192 = arith.constant 0 : index
    %325 = vector.load %arg13[%c0_191, %c0_192] : memref<32x1xf32, #tpu.memory_space<vmem>>, vector<32x1xf32>
    %326 = vector.broadcast %325 : vector<32x1xf32> to vector<32x2xf32>
    %327 = arith.addf %324, %326 : vector<32x2xf32>
    %cst_193 = arith.constant 0.000000e+00 : f32
    %328 = vector.broadcast %cst_193 : f32 to vector<32x2xf32>
    %329 = arith.cmpf oge, %327, %328 : vector<32x2xf32>
    %cst_194 = arith.constant 2.000000e-01 : f32
    %330 = vector.broadcast %cst_194 : f32 to vector<32x2xf32>
    %331 = arith.mulf %330, %327 : vector<32x2xf32>
    %332 = arith.select %329, %327, %331 : vector<32x2xi1>, vector<32x2xf32>
    %c0_195 = arith.constant 0 : index
    %c0_196 = arith.constant 0 : index
    %333 = vector.load %arg18[%c0_195, %c0_196] : memref<32x32xbf16, #tpu.memory_space<vmem>>, vector<32x32xbf16>
    %334 = arith.truncf %332 : vector<32x2xf32> to vector<32x2xbf16>
    %cst_197 = arith.constant dense<0.000000e+00> : vector<32x2xf32>
    %335 = tpu.matmul %333, %334, %cst_197 {dimension_numbers = #tpu.dot_dimension_numbers<[1], [0], [0], [1], [0, 0, 1, 1], [], []>} : vector<32x32xbf16>, vector<32x2xbf16>, vector<32x2xf32> -> vector<32x2xf32>
    %c0_198 = arith.constant 0 : index
    %c0_199 = arith.constant 0 : index
    %336 = vector.load %arg19[%c0_198, %c0_199] : memref<32x1xf32, #tpu.memory_space<vmem>>, vector<32x1xf32>
    %337 = vector.broadcast %336 : vector<32x1xf32> to vector<32x2xf32>
    %338 = arith.addf %335, %337 : vector<32x2xf32>
    %c0_200 = arith.constant 0 : index
    %c0_201 = arith.constant 0 : index
    %339 = vector.load %arg2[%c0_200, %c0_201] : memref<32x2xf32, #tpu.memory_space<vmem>>, vector<32x2xf32>
    %340 = tpu.concatenate %339, %338 in 0 : vector<32x2xf32>, vector<32x2xf32> -> vector<64x2xf32>
    %c0_202 = arith.constant 0 : index
    %c0_203 = arith.constant 0 : index
    %341 = vector.load %arg20[%c0_202, %c0_203] : memref<32x64xbf16, #tpu.memory_space<vmem>>, vector<32x64xbf16>
    %342 = arith.truncf %340 : vector<64x2xf32> to vector<64x2xbf16>
    %cst_204 = arith.constant dense<0.000000e+00> : vector<32x2xf32>
    %343 = tpu.matmul %341, %342, %cst_204 {dimension_numbers = #tpu.dot_dimension_numbers<[1], [0], [0], [1], [0, 0, 1, 1], [], []>} : vector<32x64xbf16>, vector<64x2xbf16>, vector<32x2xf32> -> vector<32x2xf32>
    %c0_205 = arith.constant 0 : index
    %c0_206 = arith.constant 0 : index
    %344 = vector.load %arg21[%c0_205, %c0_206] : memref<32x1xf32, #tpu.memory_space<vmem>>, vector<32x1xf32>
    %345 = vector.broadcast %344 : vector<32x1xf32> to vector<32x2xf32>
    %346 = arith.addf %343, %345 : vector<32x2xf32>
    %cst_207 = arith.constant 0.000000e+00 : f32
    %347 = vector.broadcast %cst_207 : f32 to vector<32x2xf32>
    %348 = arith.cmpf oge, %346, %347 : vector<32x2xf32>
    %cst_208 = arith.constant 2.000000e-01 : f32
    %349 = vector.broadcast %cst_208 : f32 to vector<32x2xf32>
    %350 = arith.mulf %349, %346 : vector<32x2xf32>
    %351 = arith.select %348, %346, %350 : vector<32x2xi1>, vector<32x2xf32>
    %c0_209 = arith.constant 0 : index
    %c0_210 = arith.constant 0 : index
    %c0_211 = arith.constant 0 : index
    %352 = vector.load %arg22[%c0_209, %c0_210, %c0_211] : memref<6x32x32xbf16, #tpu.memory_space<vmem>>, vector<1x32x32xbf16>
    %353 = vector.shape_cast %352 : vector<1x32x32xbf16> to vector<32x32xbf16>
    %354 = arith.truncf %351 : vector<32x2xf32> to vector<32x2xbf16>
    %cst_212 = arith.constant dense<0.000000e+00> : vector<32x2xf32>
    %355 = tpu.matmul %353, %354, %cst_212 {dimension_numbers = #tpu.dot_dimension_numbers<[1], [0], [0], [1], [0, 0, 1, 1], [], []>} : vector<32x32xbf16>, vector<32x2xbf16>, vector<32x2xf32> -> vector<32x2xf32>
    %c0_213 = arith.constant 0 : index
    %c0_214 = arith.constant 0 : index
    %c0_215 = arith.constant 0 : index
    %356 = vector.load %arg23[%c0_213, %c0_214, %c0_215] : memref<6x32x1xf32, #tpu.memory_space<vmem>>, vector<1x32x1xf32>
    %357 = vector.shape_cast %356 : vector<1x32x1xf32> to vector<32x1xf32>
    %358 = vector.broadcast %357 : vector<32x1xf32> to vector<32x2xf32>
    %359 = arith.addf %355, %358 : vector<32x2xf32>
    %cst_216 = arith.constant 0.000000e+00 : f32
    %360 = vector.broadcast %cst_216 : f32 to vector<32x2xf32>
    %361 = arith.cmpf oge, %359, %360 : vector<32x2xf32>
    %cst_217 = arith.constant 2.000000e-01 : f32
    %362 = vector.broadcast %cst_217 : f32 to vector<32x2xf32>
    %363 = arith.mulf %362, %359 : vector<32x2xf32>
    %364 = arith.select %361, %359, %363 : vector<32x2xi1>, vector<32x2xf32>
    %c1_218 = arith.constant 1 : index
    %c0_219 = arith.constant 0 : index
    %c0_220 = arith.constant 0 : index
    %365 = vector.load %arg22[%c1_218, %c0_219, %c0_220] : memref<6x32x32xbf16, #tpu.memory_space<vmem>>, vector<1x32x32xbf16>
    %366 = vector.shape_cast %365 : vector<1x32x32xbf16> to vector<32x32xbf16>
    %367 = arith.truncf %364 : vector<32x2xf32> to vector<32x2xbf16>
    %cst_221 = arith.constant dense<0.000000e+00> : vector<32x2xf32>
    %368 = tpu.matmul %366, %367, %cst_221 {dimension_numbers = #tpu.dot_dimension_numbers<[1], [0], [0], [1], [0, 0, 1, 1], [], []>} : vector<32x32xbf16>, vector<32x2xbf16>, vector<32x2xf32> -> vector<32x2xf32>
    %c1_222 = arith.constant 1 : index
    %c0_223 = arith.constant 0 : index
    %c0_224 = arith.constant 0 : index
    %369 = vector.load %arg23[%c1_222, %c0_223, %c0_224] : memref<6x32x1xf32, #tpu.memory_space<vmem>>, vector<1x32x1xf32>
    %370 = vector.shape_cast %369 : vector<1x32x1xf32> to vector<32x1xf32>
    %371 = vector.broadcast %370 : vector<32x1xf32> to vector<32x2xf32>
    %372 = arith.addf %368, %371 : vector<32x2xf32>
    %cst_225 = arith.constant 0.000000e+00 : f32
    %373 = vector.broadcast %cst_225 : f32 to vector<32x2xf32>
    %374 = arith.cmpf oge, %372, %373 : vector<32x2xf32>
    %cst_226 = arith.constant 2.000000e-01 : f32
    %375 = vector.broadcast %cst_226 : f32 to vector<32x2xf32>
    %376 = arith.mulf %375, %372 : vector<32x2xf32>
    %377 = arith.select %374, %372, %376 : vector<32x2xi1>, vector<32x2xf32>
    %c2_227 = arith.constant 2 : index
    %c0_228 = arith.constant 0 : index
    %c0_229 = arith.constant 0 : index
    %378 = vector.load %arg22[%c2_227, %c0_228, %c0_229] : memref<6x32x32xbf16, #tpu.memory_space<vmem>>, vector<1x32x32xbf16>
    %379 = vector.shape_cast %378 : vector<1x32x32xbf16> to vector<32x32xbf16>
    %380 = arith.truncf %377 : vector<32x2xf32> to vector<32x2xbf16>
    %cst_230 = arith.constant dense<0.000000e+00> : vector<32x2xf32>
    %381 = tpu.matmul %379, %380, %cst_230 {dimension_numbers = #tpu.dot_dimension_numbers<[1], [0], [0], [1], [0, 0, 1, 1], [], []>} : vector<32x32xbf16>, vector<32x2xbf16>, vector<32x2xf32> -> vector<32x2xf32>
    %c2_231 = arith.constant 2 : index
    %c0_232 = arith.constant 0 : index
    %c0_233 = arith.constant 0 : index
    %382 = vector.load %arg23[%c2_231, %c0_232, %c0_233] : memref<6x32x1xf32, #tpu.memory_space<vmem>>, vector<1x32x1xf32>
    %383 = vector.shape_cast %382 : vector<1x32x1xf32> to vector<32x1xf32>
    %384 = vector.broadcast %383 : vector<32x1xf32> to vector<32x2xf32>
    %385 = arith.addf %381, %384 : vector<32x2xf32>
    %cst_234 = arith.constant 0.000000e+00 : f32
    %386 = vector.broadcast %cst_234 : f32 to vector<32x2xf32>
    %387 = arith.cmpf oge, %385, %386 : vector<32x2xf32>
    %cst_235 = arith.constant 2.000000e-01 : f32
    %388 = vector.broadcast %cst_235 : f32 to vector<32x2xf32>
    %389 = arith.mulf %388, %385 : vector<32x2xf32>
    %390 = arith.select %387, %385, %389 : vector<32x2xi1>, vector<32x2xf32>
    %c3_236 = arith.constant 3 : index
    %c0_237 = arith.constant 0 : index
    %c0_238 = arith.constant 0 : index
    %391 = vector.load %arg22[%c3_236, %c0_237, %c0_238] : memref<6x32x32xbf16, #tpu.memory_space<vmem>>, vector<1x32x32xbf16>
    %392 = vector.shape_cast %391 : vector<1x32x32xbf16> to vector<32x32xbf16>
    %393 = arith.truncf %390 : vector<32x2xf32> to vector<32x2xbf16>
    %cst_239 = arith.constant dense<0.000000e+00> : vector<32x2xf32>
    %394 = tpu.matmul %392, %393, %cst_239 {dimension_numbers = #tpu.dot_dimension_numbers<[1], [0], [0], [1], [0, 0, 1, 1], [], []>} : vector<32x32xbf16>, vector<32x2xbf16>, vector<32x2xf32> -> vector<32x2xf32>
    %c3_240 = arith.constant 3 : index
    %c0_241 = arith.constant 0 : index
    %c0_242 = arith.constant 0 : index
    %395 = vector.load %arg23[%c3_240, %c0_241, %c0_242] : memref<6x32x1xf32, #tpu.memory_space<vmem>>, vector<1x32x1xf32>
    %396 = vector.shape_cast %395 : vector<1x32x1xf32> to vector<32x1xf32>
    %397 = vector.broadcast %396 : vector<32x1xf32> to vector<32x2xf32>
    %398 = arith.addf %394, %397 : vector<32x2xf32>
    %cst_243 = arith.constant 0.000000e+00 : f32
    %399 = vector.broadcast %cst_243 : f32 to vector<32x2xf32>
    %400 = arith.cmpf oge, %398, %399 : vector<32x2xf32>
    %cst_244 = arith.constant 2.000000e-01 : f32
    %401 = vector.broadcast %cst_244 : f32 to vector<32x2xf32>
    %402 = arith.mulf %401, %398 : vector<32x2xf32>
    %403 = arith.select %400, %398, %402 : vector<32x2xi1>, vector<32x2xf32>
    %c4_245 = arith.constant 4 : index
    %c0_246 = arith.constant 0 : index
    %c0_247 = arith.constant 0 : index
    %404 = vector.load %arg22[%c4_245, %c0_246, %c0_247] : memref<6x32x32xbf16, #tpu.memory_space<vmem>>, vector<1x32x32xbf16>
    %405 = vector.shape_cast %404 : vector<1x32x32xbf16> to vector<32x32xbf16>
    %406 = arith.truncf %403 : vector<32x2xf32> to vector<32x2xbf16>
    %cst_248 = arith.constant dense<0.000000e+00> : vector<32x2xf32>
    %407 = tpu.matmul %405, %406, %cst_248 {dimension_numbers = #tpu.dot_dimension_numbers<[1], [0], [0], [1], [0, 0, 1, 1], [], []>} : vector<32x32xbf16>, vector<32x2xbf16>, vector<32x2xf32> -> vector<32x2xf32>
    %c4_249 = arith.constant 4 : index
    %c0_250 = arith.constant 0 : index
    %c0_251 = arith.constant 0 : index
    %408 = vector.load %arg23[%c4_249, %c0_250, %c0_251] : memref<6x32x1xf32, #tpu.memory_space<vmem>>, vector<1x32x1xf32>
    %409 = vector.shape_cast %408 : vector<1x32x1xf32> to vector<32x1xf32>
    %410 = vector.broadcast %409 : vector<32x1xf32> to vector<32x2xf32>
    %411 = arith.addf %407, %410 : vector<32x2xf32>
    %cst_252 = arith.constant 0.000000e+00 : f32
    %412 = vector.broadcast %cst_252 : f32 to vector<32x2xf32>
    %413 = arith.cmpf oge, %411, %412 : vector<32x2xf32>
    %cst_253 = arith.constant 2.000000e-01 : f32
    %414 = vector.broadcast %cst_253 : f32 to vector<32x2xf32>
    %415 = arith.mulf %414, %411 : vector<32x2xf32>
    %416 = arith.select %413, %411, %415 : vector<32x2xi1>, vector<32x2xf32>
    %c5_254 = arith.constant 5 : index
    %c0_255 = arith.constant 0 : index
    %c0_256 = arith.constant 0 : index
    %417 = vector.load %arg22[%c5_254, %c0_255, %c0_256] : memref<6x32x32xbf16, #tpu.memory_space<vmem>>, vector<1x32x32xbf16>
    %418 = vector.shape_cast %417 : vector<1x32x32xbf16> to vector<32x32xbf16>
    %419 = arith.truncf %416 : vector<32x2xf32> to vector<32x2xbf16>
    %cst_257 = arith.constant dense<0.000000e+00> : vector<32x2xf32>
    %420 = tpu.matmul %418, %419, %cst_257 {dimension_numbers = #tpu.dot_dimension_numbers<[1], [0], [0], [1], [0, 0, 1, 1], [], []>} : vector<32x32xbf16>, vector<32x2xbf16>, vector<32x2xf32> -> vector<32x2xf32>
    %c5_258 = arith.constant 5 : index
    %c0_259 = arith.constant 0 : index
    %c0_260 = arith.constant 0 : index
    %421 = vector.load %arg23[%c5_258, %c0_259, %c0_260] : memref<6x32x1xf32, #tpu.memory_space<vmem>>, vector<1x32x1xf32>
    %422 = vector.shape_cast %421 : vector<1x32x1xf32> to vector<32x1xf32>
    %423 = vector.broadcast %422 : vector<32x1xf32> to vector<32x2xf32>
    %424 = arith.addf %420, %423 : vector<32x2xf32>
    %cst_261 = arith.constant 0.000000e+00 : f32
    %425 = vector.broadcast %cst_261 : f32 to vector<32x2xf32>
    %426 = arith.cmpf oge, %424, %425 : vector<32x2xf32>
    %cst_262 = arith.constant 2.000000e-01 : f32
    %427 = vector.broadcast %cst_262 : f32 to vector<32x2xf32>
    %428 = arith.mulf %427, %424 : vector<32x2xf32>
    %429 = arith.select %426, %424, %428 : vector<32x2xi1>, vector<32x2xf32>
    %c0_263 = arith.constant 0 : index
    %c0_264 = arith.constant 0 : index
    %430 = vector.load %arg24[%c0_263, %c0_264] : memref<224x32xbf16, #tpu.memory_space<vmem>>, vector<224x32xbf16>
    %431 = arith.truncf %429 : vector<32x2xf32> to vector<32x2xbf16>
    %cst_265 = arith.constant dense<0.000000e+00> : vector<224x2xf32>
    %432 = tpu.matmul %430, %431, %cst_265 {dimension_numbers = #tpu.dot_dimension_numbers<[1], [0], [0], [1], [0, 0, 1, 1], [], []>} : vector<224x32xbf16>, vector<32x2xbf16>, vector<224x2xf32> -> vector<224x2xf32>
    %c0_266 = arith.constant 0 : index
    %c0_267 = arith.constant 0 : index
    %433 = vector.load %arg25[%c0_266, %c0_267] : memref<224x1xf32, #tpu.memory_space<vmem>>, vector<224x1xf32>
    %434 = vector.broadcast %433 : vector<224x1xf32> to vector<224x2xf32>
    %435 = arith.addf %432, %434 : vector<224x2xf32>
    %436 = vector.extract_strided_slice %435 {offsets = [0, 0], sizes = [32, 2], strides = [1, 1]} : vector<224x2xf32> to vector<32x2xf32>
    %437 = vector.extract_strided_slice %435 {offsets = [32, 0], sizes = [32, 2], strides = [1, 1]} : vector<224x2xf32> to vector<32x2xf32>
    %cst_268 = arith.constant 1.000000e+00 : f32
    %438 = vector.broadcast %cst_268 : f32 to vector<32x2xf32>
    %439 = arith.addf %438, %436 : vector<32x2xf32>
    %440 = arith.mulf %332, %439 : vector<32x2xf32>
    %441 = arith.addf %440, %437 : vector<32x2xf32>
    %cst_269 = arith.constant 0.000000e+00 : f32
    %442 = vector.broadcast %cst_269 : f32 to vector<32x2xf32>
    %443 = arith.cmpf oge, %441, %442 : vector<32x2xf32>
    %cst_270 = arith.constant 2.000000e-01 : f32
    %444 = vector.broadcast %cst_270 : f32 to vector<32x2xf32>
    %445 = arith.mulf %444, %441 : vector<32x2xf32>
    %446 = arith.select %443, %441, %445 : vector<32x2xi1>, vector<32x2xf32>
    %447 = arith.truncf %446 : vector<32x2xf32> to vector<32x2xbf16>
    %448 = vector.extract_strided_slice %447 {offsets = [0, 0], sizes = [32, 1], strides = [1, 1]} : vector<32x2xbf16> to vector<32x1xbf16>
    %449 = vector.extract_strided_slice %447 {offsets = [0, 1], sizes = [32, 1], strides = [1, 1]} : vector<32x2xbf16> to vector<32x1xbf16>
    %450 = tpu.concatenate %448, %449 in 0 : vector<32x1xbf16>, vector<32x1xbf16> -> vector<64x1xbf16>
    %c0_271 = arith.constant 0 : index
    %c0_272 = arith.constant 0 : index
    %c0_273 = arith.constant 0 : index
    %451 = vector.load %arg34[%c0_271, %c0_272, %c0_273] : memref<9x1x4xbf16, #tpu.memory_space<vmem>>, vector<1x1x4xbf16>
    %452 = vector.shape_cast %451 : vector<1x1x4xbf16> to vector<1x4xbf16>
    %453 = arith.extf %450 : vector<64x1xbf16> to vector<64x1xf32>
    %454 = arith.extf %452 : vector<1x4xbf16> to vector<1x4xf32>
    %455 = vector.broadcast %453 : vector<64x1xf32> to vector<64x4xf32>
    %456 = vector.broadcast %454 : vector<1x4xf32> to vector<64x4xf32>
    %457 = arith.mulf %455, %456 : vector<64x4xf32>
    %458 = vector.extract_strided_slice %457 {offsets = [0, 0], sizes = [32, 4], strides = [1, 1]} : vector<64x4xf32> to vector<32x4xf32>
    %459 = vector.extract_strided_slice %457 {offsets = [32, 0], sizes = [32, 4], strides = [1, 1]} : vector<64x4xf32> to vector<32x4xf32>
    %460 = tpu.concatenate %458, %459 in 1 : vector<32x4xf32>, vector<32x4xf32> -> vector<32x8xf32>
    %c1_274 = arith.constant 1 : index
    %c0_275 = arith.constant 0 : index
    %c0_276 = arith.constant 0 : index
    %461 = vector.load %arg34[%c1_274, %c0_275, %c0_276] : memref<9x1x4xbf16, #tpu.memory_space<vmem>>, vector<1x1x4xbf16>
    %462 = vector.shape_cast %461 : vector<1x1x4xbf16> to vector<1x4xbf16>
    %463 = arith.extf %450 : vector<64x1xbf16> to vector<64x1xf32>
    %464 = arith.extf %462 : vector<1x4xbf16> to vector<1x4xf32>
    %465 = vector.broadcast %463 : vector<64x1xf32> to vector<64x4xf32>
    %466 = vector.broadcast %464 : vector<1x4xf32> to vector<64x4xf32>
    %467 = arith.mulf %465, %466 : vector<64x4xf32>
    %468 = vector.extract_strided_slice %467 {offsets = [0, 0], sizes = [32, 4], strides = [1, 1]} : vector<64x4xf32> to vector<32x4xf32>
    %469 = vector.extract_strided_slice %467 {offsets = [32, 0], sizes = [32, 4], strides = [1, 1]} : vector<64x4xf32> to vector<32x4xf32>
    %470 = tpu.concatenate %468, %469 in 1 : vector<32x4xf32>, vector<32x4xf32> -> vector<32x8xf32>
    %c2_277 = arith.constant 2 : index
    %c0_278 = arith.constant 0 : index
    %c0_279 = arith.constant 0 : index
    %471 = vector.load %arg34[%c2_277, %c0_278, %c0_279] : memref<9x1x4xbf16, #tpu.memory_space<vmem>>, vector<1x1x4xbf16>
    %472 = vector.shape_cast %471 : vector<1x1x4xbf16> to vector<1x4xbf16>
    %473 = arith.extf %450 : vector<64x1xbf16> to vector<64x1xf32>
    %474 = arith.extf %472 : vector<1x4xbf16> to vector<1x4xf32>
    %475 = vector.broadcast %473 : vector<64x1xf32> to vector<64x4xf32>
    %476 = vector.broadcast %474 : vector<1x4xf32> to vector<64x4xf32>
    %477 = arith.mulf %475, %476 : vector<64x4xf32>
    %478 = vector.extract_strided_slice %477 {offsets = [0, 0], sizes = [32, 4], strides = [1, 1]} : vector<64x4xf32> to vector<32x4xf32>
    %479 = vector.extract_strided_slice %477 {offsets = [32, 0], sizes = [32, 4], strides = [1, 1]} : vector<64x4xf32> to vector<32x4xf32>
    %480 = tpu.concatenate %478, %479 in 1 : vector<32x4xf32>, vector<32x4xf32> -> vector<32x8xf32>
    %c3_280 = arith.constant 3 : index
    %c0_281 = arith.constant 0 : index
    %c0_282 = arith.constant 0 : index
    %481 = vector.load %arg34[%c3_280, %c0_281, %c0_282] : memref<9x1x4xbf16, #tpu.memory_space<vmem>>, vector<1x1x4xbf16>
    %482 = vector.shape_cast %481 : vector<1x1x4xbf16> to vector<1x4xbf16>
    %483 = arith.extf %450 : vector<64x1xbf16> to vector<64x1xf32>
    %484 = arith.extf %482 : vector<1x4xbf16> to vector<1x4xf32>
    %485 = vector.broadcast %483 : vector<64x1xf32> to vector<64x4xf32>
    %486 = vector.broadcast %484 : vector<1x4xf32> to vector<64x4xf32>
    %487 = arith.mulf %485, %486 : vector<64x4xf32>
    %488 = vector.extract_strided_slice %487 {offsets = [0, 0], sizes = [32, 4], strides = [1, 1]} : vector<64x4xf32> to vector<32x4xf32>
    %489 = vector.extract_strided_slice %487 {offsets = [32, 0], sizes = [32, 4], strides = [1, 1]} : vector<64x4xf32> to vector<32x4xf32>
    %490 = tpu.concatenate %488, %489 in 1 : vector<32x4xf32>, vector<32x4xf32> -> vector<32x8xf32>
    %c4_283 = arith.constant 4 : index
    %c0_284 = arith.constant 0 : index
    %c0_285 = arith.constant 0 : index
    %491 = vector.load %arg34[%c4_283, %c0_284, %c0_285] : memref<9x1x4xbf16, #tpu.memory_space<vmem>>, vector<1x1x4xbf16>
    %492 = vector.shape_cast %491 : vector<1x1x4xbf16> to vector<1x4xbf16>
    %493 = arith.extf %450 : vector<64x1xbf16> to vector<64x1xf32>
    %494 = arith.extf %492 : vector<1x4xbf16> to vector<1x4xf32>
    %495 = vector.broadcast %493 : vector<64x1xf32> to vector<64x4xf32>
    %496 = vector.broadcast %494 : vector<1x4xf32> to vector<64x4xf32>
    %497 = arith.mulf %495, %496 : vector<64x4xf32>
    %498 = vector.extract_strided_slice %497 {offsets = [0, 0], sizes = [32, 4], strides = [1, 1]} : vector<64x4xf32> to vector<32x4xf32>
    %499 = vector.extract_strided_slice %497 {offsets = [32, 0], sizes = [32, 4], strides = [1, 1]} : vector<64x4xf32> to vector<32x4xf32>
    %500 = tpu.concatenate %498, %499 in 1 : vector<32x4xf32>, vector<32x4xf32> -> vector<32x8xf32>
    %c5_286 = arith.constant 5 : index
    %c0_287 = arith.constant 0 : index
    %c0_288 = arith.constant 0 : index
    %501 = vector.load %arg34[%c5_286, %c0_287, %c0_288] : memref<9x1x4xbf16, #tpu.memory_space<vmem>>, vector<1x1x4xbf16>
    %502 = vector.shape_cast %501 : vector<1x1x4xbf16> to vector<1x4xbf16>
    %503 = arith.extf %450 : vector<64x1xbf16> to vector<64x1xf32>
    %504 = arith.extf %502 : vector<1x4xbf16> to vector<1x4xf32>
    %505 = vector.broadcast %503 : vector<64x1xf32> to vector<64x4xf32>
    %506 = vector.broadcast %504 : vector<1x4xf32> to vector<64x4xf32>
    %507 = arith.mulf %505, %506 : vector<64x4xf32>
    %508 = vector.extract_strided_slice %507 {offsets = [0, 0], sizes = [32, 4], strides = [1, 1]} : vector<64x4xf32> to vector<32x4xf32>
    %509 = vector.extract_strided_slice %507 {offsets = [32, 0], sizes = [32, 4], strides = [1, 1]} : vector<64x4xf32> to vector<32x4xf32>
    %510 = tpu.concatenate %508, %509 in 1 : vector<32x4xf32>, vector<32x4xf32> -> vector<32x8xf32>
    %c6_289 = arith.constant 6 : index
    %c0_290 = arith.constant 0 : index
    %c0_291 = arith.constant 0 : index
    %511 = vector.load %arg34[%c6_289, %c0_290, %c0_291] : memref<9x1x4xbf16, #tpu.memory_space<vmem>>, vector<1x1x4xbf16>
    %512 = vector.shape_cast %511 : vector<1x1x4xbf16> to vector<1x4xbf16>
    %513 = arith.extf %450 : vector<64x1xbf16> to vector<64x1xf32>
    %514 = arith.extf %512 : vector<1x4xbf16> to vector<1x4xf32>
    %515 = vector.broadcast %513 : vector<64x1xf32> to vector<64x4xf32>
    %516 = vector.broadcast %514 : vector<1x4xf32> to vector<64x4xf32>
    %517 = arith.mulf %515, %516 : vector<64x4xf32>
    %518 = vector.extract_strided_slice %517 {offsets = [0, 0], sizes = [32, 4], strides = [1, 1]} : vector<64x4xf32> to vector<32x4xf32>
    %519 = vector.extract_strided_slice %517 {offsets = [32, 0], sizes = [32, 4], strides = [1, 1]} : vector<64x4xf32> to vector<32x4xf32>
    %520 = tpu.concatenate %518, %519 in 1 : vector<32x4xf32>, vector<32x4xf32> -> vector<32x8xf32>
    %c7_292 = arith.constant 7 : index
    %c0_293 = arith.constant 0 : index
    %c0_294 = arith.constant 0 : index
    %521 = vector.load %arg34[%c7_292, %c0_293, %c0_294] : memref<9x1x4xbf16, #tpu.memory_space<vmem>>, vector<1x1x4xbf16>
    %522 = vector.shape_cast %521 : vector<1x1x4xbf16> to vector<1x4xbf16>
    %523 = arith.extf %450 : vector<64x1xbf16> to vector<64x1xf32>
    %524 = arith.extf %522 : vector<1x4xbf16> to vector<1x4xf32>
    %525 = vector.broadcast %523 : vector<64x1xf32> to vector<64x4xf32>
    %526 = vector.broadcast %524 : vector<1x4xf32> to vector<64x4xf32>
    %527 = arith.mulf %525, %526 : vector<64x4xf32>
    %528 = vector.extract_strided_slice %527 {offsets = [0, 0], sizes = [32, 4], strides = [1, 1]} : vector<64x4xf32> to vector<32x4xf32>
    %529 = vector.extract_strided_slice %527 {offsets = [32, 0], sizes = [32, 4], strides = [1, 1]} : vector<64x4xf32> to vector<32x4xf32>
    %530 = tpu.concatenate %528, %529 in 1 : vector<32x4xf32>, vector<32x4xf32> -> vector<32x8xf32>
    %c8_295 = arith.constant 8 : index
    %c0_296 = arith.constant 0 : index
    %c0_297 = arith.constant 0 : index
    %531 = vector.load %arg34[%c8_295, %c0_296, %c0_297] : memref<9x1x4xbf16, #tpu.memory_space<vmem>>, vector<1x1x4xbf16>
    %532 = vector.shape_cast %531 : vector<1x1x4xbf16> to vector<1x4xbf16>
    %533 = arith.extf %450 : vector<64x1xbf16> to vector<64x1xf32>
    %534 = arith.extf %532 : vector<1x4xbf16> to vector<1x4xf32>
    %535 = vector.broadcast %533 : vector<64x1xf32> to vector<64x4xf32>
    %536 = vector.broadcast %534 : vector<1x4xf32> to vector<64x4xf32>
    %537 = arith.mulf %535, %536 : vector<64x4xf32>
    %538 = vector.extract_strided_slice %537 {offsets = [0, 0], sizes = [32, 4], strides = [1, 1]} : vector<64x4xf32> to vector<32x4xf32>
    %539 = vector.extract_strided_slice %537 {offsets = [32, 0], sizes = [32, 4], strides = [1, 1]} : vector<64x4xf32> to vector<32x4xf32>
    %540 = tpu.concatenate %538, %539 in 1 : vector<32x4xf32>, vector<32x4xf32> -> vector<32x8xf32>
    %541 = tpu.concatenate %460, %470, %480, %490, %500, %510, %520, %530, %540 in 0 : vector<32x8xf32>, vector<32x8xf32>, vector<32x8xf32>, vector<32x8xf32>, vector<32x8xf32>, vector<32x8xf32>, vector<32x8xf32>, vector<32x8xf32>, vector<32x8xf32> -> vector<288x8xf32>
    %542 = arith.truncf %541 : vector<288x8xf32> to vector<288x8xbf16>
    %c0_298 = arith.constant 0 : index
    %c0_299 = arith.constant 0 : index
    %543 = vector.load %arg26[%c0_298, %c0_299] : memref<32x288xbf16, #tpu.memory_space<vmem>>, vector<32x288xbf16>
    %cst_300 = arith.constant dense<0.000000e+00> : vector<32x8xf32>
    %544 = tpu.matmul %543, %542, %cst_300 {dimension_numbers = #tpu.dot_dimension_numbers<[1], [0], [0], [1], [0, 0, 1, 1], [], []>} : vector<32x288xbf16>, vector<288x8xbf16>, vector<32x8xf32> -> vector<32x8xf32>
    %c0_301 = arith.constant 0 : index
    %c0_302 = arith.constant 0 : index
    %545 = vector.load %arg30[%c0_301, %c0_302] : memref<32x1xf32, #tpu.memory_space<vmem>>, vector<32x1xf32>
    %546 = vector.broadcast %545 : vector<32x1xf32> to vector<32x8xf32>
    %547 = arith.addf %544, %546 : vector<32x8xf32>
    %cst_303 = arith.constant 0.000000e+00 : f32
    %548 = vector.broadcast %cst_303 : f32 to vector<32x8xf32>
    %549 = arith.cmpf oge, %547, %548 : vector<32x8xf32>
    %cst_304 = arith.constant 2.000000e-01 : f32
    %550 = vector.broadcast %cst_304 : f32 to vector<32x8xf32>
    %551 = arith.mulf %550, %547 : vector<32x8xf32>
    %552 = arith.select %549, %547, %551 : vector<32x8xi1>, vector<32x8xf32>
    %553 = arith.addf %552, %262 : vector<32x8xf32>
    %cst_305 = arith.constant 0.000000e+00 : f32
    %554 = vector.broadcast %cst_305 : f32 to vector<32x8xf32>
    %555 = arith.cmpf oge, %553, %554 : vector<32x8xf32>
    %cst_306 = arith.constant 2.000000e-01 : f32
    %556 = vector.broadcast %cst_306 : f32 to vector<32x8xf32>
    %557 = arith.mulf %556, %553 : vector<32x8xf32>
    %558 = arith.select %555, %553, %557 : vector<32x8xi1>, vector<32x8xf32>
    %559 = vector.extract_strided_slice %435 {offsets = [64, 0], sizes = [32, 2], strides = [1, 1]} : vector<224x2xf32> to vector<32x2xf32>
    %560 = vector.extract_strided_slice %559 {offsets = [0, 0], sizes = [32, 1], strides = [1, 1]} : vector<32x2xf32> to vector<32x1xf32>
    %561 = vector.shape_cast %560 : vector<32x1xf32> to vector<32x1xf32>
    %562 = vector.broadcast %561 : vector<32x1xf32> to vector<32x4xf32>
    %563 = vector.extract_strided_slice %559 {offsets = [0, 1], sizes = [32, 1], strides = [1, 1]} : vector<32x2xf32> to vector<32x1xf32>
    %564 = vector.shape_cast %563 : vector<32x1xf32> to vector<32x1xf32>
    %565 = vector.broadcast %564 : vector<32x1xf32> to vector<32x4xf32>
    %566 = tpu.concatenate %562, %565 in 1 : vector<32x4xf32>, vector<32x4xf32> -> vector<32x8xf32>
    %567 = vector.extract_strided_slice %435 {offsets = [96, 0], sizes = [32, 2], strides = [1, 1]} : vector<224x2xf32> to vector<32x2xf32>
    %568 = vector.extract_strided_slice %567 {offsets = [0, 0], sizes = [32, 1], strides = [1, 1]} : vector<32x2xf32> to vector<32x1xf32>
    %569 = vector.shape_cast %568 : vector<32x1xf32> to vector<32x1xf32>
    %570 = vector.broadcast %569 : vector<32x1xf32> to vector<32x4xf32>
    %571 = vector.extract_strided_slice %567 {offsets = [0, 1], sizes = [32, 1], strides = [1, 1]} : vector<32x2xf32> to vector<32x1xf32>
    %572 = vector.shape_cast %571 : vector<32x1xf32> to vector<32x1xf32>
    %573 = vector.broadcast %572 : vector<32x1xf32> to vector<32x4xf32>
    %574 = tpu.concatenate %570, %573 in 1 : vector<32x4xf32>, vector<32x4xf32> -> vector<32x8xf32>
    %cst_307 = arith.constant 1.000000e+00 : f32
    %575 = vector.broadcast %cst_307 : f32 to vector<32x8xf32>
    %576 = arith.addf %575, %566 : vector<32x8xf32>
    %577 = arith.mulf %558, %576 : vector<32x8xf32>
    %578 = arith.addf %577, %574 : vector<32x8xf32>
    %cst_308 = arith.constant 0.000000e+00 : f32
    %579 = vector.broadcast %cst_308 : f32 to vector<32x8xf32>
    %580 = arith.cmpf oge, %578, %579 : vector<32x8xf32>
    %cst_309 = arith.constant 2.000000e-01 : f32
    %581 = vector.broadcast %cst_309 : f32 to vector<32x8xf32>
    %582 = arith.mulf %581, %578 : vector<32x8xf32>
    %583 = arith.select %580, %578, %582 : vector<32x8xi1>, vector<32x8xf32>
    %584 = arith.truncf %583 : vector<32x8xf32> to vector<32x8xbf16>
    %585 = vector.extract_strided_slice %584 {offsets = [0, 0], sizes = [32, 4], strides = [1, 1]} : vector<32x8xbf16> to vector<32x4xbf16>
    %586 = vector.extract_strided_slice %584 {offsets = [0, 4], sizes = [32, 4], strides = [1, 1]} : vector<32x8xbf16> to vector<32x4xbf16>
    %587 = tpu.concatenate %585, %586 in 0 : vector<32x4xbf16>, vector<32x4xbf16> -> vector<64x4xbf16>
    %c0_310 = arith.constant 0 : index
    %c0_311 = arith.constant 0 : index
    %c0_312 = arith.constant 0 : index
    %588 = vector.load %arg35[%c0_310, %c0_311, %c0_312] : memref<9x4x16xbf16, #tpu.memory_space<vmem>>, vector<1x4x16xbf16>
    %589 = vector.shape_cast %588 : vector<1x4x16xbf16> to vector<4x16xbf16>
    %cst_313 = arith.constant dense<0.000000e+00> : vector<64x16xf32>
    %590 = tpu.matmul %587, %589, %cst_313 {dimension_numbers = #tpu.dot_dimension_numbers<[1], [0], [0], [1], [0, 0, 1, 1], [], []>} : vector<64x4xbf16>, vector<4x16xbf16>, vector<64x16xf32> -> vector<64x16xf32>
    %591 = vector.extract_strided_slice %590 {offsets = [0, 0], sizes = [32, 16], strides = [1, 1]} : vector<64x16xf32> to vector<32x16xf32>
    %592 = vector.extract_strided_slice %590 {offsets = [32, 0], sizes = [32, 16], strides = [1, 1]} : vector<64x16xf32> to vector<32x16xf32>
    %593 = tpu.concatenate %591, %592 in 1 : vector<32x16xf32>, vector<32x16xf32> -> vector<32x32xf32>
    %c1_314 = arith.constant 1 : index
    %c0_315 = arith.constant 0 : index
    %c0_316 = arith.constant 0 : index
    %594 = vector.load %arg35[%c1_314, %c0_315, %c0_316] : memref<9x4x16xbf16, #tpu.memory_space<vmem>>, vector<1x4x16xbf16>
    %595 = vector.shape_cast %594 : vector<1x4x16xbf16> to vector<4x16xbf16>
    %cst_317 = arith.constant dense<0.000000e+00> : vector<64x16xf32>
    %596 = tpu.matmul %587, %595, %cst_317 {dimension_numbers = #tpu.dot_dimension_numbers<[1], [0], [0], [1], [0, 0, 1, 1], [], []>} : vector<64x4xbf16>, vector<4x16xbf16>, vector<64x16xf32> -> vector<64x16xf32>
    %597 = vector.extract_strided_slice %596 {offsets = [0, 0], sizes = [32, 16], strides = [1, 1]} : vector<64x16xf32> to vector<32x16xf32>
    %598 = vector.extract_strided_slice %596 {offsets = [32, 0], sizes = [32, 16], strides = [1, 1]} : vector<64x16xf32> to vector<32x16xf32>
    %599 = tpu.concatenate %597, %598 in 1 : vector<32x16xf32>, vector<32x16xf32> -> vector<32x32xf32>
    %c2_318 = arith.constant 2 : index
    %c0_319 = arith.constant 0 : index
    %c0_320 = arith.constant 0 : index
    %600 = vector.load %arg35[%c2_318, %c0_319, %c0_320] : memref<9x4x16xbf16, #tpu.memory_space<vmem>>, vector<1x4x16xbf16>
    %601 = vector.shape_cast %600 : vector<1x4x16xbf16> to vector<4x16xbf16>
    %cst_321 = arith.constant dense<0.000000e+00> : vector<64x16xf32>
    %602 = tpu.matmul %587, %601, %cst_321 {dimension_numbers = #tpu.dot_dimension_numbers<[1], [0], [0], [1], [0, 0, 1, 1], [], []>} : vector<64x4xbf16>, vector<4x16xbf16>, vector<64x16xf32> -> vector<64x16xf32>
    %603 = vector.extract_strided_slice %602 {offsets = [0, 0], sizes = [32, 16], strides = [1, 1]} : vector<64x16xf32> to vector<32x16xf32>
    %604 = vector.extract_strided_slice %602 {offsets = [32, 0], sizes = [32, 16], strides = [1, 1]} : vector<64x16xf32> to vector<32x16xf32>
    %605 = tpu.concatenate %603, %604 in 1 : vector<32x16xf32>, vector<32x16xf32> -> vector<32x32xf32>
    %c3_322 = arith.constant 3 : index
    %c0_323 = arith.constant 0 : index
    %c0_324 = arith.constant 0 : index
    %606 = vector.load %arg35[%c3_322, %c0_323, %c0_324] : memref<9x4x16xbf16, #tpu.memory_space<vmem>>, vector<1x4x16xbf16>
    %607 = vector.shape_cast %606 : vector<1x4x16xbf16> to vector<4x16xbf16>
    %cst_325 = arith.constant dense<0.000000e+00> : vector<64x16xf32>
    %608 = tpu.matmul %587, %607, %cst_325 {dimension_numbers = #tpu.dot_dimension_numbers<[1], [0], [0], [1], [0, 0, 1, 1], [], []>} : vector<64x4xbf16>, vector<4x16xbf16>, vector<64x16xf32> -> vector<64x16xf32>
    %609 = vector.extract_strided_slice %608 {offsets = [0, 0], sizes = [32, 16], strides = [1, 1]} : vector<64x16xf32> to vector<32x16xf32>
    %610 = vector.extract_strided_slice %608 {offsets = [32, 0], sizes = [32, 16], strides = [1, 1]} : vector<64x16xf32> to vector<32x16xf32>
    %611 = tpu.concatenate %609, %610 in 1 : vector<32x16xf32>, vector<32x16xf32> -> vector<32x32xf32>
    %c4_326 = arith.constant 4 : index
    %c0_327 = arith.constant 0 : index
    %c0_328 = arith.constant 0 : index
    %612 = vector.load %arg35[%c4_326, %c0_327, %c0_328] : memref<9x4x16xbf16, #tpu.memory_space<vmem>>, vector<1x4x16xbf16>
    %613 = vector.shape_cast %612 : vector<1x4x16xbf16> to vector<4x16xbf16>
    %cst_329 = arith.constant dense<0.000000e+00> : vector<64x16xf32>
    %614 = tpu.matmul %587, %613, %cst_329 {dimension_numbers = #tpu.dot_dimension_numbers<[1], [0], [0], [1], [0, 0, 1, 1], [], []>} : vector<64x4xbf16>, vector<4x16xbf16>, vector<64x16xf32> -> vector<64x16xf32>
    %615 = vector.extract_strided_slice %614 {offsets = [0, 0], sizes = [32, 16], strides = [1, 1]} : vector<64x16xf32> to vector<32x16xf32>
    %616 = vector.extract_strided_slice %614 {offsets = [32, 0], sizes = [32, 16], strides = [1, 1]} : vector<64x16xf32> to vector<32x16xf32>
    %617 = tpu.concatenate %615, %616 in 1 : vector<32x16xf32>, vector<32x16xf32> -> vector<32x32xf32>
    %c5_330 = arith.constant 5 : index
    %c0_331 = arith.constant 0 : index
    %c0_332 = arith.constant 0 : index
    %618 = vector.load %arg35[%c5_330, %c0_331, %c0_332] : memref<9x4x16xbf16, #tpu.memory_space<vmem>>, vector<1x4x16xbf16>
    %619 = vector.shape_cast %618 : vector<1x4x16xbf16> to vector<4x16xbf16>
    %cst_333 = arith.constant dense<0.000000e+00> : vector<64x16xf32>
    %620 = tpu.matmul %587, %619, %cst_333 {dimension_numbers = #tpu.dot_dimension_numbers<[1], [0], [0], [1], [0, 0, 1, 1], [], []>} : vector<64x4xbf16>, vector<4x16xbf16>, vector<64x16xf32> -> vector<64x16xf32>
    %621 = vector.extract_strided_slice %620 {offsets = [0, 0], sizes = [32, 16], strides = [1, 1]} : vector<64x16xf32> to vector<32x16xf32>
    %622 = vector.extract_strided_slice %620 {offsets = [32, 0], sizes = [32, 16], strides = [1, 1]} : vector<64x16xf32> to vector<32x16xf32>
    %623 = tpu.concatenate %621, %622 in 1 : vector<32x16xf32>, vector<32x16xf32> -> vector<32x32xf32>
    %c6_334 = arith.constant 6 : index
    %c0_335 = arith.constant 0 : index
    %c0_336 = arith.constant 0 : index
    %624 = vector.load %arg35[%c6_334, %c0_335, %c0_336] : memref<9x4x16xbf16, #tpu.memory_space<vmem>>, vector<1x4x16xbf16>
    %625 = vector.shape_cast %624 : vector<1x4x16xbf16> to vector<4x16xbf16>
    %cst_337 = arith.constant dense<0.000000e+00> : vector<64x16xf32>
    %626 = tpu.matmul %587, %625, %cst_337 {dimension_numbers = #tpu.dot_dimension_numbers<[1], [0], [0], [1], [0, 0, 1, 1], [], []>} : vector<64x4xbf16>, vector<4x16xbf16>, vector<64x16xf32> -> vector<64x16xf32>
    %627 = vector.extract_strided_slice %626 {offsets = [0, 0], sizes = [32, 16], strides = [1, 1]} : vector<64x16xf32> to vector<32x16xf32>
    %628 = vector.extract_strided_slice %626 {offsets = [32, 0], sizes = [32, 16], strides = [1, 1]} : vector<64x16xf32> to vector<32x16xf32>
    %629 = tpu.concatenate %627, %628 in 1 : vector<32x16xf32>, vector<32x16xf32> -> vector<32x32xf32>
    %c7_338 = arith.constant 7 : index
    %c0_339 = arith.constant 0 : index
    %c0_340 = arith.constant 0 : index
    %630 = vector.load %arg35[%c7_338, %c0_339, %c0_340] : memref<9x4x16xbf16, #tpu.memory_space<vmem>>, vector<1x4x16xbf16>
    %631 = vector.shape_cast %630 : vector<1x4x16xbf16> to vector<4x16xbf16>
    %cst_341 = arith.constant dense<0.000000e+00> : vector<64x16xf32>
    %632 = tpu.matmul %587, %631, %cst_341 {dimension_numbers = #tpu.dot_dimension_numbers<[1], [0], [0], [1], [0, 0, 1, 1], [], []>} : vector<64x4xbf16>, vector<4x16xbf16>, vector<64x16xf32> -> vector<64x16xf32>
    %633 = vector.extract_strided_slice %632 {offsets = [0, 0], sizes = [32, 16], strides = [1, 1]} : vector<64x16xf32> to vector<32x16xf32>
    %634 = vector.extract_strided_slice %632 {offsets = [32, 0], sizes = [32, 16], strides = [1, 1]} : vector<64x16xf32> to vector<32x16xf32>
    %635 = tpu.concatenate %633, %634 in 1 : vector<32x16xf32>, vector<32x16xf32> -> vector<32x32xf32>
    %c8_342 = arith.constant 8 : index
    %c0_343 = arith.constant 0 : index
    %c0_344 = arith.constant 0 : index
    %636 = vector.load %arg35[%c8_342, %c0_343, %c0_344] : memref<9x4x16xbf16, #tpu.memory_space<vmem>>, vector<1x4x16xbf16>
    %637 = vector.shape_cast %636 : vector<1x4x16xbf16> to vector<4x16xbf16>
    %cst_345 = arith.constant dense<0.000000e+00> : vector<64x16xf32>
    %638 = tpu.matmul %587, %637, %cst_345 {dimension_numbers = #tpu.dot_dimension_numbers<[1], [0], [0], [1], [0, 0, 1, 1], [], []>} : vector<64x4xbf16>, vector<4x16xbf16>, vector<64x16xf32> -> vector<64x16xf32>
    %639 = vector.extract_strided_slice %638 {offsets = [0, 0], sizes = [32, 16], strides = [1, 1]} : vector<64x16xf32> to vector<32x16xf32>
    %640 = vector.extract_strided_slice %638 {offsets = [32, 0], sizes = [32, 16], strides = [1, 1]} : vector<64x16xf32> to vector<32x16xf32>
    %641 = tpu.concatenate %639, %640 in 1 : vector<32x16xf32>, vector<32x16xf32> -> vector<32x32xf32>
    %642 = tpu.concatenate %593, %599, %605, %611, %617, %623, %629, %635, %641 in 0 : vector<32x32xf32>, vector<32x32xf32>, vector<32x32xf32>, vector<32x32xf32>, vector<32x32xf32>, vector<32x32xf32>, vector<32x32xf32>, vector<32x32xf32>, vector<32x32xf32> -> vector<288x32xf32>
    %643 = arith.truncf %642 : vector<288x32xf32> to vector<288x32xbf16>
    %c0_346 = arith.constant 0 : index
    %c0_347 = arith.constant 0 : index
    %644 = vector.load %arg27[%c0_346, %c0_347] : memref<32x288xbf16, #tpu.memory_space<vmem>>, vector<32x288xbf16>
    %cst_348 = arith.constant dense<0.000000e+00> : vector<32x32xf32>
    %645 = tpu.matmul %644, %643, %cst_348 {dimension_numbers = #tpu.dot_dimension_numbers<[1], [0], [0], [1], [0, 0, 1, 1], [], []>} : vector<32x288xbf16>, vector<288x32xbf16>, vector<32x32xf32> -> vector<32x32xf32>
    %c0_349 = arith.constant 0 : index
    %c0_350 = arith.constant 0 : index
    %646 = vector.load %arg31[%c0_349, %c0_350] : memref<32x1xf32, #tpu.memory_space<vmem>>, vector<32x1xf32>
    %647 = vector.broadcast %646 : vector<32x1xf32> to vector<32x32xf32>
    %648 = arith.addf %645, %647 : vector<32x32xf32>
    %cst_351 = arith.constant 0.000000e+00 : f32
    %649 = vector.broadcast %cst_351 : f32 to vector<32x32xf32>
    %650 = arith.cmpf oge, %648, %649 : vector<32x32xf32>
    %cst_352 = arith.constant 2.000000e-01 : f32
    %651 = vector.broadcast %cst_352 : f32 to vector<32x32xf32>
    %652 = arith.mulf %651, %648 : vector<32x32xf32>
    %653 = arith.select %650, %648, %652 : vector<32x32xi1>, vector<32x32xf32>
    %654 = arith.addf %653, %192 : vector<32x32xf32>
    %cst_353 = arith.constant 0.000000e+00 : f32
    %655 = vector.broadcast %cst_353 : f32 to vector<32x32xf32>
    %656 = arith.cmpf oge, %654, %655 : vector<32x32xf32>
    %cst_354 = arith.constant 2.000000e-01 : f32
    %657 = vector.broadcast %cst_354 : f32 to vector<32x32xf32>
    %658 = arith.mulf %657, %654 : vector<32x32xf32>
    %659 = arith.select %656, %654, %658 : vector<32x32xi1>, vector<32x32xf32>
    %660 = vector.extract_strided_slice %435 {offsets = [128, 0], sizes = [32, 2], strides = [1, 1]} : vector<224x2xf32> to vector<32x2xf32>
    %661 = vector.extract_strided_slice %660 {offsets = [0, 0], sizes = [32, 1], strides = [1, 1]} : vector<32x2xf32> to vector<32x1xf32>
    %662 = vector.shape_cast %661 : vector<32x1xf32> to vector<32x1xf32>
    %663 = vector.broadcast %662 : vector<32x1xf32> to vector<32x16xf32>
    %664 = vector.extract_strided_slice %660 {offsets = [0, 1], sizes = [32, 1], strides = [1, 1]} : vector<32x2xf32> to vector<32x1xf32>
    %665 = vector.shape_cast %664 : vector<32x1xf32> to vector<32x1xf32>
    %666 = vector.broadcast %665 : vector<32x1xf32> to vector<32x16xf32>
    %667 = tpu.concatenate %663, %666 in 1 : vector<32x16xf32>, vector<32x16xf32> -> vector<32x32xf32>
    %668 = vector.extract_strided_slice %435 {offsets = [160, 0], sizes = [32, 2], strides = [1, 1]} : vector<224x2xf32> to vector<32x2xf32>
    %669 = vector.extract_strided_slice %668 {offsets = [0, 0], sizes = [32, 1], strides = [1, 1]} : vector<32x2xf32> to vector<32x1xf32>
    %670 = vector.shape_cast %669 : vector<32x1xf32> to vector<32x1xf32>
    %671 = vector.broadcast %670 : vector<32x1xf32> to vector<32x16xf32>
    %672 = vector.extract_strided_slice %668 {offsets = [0, 1], sizes = [32, 1], strides = [1, 1]} : vector<32x2xf32> to vector<32x1xf32>
    %673 = vector.shape_cast %672 : vector<32x1xf32> to vector<32x1xf32>
    %674 = vector.broadcast %673 : vector<32x1xf32> to vector<32x16xf32>
    %675 = tpu.concatenate %671, %674 in 1 : vector<32x16xf32>, vector<32x16xf32> -> vector<32x32xf32>
    %cst_355 = arith.constant 1.000000e+00 : f32
    %676 = vector.broadcast %cst_355 : f32 to vector<32x32xf32>
    %677 = arith.addf %676, %667 : vector<32x32xf32>
    %678 = arith.mulf %659, %677 : vector<32x32xf32>
    %679 = arith.addf %678, %675 : vector<32x32xf32>
    %cst_356 = arith.constant 0.000000e+00 : f32
    %680 = vector.broadcast %cst_356 : f32 to vector<32x32xf32>
    %681 = arith.cmpf oge, %679, %680 : vector<32x32xf32>
    %cst_357 = arith.constant 2.000000e-01 : f32
    %682 = vector.broadcast %cst_357 : f32 to vector<32x32xf32>
    %683 = arith.mulf %682, %679 : vector<32x32xf32>
    %684 = arith.select %681, %679, %683 : vector<32x32xi1>, vector<32x32xf32>
    %c0_358 = arith.constant 0 : index
    %c0_359 = arith.constant 0 : index
    %685 = vector.load %arg28[%c0_358, %c0_359] : memref<144x32xbf16, #tpu.memory_space<vmem>>, vector<144x32xbf16>
    %686 = arith.truncf %684 : vector<32x32xf32> to vector<32x32xbf16>
    %cst_360 = arith.constant dense<0.000000e+00> : vector<144x32xf32>
    %687 = tpu.matmul %685, %686, %cst_360 {dimension_numbers = #tpu.dot_dimension_numbers<[1], [0], [0], [1], [0, 0, 1, 1], [], []>} : vector<144x32xbf16>, vector<32x32xbf16>, vector<144x32xf32> -> vector<144x32xf32>
    %688 = arith.truncf %687 : vector<144x32xf32> to vector<144x32xbf16>
    %689 = vector.extract_strided_slice %688 {offsets = [0, 0], sizes = [16, 32], strides = [1, 1]} : vector<144x32xbf16> to vector<16x32xbf16>
    %690 = vector.extract_strided_slice %689 {offsets = [0, 0], sizes = [16, 16], strides = [1, 1]} : vector<16x32xbf16> to vector<16x16xbf16>
    %691 = vector.extract_strided_slice %689 {offsets = [0, 16], sizes = [16, 16], strides = [1, 1]} : vector<16x32xbf16> to vector<16x16xbf16>
    %692 = tpu.concatenate %690, %691 in 0 : vector<16x16xbf16>, vector<16x16xbf16> -> vector<32x16xbf16>
    %c0_361 = arith.constant 0 : index
    %c0_362 = arith.constant 0 : index
    %c0_363 = arith.constant 0 : index
    %693 = vector.load %arg36[%c0_361, %c0_362, %c0_363] : memref<9x16x64xbf16, #tpu.memory_space<vmem>>, vector<1x16x64xbf16>
    %694 = vector.shape_cast %693 : vector<1x16x64xbf16> to vector<16x64xbf16>
    %cst_364 = arith.constant dense<0.000000e+00> : vector<32x64xf32>
    %695 = tpu.matmul %692, %694, %cst_364 {dimension_numbers = #tpu.dot_dimension_numbers<[1], [0], [0], [1], [0, 0, 1, 1], [], []>} : vector<32x16xbf16>, vector<16x64xbf16>, vector<32x64xf32> -> vector<32x64xf32>
    %696 = vector.extract_strided_slice %688 {offsets = [16, 0], sizes = [16, 32], strides = [1, 1]} : vector<144x32xbf16> to vector<16x32xbf16>
    %697 = vector.extract_strided_slice %696 {offsets = [0, 0], sizes = [16, 16], strides = [1, 1]} : vector<16x32xbf16> to vector<16x16xbf16>
    %698 = vector.extract_strided_slice %696 {offsets = [0, 16], sizes = [16, 16], strides = [1, 1]} : vector<16x32xbf16> to vector<16x16xbf16>
    %699 = tpu.concatenate %697, %698 in 0 : vector<16x16xbf16>, vector<16x16xbf16> -> vector<32x16xbf16>
    %c1_365 = arith.constant 1 : index
    %c0_366 = arith.constant 0 : index
    %c0_367 = arith.constant 0 : index
    %700 = vector.load %arg36[%c1_365, %c0_366, %c0_367] : memref<9x16x64xbf16, #tpu.memory_space<vmem>>, vector<1x16x64xbf16>
    %701 = vector.shape_cast %700 : vector<1x16x64xbf16> to vector<16x64xbf16>
    %cst_368 = arith.constant dense<0.000000e+00> : vector<32x64xf32>
    %702 = tpu.matmul %699, %701, %cst_368 {dimension_numbers = #tpu.dot_dimension_numbers<[1], [0], [0], [1], [0, 0, 1, 1], [], []>} : vector<32x16xbf16>, vector<16x64xbf16>, vector<32x64xf32> -> vector<32x64xf32>
    %703 = arith.addf %695, %702 : vector<32x64xf32>
    %704 = vector.extract_strided_slice %688 {offsets = [32, 0], sizes = [16, 32], strides = [1, 1]} : vector<144x32xbf16> to vector<16x32xbf16>
    %705 = vector.extract_strided_slice %704 {offsets = [0, 0], sizes = [16, 16], strides = [1, 1]} : vector<16x32xbf16> to vector<16x16xbf16>
    %706 = vector.extract_strided_slice %704 {offsets = [0, 16], sizes = [16, 16], strides = [1, 1]} : vector<16x32xbf16> to vector<16x16xbf16>
    %707 = tpu.concatenate %705, %706 in 0 : vector<16x16xbf16>, vector<16x16xbf16> -> vector<32x16xbf16>
    %c2_369 = arith.constant 2 : index
    %c0_370 = arith.constant 0 : index
    %c0_371 = arith.constant 0 : index
    %708 = vector.load %arg36[%c2_369, %c0_370, %c0_371] : memref<9x16x64xbf16, #tpu.memory_space<vmem>>, vector<1x16x64xbf16>
    %709 = vector.shape_cast %708 : vector<1x16x64xbf16> to vector<16x64xbf16>
    %cst_372 = arith.constant dense<0.000000e+00> : vector<32x64xf32>
    %710 = tpu.matmul %707, %709, %cst_372 {dimension_numbers = #tpu.dot_dimension_numbers<[1], [0], [0], [1], [0, 0, 1, 1], [], []>} : vector<32x16xbf16>, vector<16x64xbf16>, vector<32x64xf32> -> vector<32x64xf32>
    %711 = arith.addf %703, %710 : vector<32x64xf32>
    %712 = vector.extract_strided_slice %688 {offsets = [48, 0], sizes = [16, 32], strides = [1, 1]} : vector<144x32xbf16> to vector<16x32xbf16>
    %713 = vector.extract_strided_slice %712 {offsets = [0, 0], sizes = [16, 16], strides = [1, 1]} : vector<16x32xbf16> to vector<16x16xbf16>
    %714 = vector.extract_strided_slice %712 {offsets = [0, 16], sizes = [16, 16], strides = [1, 1]} : vector<16x32xbf16> to vector<16x16xbf16>
    %715 = tpu.concatenate %713, %714 in 0 : vector<16x16xbf16>, vector<16x16xbf16> -> vector<32x16xbf16>
    %c3_373 = arith.constant 3 : index
    %c0_374 = arith.constant 0 : index
    %c0_375 = arith.constant 0 : index
    %716 = vector.load %arg36[%c3_373, %c0_374, %c0_375] : memref<9x16x64xbf16, #tpu.memory_space<vmem>>, vector<1x16x64xbf16>
    %717 = vector.shape_cast %716 : vector<1x16x64xbf16> to vector<16x64xbf16>
    %cst_376 = arith.constant dense<0.000000e+00> : vector<32x64xf32>
    %718 = tpu.matmul %715, %717, %cst_376 {dimension_numbers = #tpu.dot_dimension_numbers<[1], [0], [0], [1], [0, 0, 1, 1], [], []>} : vector<32x16xbf16>, vector<16x64xbf16>, vector<32x64xf32> -> vector<32x64xf32>
    %719 = arith.addf %711, %718 : vector<32x64xf32>
    %720 = vector.extract_strided_slice %688 {offsets = [64, 0], sizes = [16, 32], strides = [1, 1]} : vector<144x32xbf16> to vector<16x32xbf16>
    %721 = vector.extract_strided_slice %720 {offsets = [0, 0], sizes = [16, 16], strides = [1, 1]} : vector<16x32xbf16> to vector<16x16xbf16>
    %722 = vector.extract_strided_slice %720 {offsets = [0, 16], sizes = [16, 16], strides = [1, 1]} : vector<16x32xbf16> to vector<16x16xbf16>
    %723 = tpu.concatenate %721, %722 in 0 : vector<16x16xbf16>, vector<16x16xbf16> -> vector<32x16xbf16>
    %c4_377 = arith.constant 4 : index
    %c0_378 = arith.constant 0 : index
    %c0_379 = arith.constant 0 : index
    %724 = vector.load %arg36[%c4_377, %c0_378, %c0_379] : memref<9x16x64xbf16, #tpu.memory_space<vmem>>, vector<1x16x64xbf16>
    %725 = vector.shape_cast %724 : vector<1x16x64xbf16> to vector<16x64xbf16>
    %cst_380 = arith.constant dense<0.000000e+00> : vector<32x64xf32>
    %726 = tpu.matmul %723, %725, %cst_380 {dimension_numbers = #tpu.dot_dimension_numbers<[1], [0], [0], [1], [0, 0, 1, 1], [], []>} : vector<32x16xbf16>, vector<16x64xbf16>, vector<32x64xf32> -> vector<32x64xf32>
    %727 = arith.addf %719, %726 : vector<32x64xf32>
    %728 = vector.extract_strided_slice %688 {offsets = [80, 0], sizes = [16, 32], strides = [1, 1]} : vector<144x32xbf16> to vector<16x32xbf16>
    %729 = vector.extract_strided_slice %728 {offsets = [0, 0], sizes = [16, 16], strides = [1, 1]} : vector<16x32xbf16> to vector<16x16xbf16>
    %730 = vector.extract_strided_slice %728 {offsets = [0, 16], sizes = [16, 16], strides = [1, 1]} : vector<16x32xbf16> to vector<16x16xbf16>
    %731 = tpu.concatenate %729, %730 in 0 : vector<16x16xbf16>, vector<16x16xbf16> -> vector<32x16xbf16>
    %c5_381 = arith.constant 5 : index
    %c0_382 = arith.constant 0 : index
    %c0_383 = arith.constant 0 : index
    %732 = vector.load %arg36[%c5_381, %c0_382, %c0_383] : memref<9x16x64xbf16, #tpu.memory_space<vmem>>, vector<1x16x64xbf16>
    %733 = vector.shape_cast %732 : vector<1x16x64xbf16> to vector<16x64xbf16>
    %cst_384 = arith.constant dense<0.000000e+00> : vector<32x64xf32>
    %734 = tpu.matmul %731, %733, %cst_384 {dimension_numbers = #tpu.dot_dimension_numbers<[1], [0], [0], [1], [0, 0, 1, 1], [], []>} : vector<32x16xbf16>, vector<16x64xbf16>, vector<32x64xf32> -> vector<32x64xf32>
    %735 = arith.addf %727, %734 : vector<32x64xf32>
    %736 = vector.extract_strided_slice %688 {offsets = [96, 0], sizes = [16, 32], strides = [1, 1]} : vector<144x32xbf16> to vector<16x32xbf16>
    %737 = vector.extract_strided_slice %736 {offsets = [0, 0], sizes = [16, 16], strides = [1, 1]} : vector<16x32xbf16> to vector<16x16xbf16>
    %738 = vector.extract_strided_slice %736 {offsets = [0, 16], sizes = [16, 16], strides = [1, 1]} : vector<16x32xbf16> to vector<16x16xbf16>
    %739 = tpu.concatenate %737, %738 in 0 : vector<16x16xbf16>, vector<16x16xbf16> -> vector<32x16xbf16>
    %c6_385 = arith.constant 6 : index
    %c0_386 = arith.constant 0 : index
    %c0_387 = arith.constant 0 : index
    %740 = vector.load %arg36[%c6_385, %c0_386, %c0_387] : memref<9x16x64xbf16, #tpu.memory_space<vmem>>, vector<1x16x64xbf16>
    %741 = vector.shape_cast %740 : vector<1x16x64xbf16> to vector<16x64xbf16>
    %cst_388 = arith.constant dense<0.000000e+00> : vector<32x64xf32>
    %742 = tpu.matmul %739, %741, %cst_388 {dimension_numbers = #tpu.dot_dimension_numbers<[1], [0], [0], [1], [0, 0, 1, 1], [], []>} : vector<32x16xbf16>, vector<16x64xbf16>, vector<32x64xf32> -> vector<32x64xf32>
    %743 = arith.addf %735, %742 : vector<32x64xf32>
    %744 = vector.extract_strided_slice %688 {offsets = [112, 0], sizes = [16, 32], strides = [1, 1]} : vector<144x32xbf16> to vector<16x32xbf16>
    %745 = vector.extract_strided_slice %744 {offsets = [0, 0], sizes = [16, 16], strides = [1, 1]} : vector<16x32xbf16> to vector<16x16xbf16>
    %746 = vector.extract_strided_slice %744 {offsets = [0, 16], sizes = [16, 16], strides = [1, 1]} : vector<16x32xbf16> to vector<16x16xbf16>
    %747 = tpu.concatenate %745, %746 in 0 : vector<16x16xbf16>, vector<16x16xbf16> -> vector<32x16xbf16>
    %c7_389 = arith.constant 7 : index
    %c0_390 = arith.constant 0 : index
    %c0_391 = arith.constant 0 : index
    %748 = vector.load %arg36[%c7_389, %c0_390, %c0_391] : memref<9x16x64xbf16, #tpu.memory_space<vmem>>, vector<1x16x64xbf16>
    %749 = vector.shape_cast %748 : vector<1x16x64xbf16> to vector<16x64xbf16>
    %cst_392 = arith.constant dense<0.000000e+00> : vector<32x64xf32>
    %750 = tpu.matmul %747, %749, %cst_392 {dimension_numbers = #tpu.dot_dimension_numbers<[1], [0], [0], [1], [0, 0, 1, 1], [], []>} : vector<32x16xbf16>, vector<16x64xbf16>, vector<32x64xf32> -> vector<32x64xf32>
    %751 = arith.addf %743, %750 : vector<32x64xf32>
    %752 = vector.extract_strided_slice %688 {offsets = [128, 0], sizes = [16, 32], strides = [1, 1]} : vector<144x32xbf16> to vector<16x32xbf16>
    %753 = vector.extract_strided_slice %752 {offsets = [0, 0], sizes = [16, 16], strides = [1, 1]} : vector<16x32xbf16> to vector<16x16xbf16>
    %754 = vector.extract_strided_slice %752 {offsets = [0, 16], sizes = [16, 16], strides = [1, 1]} : vector<16x32xbf16> to vector<16x16xbf16>
    %755 = tpu.concatenate %753, %754 in 0 : vector<16x16xbf16>, vector<16x16xbf16> -> vector<32x16xbf16>
    %c8_393 = arith.constant 8 : index
    %c0_394 = arith.constant 0 : index
    %c0_395 = arith.constant 0 : index
    %756 = vector.load %arg36[%c8_393, %c0_394, %c0_395] : memref<9x16x64xbf16, #tpu.memory_space<vmem>>, vector<1x16x64xbf16>
    %757 = vector.shape_cast %756 : vector<1x16x64xbf16> to vector<16x64xbf16>
    %cst_396 = arith.constant dense<0.000000e+00> : vector<32x64xf32>
    %758 = tpu.matmul %755, %757, %cst_396 {dimension_numbers = #tpu.dot_dimension_numbers<[1], [0], [0], [1], [0, 0, 1, 1], [], []>} : vector<32x16xbf16>, vector<16x64xbf16>, vector<32x64xf32> -> vector<32x64xf32>
    %759 = arith.addf %751, %758 : vector<32x64xf32>
    %760 = vector.extract_strided_slice %759 {offsets = [0, 0], sizes = [16, 64], strides = [1, 1]} : vector<32x64xf32> to vector<16x64xf32>
    %761 = vector.extract_strided_slice %759 {offsets = [16, 0], sizes = [16, 64], strides = [1, 1]} : vector<32x64xf32> to vector<16x64xf32>
    %762 = tpu.concatenate %760, %761 in 1 : vector<16x64xf32>, vector<16x64xf32> -> vector<16x128xf32>
    %c0_397 = arith.constant 0 : index
    %c0_398 = arith.constant 0 : index
    %763 = vector.load %arg32[%c0_397, %c0_398] : memref<16x1xf32, #tpu.memory_space<vmem>>, vector<16x1xf32>
    %764 = vector.broadcast %763 : vector<16x1xf32> to vector<16x128xf32>
    %765 = arith.addf %762, %764 : vector<16x128xf32>
    %cst_399 = arith.constant 0.000000e+00 : f32
    %766 = vector.broadcast %cst_399 : f32 to vector<16x128xf32>
    %767 = arith.cmpf oge, %765, %766 : vector<16x128xf32>
    %cst_400 = arith.constant 2.000000e-01 : f32
    %768 = vector.broadcast %cst_400 : f32 to vector<16x128xf32>
    %769 = arith.mulf %768, %765 : vector<16x128xf32>
    %770 = arith.select %767, %765, %769 : vector<16x128xi1>, vector<16x128xf32>
    %771 = arith.addf %770, %122 : vector<16x128xf32>
    %cst_401 = arith.constant 0.000000e+00 : f32
    %772 = vector.broadcast %cst_401 : f32 to vector<16x128xf32>
    %773 = arith.cmpf oge, %771, %772 : vector<16x128xf32>
    %cst_402 = arith.constant 2.000000e-01 : f32
    %774 = vector.broadcast %cst_402 : f32 to vector<16x128xf32>
    %775 = arith.mulf %774, %771 : vector<16x128xf32>
    %776 = arith.select %773, %771, %775 : vector<16x128xi1>, vector<16x128xf32>
    %777 = vector.extract_strided_slice %435 {offsets = [192, 0], sizes = [16, 2], strides = [1, 1]} : vector<224x2xf32> to vector<16x2xf32>
    %778 = vector.extract_strided_slice %777 {offsets = [0, 0], sizes = [16, 1], strides = [1, 1]} : vector<16x2xf32> to vector<16x1xf32>
    %779 = vector.shape_cast %778 : vector<16x1xf32> to vector<16x1xf32>
    %780 = vector.broadcast %779 : vector<16x1xf32> to vector<16x64xf32>
    %781 = vector.extract_strided_slice %777 {offsets = [0, 1], sizes = [16, 1], strides = [1, 1]} : vector<16x2xf32> to vector<16x1xf32>
    %782 = vector.shape_cast %781 : vector<16x1xf32> to vector<16x1xf32>
    %783 = vector.broadcast %782 : vector<16x1xf32> to vector<16x64xf32>
    %784 = tpu.concatenate %780, %783 in 1 : vector<16x64xf32>, vector<16x64xf32> -> vector<16x128xf32>
    %785 = vector.extract_strided_slice %435 {offsets = [208, 0], sizes = [16, 2], strides = [1, 1]} : vector<224x2xf32> to vector<16x2xf32>
    %786 = vector.extract_strided_slice %785 {offsets = [0, 0], sizes = [16, 1], strides = [1, 1]} : vector<16x2xf32> to vector<16x1xf32>
    %787 = vector.shape_cast %786 : vector<16x1xf32> to vector<16x1xf32>
    %788 = vector.broadcast %787 : vector<16x1xf32> to vector<16x64xf32>
    %789 = vector.extract_strided_slice %785 {offsets = [0, 1], sizes = [16, 1], strides = [1, 1]} : vector<16x2xf32> to vector<16x1xf32>
    %790 = vector.shape_cast %789 : vector<16x1xf32> to vector<16x1xf32>
    %791 = vector.broadcast %790 : vector<16x1xf32> to vector<16x64xf32>
    %792 = tpu.concatenate %788, %791 in 1 : vector<16x64xf32>, vector<16x64xf32> -> vector<16x128xf32>
    %cst_403 = arith.constant 1.000000e+00 : f32
    %793 = vector.broadcast %cst_403 : f32 to vector<16x128xf32>
    %794 = arith.addf %793, %784 : vector<16x128xf32>
    %795 = arith.mulf %776, %794 : vector<16x128xf32>
    %796 = arith.addf %795, %792 : vector<16x128xf32>
    %cst_404 = arith.constant 0.000000e+00 : f32
    %797 = vector.broadcast %cst_404 : f32 to vector<16x128xf32>
    %798 = arith.cmpf oge, %796, %797 : vector<16x128xf32>
    %cst_405 = arith.constant 2.000000e-01 : f32
    %799 = vector.broadcast %cst_405 : f32 to vector<16x128xf32>
    %800 = arith.mulf %799, %796 : vector<16x128xf32>
    %801 = arith.select %798, %796, %800 : vector<16x128xi1>, vector<16x128xf32>
    %c0_406 = arith.constant 0 : index
    %c0_407 = arith.constant 0 : index
    %802 = vector.load %arg29[%c0_406, %c0_407] : memref<36x16xbf16, #tpu.memory_space<vmem>>, vector<36x16xbf16>
    %803 = arith.truncf %801 : vector<16x128xf32> to vector<16x128xbf16>
    %cst_408 = arith.constant dense<0.000000e+00> : vector<36x128xf32>
    %804 = tpu.matmul %802, %803, %cst_408 {dimension_numbers = #tpu.dot_dimension_numbers<[1], [0], [0], [1], [0, 0, 1, 1], [], []>} : vector<36x16xbf16>, vector<16x128xbf16>, vector<36x128xf32> -> vector<36x128xf32>
    %805 = arith.truncf %804 : vector<36x128xf32> to vector<36x128xbf16>
    %806 = vector.extract_strided_slice %805 {offsets = [0, 0], sizes = [4, 128], strides = [1, 1]} : vector<36x128xbf16> to vector<4x128xbf16>
    %807 = vector.extract_strided_slice %806 {offsets = [0, 0], sizes = [4, 64], strides = [1, 1]} : vector<4x128xbf16> to vector<4x64xbf16>
    %808 = vector.extract_strided_slice %806 {offsets = [0, 64], sizes = [4, 64], strides = [1, 1]} : vector<4x128xbf16> to vector<4x64xbf16>
    %809 = tpu.concatenate %807, %808 in 0 : vector<4x64xbf16>, vector<4x64xbf16> -> vector<8x64xbf16>
    %c0_409 = arith.constant 0 : index
    %c0_410 = arith.constant 0 : index
    %c0_411 = arith.constant 0 : index
    %810 = vector.load %arg37[%c0_409, %c0_410, %c0_411] : memref<9x64x256xbf16, #tpu.memory_space<vmem>>, vector<1x64x256xbf16>
    %811 = vector.shape_cast %810 : vector<1x64x256xbf16> to vector<64x256xbf16>
    %cst_412 = arith.constant dense<0.000000e+00> : vector<8x256xf32>
    %812 = tpu.matmul %809, %811, %cst_412 {dimension_numbers = #tpu.dot_dimension_numbers<[1], [0], [0], [1], [0, 0, 1, 1], [], []>} : vector<8x64xbf16>, vector<64x256xbf16>, vector<8x256xf32> -> vector<8x256xf32>
    %813 = vector.extract_strided_slice %805 {offsets = [4, 0], sizes = [4, 128], strides = [1, 1]} : vector<36x128xbf16> to vector<4x128xbf16>
    %814 = vector.extract_strided_slice %813 {offsets = [0, 0], sizes = [4, 64], strides = [1, 1]} : vector<4x128xbf16> to vector<4x64xbf16>
    %815 = vector.extract_strided_slice %813 {offsets = [0, 64], sizes = [4, 64], strides = [1, 1]} : vector<4x128xbf16> to vector<4x64xbf16>
    %816 = tpu.concatenate %814, %815 in 0 : vector<4x64xbf16>, vector<4x64xbf16> -> vector<8x64xbf16>
    %c1_413 = arith.constant 1 : index
    %c0_414 = arith.constant 0 : index
    %c0_415 = arith.constant 0 : index
    %817 = vector.load %arg37[%c1_413, %c0_414, %c0_415] : memref<9x64x256xbf16, #tpu.memory_space<vmem>>, vector<1x64x256xbf16>
    %818 = vector.shape_cast %817 : vector<1x64x256xbf16> to vector<64x256xbf16>
    %cst_416 = arith.constant dense<0.000000e+00> : vector<8x256xf32>
    %819 = tpu.matmul %816, %818, %cst_416 {dimension_numbers = #tpu.dot_dimension_numbers<[1], [0], [0], [1], [0, 0, 1, 1], [], []>} : vector<8x64xbf16>, vector<64x256xbf16>, vector<8x256xf32> -> vector<8x256xf32>
    %820 = arith.addf %812, %819 : vector<8x256xf32>
    %821 = vector.extract_strided_slice %805 {offsets = [8, 0], sizes = [4, 128], strides = [1, 1]} : vector<36x128xbf16> to vector<4x128xbf16>
    %822 = vector.extract_strided_slice %821 {offsets = [0, 0], sizes = [4, 64], strides = [1, 1]} : vector<4x128xbf16> to vector<4x64xbf16>
    %823 = vector.extract_strided_slice %821 {offsets = [0, 64], sizes = [4, 64], strides = [1, 1]} : vector<4x128xbf16> to vector<4x64xbf16>
    %824 = tpu.concatenate %822, %823 in 0 : vector<4x64xbf16>, vector<4x64xbf16> -> vector<8x64xbf16>
    %c2_417 = arith.constant 2 : index
    %c0_418 = arith.constant 0 : index
    %c0_419 = arith.constant 0 : index
    %825 = vector.load %arg37[%c2_417, %c0_418, %c0_419] : memref<9x64x256xbf16, #tpu.memory_space<vmem>>, vector<1x64x256xbf16>
    %826 = vector.shape_cast %825 : vector<1x64x256xbf16> to vector<64x256xbf16>
    %cst_420 = arith.constant dense<0.000000e+00> : vector<8x256xf32>
    %827 = tpu.matmul %824, %826, %cst_420 {dimension_numbers = #tpu.dot_dimension_numbers<[1], [0], [0], [1], [0, 0, 1, 1], [], []>} : vector<8x64xbf16>, vector<64x256xbf16>, vector<8x256xf32> -> vector<8x256xf32>
    %828 = arith.addf %820, %827 : vector<8x256xf32>
    %829 = vector.extract_strided_slice %805 {offsets = [12, 0], sizes = [4, 128], strides = [1, 1]} : vector<36x128xbf16> to vector<4x128xbf16>
    %830 = vector.extract_strided_slice %829 {offsets = [0, 0], sizes = [4, 64], strides = [1, 1]} : vector<4x128xbf16> to vector<4x64xbf16>
    %831 = vector.extract_strided_slice %829 {offsets = [0, 64], sizes = [4, 64], strides = [1, 1]} : vector<4x128xbf16> to vector<4x64xbf16>
    %832 = tpu.concatenate %830, %831 in 0 : vector<4x64xbf16>, vector<4x64xbf16> -> vector<8x64xbf16>
    %c3_421 = arith.constant 3 : index
    %c0_422 = arith.constant 0 : index
    %c0_423 = arith.constant 0 : index
    %833 = vector.load %arg37[%c3_421, %c0_422, %c0_423] : memref<9x64x256xbf16, #tpu.memory_space<vmem>>, vector<1x64x256xbf16>
    %834 = vector.shape_cast %833 : vector<1x64x256xbf16> to vector<64x256xbf16>
    %cst_424 = arith.constant dense<0.000000e+00> : vector<8x256xf32>
    %835 = tpu.matmul %832, %834, %cst_424 {dimension_numbers = #tpu.dot_dimension_numbers<[1], [0], [0], [1], [0, 0, 1, 1], [], []>} : vector<8x64xbf16>, vector<64x256xbf16>, vector<8x256xf32> -> vector<8x256xf32>
    %836 = arith.addf %828, %835 : vector<8x256xf32>
    %837 = vector.extract_strided_slice %805 {offsets = [16, 0], sizes = [4, 128], strides = [1, 1]} : vector<36x128xbf16> to vector<4x128xbf16>
    %838 = vector.extract_strided_slice %837 {offsets = [0, 0], sizes = [4, 64], strides = [1, 1]} : vector<4x128xbf16> to vector<4x64xbf16>
    %839 = vector.extract_strided_slice %837 {offsets = [0, 64], sizes = [4, 64], strides = [1, 1]} : vector<4x128xbf16> to vector<4x64xbf16>
    %840 = tpu.concatenate %838, %839 in 0 : vector<4x64xbf16>, vector<4x64xbf16> -> vector<8x64xbf16>
    %c4_425 = arith.constant 4 : index
    %c0_426 = arith.constant 0 : index
    %c0_427 = arith.constant 0 : index
    %841 = vector.load %arg37[%c4_425, %c0_426, %c0_427] : memref<9x64x256xbf16, #tpu.memory_space<vmem>>, vector<1x64x256xbf16>
    %842 = vector.shape_cast %841 : vector<1x64x256xbf16> to vector<64x256xbf16>
    %cst_428 = arith.constant dense<0.000000e+00> : vector<8x256xf32>
    %843 = tpu.matmul %840, %842, %cst_428 {dimension_numbers = #tpu.dot_dimension_numbers<[1], [0], [0], [1], [0, 0, 1, 1], [], []>} : vector<8x64xbf16>, vector<64x256xbf16>, vector<8x256xf32> -> vector<8x256xf32>
    %844 = arith.addf %836, %843 : vector<8x256xf32>
    %845 = vector.extract_strided_slice %805 {offsets = [20, 0], sizes = [4, 128], strides = [1, 1]} : vector<36x128xbf16> to vector<4x128xbf16>
    %846 = vector.extract_strided_slice %845 {offsets = [0, 0], sizes = [4, 64], strides = [1, 1]} : vector<4x128xbf16> to vector<4x64xbf16>
    %847 = vector.extract_strided_slice %845 {offsets = [0, 64], sizes = [4, 64], strides = [1, 1]} : vector<4x128xbf16> to vector<4x64xbf16>
    %848 = tpu.concatenate %846, %847 in 0 : vector<4x64xbf16>, vector<4x64xbf16> -> vector<8x64xbf16>
    %c5_429 = arith.constant 5 : index
    %c0_430 = arith.constant 0 : index
    %c0_431 = arith.constant 0 : index
    %849 = vector.load %arg37[%c5_429, %c0_430, %c0_431] : memref<9x64x256xbf16, #tpu.memory_space<vmem>>, vector<1x64x256xbf16>
    %850 = vector.shape_cast %849 : vector<1x64x256xbf16> to vector<64x256xbf16>
    %cst_432 = arith.constant dense<0.000000e+00> : vector<8x256xf32>
    %851 = tpu.matmul %848, %850, %cst_432 {dimension_numbers = #tpu.dot_dimension_numbers<[1], [0], [0], [1], [0, 0, 1, 1], [], []>} : vector<8x64xbf16>, vector<64x256xbf16>, vector<8x256xf32> -> vector<8x256xf32>
    %852 = arith.addf %844, %851 : vector<8x256xf32>
    %853 = vector.extract_strided_slice %805 {offsets = [24, 0], sizes = [4, 128], strides = [1, 1]} : vector<36x128xbf16> to vector<4x128xbf16>
    %854 = vector.extract_strided_slice %853 {offsets = [0, 0], sizes = [4, 64], strides = [1, 1]} : vector<4x128xbf16> to vector<4x64xbf16>
    %855 = vector.extract_strided_slice %853 {offsets = [0, 64], sizes = [4, 64], strides = [1, 1]} : vector<4x128xbf16> to vector<4x64xbf16>
    %856 = tpu.concatenate %854, %855 in 0 : vector<4x64xbf16>, vector<4x64xbf16> -> vector<8x64xbf16>
    %c6_433 = arith.constant 6 : index
    %c0_434 = arith.constant 0 : index
    %c0_435 = arith.constant 0 : index
    %857 = vector.load %arg37[%c6_433, %c0_434, %c0_435] : memref<9x64x256xbf16, #tpu.memory_space<vmem>>, vector<1x64x256xbf16>
    %858 = vector.shape_cast %857 : vector<1x64x256xbf16> to vector<64x256xbf16>
    %cst_436 = arith.constant dense<0.000000e+00> : vector<8x256xf32>
    %859 = tpu.matmul %856, %858, %cst_436 {dimension_numbers = #tpu.dot_dimension_numbers<[1], [0], [0], [1], [0, 0, 1, 1], [], []>} : vector<8x64xbf16>, vector<64x256xbf16>, vector<8x256xf32> -> vector<8x256xf32>
    %860 = arith.addf %852, %859 : vector<8x256xf32>
    %861 = vector.extract_strided_slice %805 {offsets = [28, 0], sizes = [4, 128], strides = [1, 1]} : vector<36x128xbf16> to vector<4x128xbf16>
    %862 = vector.extract_strided_slice %861 {offsets = [0, 0], sizes = [4, 64], strides = [1, 1]} : vector<4x128xbf16> to vector<4x64xbf16>
    %863 = vector.extract_strided_slice %861 {offsets = [0, 64], sizes = [4, 64], strides = [1, 1]} : vector<4x128xbf16> to vector<4x64xbf16>
    %864 = tpu.concatenate %862, %863 in 0 : vector<4x64xbf16>, vector<4x64xbf16> -> vector<8x64xbf16>
    %c7_437 = arith.constant 7 : index
    %c0_438 = arith.constant 0 : index
    %c0_439 = arith.constant 0 : index
    %865 = vector.load %arg37[%c7_437, %c0_438, %c0_439] : memref<9x64x256xbf16, #tpu.memory_space<vmem>>, vector<1x64x256xbf16>
    %866 = vector.shape_cast %865 : vector<1x64x256xbf16> to vector<64x256xbf16>
    %cst_440 = arith.constant dense<0.000000e+00> : vector<8x256xf32>
    %867 = tpu.matmul %864, %866, %cst_440 {dimension_numbers = #tpu.dot_dimension_numbers<[1], [0], [0], [1], [0, 0, 1, 1], [], []>} : vector<8x64xbf16>, vector<64x256xbf16>, vector<8x256xf32> -> vector<8x256xf32>
    %868 = arith.addf %860, %867 : vector<8x256xf32>
    %869 = vector.extract_strided_slice %805 {offsets = [32, 0], sizes = [4, 128], strides = [1, 1]} : vector<36x128xbf16> to vector<4x128xbf16>
    %870 = vector.extract_strided_slice %869 {offsets = [0, 0], sizes = [4, 64], strides = [1, 1]} : vector<4x128xbf16> to vector<4x64xbf16>
    %871 = vector.extract_strided_slice %869 {offsets = [0, 64], sizes = [4, 64], strides = [1, 1]} : vector<4x128xbf16> to vector<4x64xbf16>
    %872 = tpu.concatenate %870, %871 in 0 : vector<4x64xbf16>, vector<4x64xbf16> -> vector<8x64xbf16>
    %c8_441 = arith.constant 8 : index
    %c0_442 = arith.constant 0 : index
    %c0_443 = arith.constant 0 : index
    %873 = vector.load %arg37[%c8_441, %c0_442, %c0_443] : memref<9x64x256xbf16, #tpu.memory_space<vmem>>, vector<1x64x256xbf16>
    %874 = vector.shape_cast %873 : vector<1x64x256xbf16> to vector<64x256xbf16>
    %cst_444 = arith.constant dense<0.000000e+00> : vector<8x256xf32>
    %875 = tpu.matmul %872, %874, %cst_444 {dimension_numbers = #tpu.dot_dimension_numbers<[1], [0], [0], [1], [0, 0, 1, 1], [], []>} : vector<8x64xbf16>, vector<64x256xbf16>, vector<8x256xf32> -> vector<8x256xf32>
    %876 = arith.addf %868, %875 : vector<8x256xf32>
    %877 = vector.extract_strided_slice %876 {offsets = [0, 0], sizes = [4, 256], strides = [1, 1]} : vector<8x256xf32> to vector<4x256xf32>
    %878 = vector.extract_strided_slice %876 {offsets = [4, 0], sizes = [4, 256], strides = [1, 1]} : vector<8x256xf32> to vector<4x256xf32>
    %879 = tpu.concatenate %877, %878 in 1 : vector<4x256xf32>, vector<4x256xf32> -> vector<4x512xf32>
    %c0_445 = arith.constant 0 : index
    %c0_446 = arith.constant 0 : index
    %880 = vector.load %arg33[%c0_445, %c0_446] : memref<4x1xf32, #tpu.memory_space<vmem>>, vector<4x1xf32>
    %881 = vector.broadcast %880 : vector<4x1xf32> to vector<4x512xf32>
    %882 = arith.addf %879, %881 : vector<4x512xf32>
    %c0_447 = arith.constant 0 : index
    %c0_448 = arith.constant 0 : index
    %883 = vector.load %arg38[%c0_447, %c0_448] : memref<4x512xf32, #tpu.memory_space<vmem>>, vector<4x512xf32>
    tpu.vector_store %arg38[%c0_447, %c0_448], %882 {strides = array<i32>} : memref<4x512xf32, #tpu.memory_space<vmem>>, vector<4x512xf32>,
    return
  }
  func.func @transform_0(%arg0: i32) -> (i32, i32) {
    %c0_i32 = arith.constant 0 : i32
    %c0_i32_0 = arith.constant 0 : i32
    %c0_i32_1 = arith.constant 0 : i32
    return %c0_i32, %c0_i32_0 : i32, i32
  }
  func.func @transform_1(%arg0: i32) -> (i32, i32) {
    %c0_i32 = arith.constant 0 : i32
    %c0_i32_0 = arith.constant 0 : i32
    %c0_i32_1 = arith.constant 0 : i32
    return %c0_i32, %c0_i32_0 : i32, i32
  }
  func.func @transform_2(%arg0: i32) -> (i32, i32, i32) {
    %c0_i32 = arith.constant 0 : i32
    %c0_i32_0 = arith.constant 0 : i32
    %c0_i32_1 = arith.constant 0 : i32
    %c0_i32_2 = arith.constant 0 : i32
    return %c0_i32, %c0_i32_0, %c0_i32_1 : i32, i32, i32
  }
  func.func @transform_3(%arg0: i32) -> (i32, i32) {
    %c0_i32 = arith.constant 0 : i32
    %c0_i32_0 = arith.constant 0 : i32
    %c0_i32_1 = arith.constant 0 : i32
    return %c0_i32, %c0_i32_0 : i32, i32
  }
  func.func @transform_4(%arg0: i32) -> (i32, i32) {
    %c0_i32 = arith.constant 0 : i32
    %c0_i32_0 = arith.constant 0 : i32
    %c0_i32_1 = arith.constant 0 : i32
    return %c0_i32, %c0_i32_0 : i32, i32
  }
  func.func @transform_5(%arg0: i32) -> (i32, i32) {
    %c0_i32 = arith.constant 0 : i32
    %c0_i32_0 = arith.constant 0 : i32
    %c0_i32_1 = arith.constant 0 : i32
    return %c0_i32, %c0_i32_0 : i32, i32
  }
  func.func @transform_6(%arg0: i32) -> (i32, i32) {
    %c0_i32 = arith.constant 0 : i32
    %c0_i32_0 = arith.constant 0 : i32
    %c0_i32_1 = arith.constant 0 : i32
    return %c0_i32, %c0_i32_0 : i32, i32
  }
  func.func @transform_7(%arg0: i32) -> (i32, i32) {
    %c0_i32 = arith.constant 0 : i32
    %c0_i32_0 = arith.constant 0 : i32
    %c0_i32_1 = arith.constant 0 : i32
    return %c0_i32, %c0_i32_0 : i32, i32
  }
  func.func @transform_8(%arg0: i32) -> (i32, i32) {
    %c0_i32 = arith.constant 0 : i32
    %c0_i32_0 = arith.constant 0 : i32
    %c0_i32_1 = arith.constant 0 : i32
    return %c0_i32, %c0_i32_0 : i32, i32
  }
  func.func @transform_9(%arg0: i32) -> (i32, i32) {
    %c0_i32 = arith.constant 0 : i32
    %c0_i32_0 = arith.constant 0 : i32
    %c0_i32_1 = arith.constant 0 : i32
    return %c0_i32, %c0_i32_0 : i32, i32
  }
  func.func @transform_10(%arg0: i32) -> (i32, i32) {
    %c0_i32 = arith.constant 0 : i32
    %c0_i32_0 = arith.constant 0 : i32
    %c0_i32_1 = arith.constant 0 : i32
    return %c0_i32, %c0_i32_0 : i32, i32
  }
  func.func @transform_11(%arg0: i32) -> (i32, i32) {
    %c0_i32 = arith.constant 0 : i32
    %c0_i32_0 = arith.constant 0 : i32
    %c0_i32_1 = arith.constant 0 : i32
    return %c0_i32, %c0_i32_0 : i32, i32
  }
  func.func @transform_12(%arg0: i32) -> (i32, i32) {
    %c0_i32 = arith.constant 0 : i32
    %c0_i32_0 = arith.constant 0 : i32
    %c0_i32_1 = arith.constant 0 : i32
    return %c0_i32, %c0_i32_0 : i32, i32
  }
  func.func @transform_13(%arg0: i32) -> (i32, i32, i32) {
    %c0_i32 = arith.constant 0 : i32
    %c0_i32_0 = arith.constant 0 : i32
    %c0_i32_1 = arith.constant 0 : i32
    %c0_i32_2 = arith.constant 0 : i32
    return %c0_i32, %c0_i32_0, %c0_i32_1 : i32, i32, i32
  }
  func.func @transform_14(%arg0: i32) -> (i32, i32, i32) {
    %c0_i32 = arith.constant 0 : i32
    %c0_i32_0 = arith.constant 0 : i32
    %c0_i32_1 = arith.constant 0 : i32
    %c0_i32_2 = arith.constant 0 : i32
    return %c0_i32, %c0_i32_0, %c0_i32_1 : i32, i32, i32
  }
  func.func @transform_15(%arg0: i32) -> (i32, i32, i32) {
    %c0_i32 = arith.constant 0 : i32
    %c0_i32_0 = arith.constant 0 : i32
    %c0_i32_1 = arith.constant 0 : i32
    %c0_i32_2 = arith.constant 0 : i32
    return %c0_i32, %c0_i32_0, %c0_i32_1 : i32, i32, i32
  }
  func.func @transform_16(%arg0: i32) -> (i32, i32, i32) {
    %c0_i32 = arith.constant 0 : i32
    %c0_i32_0 = arith.constant 0 : i32
    %c0_i32_1 = arith.constant 0 : i32
    %c0_i32_2 = arith.constant 0 : i32
    return %c0_i32, %c0_i32_0, %c0_i32_1 : i32, i32, i32
  }
  func.func @transform_17(%arg0: i32) -> (i32, i32) {
    %c0_i32 = arith.constant 0 : i32
    %c0_i32_0 = arith.constant 0 : i32
    %c0_i32_1 = arith.constant 0 : i32
    return %c0_i32, %c0_i32_0 : i32, i32
  }
  func.func @transform_18(%arg0: i32) -> (i32, i32) {
    %c0_i32 = arith.constant 0 : i32
    %c0_i32_0 = arith.constant 0 : i32
    %c0_i32_1 = arith.constant 0 : i32
    return %c0_i32, %c0_i32_0 : i32, i32
  }
  func.func @transform_19(%arg0: i32) -> (i32, i32) {
    %c0_i32 = arith.constant 0 : i32
    %c0_i32_0 = arith.constant 0 : i32
    %c0_i32_1 = arith.constant 0 : i32
    return %c0_i32, %c0_i32_0 : i32, i32
  }
  func.func @transform_20(%arg0: i32) -> (i32, i32) {
    %c0_i32 = arith.constant 0 : i32
    %c0_i32_0 = arith.constant 0 : i32
    %c0_i32_1 = arith.constant 0 : i32
    return %c0_i32, %c0_i32_0 : i32, i32
  }
  func.func @transform_21(%arg0: i32) -> (i32, i32, i32) {
    %c0_i32 = arith.constant 0 : i32
    %c0_i32_0 = arith.constant 0 : i32
    %c0_i32_1 = arith.constant 0 : i32
    %c0_i32_2 = arith.constant 0 : i32
    return %c0_i32, %c0_i32_0, %c0_i32_1 : i32, i32, i32
  }
  func.func @transform_22(%arg0: i32) -> (i32, i32, i32) {
    %c0_i32 = arith.constant 0 : i32
    %c0_i32_0 = arith.constant 0 : i32
    %c0_i32_1 = arith.constant 0 : i32
    %c0_i32_2 = arith.constant 0 : i32
    return %c0_i32, %c0_i32_0, %c0_i32_1 : i32, i32, i32
  }
  func.func @transform_23(%arg0: i32) -> (i32, i32) {
    %c0_i32 = arith.constant 0 : i32
    %c0_i32_0 = arith.constant 0 : i32
    %c0_i32_1 = arith.constant 0 : i32
    return %c0_i32, %c0_i32_0 : i32, i32
  }
  func.func @transform_24(%arg0: i32) -> (i32, i32) {
    %c0_i32 = arith.constant 0 : i32
    %c0_i32_0 = arith.constant 0 : i32
    %c0_i32_1 = arith.constant 0 : i32
    return %c0_i32, %c0_i32_0 : i32, i32
  }
  func.func @transform_25(%arg0: i32) -> (i32, i32) {
    %c0_i32 = arith.constant 0 : i32
    %c0_i32_0 = arith.constant 0 : i32
    %c0_i32_1 = arith.constant 0 : i32
    return %c0_i32, %c0_i32_0 : i32, i32
  }
  func.func @transform_26(%arg0: i32) -> (i32, i32) {
    %c0_i32 = arith.constant 0 : i32
    %c0_i32_0 = arith.constant 0 : i32
    %c0_i32_1 = arith.constant 0 : i32
    return %c0_i32, %c0_i32_0 : i32, i32
  }
  func.func @transform_27(%arg0: i32) -> (i32, i32) {
    %c0_i32 = arith.constant 0 : i32
    %c0_i32_0 = arith.constant 0 : i32
    %c0_i32_1 = arith.constant 0 : i32
    return %c0_i32, %c0_i32_0 : i32, i32
  }
  func.func @transform_28(%arg0: i32) -> (i32, i32) {
    %c0_i32 = arith.constant 0 : i32
    %c0_i32_0 = arith.constant 0 : i32
    %c0_i32_1 = arith.constant 0 : i32
    return %c0_i32, %c0_i32_0 : i32, i32
  }
  func.func @transform_29(%arg0: i32) -> (i32, i32) {
    %c0_i32 = arith.constant 0 : i32
    %c0_i32_0 = arith.constant 0 : i32
    %c0_i32_1 = arith.constant 0 : i32
    return %c0_i32, %c0_i32_0 : i32, i32
  }
  func.func @transform_30(%arg0: i32) -> (i32, i32) {
    %c0_i32 = arith.constant 0 : i32
    %c0_i32_0 = arith.constant 0 : i32
    %c0_i32_1 = arith.constant 0 : i32
    return %c0_i32, %c0_i32_0 : i32, i32
  }
  func.func @transform_31(%arg0: i32) -> (i32, i32) {
    %c0_i32 = arith.constant 0 : i32
    %c0_i32_0 = arith.constant 0 : i32
    %c0_i32_1 = arith.constant 0 : i32
    return %c0_i32, %c0_i32_0 : i32, i32
  }
  func.func @transform_32(%arg0: i32) -> (i32, i32) {
    %c0_i32 = arith.constant 0 : i32
    %c0_i32_0 = arith.constant 0 : i32
    %c0_i32_1 = arith.constant 0 : i32
    return %c0_i32, %c0_i32_0 : i32, i32
  }
  func.func @transform_33(%arg0: i32) -> (i32, i32, i32) {
    %c0_i32 = arith.constant 0 : i32
    %c0_i32_0 = arith.constant 0 : i32
    %c0_i32_1 = arith.constant 0 : i32
    %c0_i32_2 = arith.constant 0 : i32
    return %c0_i32, %c0_i32_0, %c0_i32_1 : i32, i32, i32
  }
  func.func @transform_34(%arg0: i32) -> (i32, i32, i32) {
    %c0_i32 = arith.constant 0 : i32
    %c0_i32_0 = arith.constant 0 : i32
    %c0_i32_1 = arith.constant 0 : i32
    %c0_i32_2 = arith.constant 0 : i32
    return %c0_i32, %c0_i32_0, %c0_i32_1 : i32, i32, i32
  }
  func.func @transform_35(%arg0: i32) -> (i32, i32, i32) {
    %c0_i32 = arith.constant 0 : i32
    %c0_i32_0 = arith.constant 0 : i32
    %c0_i32_1 = arith.constant 0 : i32
    %c0_i32_2 = arith.constant 0 : i32
    return %c0_i32, %c0_i32_0, %c0_i32_1 : i32, i32, i32
  }
  func.func @transform_36(%arg0: i32) -> (i32, i32, i32) {
    %c0_i32 = arith.constant 0 : i32
    %c0_i32_0 = arith.constant 0 : i32
    %c0_i32_1 = arith.constant 0 : i32
    %c0_i32_2 = arith.constant 0 : i32
    return %c0_i32, %c0_i32_0, %c0_i32_1 : i32, i32, i32
  }
  func.func @transform_37(%arg0: i32) -> (i32, i32) {
    %c0_i32 = arith.constant 0 : i32
    %c0_i32_0 = arith.constant 0 : i32
    %c0_i32_1 = arith.constant 0 : i32
    return %c0_i32, %c0_i32_0 : i32, i32
  }
}

</mosaic_0001>

<bundles_post_ra>
// kernel: ed_latent_bank_forward.1
= control target key start
LH: loop header
LB: loop body
LE: loop exit
PB: predicated region body
PF: predicated region fallthrough
CT: control target
= control target key end

     0   :  { %s13823_s6 = smov 17   ;;  %s13824_s10 = smov 15   ;;  %v16269_v4 = vmov 0   ;;  %v171_v6 = vlaneseq  ;;  %vm532_vm4 = vcmask 1043456   ;;  %vm572_vm9 = vcmask 1041408   ;;  %s16266_s0 = inlined_call_operand.smem [shape: u32[38], index: -1, kind: input, shape index: {}] }
   0x1   :  { %s13878_s5 = sld [smem:[%s16266_s0]]   ;;  %s13825_s14 = smov 1   ;;  %617 = vmatprep.mubr.bf16.mxu0 %v16269_v4  ;;  %658 = vmatprep.mubr.bf16.mxu1 %v16269_v4  ;;  %vm568_vm10 = vcmask 293888   ;;  %vm13840_vm15 = vmmov 0  }
   0x2   :  { %s13883_s9 = sld [smem:[%s16266_s0 + %s13823_s6]]   ;;  %s13826_s15 = smov 16   ;;  %12959 = vset.pattern.permute.xlu0 %v16269_v4  ;;  %12980 = vset.pattern.permute.xlu1 %v16269_v4  ;;  %v181_v7 = vshrl.u32 %v171_v6, 7  ;;  %v13940_v8 = vand.u32 127, %v171_v6 }
   0x3   :  { %s13888_s13 = sld [smem:[%s16266_s0 + %s13824_s10]]   ;;  %s13827_s16 = smov 127  }
   0x4   :  { %s13828_s17 = smov 112   ;;  %s13829_s18 = smov 113   ;;  %v13942_v9 = vsub.s32 0, %v181_v7  ;;  %v13944_v10 = vsub.s32 3, %v181_v7  ;;  %v13946_v11 = vsub.s32 2, %v181_v7  ;;  %v13948_v12 = vsub.s32 1, %v181_v7 }
   0x5   :  { %s13831_s19 = smov 111   ;;  %s13832_s20 = smov 8   ;;  %vm292_vm0 = vcmp.lt.s32.totalorder %v13940_v8, 1  ;;  %vm212_vm1 = vcmp.lt.s32.totalorder %v13940_v8, 16  ;;  %vm173_vm2 = vcmp.lt.s32.totalorder %v13940_v8, 17  ;;  %vm252_vm3 = vcmp.lt.s32.totalorder %v13940_v8, 15 }
   0x6   :  { %s10515_s23 = sld [smem:[%s16266_s0 + %s13832_s20]]   ;;  %s13833_s24 = smov 13   ;;  %vm332_vm5 = vcmp.lt.s32.totalorder %v13940_v8, 127  ;;  %vm412_vm6 = vcmp.lt.s32.totalorder %v13940_v8, 112  ;;  %vm372_vm7 = vcmp.lt.s32.totalorder %v13940_v8, 113  ;;  %vm452_vm8 = vcmp.lt.s32.totalorder %v13940_v8, 111 }
   0x7   :  { %v156_v0 = vld [vmem:[%s13878_s5 + $0x8] sm:$0xff]  ;;  %v155_v2 = vld [vmem:[%s13878_s5] sm:$0xff]  ;;  %s13936_s27 = sld [smem:[%s16266_s0 + %s13833_s24]]   ;;  %s13834_s28 = smov 2  }
   0x8   :  { %288 = vrot.lane.b32.xlu1 %v156_v0, %s13825_s14  ;;  %208 = vrot.lane.b32.xlu0 %v156_v0, %s13826_s15  ;;  %v13893_v1 = vcombine.high %v156_v0, %v156_v0  ;;  %v13900_v3 = vcombine.high %v155_v2, %v155_v2  ;;  %s13953_s1 = sld [smem:[%s16266_s0 + %s13834_s28]]   ;;  %s13835_s2 = smov 3  }
   0x9   :  { %s13838_s7 = smov 9   ;;  %s13839_s12 = smov 4  }
   0xa   :  { %s10516_s11 = sld [smem:[%s16266_s0 + %s13838_s7]]   ;;  %s13841_s21 = smov 14  }
   0xb   :  { %s14290_s20 = sld [smem:[%s16266_s0 + %s13839_s12]]   ;;  %s13842_s25 = smov 10  }
   0xc   :  { %290 = vrot.lane.b32.xlu1 %v13893_v1, %s13825_s14  ;;  %210 = vrot.lane.b32.xlu0 %v13893_v1, %s13826_s15  ;;  %v562_v5 = vld [vmem:[%s10515_s23] sm:$0xff]  ;;  %s14318_s24 = sld [smem:[%s16266_s0 + %s13841_s21]]   ;;  %s13843_s29 = smov 5  }
   0xd   :  { %s10517_s28 = sld [smem:[%s16266_s0 + %s13842_s25]]   ;;  %s13845_s7 = smov 11  }
   0xe   :  { %v10547_v13 = vld [vmem:[%s13953_s1 + $0xc] sm:$0xf]  ;;  %v10545_v14 = vld [vmem:[%s13953_s1 + $0x4] sm:$0xf]  ;;  %v13974_v35 = vld [vmem:[%s13953_s1] sm:$0xf] }
   0xf   :  { %v315_v17 = vrot.slane %v10547_v13, %v13944_v10  ;;  %v235_v18 = vrot.slane %v10545_v14, %v13944_v10  ;;  %v311_v25 = vrot.slane %v10547_v13, %v13946_v11  ;;  %v231_v26 = vrot.slane %v10545_v14, %v13946_v11  ;;  %v10546_v40 = vld [vmem:[%s13953_s1 + $0x8] sm:$0xf]  ;;  %s13846_s21 = smov 124   ;;  %s13847_s22 = smov 7  }
  0x10   :  { %286 = vrot.lane.b32.xlu1 %v13900_v3, %s13825_s14  ;;  %206 = vrot.lane.b32.xlu0 %v13900_v3, %s13826_s15  ;;  %v223_v41 = vrot.slane %v10545_v14, %v13942_v9  ;;  %v227_v42 = vrot.slane %v10545_v14, %v13948_v12  ;;  %v195_v43 = vrot.slane %v13974_v35, %v13944_v10  ;;  %s14962_s25 = sld [smem:[%s16266_s0 + %s13847_s22]]   ;;  %s13848_s26 = smov 12  }
  0x11   :  { %v303_v49 = vrot.slane %v10547_v13, %v13942_v9  ;;  %v307_v52 = vrot.slane %v10547_v13, %v13948_v12  ;;  %v275_v53 = vrot.slane %v10546_v40, %v13944_v10  ;;  %v271_v62 = vrot.slane %v10546_v40, %v13946_v11  ;;  %s13849_s30 = smov 18   ;;  %s13850_s3 = smov 20  }
  0x12   :  { %v263_v6 = vrot.slane %v10546_v40, %v13942_v9  ;;  %s13851_s8 = smov 22  }
  0x14   :  { %169 = vrot.lane.b32.xlu1 %v13893_v1, %s13823_s6  ;;  %167 = vrot.lane.b32.xlu0 %v156_v0, %s13823_s6 }
  0x18   :  { %248 = vrot.lane.b32.xlu1 %v156_v0, %s13824_s10  ;;  %204 = vrot.lane.b32.xlu0 %v155_v2, %s13826_s15 }
  0x1c   :  { %284 = vrot.lane.b32.xlu1 %v155_v2, %s13825_s14  ;;  %250 = vrot.lane.b32.xlu0 %v13893_v1, %s13824_s10 }
  0x20   :  { %246 = vrot.lane.b32.xlu1 %v13900_v3, %s13824_s10  ;;  %165 = vrot.lane.b32.xlu0 %v13900_v3, %s13823_s6 }
  0x24   :  { %244 = vrot.lane.b32.xlu1 %v155_v2, %s13824_s10  ;;  %163 = vrot.lane.b32.xlu0 %v155_v2, %s13823_s6  ;;  %s13837_s6 = smov 64  }
  0x28   :  { %330 = vrot.lane.b32.xlu1 %v13893_v1, %s13827_s16  ;;  %324 = vrot.lane.b32.xlu0 %v155_v2, %s13827_s16 }
  0x2c   :  { %410 = vrot.lane.b32.xlu1 %v13893_v1, %s13828_s17  ;;  %404 = vrot.lane.b32.xlu0 %v155_v2, %s13828_s17 }
  0x30   :  { %408 = vrot.lane.b32.xlu1 %v156_v0, %s13828_s17  ;;  %328 = vrot.lane.b32.xlu0 %v156_v0, %s13827_s16 }
  0x34   :  { %364 = vrot.lane.b32.xlu1 %v155_v2, %s13829_s18  ;;  %326 = vrot.lane.b32.xlu0 %v13900_v3, %s13827_s16 }
  0x38   :  { %406 = vrot.lane.b32.xlu1 %v13900_v3, %s13828_s17  ;;  %370 = vrot.lane.b32.xlu0 %v13893_v1, %s13829_s18 }
  0x3c   :  { %366 = vrot.lane.b32.xlu1 %v13900_v3, %s13829_s18  ;;  %368 = vrot.lane.b32.xlu0 %v156_v0, %s13829_s18  ;;  %s14992_s18 = sld [smem:[%s16266_s0 + %s13851_s8]]   ;;  %s13864_s8 = smov 35  }
  0x40   :  { %448 = vrot.lane.b32.xlu1 %v156_v0, %s13831_s19  ;;  %444 = vrot.lane.b32.xlu0 %v155_v2, %s13831_s19 }
  0x44   :  { %446 = vrot.lane.b32.xlu1 %v13900_v3, %s13831_s19  ;;  %450 = vrot.lane.b32.xlu0 %v13893_v1, %s13831_s19  ;;  %s13852_s19 = smov 24  }
  0x45   :  { %s15048_s23 = sld [smem:[%s16266_s0 + %s13852_s19]]  }
  0x48   :  { %565 = vperm.xlu0 %12959, %v562_v5   ;;  %v191_v5 = vrot.slane %v13974_v35, %v13946_v11 }
  0x7a   :  { %v289_v15 = vpop.permute.xlu1 %288  ;;  %v209_v16 = vpop.permute.xlu0 %208 }
  0x7e   :  { %v291_v19 = vpop.permute.xlu1 %290  ;;  %v211_v20 = vpop.permute.xlu0 %210 }
  0x7f   :  { %v293_v21 = vsel %vm292_vm0, %v289_v15, %v291_v19  ;;  %v213_v22 = vsel %vm212_vm1, %v209_v16, %v211_v20 }
  0x80   :  { %v323_v23 = vmul.f32 %v315_v17, %v293_v21  ;;  %v243_v24 = vmul.f32 %v235_v18, %v213_v22  ;;  %v267_v21 = vrot.slane %v10546_v40, %v13948_v12 }
  0x82   :  { %v503_v27 = vrot.slane %v323_v23, 4  ;;  %v491_v28 = vrot.slane %v243_v24, 4  ;;  %v287_v29 = vpop.permute.xlu1 %286  ;;  %v207_v30 = vpop.permute.xlu0 %206  ;;  %v183_v24 = vrot.slane %v13974_v35, %v13942_v9 }
  0x83   :  { %v294_v31 = vsel %vm292_vm0, %v287_v29, %v289_v15  ;;  %v214_v32 = vsel %vm212_vm1, %v207_v30, %v209_v16 }
  0x84   :  { %v322_v33 = vmul.f32 %v311_v25, %v294_v31  ;;  %v242_v34 = vmul.f32 %v231_v26, %v214_v32  ;;  %v187_v25 = vrot.slane %v13974_v35, %v13948_v12  ;;  %v10548_v26 = vld [vmem:[%s13953_s1 + $0x14] sm:$0xf]  ;;  %v10550_v35 = vld [vmem:[%s13953_s1 + $0x1c] sm:$0xf] }
  0x86   :  { %v502_v36 = vrot.slane %v322_v33, 4  ;;  %v490_v37 = vrot.slane %v242_v34, 4  ;;  %v170_v38 = vpop.permute.xlu1 %169  ;;  %v168_v39 = vpop.permute.xlu0 %167 }
  0x87   :  { %v174_v46 = vsel %vm173_vm2, %v168_v39, %v170_v38 }
  0x88   :  { %v203_v54 = vmul.f32 %v195_v43, %v174_v46 }
  0x8a   :  { %v249_v44 = vpop.permute.xlu1 %248  ;;  %v205_v45 = vpop.permute.xlu0 %204  ;;  %v536_v16 = vsel %vm532_vm4, %v203_v54, %v491_v28 }
  0x8b   :  { %v215_v47 = vsel %vm212_vm1, %v205_v45, %v207_v30  ;;  %v216_v48 = vsel %vm212_vm1, %v211_v20, %v205_v45  ;;  %vm2294_vm1 = vcmask 588800  }
  0x8c   :  { %v240_v50 = vmul.f32 %v223_v41, %v216_v48  ;;  %v241_v51 = vmul.f32 %v227_v42, %v215_v47 }
  0x8e   :  { %v488_v55 = vrot.slane %v240_v50, 4  ;;  %v489_v56 = vrot.slane %v241_v51, 4  ;;  %v285_v57 = vpop.permute.xlu1 %284  ;;  %v251_v58 = vpop.permute.xlu0 %250  ;;  %v435_v51 = vrot.slane %v10550_v35, %v13944_v10 }
  0x8f   :  { %v295_v59 = vsel %vm292_vm0, %v285_v57, %v287_v29  ;;  %v296_v60 = vsel %vm292_vm0, %v291_v19, %v285_v57  ;;  %v253_v61 = vsel %vm252_vm3, %v249_v44, %v251_v58  ;;  %v431_v57 = vrot.slane %v10550_v35, %v13946_v11 }
  0x90   :  { %v320_v63 = vmul.f32 %v303_v49, %v296_v60  ;;  %v321_v0 = vmul.f32 %v307_v52, %v295_v59  ;;  %v283_v2 = vmul.f32 %v275_v53, %v253_v61  ;;  %vm868_vm0 = vcmask 523264  }
  0x92   :  { %v500_v7 = vrot.slane %v320_v63, 4  ;;  %v501_v13 = vrot.slane %v321_v0, 4  ;;  %v247_v14 = vpop.permute.xlu1 %246  ;;  %v166_v15 = vpop.permute.xlu0 %165  ;;  %v540_v17 = vsel %vm532_vm4, %v283_v2, %v503_v27  ;;  %v10549_v2 = vld [vmem:[%s13953_s1 + $0x18] sm:$0xf] }
  0x93   :  { %v254_v18 = vsel %vm252_vm3, %v247_v14, %v249_v44  ;;  %v175_v19 = vsel %vm173_vm2, %v166_v15, %v168_v39  ;;  %v552_v20 = vpack.c.bf16 %v540_v17, %v536_v16 }
  0x94   :  { %v282_v22 = vmul.f32 %v271_v62, %v254_v18  ;;  %v202_v23 = vmul.f32 %v191_v5, %v175_v19 }
  0x95   :  { %626 = vmatprep.subr.bf16.mxu1 %v552_v20  ;;  %v423_v20 = vrot.slane %v10550_v35, %v13942_v9 }
  0x96   :  { %v245_v27 = vpop.permute.xlu1 %244  ;;  %v164_v28 = vpop.permute.xlu0 %163  ;;  %v535_v29 = vsel %vm532_vm4, %v202_v23, %v490_v37  ;;  %v539_v30 = vsel %vm532_vm4, %v282_v22, %v502_v36  ;;  %v355_v36 = vrot.slane %v10548_v26, %v13944_v10  ;;  %v427_v23 = vrot.slane %v10550_v35, %v13948_v12 }
  0x97   :  { %v255_v31 = vsel %vm252_vm3, %v245_v27, %v247_v14  ;;  %v256_v32 = vsel %vm252_vm3, %v251_v58, %v245_v27  ;;  %v176_v33 = vsel %vm173_vm2, %v164_v28, %v166_v15  ;;  %v177_v34 = vsel %vm173_vm2, %v170_v38, %v164_v28 }
  0x98   :  { %v280_v39 = vmul.f32 %v263_v6, %v256_v32  ;;  %v281_v40 = vmul.f32 %v267_v21, %v255_v31  ;;  %v200_v41 = vmul.f32 %v183_v24, %v177_v34  ;;  %v201_v42 = vmul.f32 %v187_v25, %v176_v33 }
  0x99   :  { %v551_v37 = vpack.c.bf16 %v539_v30, %v535_v29  ;;  %v351_v58 = vrot.slane %v10548_v26, %v13946_v11  ;;  %v395_v24 = vrot.slane %v10549_v2, %v13944_v10  ;;  %v383_v29 = vrot.slane %v10549_v2, %v13942_v9 }
  0x9a   :  { %v331_v43 = vpop.permute.xlu1 %330  ;;  %v325_v44 = vpop.permute.xlu0 %324  ;;  %v534_v45 = vsel %vm532_vm4, %v201_v42, %v489_v56  ;;  %v538_v46 = vsel %vm532_vm4, %v281_v40, %v501_v13  ;;  %v533_v47 = vsel %vm532_vm4, %v200_v41, %v488_v55  ;;  %v537_v48 = vsel %vm532_vm4, %v280_v39, %v500_v7 }
  0x9b   :  { %627 = vmatpush1.bf16.msra.mxu1 %v551_v37  ;;  %v336_v38 = vsel %vm332_vm5, %v331_v43, %v325_v44  ;;  %v550_v49 = vpack.c.bf16 %v538_v46, %v534_v45  ;;  %v549_v50 = vpack.c.bf16 %v537_v48, %v533_v47  ;;  %v343_v7 = vrot.slane %v10548_v26, %v13942_v9 }
  0x9c   :  { %v363_v52 = vmul.f32 %v355_v36, %v336_v38  ;;  %v347_v13 = vrot.slane %v10548_v26, %v13948_v12  ;;  %v387_v33 = vrot.slane %v10549_v2, %v13948_v12  ;;  %v391_v40 = vrot.slane %v10549_v2, %v13946_v11 }
  0x9d   :  { %585 = vmatprep.subr.bf16.mxu0 %v550_v49 }
  0x9e   :  { %v411_v53 = vpop.permute.xlu1 %410  ;;  %586 = vmatpush1.bf16.msra.mxu0 %v549_v50  ;;  %v405_v54 = vpop.permute.xlu0 %404  ;;  %v515_v59 = vrot.slane %v363_v52, 4 }
  0x9f   :  { %v416_v56 = vsel %vm412_vm6, %v411_v53, %v405_v54 }
  0xa0   :  { %v443_v55 = vmul.f32 %v435_v51, %v416_v56  ;;  %v13821_v51 = vld [vmem:[%s13878_s5 + $0x8] sm:$0xff] }
  0xa2   :  { %v527_v60 = vrot.slane %v443_v55, 4  ;;  %v409_v61 = vpop.permute.xlu1 %408  ;;  %v329_v62 = vpop.permute.xlu0 %328 }
  0xa3   :  { %v413_v63 = vsel %vm412_vm6, %v409_v61, %v411_v53  ;;  %v333_v0 = vsel %vm332_vm5, %v329_v62, %v331_v43  ;;  %v544_v43 = vsel %vm532_vm4, %v13893_v1, %v515_v59  ;;  %v10551_v53 = vld [vmem:[%s13953_s1 + $0x20] sm:$0xf]  ;;  %s13862_s1 = smov 30  }
  0xa4   :  { %v442_v5 = vmul.f32 %v431_v57, %v413_v63  ;;  %v362_v6 = vmul.f32 %v351_v58, %v333_v0  ;;  %v13822_v58 = vld [vmem:[%s13878_s5] sm:$0xff]  ;;  %v467_v63 = vrot.slane %v10551_v53, %v13948_v12  ;;  %v475_v0 = vrot.slane %v10551_v53, %v13944_v10  ;;  %s10510_s5 = sld [smem:[%s16266_s0 + %s13835_s2]]  }
  0xa5   :  { %v463_v2 = vrot.slane %v10551_v53, %v13942_v9  ;;  %s14451_s2 = sld [smem:[%s16266_s0 + %s13843_s29]]  }
  0xa6   :  { %v526_v14 = vrot.slane %v442_v5, 4  ;;  %v514_v15 = vrot.slane %v362_v6, 4  ;;  %v365_v16 = vpop.permute.xlu1 %364  ;;  %v327_v17 = vpop.permute.xlu0 %326  ;;  %v471_v5 = vrot.slane %v10551_v53, %v13946_v11  ;;  %v13464_v53 = vld [vmem:[%s13936_s27 + $0x38] sm:$0xff]   ;;  %s10519_s29 = sld [smem:[%s16266_s0 + %s13848_s26]]  }
  0xa7   :  { %v334_v18 = vsel %vm332_vm5, %v327_v17, %v329_v62  ;;  %v335_v19 = vsel %vm332_vm5, %v325_v44, %v327_v17  ;;  %s10508_s26 = sld [smem:[%s16266_s0 + %s13825_s14]]  }
  0xa8   :  { %v360_v21 = vmul.f32 %v343_v7, %v335_v19  ;;  %v361_v22 = vmul.f32 %v347_v13, %v334_v18  ;;  %v543_v52 = vsel %vm532_vm4, %v13821_v51, %v514_v15  ;;  %v13462_v51 = vld [vmem:[%s13936_s27 + $0x78] sm:$0xff]  }
  0xaa   :  { %v512_v25 = vrot.slane %v360_v21, 4  ;;  %v513_v26 = vrot.slane %v361_v22, 4  ;;  %v407_v27 = vpop.permute.xlu1 %406  ;;  %v371_v28 = vpop.permute.xlu0 %370  ;;  %v13434_v22 = vld [vmem:[%s13936_s27 + $0x40] sm:$0xff]  }
  0xab   :  { %v414_v30 = vsel %vm412_vm6, %v407_v27, %v409_v61  ;;  %v415_v31 = vsel %vm412_vm6, %v405_v54, %v407_v27  ;;  %v376_v32 = vsel %vm372_vm7, %v371_v28, %v365_v16  ;;  %v13437_v27 = vld [vmem:[%s13936_s27 + $0x100] sm:$0xff]  }
  0xac   :  { %v440_v34 = vmul.f32 %v423_v20, %v415_v31  ;;  %v441_v35 = vmul.f32 %v427_v23, %v414_v30  ;;  %v403_v39 = vmul.f32 %v395_v24, %v376_v32  ;;  %v542_v1 = vsel %vm532_vm4, %v13900_v3, %v513_v26  ;;  %v13435_v23 = vld [vmem:[%s13936_s27 + $0x140] sm:$0xff]   ;;  %v13440_v30 = vld [vmem:[%s13936_s27 + $0x8] sm:$0xff]   ;;  %v13442_v32 = vld [vmem:[%s13936_s27 + $0x50] sm:$0xff]  }
  0xad   :  { %v541_v59 = vsel %vm532_vm4, %v13822_v58, %v512_v25  ;;  %v561_v25 = vld [vmem:[%s10510_s5] sm:$0xf]  ;;  %v13441_v31 = vld [vmem:[%s13936_s27 + $0x108] sm:$0xff]  }
  0xae   :  { %v524_v41 = vrot.slane %v440_v34, 4  ;;  %v525_v42 = vrot.slane %v441_v35, 4  ;;  %v367_v37 = vpop.permute.xlu1 %366  ;;  %v369_v36 = vpop.permute.xlu0 %368  ;;  %v548_v44 = vsel %vm532_vm4, %v403_v39, %v527_v60  ;;  %v13436_v26 = vld [vmem:[%s13936_s27] sm:$0xff]   ;;  %v13444_v34 = vld [vmem:[%s13936_s27 + $0x10] sm:$0xff]   ;;  %v13446_v39 = vld [vmem:[%s13936_s27 + $0x58] sm:$0xff]  }
  0xaf   :  { %v375_v45 = vsel %vm372_vm7, %v365_v16, %v367_v37  ;;  %v373_v46 = vsel %vm372_vm7, %v369_v36, %v371_v28  ;;  %v374_v47 = vsel %vm372_vm7, %v367_v37, %v369_v36  ;;  %v556_v48 = vpack.c.bf16 %v548_v44, %v544_v43  ;;  %v13438_v28 = vld [vmem:[%s13936_s27 + $0x48] sm:$0xff]   ;;  %v13445_v35 = vld [vmem:[%s13936_s27 + $0x110] sm:$0xff]   ;;  %v13450_v37 = vld [vmem:[%s13936_s27 + $0x60] sm:$0xff]  }
  0xb0   :  { %v400_v38 = vmul.f32 %v383_v29, %v375_v45  ;;  %v401_v49 = vmul.f32 %v387_v33, %v374_v47  ;;  %v402_v50 = vmul.f32 %v391_v40, %v373_v46  ;;  %v13439_v29 = vld [vmem:[%s13936_s27 + $0x148] sm:$0xff]   ;;  %v13443_v33 = vld [vmem:[%s13936_s27 + $0x150] sm:$0xff]   ;;  %v13447_v40 = vld [vmem:[%s13936_s27 + $0x158] sm:$0xff]  }
  0xb1   :  { %628 = vmatprep.subr.bf16.mxu1 %v556_v48  ;;  %v13451_v36 = vld [vmem:[%s13936_s27 + $0x160] sm:$0xff]   ;;  %v13454_v45 = vld [vmem:[%s13936_s27 + $0x68] sm:$0xff]  }
  0xb2   :  { %v449_v54 = vpop.permute.xlu1 %448  ;;  %v445_v56 = vpop.permute.xlu0 %444  ;;  %v546_v55 = vsel %vm532_vm4, %v401_v49, %v525_v42  ;;  %v547_v57 = vsel %vm532_vm4, %v402_v50, %v526_v14  ;;  %v545_v60 = vsel %vm532_vm4, %v400_v38, %v524_v41  ;;  %v13448_v41 = vld [vmem:[%s13936_s27 + $0x18] sm:$0xff]   ;;  %v13452_v43 = vld [vmem:[%s13936_s27 + $0x20] sm:$0xff]   ;;  %v13455_v46 = vld [vmem:[%s13936_s27 + $0x168] sm:$0xff]  }
  0xb3   :  { %v554_v61 = vpack.c.bf16 %v546_v55, %v542_v1  ;;  %v555_v62 = vpack.c.bf16 %v547_v57, %v543_v52  ;;  %v553_v3 = vpack.c.bf16 %v545_v60, %v541_v59  ;;  %v13449_v42 = vld [vmem:[%s13936_s27 + $0x118] sm:$0xff]   ;;  %v13453_v44 = vld [vmem:[%s13936_s27 + $0x120] sm:$0xff]   ;;  %v13456_v47 = vld [vmem:[%s13936_s27 + $0x28] sm:$0xff]  }
  0xb4   :  { %v13457_v48 = vld [vmem:[%s13936_s27 + $0x128] sm:$0xff]   ;;  %v13458_v38 = vld [vmem:[%s13936_s27 + $0x70] sm:$0xff]   ;;  %v13463_v52 = vld [vmem:[%s13936_s27 + $0x178] sm:$0xff]  }
  0xb5   :  { %587 = vmatprep.subr.bf16.mxu0 %v554_v61  ;;  %629 = vmatpush1.bf16.msra.mxu1 %v555_v62  ;;  %v13459_v49 = vld [vmem:[%s13936_s27 + $0x170] sm:$0xff]   ;;  %v13467_v55 = vld [vmem:[%s13936_s27 + $0x240] sm:$0xff]  }
  0xb6   :  { %v447_v6 = vpop.permute.xlu1 %446  ;;  %588 = vmatpush1.bf16.msra.mxu0 %v553_v3  ;;  %v451_v7 = vpop.permute.xlu0 %450  ;;  %v13460_v50 = vld [vmem:[%s13936_s27 + $0x30] sm:$0xff]  }
  0xb7   :  { %v454_v12 = vsel %vm452_vm8, %v447_v6, %v449_v54  ;;  %v455_v10 = vsel %vm452_vm8, %v445_v56, %v447_v6  ;;  %v453_v11 = vsel %vm452_vm8, %v449_v54, %v451_v7  ;;  %v456_v13 = vsel %vm452_vm8, %v451_v7, %v445_v56  ;;  %v13461_v1 = vld [vmem:[%s13936_s27 + $0x130] sm:$0xff]   ;;  %v13465_v54 = vld [vmem:[%s13936_s27 + $0x138] sm:$0xff]   ;;  %v13466_v56 = vld [vmem:[%s13936_s27 + $0xc0] sm:$0xff]  }
  0xb8   :  { %v481_v14 = vmul.f32 %v467_v63, %v454_v12  ;;  %v483_v15 = vmul.f32 %v475_v0, %v456_v13  ;;  %v480_v16 = vmul.f32 %v463_v2, %v455_v10  ;;  %v482_v17 = vmul.f32 %v471_v5, %v453_v11 }
  0xba   :  { %v558_v18 = vpack.c.bf16 %v481_v14, %v481_v14  ;;  %v560_v19 = vpack.c.bf16 %v483_v15, %v483_v15  ;;  %v557_v20 = vpack.c.bf16 %v480_v16, %v480_v16  ;;  %v559_v21 = vpack.c.bf16 %v482_v17, %v482_v17 }
  0xbc   :  { %10552 = vmatprep.subr.msk.bf16.mxu0 %vm572_vm9, %v558_v18  ;;  %10554 = vmatprep.subr.msk.bf16.mxu1 %vm572_vm9, %v560_v19  ;;  %v574_v8 = vsel %vm572_vm9, %v557_v20, 0  ;;  %v580_v24 = vsel %vm572_vm9, %v559_v21, 0 }
  0xbd   :  { %590 = vmatpush1.bf16.msra.mxu0 %v574_v8  ;;  %631 = vmatpush1.bf16.msra.mxu1 %v580_v24  ;;  %v13468_v24 = vld [vmem:[%s13936_s27 + $0x80] sm:$0xff]  }
  0xbe   :  { %11583 = vmatprep.subr.bf16.mxu1 %v13434_v22  ;;  %11627 = vmatprep.subr.bf16.mxu0 %v13435_v23 }
  0xc0   :  { %10553 = vmatmul.mubr.msk.bf16.vlgmr.msra.gmra.mrb[0].mxu0 %vm568_vm10, %v561_v25  ;;  %10555 = vmatmul.mubr.msk.bf16.vlgmr.msra.gmra.mrb[0].mxu1 %vm568_vm10, %v561_v25  ;;  %v13469_v25 = vld [vmem:[%s13936_s27 + $0x200] sm:$0xff]   ;;  %vm4254_vm10 = vcmask 261120  }
  0xc1   :  { %11584 = vmatpush3.bf16.msra.mxu1 %v13436_v26  ;;  %11628 = vmatpush3.bf16.msra.mxu0 %v13437_v27  ;;  %v13470_v27 = vld [vmem:[%s13936_s27 + $0xc8] sm:$0xff]  }
  0xc2   :  { %11585 = vmatprep.subr.bf16.mxu1 %v13438_v28  ;;  %11629 = vmatprep.subr.bf16.mxu0 %v13439_v29  ;;  %v13471_v28 = vld [vmem:[%s13936_s27 + $0x248] sm:$0xff]  }
  0xc3   :  { %v13472_v29 = vld [vmem:[%s13936_s27 + $0x88] sm:$0xff]  }
  0xc5   :  { %11586 = vmatpush3.bf16.msra.mxu1 %v13440_v30  ;;  %11630 = vmatpush3.bf16.msra.mxu0 %v13441_v31  ;;  %v13473_v30 = vld [vmem:[%s13936_s27 + $0x208] sm:$0xff]   ;;  %v13474_v31 = vld [vmem:[%s13936_s27 + $0xd0] sm:$0xff]  }
  0xc6   :  { %11587 = vmatprep.subr.bf16.mxu1 %v13442_v32  ;;  %11631 = vmatprep.subr.bf16.mxu0 %v13443_v33  ;;  %v13475_v32 = vld [vmem:[%s13936_s27 + $0x250] sm:$0xff]  }
  0xc7   :  { %v566_v57 = vpop.permute.xlu0 %565  ;;  %v13476_v33 = vld [vmem:[%s13936_s27 + $0x90] sm:$0xff]  }
  0xc9   :  { %11588 = vmatpush3.bf16.msra.mxu1 %v13444_v34  ;;  %11632 = vmatpush3.bf16.msra.mxu0 %v13445_v35  ;;  %v13477_v34 = vld [vmem:[%s13936_s27 + $0x210] sm:$0xff]   ;;  %v13478_v35 = vld [vmem:[%s13936_s27 + $0xd8] sm:$0xff]  }
  0xca   :  { %11589 = vmatprep.subr.bf16.mxu1 %v13446_v39  ;;  %11633 = vmatprep.subr.bf16.mxu0 %v13447_v40  ;;  %v13479_v39 = vld [vmem:[%s13936_s27 + $0x258] sm:$0xff]  }
  0xcb   :  { %v13480_v40 = vld [vmem:[%s13936_s27 + $0x98] sm:$0xff]  }
  0xcd   :  { %11590 = vmatpush3.bf16.msra.mxu1 %v13448_v41  ;;  %11634 = vmatpush3.bf16.msra.mxu0 %v13449_v42  ;;  %v13481_v41 = vld [vmem:[%s13936_s27 + $0x218] sm:$0xff]   ;;  %v13482_v42 = vld [vmem:[%s13936_s27 + $0xe0] sm:$0xff]  }
  0xce   :  { %11591 = vmatprep.subr.bf16.mxu1 %v13450_v37  ;;  %11635 = vmatprep.subr.bf16.mxu0 %v13451_v36  ;;  %v13483_v37 = vld [vmem:[%s13936_s27 + $0x260] sm:$0xff]  }
  0xcf   :  { %v13484_v36 = vld [vmem:[%s13936_s27 + $0xa0] sm:$0xff]  }
  0xd1   :  { %11592 = vmatpush3.bf16.msra.mxu1 %v13452_v43  ;;  %11636 = vmatpush3.bf16.msra.mxu0 %v13453_v44  ;;  %v13485_v43 = vld [vmem:[%s13936_s27 + $0x220] sm:$0xff]   ;;  %v13486_v44 = vld [vmem:[%s13936_s27 + $0xe8] sm:$0xff]  }
  0xd2   :  { %11593 = vmatprep.subr.bf16.mxu1 %v13454_v45  ;;  %11637 = vmatprep.subr.bf16.mxu0 %v13455_v46  ;;  %v13487_v45 = vld [vmem:[%s13936_s27 + $0x268] sm:$0xff]  }
  0xd3   :  { %v13488_v46 = vld [vmem:[%s13936_s27 + $0xa8] sm:$0xff]  }
  0xd5   :  { %11594 = vmatpush3.bf16.msra.mxu1 %v13456_v47  ;;  %11638 = vmatpush3.bf16.msra.mxu0 %v13457_v48  ;;  %v13489_v47 = vld [vmem:[%s13936_s27 + $0x228] sm:$0xff]   ;;  %v13490_v48 = vld [vmem:[%s13936_s27 + $0xf0] sm:$0xff]  }
  0xd6   :  { %11595 = vmatprep.subr.bf16.mxu1 %v13458_v38  ;;  %11639 = vmatprep.subr.bf16.mxu0 %v13459_v49  ;;  %v13491_v38 = vld [vmem:[%s13936_s27 + $0x270] sm:$0xff]  }
  0xd7   :  { %v13492_v49 = vld [vmem:[%s13936_s27 + $0xb0] sm:$0xff]  }
  0xd9   :  { %11596 = vmatpush3.bf16.msra.mxu1 %v13460_v50  ;;  %11640 = vmatpush3.bf16.msra.mxu0 %v13461_v1  ;;  %v13493_v50 = vld [vmem:[%s13936_s27 + $0x230] sm:$0xff]   ;;  %v13494_v1 = vld [vmem:[%s13936_s27 + $0xf8] sm:$0xff]  }
  0xda   :  { %11597 = vmatprep.subr.bf16.mxu1 %v13462_v51  ;;  %11641 = vmatprep.subr.bf16.mxu0 %v13463_v52  ;;  %v13495_v51 = vld [vmem:[%s13936_s27 + $0x278] sm:$0xff]  }
  0xdb   :  { %v13496_v52 = vld [vmem:[%s13936_s27 + $0xb8] sm:$0xff]  }
  0xdd   :  { %11598 = vmatpush3.bf16.msra.mxu1 %v13464_v53  ;;  %11642 = vmatpush3.bf16.msra.mxu0 %v13465_v54  ;;  %v13497_v53 = vld [vmem:[%s13936_s27 + $0x238] sm:$0xff]   ;;  %v13498_v54 = vld [vmem:[%s13936_s27 + $0x1c0] sm:$0xff]  }
  0xde   :  { %11605 = vmatprep.subr.bf16.mxu1 %v13466_v56  ;;  %11671 = vmatprep.subr.bf16.mxu0 %v13467_v55  ;;  %v13499_v56 = vld [vmem:[%s13936_s27 + $0x340] sm:$0xff]  }
  0xdf   :  { %v13500_v55 = vld [vmem:[%s13936_s27 + $0x180] sm:$0xff]  }
 0x193   :  { %v619_v58 = vpop.f32.mrb[0].mxu0  ;;  %v660_v59 = vpop.f32.mrb[0].mxu1 }
 0x194   :  { %v620_v60 = vadd.f32 %v619_v58, %v566_v57  ;;  %v661_v61 = vadd.f32 %v660_v59, %v566_v57  ;;  %v621_v62 = vpop.f32.mrb[1].mxu0  ;;  %v662_v3 = vpop.f32.mrb[1].mxu1  ;;  %v13502_v58 = vld [vmem:[%s13936_s27 + $0x1c8] sm:$0xff]  }
 0x195   :  { %v622_v63 = vadd.f32 %v621_v62, %v566_v57  ;;  %v663_v0 = vadd.f32 %v662_v3, %v566_v57  ;;  %v623_v2 = vpop.f32.mrb[2].mxu0  ;;  %v664_v5 = vpop.f32.mrb[2].mxu1  ;;  %v13501_v57 = vld [vmem:[%s13936_s27 + $0x300] sm:$0xff]   ;;  %v13503_v59 = vld [vmem:[%s13936_s27 + $0x348] sm:$0xff]   ;;  %v13506_v62 = vld [vmem:[%s13936_s27 + $0x1d0] sm:$0xff]  }
 0x196   :  { %vm667_vm11 = vcmp.ge.f32.partialorder %v620_v60, 0.0  ;;  %vm669_vm12 = vcmp.ge.f32.partialorder %v661_v61, 0.0  ;;  %v671_v6 = vmul.f32 0.2, %v620_v60  ;;  %v673_v7 = vmul.f32 0.2, %v661_v61 }
 0x197   :  { %vm668_vm13 = vcmp.ge.f32.partialorder %v622_v63, 0.0  ;;  %v672_v12 = vmul.f32 0.2, %v622_v63  ;;  %vm670_vm14 = vcmp.ge.f32.partialorder %v663_v0, 0.0  ;;  %v674_v10 = vmul.f32 0.2, %v663_v0 }
 0x198   :  { %v675_v11 = vsel %vm667_vm11, %v620_v60, %v671_v6  ;;  %v677_v13 = vsel %vm669_vm12, %v661_v61, %v673_v7  ;;  %v624_v14 = vpop.f32.mrb[3].mxu0  ;;  %v665_v15 = vpop.f32.mrb[3].mxu1  ;;  %v13504_v60 = vld [vmem:[%s13936_s27 + $0x188] sm:$0xff]   ;;  %v13507_v3 = vld [vmem:[%s13936_s27 + $0x350] sm:$0xff]   ;;  %v13510_v2 = vld [vmem:[%s13936_s27 + $0x1d8] sm:$0xff]   ;;  %vm3417_vm11 = vcmask 31744  }
 0x199   :  { %v681_v16 = vpack.c.bf16 %v677_v13, %v677_v13  ;;  %v676_v17 = vsel %vm668_vm13, %v622_v63, %v672_v12  ;;  %v678_v18 = vsel %vm670_vm14, %v663_v0, %v674_v10  ;;  %v679_v20 = vpack.c.bf16 %v675_v11, %v675_v11  ;;  %v13505_v61 = vld [vmem:[%s13936_s27 + $0x308] sm:$0xff]   ;;  %v13508_v63 = vld [vmem:[%s13936_s27 + $0x190] sm:$0xff]   ;;  %v13511_v5 = vld [vmem:[%s13936_s27 + $0x358] sm:$0xff]  }
 0x19a   :  { %v682_v19 = vpack.c.bf16 %v678_v18, %v678_v18  ;;  %v680_v22 = vpack.c.bf16 %v676_v17, %v676_v17  ;;  %v13509_v0 = vld [vmem:[%s13936_s27 + $0x310] sm:$0xff]   ;;  %v13512_v6 = vld [vmem:[%s13936_s27 + $0x198] sm:$0xff]   ;;  %v13514_v12 = vld [vmem:[%s13936_s27 + $0x1e0] sm:$0xff]  }
 0x19b   :  { %v685_v21 = vrot.slane %v681_v16, 4  ;;  %v13513_v7 = vld [vmem:[%s13936_s27 + $0x318] sm:$0xff]   ;;  %v13515_v10 = vld [vmem:[%s13936_s27 + $0x360] sm:$0xff]   ;;  %v13518_v14 = vld [vmem:[%s13936_s27 + $0x1e8] sm:$0xff]  }
 0x19c   :  { %v686_v23 = vrot.slane %v682_v19, 4  ;;  %v13516_v11 = vld [vmem:[%s13936_s27 + $0x1a0] sm:$0xff]   ;;  %v13519_v15 = vld [vmem:[%s13936_s27 + $0x368] sm:$0xff]   ;;  %v13522_v18 = vld [vmem:[%s13936_s27 + $0x1f0] sm:$0xff]  }
 0x19d   :  { %v14135_v8 = vsel %vm532_vm4, %v679_v20, %v685_v21  ;;  %v13517_v13 = vld [vmem:[%s13936_s27 + $0x320] sm:$0xff]   ;;  %v13520_v16 = vld [vmem:[%s13936_s27 + $0x1a8] sm:$0xff]   ;;  %v13523_v19 = vld [vmem:[%s13936_s27 + $0x370] sm:$0xff]  }
 0x19e   :  { %v14140_v26 = vsel %vm532_vm4, %v680_v22, %v686_v23  ;;  %v13521_v17 = vld [vmem:[%s13936_s27 + $0x328] sm:$0xff]   ;;  %v13524_v20 = vld [vmem:[%s13936_s27 + $0x1b0] sm:$0xff]   ;;  %v13526_v22 = vld [vmem:[%s13936_s27 + $0x1f8] sm:$0xff]  }
 0x19f   :  { %855 = vmatprep.mubr.bf16.mxu1 %v14140_v26  ;;  %1206 = vmatprep.mubr.bf16.mxu0 %v14140_v26  ;;  %v13525_v21 = vld [vmem:[%s13936_s27 + $0x330] sm:$0xff]   ;;  %v13527_v23 = vld [vmem:[%s13936_s27 + $0x378] sm:$0xff]  }
 0x1a0   :  { %856 = vmatmul.mubr.bf16.vlgmr.msra.gmra.mrb[4].mxu1 %v14135_v8  ;;  %1207 = vmatmul.mubr.bf16.vlgmr.msra.gmra.mrb[4].mxu0 %v14135_v8 }
 0x1a1   :  { %11606 = vmatpush3.bf16.msra.mxu1 %v13468_v24  ;;  %11672 = vmatpush3.bf16.msra.mxu0 %v13469_v25  ;;  %v13528_v24 = vld [vmem:[%s13936_s27 + $0x1b8] sm:$0xff]  }
 0x1a2   :  { %1031 = vmatprep.mubr.bf16.mxu1 %v14140_v26  ;;  %1556 = vmatprep.mubr.bf16.mxu0 %v14140_v26  ;;  %v13529_v25 = vld [vmem:[%s13936_s27 + $0x338] sm:$0xff]  }
 0x1a3   :  { %11607 = vmatprep.subr.bf16.mxu1 %v13470_v27  ;;  %11673 = vmatprep.subr.bf16.mxu0 %v13471_v28  ;;  %v13530_v27 = vld [vmem:[%s13936_s27 + $0x2c0] sm:$0xff]  }
 0x1a4   :  { %v13531_v28 = vld [vmem:[%s13936_s27 + $0x440] sm:$0xff]  }
 0x1a5   :  { %11608 = vmatpush3.bf16.msra.mxu1 %v13472_v29  ;;  %11674 = vmatpush3.bf16.msra.mxu0 %v13473_v30  ;;  %v13532_v29 = vld [vmem:[%s13936_s27 + $0x280] sm:$0xff]  }
 0x1a6   :  { %11609 = vmatprep.subr.bf16.mxu1 %v13474_v31  ;;  %11675 = vmatprep.subr.bf16.mxu0 %v13475_v32  ;;  %v13533_v30 = vld [vmem:[%s13936_s27 + $0x400] sm:$0xff]   ;;  %v13534_v31 = vld [vmem:[%s13936_s27 + $0x2c8] sm:$0xff]  }
 0x1a7   :  { %v13535_v32 = vld [vmem:[%s13936_s27 + $0x448] sm:$0xff]  }
 0x1a9   :  { %11610 = vmatpush3.bf16.msra.mxu1 %v13476_v33  ;;  %11676 = vmatpush3.bf16.msra.mxu0 %v13477_v34  ;;  %v13536_v33 = vld [vmem:[%s13936_s27 + $0x288] sm:$0xff]  }
 0x1aa   :  { %11611 = vmatprep.subr.bf16.mxu1 %v13478_v35  ;;  %11677 = vmatprep.subr.bf16.mxu0 %v13479_v39  ;;  %v13537_v34 = vld [vmem:[%s13936_s27 + $0x408] sm:$0xff]   ;;  %v13538_v35 = vld [vmem:[%s13936_s27 + $0x2d0] sm:$0xff]  }
 0x1ab   :  { %v13539_v39 = vld [vmem:[%s13936_s27 + $0x450] sm:$0xff]  }
 0x1ad   :  { %11612 = vmatpush3.bf16.msra.mxu1 %v13480_v40  ;;  %11678 = vmatpush3.bf16.msra.mxu0 %v13481_v41  ;;  %v13540_v40 = vld [vmem:[%s13936_s27 + $0x290] sm:$0xff]  }
 0x1ae   :  { %11613 = vmatprep.subr.bf16.mxu1 %v13482_v42  ;;  %11679 = vmatprep.subr.bf16.mxu0 %v13483_v37  ;;  %v13541_v41 = vld [vmem:[%s13936_s27 + $0x410] sm:$0xff]   ;;  %v13542_v42 = vld [vmem:[%s13936_s27 + $0x2d8] sm:$0xff]  }
 0x1af   :  { %v13543_v37 = vld [vmem:[%s13936_s27 + $0x458] sm:$0xff]  }
 0x1b1   :  { %11614 = vmatpush3.bf16.msra.mxu1 %v13484_v36  ;;  %11680 = vmatpush3.bf16.msra.mxu0 %v13485_v43  ;;  %v13544_v36 = vld [vmem:[%s13936_s27 + $0x298] sm:$0xff]  }
 0x1b2   :  { %11615 = vmatprep.subr.bf16.mxu1 %v13486_v44  ;;  %11681 = vmatprep.subr.bf16.mxu0 %v13487_v45  ;;  %v13545_v43 = vld [vmem:[%s13936_s27 + $0x418] sm:$0xff]   ;;  %v13546_v44 = vld [vmem:[%s13936_s27 + $0x2e0] sm:$0xff]  }
 0x1b3   :  { %v13547_v45 = vld [vmem:[%s13936_s27 + $0x460] sm:$0xff]  }
 0x1b5   :  { %11616 = vmatpush3.bf16.msra.mxu1 %v13488_v46  ;;  %11682 = vmatpush3.bf16.msra.mxu0 %v13489_v47  ;;  %v13548_v46 = vld [vmem:[%s13936_s27 + $0x2a0] sm:$0xff]  }
 0x1b6   :  { %11617 = vmatprep.subr.bf16.mxu1 %v13490_v48  ;;  %11683 = vmatprep.subr.bf16.mxu0 %v13491_v38  ;;  %v13549_v47 = vld [vmem:[%s13936_s27 + $0x420] sm:$0xff]   ;;  %v13550_v48 = vld [vmem:[%s13936_s27 + $0x2e8] sm:$0xff]  }
 0x1b7   :  { %v13551_v38 = vld [vmem:[%s13936_s27 + $0x468] sm:$0xff]  }
 0x1b9   :  { %11618 = vmatpush3.bf16.msra.mxu1 %v13492_v49  ;;  %11684 = vmatpush3.bf16.msra.mxu0 %v13493_v50  ;;  %v13552_v49 = vld [vmem:[%s13936_s27 + $0x2a8] sm:$0xff]  }
 0x1ba   :  { %11619 = vmatprep.subr.bf16.mxu1 %v13494_v1  ;;  %11685 = vmatprep.subr.bf16.mxu0 %v13495_v51  ;;  %v13553_v50 = vld [vmem:[%s13936_s27 + $0x428] sm:$0xff]   ;;  %v13554_v1 = vld [vmem:[%s13936_s27 + $0x2f0] sm:$0xff]  }
 0x1bb   :  { %v13555_v51 = vld [vmem:[%s13936_s27 + $0x470] sm:$0xff]  }
 0x1bd   :  { %11620 = vmatpush3.bf16.msra.mxu1 %v13496_v52  ;;  %11686 = vmatpush3.bf16.msra.mxu0 %v13497_v53  ;;  %v13556_v52 = vld [vmem:[%s13936_s27 + $0x2b0] sm:$0xff]  }
 0x1be   :  { %11649 = vmatprep.subr.bf16.mxu1 %v13498_v54  ;;  %11715 = vmatprep.subr.bf16.mxu0 %v13499_v56  ;;  %v13557_v53 = vld [vmem:[%s13936_s27 + $0x430] sm:$0xff]   ;;  %v13558_v54 = vld [vmem:[%s13936_s27 + $0x2f8] sm:$0xff]  }
 0x1bf   :  { %v13559_v56 = vld [vmem:[%s13936_s27 + $0x478] sm:$0xff]  }
 0x1c0   :  { %1032 = vmatmul.mubr.bf16.vlgmr.msra.gmra.mrb[8].mxu1 %v14135_v8  ;;  %1557 = vmatmul.mubr.bf16.vlgmr.msra.gmra.mrb[8].mxu0 %v14135_v8 }
 0x1c1   :  { %11650 = vmatpush3.bf16.msra.mxu1 %v13500_v55  ;;  %1381 = vmatprep.mubr.bf16.mxu1 %v14140_v26  ;;  %v13560_v55 = vld [vmem:[%s13936_s27 + $0x2b8] sm:$0xff]  }
 0x1c2   :  { %11716 = vmatpush3.bf16.msra.mxu0 %v13501_v57  ;;  %1906 = vmatprep.mubr.bf16.mxu0 %v14140_v26  ;;  %v13561_v57 = vld [vmem:[%s13936_s27 + $0x438] sm:$0xff]  }
 0x1c3   :  { %11651 = vmatprep.subr.bf16.mxu1 %v13502_v58  ;;  %11717 = vmatprep.subr.bf16.mxu0 %v13503_v59  ;;  %v13562_v58 = vld [vmem:[%s13936_s27 + $0x3c0] sm:$0xff]  }
 0x1c4   :  { %v13563_v59 = vld [vmem:[%s13936_s27 + $0x380] sm:$0xff]  }
 0x1c5   :  { %11652 = vmatpush3.bf16.msra.mxu1 %v13504_v60  ;;  %v13564_v60 = vld [vmem:[%s13936_s27 + $0x3c8] sm:$0xff]  }
 0x1c6   :  { %11718 = vmatpush3.bf16.msra.mxu0 %v13505_v61  ;;  %11653 = vmatprep.subr.bf16.mxu1 %v13506_v62  ;;  %v13565_v61 = vld [vmem:[%s13936_s27 + $0x388] sm:$0xff]   ;;  %v13566_v62 = vld [vmem:[%s13936_s27 + $0x3d0] sm:$0xff]  }
 0x1c7   :  { %11719 = vmatprep.subr.bf16.mxu0 %v13507_v3  ;;  %v13567_v3 = vld [vmem:[%s13936_s27 + $0x390] sm:$0xff]  }
 0x1c9   :  { %11654 = vmatpush3.bf16.msra.mxu1 %v13508_v63  ;;  %v13568_v63 = vld [vmem:[%s13936_s27 + $0x3d8] sm:$0xff]  }
 0x1ca   :  { %11720 = vmatpush3.bf16.msra.mxu0 %v13509_v0  ;;  %11655 = vmatprep.subr.bf16.mxu1 %v13510_v2  ;;  %v13569_v0 = vld [vmem:[%s13936_s27 + $0x398] sm:$0xff]   ;;  %v13570_v2 = vld [vmem:[%s13936_s27 + $0x3e0] sm:$0xff]  }
 0x1cb   :  { %11721 = vmatprep.subr.bf16.mxu0 %v13511_v5  ;;  %v13571_v5 = vld [vmem:[%s13936_s27 + $0x3a0] sm:$0xff]  }
 0x1cd   :  { %11656 = vmatpush3.bf16.msra.mxu1 %v13512_v6  ;;  %v13572_v6 = vld [vmem:[%s13936_s27 + $0x3e8] sm:$0xff]  }
 0x1ce   :  { %11722 = vmatpush3.bf16.msra.mxu0 %v13513_v7  ;;  %11657 = vmatprep.subr.bf16.mxu1 %v13514_v12  ;;  %v13574_v7 = vld [vmem:[%s13936_s27 + $0x3f0] sm:$0xff]  }
 0x1cf   :  { %11723 = vmatprep.subr.bf16.mxu0 %v13515_v10  ;;  %v13575_v12 = vld [vmem:[%s13936_s27 + $0x3b0] sm:$0xff]   ;;  %v13576_v10 = vld [vmem:[%s13936_s27 + $0x3f8] sm:$0xff]  }
 0x1d1   :  { %11658 = vmatpush3.bf16.msra.mxu1 %v13516_v11  ;;  %v13577_v11 = vld [vmem:[%s13936_s27 + $0x3b8] sm:$0xff]  }
 0x1d2   :  { %11724 = vmatpush3.bf16.msra.mxu0 %v13517_v13  ;;  %11659 = vmatprep.subr.bf16.mxu1 %v13518_v14 }
 0x1d3   :  { %11725 = vmatprep.subr.bf16.mxu0 %v13519_v15 }
 0x1d5   :  { %11660 = vmatpush3.bf16.msra.mxu1 %v13520_v16 }
 0x1d6   :  { %11726 = vmatpush3.bf16.msra.mxu0 %v13521_v17  ;;  %11661 = vmatprep.subr.bf16.mxu1 %v13522_v18 }
 0x1d7   :  { %11727 = vmatprep.subr.bf16.mxu0 %v13523_v19 }
 0x1d9   :  { %11662 = vmatpush3.bf16.msra.mxu1 %v13524_v20 }
 0x1da   :  { %11728 = vmatpush3.bf16.msra.mxu0 %v13525_v21  ;;  %11663 = vmatprep.subr.bf16.mxu1 %v13526_v22 }
 0x1db   :  { %11729 = vmatprep.subr.bf16.mxu0 %v13527_v23 }
 0x1dd   :  { %11664 = vmatpush3.bf16.msra.mxu1 %v13528_v24 }
 0x1de   :  { %11730 = vmatpush3.bf16.msra.mxu0 %v13529_v25  ;;  %11693 = vmatprep.subr.bf16.mxu1 %v13530_v27  ;;  %v16267_v25 = vmov 0.0  }
 0x1df   :  { %11759 = vmatprep.subr.bf16.mxu0 %v13531_v28 }
 0x1e0   :  { %1382 = vmatmul.mubr.bf16.vlgmr.msra.gmra.mrb[12].mxu1 %v14135_v8 }
 0x1e1   :  { %1907 = vmatmul.mubr.bf16.vlgmr.msra.gmra.mrb[12].mxu0 %v14135_v8  ;;  %11694 = vmatpush3.bf16.msra.mxu1 %v13532_v29 }
 0x1e2   :  { %1731 = vmatprep.mubr.bf16.mxu1 %v14140_v26  ;;  %11760 = vmatpush3.bf16.msra.mxu0 %v13533_v30 }
 0x1e3   :  { %2256 = vmatprep.mubr.bf16.mxu0 %v14140_v26  ;;  %11695 = vmatprep.subr.bf16.mxu1 %v13534_v31 }
 0x1e4   :  { %11761 = vmatprep.subr.bf16.mxu0 %v13535_v32 }
 0x1e5   :  { %11696 = vmatpush3.bf16.msra.mxu1 %v13536_v33 }
 0x1e6   :  { %11762 = vmatpush3.bf16.msra.mxu0 %v13537_v34  ;;  %11697 = vmatprep.subr.bf16.mxu1 %v13538_v35 }
 0x1e7   :  { %11763 = vmatprep.subr.bf16.mxu0 %v13539_v39 }
 0x1e9   :  { %11698 = vmatpush3.bf16.msra.mxu1 %v13540_v40 }
 0x1ea   :  { %11764 = vmatpush3.bf16.msra.mxu0 %v13541_v41  ;;  %11699 = vmatprep.subr.bf16.mxu1 %v13542_v42 }
 0x1eb   :  { %11765 = vmatprep.subr.bf16.mxu0 %v13543_v37 }
 0x1ed   :  { %11700 = vmatpush3.bf16.msra.mxu1 %v13544_v36 }
 0x1ee   :  { %11766 = vmatpush3.bf16.msra.mxu0 %v13545_v43  ;;  %11701 = vmatprep.subr.bf16.mxu1 %v13546_v44 }
 0x1ef   :  { %11767 = vmatprep.subr.bf16.mxu0 %v13547_v45 }
 0x1f1   :  { %11702 = vmatpush3.bf16.msra.mxu1 %v13548_v46 }
 0x1f2   :  { %11768 = vmatpush3.bf16.msra.mxu0 %v13549_v47  ;;  %11703 = vmatprep.subr.bf16.mxu1 %v13550_v48 }
 0x1f3   :  { %11769 = vmatprep.subr.bf16.mxu0 %v13551_v38 }
 0x1f5   :  { %11704 = vmatpush3.bf16.msra.mxu1 %v13552_v49 }
 0x1f6   :  { %11770 = vmatpush3.bf16.msra.mxu0 %v13553_v50  ;;  %11705 = vmatprep.subr.bf16.mxu1 %v13554_v1 }
 0x1f7   :  { %11771 = vmatprep.subr.bf16.mxu0 %v13555_v51 }
 0x1f9   :  { %11706 = vmatpush3.bf16.msra.mxu1 %v13556_v52 }
 0x1fa   :  { %11772 = vmatpush3.bf16.msra.mxu0 %v13557_v53  ;;  %11707 = vmatprep.subr.bf16.mxu1 %v13558_v54 }
 0x1fb   :  { %11773 = vmatprep.subr.bf16.mxu0 %v13559_v56 }
 0x1fd   :  { %11708 = vmatpush3.bf16.msra.mxu1 %v13560_v55 }
 0x1fe   :  { %11774 = vmatpush3.bf16.msra.mxu0 %v13561_v57  ;;  %11737 = vmatprep.subr.bf16.mxu1 %v13562_v58 }
 0x200   :  { %1732 = vmatmul.mubr.bf16.vlgmr.msra.gmra.mrb[16].mxu1 %v14135_v8 }
 0x201   :  { %2257 = vmatmul.mubr.bf16.vlgmr.msra.gmra.mrb[16].mxu0 %v14135_v8  ;;  %11738 = vmatpush3.bf16.msra.mxu1 %v13563_v59 }
 0x202   :  { %2081 = vmatprep.mubr.bf16.mxu1 %v14140_v26  ;;  %11739 = vmatprep.subr.bf16.mxu1 %v13564_v60  ;;  %v13573_v26 = vld [vmem:[%s13936_s27 + $0x3a8] sm:$0xff]   ;;  %s13853_s27 = smov 19  }
 0x205   :  { %11740 = vmatpush3.bf16.msra.mxu1 %v13565_v61 }
 0x206   :  { %11741 = vmatprep.subr.bf16.mxu1 %v13566_v62 }
 0x209   :  { %11742 = vmatpush3.bf16.msra.mxu1 %v13567_v3 }
 0x20a   :  { %11743 = vmatprep.subr.bf16.mxu1 %v13568_v63  ;;  %v2278_v63 = vld [vmem:[%s10516_s11 + $0x8] sm:$0xff] }
 0x20d   :  { %11744 = vmatpush3.bf16.msra.mxu1 %v13569_v0 }
 0x20e   :  { %11745 = vmatprep.subr.bf16.mxu1 %v13570_v2 }
 0x211   :  { %11746 = vmatpush3.bf16.msra.mxu1 %v13571_v5 }
 0x212   :  { %11747 = vmatprep.subr.bf16.mxu1 %v13572_v6 }
 0x215   :  { %11748 = vmatpush3.bf16.msra.mxu1 %v13573_v26 }
 0x216   :  { %11749 = vmatprep.subr.bf16.mxu1 %v13574_v7 }
 0x219   :  { %11750 = vmatpush3.bf16.msra.mxu1 %v13575_v12 }
 0x21a   :  { %11751 = vmatprep.subr.bf16.mxu1 %v13576_v10  ;;  %v2277_v10 = vld [vmem:[%s10516_s11] sm:$0xff]  ;;  %s10518_s11 = sld [smem:[%s16266_s0 + %s13845_s7]]  }
 0x21b   :  { %s10527_s7 = sld [smem:[%s16266_s0 + %s13850_s3]]  }
 0x21c   :  { %s10537_s3 = sld [smem:[%s16266_s0 + %s13862_s1]]  }
 0x21d   :  { %11752 = vmatpush3.bf16.msra.mxu1 %v13577_v11 }
 0x21e   :  { %12196 = vmatprep.subr.bf16.mxu1 %v16267_v25 }
 0x220   :  { %2082 = vmatmul.mubr.bf16.vlgmr.msra.gmra.mrb[20].mxu1 %v14135_v8 }
 0x221   :  { %12206 = vmatprep.mubr.msk.bf16.mxu1 %vm13840_vm15, %v16267_v25 }
 0x273   :  { %v11599_v13 = vpop.f32.mrb[4].mxu1  ;;  %v11643_v14 = vpop.f32.mrb[4].mxu0 }
 0x274   :  { %v11600_v15 = vpop.f32.mrb[5].mxu1  ;;  %v11644_v16 = vpop.f32.mrb[5].mxu0 }
 0x275   :  { %v14268_v17 = vadd.f32 %v11600_v15, %v11599_v13  ;;  %v14270_v18 = vadd.f32 %v11644_v16, %v11643_v14  ;;  %v11602_v19 = vpop.f32.mrb[6].mxu1  ;;  %v11646_v20 = vpop.f32.mrb[6].mxu0 }
 0x276   :  { %v11603_v21 = vpop.f32.mrb[7].mxu1  ;;  %v11647_v22 = vpop.f32.mrb[7].mxu0 }
 0x277   :  { %v11604_v23 = vadd.f32 %v11603_v21, %v11602_v19  ;;  %v11648_v24 = vadd.f32 %v11647_v22, %v11646_v20 }
 0x293   :  { %v11621_v27 = vpop.f32.mrb[8].mxu1  ;;  %v11687_v28 = vpop.f32.mrb[8].mxu0 }
 0x294   :  { %v11622_v8 = vpop.f32.mrb[9].mxu1  ;;  %v11688_v29 = vpop.f32.mrb[9].mxu0 }
 0x295   :  { %v14273_v30 = vadd.f32 %v11622_v8, %v11621_v27  ;;  %v14275_v31 = vadd.f32 %v11688_v29, %v11687_v28  ;;  %v11624_v32 = vpop.f32.mrb[10].mxu1  ;;  %v11690_v33 = vpop.f32.mrb[10].mxu0 }
 0x296   :  { %v11625_v34 = vpop.f32.mrb[11].mxu1  ;;  %v11691_v35 = vpop.f32.mrb[11].mxu0 }
 0x297   :  { %v11626_v39 = vadd.f32 %v11625_v34, %v11624_v32  ;;  %v11692_v40 = vadd.f32 %v11691_v35, %v11690_v33 }
 0x299   :  { %v12960_v41 = vpack.i.bf16 %v11626_v39, %v11604_v23 }
 0x29b   :  { %12961 = vrot.lane.b32.xlu1 %v12960_v41, %s13837_s6 }
 0x2b3   :  { %v11665_v42 = vpop.f32.mrb[12].mxu1 }
 0x2b4   :  { %v11731_v37 = vpop.f32.mrb[12].mxu0  ;;  %v11666_v36 = vpop.f32.mrb[13].mxu1 }
 0x2b5   :  { %v11667_v43 = vadd.f32 %v11666_v36, %v11665_v42  ;;  %v11732_v44 = vpop.f32.mrb[13].mxu0  ;;  %v11668_v45 = vpop.f32.mrb[14].mxu1  ;;  %v13578_v36 = vld [vmem:[%s14290_s20] sm:$0xff]   ;;  %s14791_s20 = sld [smem:[%s16266_s0 + %s13826_s15]]  }
 0x2b6   :  { %v14278_v46 = vadd.f32 %v11732_v44, %v11731_v37  ;;  %v11734_v47 = vpop.f32.mrb[14].mxu0  ;;  %v11669_v48 = vpop.f32.mrb[15].mxu1  ;;  %v13580_v44 = vld [vmem:[%s14318_s24 + $0x20] sm:$0xff]  }
 0x2b7   :  { %v11670_v38 = vadd.f32 %v11669_v48, %v11668_v45  ;;  %v11735_v49 = vpop.f32.mrb[15].mxu0  ;;  %v13581_v45 = vld [vmem:[%s14318_s24 + $0x8] sm:$0xff]   ;;  %12222 = vmatprep.subr.bf16.mxu0 %v13580_v44  ;;  %v13584_v48 = vld [vmem:[%s14318_s24 + $0x30] sm:$0xff]  }
 0x2b8   :  { %v11736_v50 = vadd.f32 %v11735_v49, %v11734_v47  ;;  %12223 = vmatpush3.bf16.msra.mxu0 %v13580_v44  ;;  %v13583_v47 = vld [vmem:[%s14318_s24 + $0x10] sm:$0xff]   ;;  %v13586_v49 = vld [vmem:[%s14318_s24 + $0x38] sm:$0xff]  }
 0x2b9   :  { %v12965_v1 = vpack.i.bf16 %v11670_v38, %v11648_v24  ;;  %v13585_v38 = vld [vmem:[%s14318_s24 + $0x18] sm:$0xff]  }
 0x2bb   :  { %12966 = vrot.lane.b32.xlu1 %v12965_v1, %s13837_s6  ;;  %v13588_v1 = vld [vmem:[%s14318_s24 + $0x60] sm:$0xff]  }
 0x2d3   :  { %v11709_v51 = vpop.f32.mrb[16].mxu1 }
 0x2d4   :  { %v11775_v52 = vpop.f32.mrb[16].mxu0  ;;  %v11710_v53 = vpop.f32.mrb[17].mxu1 }
 0x2d5   :  { %v11711_v54 = vadd.f32 %v11710_v53, %v11709_v51  ;;  %v11776_v56 = vpop.f32.mrb[17].mxu0  ;;  %v11712_v55 = vpop.f32.mrb[18].mxu1 }
 0x2d6   :  { %v11777_v57 = vadd.f32 %v11776_v56, %v11775_v52  ;;  %v11778_v58 = vpop.f32.mrb[18].mxu0  ;;  %v11713_v59 = vpop.f32.mrb[19].mxu1 }
 0x2d7   :  { %v11714_v60 = vadd.f32 %v11713_v59, %v11712_v55  ;;  %v11779_v61 = vpop.f32.mrb[19].mxu0 }
 0x2d8   :  { %v11780_v62 = vadd.f32 %v11779_v61, %v11778_v58 }
 0x2d9   :  { %v12970_v3 = vpack.i.bf16 %v11714_v60, %v11692_v40 }
 0x2db   :  { %12971 = vrot.lane.b32.xlu0 %v12970_v3, %s13837_s6 }
 0x2df   :  { %2266 = vrot.lane.b32.xlu0 %v11780_v62, %s13837_s6 }
 0x2e3   :  { %2286 = vperm.xlu0 %12959, %v2278_v63  }
 0x2f3   :  { %v11753_v0 = vpop.f32.mrb[20].mxu1 }
 0x2f4   :  { %v11754_v2 = vpop.f32.mrb[21].mxu1 }
 0x2f5   :  { %v11755_v5 = vadd.f32 %v11754_v2, %v11753_v0  ;;  %v11756_v6 = vpop.f32.mrb[22].mxu1  ;;  %v13589_v0 = vld [vmem:[%s14318_s24 + $0x48] sm:$0xff]  }
 0x2f6   :  { %v11757_v26 = vpop.f32.mrb[23].mxu1  ;;  %v13590_v2 = vld [vmem:[%s14318_s24 + $0x68] sm:$0xff]  }
 0x2f7   :  { %v11758_v7 = vadd.f32 %v11757_v26, %v11756_v6  ;;  %v13592_v6 = vld [vmem:[%s14318_s24 + $0x70] sm:$0xff]   ;;  %v13593_v26 = vld [vmem:[%s14318_s24 + $0x58] sm:$0xff]  }
 0x2f9   :  { %v12975_v12 = vpack.i.bf16 %v11758_v7, %v11736_v50  ;;  %v13587_v50 = vld [vmem:[%s14318_s24 + $0x40] sm:$0xff]   ;;  %v13594_v7 = vld [vmem:[%s14318_s24 + $0x78] sm:$0xff]  }
 0x2fb   :  { %12976 = vrot.lane.b32.xlu1 %v12975_v12, %s13837_s6  ;;  %v13595_v12 = vld [vmem:[%s14318_s24 + $0x80] sm:$0xff]  }
 0x2ff   :  { %2281 = vperm.xlu1 %12980, %v2277_v10   ;;  %v13596_v10 = vld [vmem:[%s14318_s24 + $0xa0] sm:$0xff]  }
 0x30d   :  { %v12962_v11 = vpop.permute.xlu1 %12961 }
 0x30e   :  { %v12964_v13 = vunpack.i.h.bf16 %v12962_v11  ;;  %v12963_v14 = vunpack.i.l.bf16 %v12962_v11  ;;  %v13597_v11 = vld [vmem:[%s14318_s24 + $0x88] sm:$0xff]  }
 0x310   :  { %v1044_v15 = vsel %vm868_vm0, %v14273_v30, %v12964_v13  ;;  %v869_v16 = vsel %vm868_vm0, %v14268_v17, %v12963_v14  ;;  %v13598_v13 = vld [vmem:[%s14318_s24 + $0xa8] sm:$0xff]   ;;  %v13599_v14 = vld [vmem:[%s14318_s24 + $0x90] sm:$0xff]  }
 0x311   :  { %v2270_v19 = vpack.c.bf16 %v1044_v15, %v869_v16  ;;  %v13600_v15 = vld [vmem:[%s14318_s24 + $0xb0] sm:$0xff]   ;;  %v13601_v16 = vld [vmem:[%s14318_s24 + $0x98] sm:$0xff]  }
 0x313   :  { %12197 = vmatpush3.bf16.msra.mxu1 %v2270_v19  ;;  %v13602_v19 = vld [vmem:[%s14318_s24 + $0xb8] sm:$0xff]  }
 0x314   :  { %12198 = vmatprep.subr.bf16.mxu1 %v16267_v25 }
 0x32d   :  { %v12967_v20 = vpop.permute.xlu1 %12966 }
 0x32e   :  { %v12969_v21 = vunpack.i.h.bf16 %v12967_v20  ;;  %v12968_v22 = vunpack.i.l.bf16 %v12967_v20  ;;  %v13603_v20 = vld [vmem:[%s14318_s24 + $0xc0] sm:$0xff]  }
 0x330   :  { %v1394_v23 = vsel %vm868_vm0, %v11667_v43, %v12969_v21  ;;  %v1219_v24 = vsel %vm868_vm0, %v14270_v18, %v12968_v22  ;;  %v13579_v43 = vld [vmem:[%s14318_s24] sm:$0xff]   ;;  %v13605_v22 = vld [vmem:[%s14318_s24 + $0xc8] sm:$0xff]  }
 0x331   :  { %v2271_v27 = vpack.c.bf16 %v1394_v23, %v1219_v24  ;;  %v13604_v21 = vld [vmem:[%s14318_s24 + $0xe0] sm:$0xff]   ;;  %v13606_v23 = vld [vmem:[%s14318_s24 + $0xe8] sm:$0xff]   ;;  %v13607_v24 = vld [vmem:[%s14318_s24 + $0xd0] sm:$0xff]  }
 0x333   :  { %12199 = vmatpush3.bf16.msra.mxu1 %v2271_v27  ;;  %v13608_v27 = vld [vmem:[%s14318_s24 + $0xf0] sm:$0xff]  }
 0x334   :  { %12200 = vmatprep.subr.bf16.mxu1 %v16267_v25 }
 0x34d   :  { %v12972_v28 = vpop.permute.xlu0 %12971 }
 0x34e   :  { %v12974_v8 = vunpack.i.h.bf16 %v12972_v28  ;;  %v12973_v29 = vunpack.i.l.bf16 %v12972_v28  ;;  %v13609_v28 = vld [vmem:[%s14318_s24 + $0xd8] sm:$0xff]  }
 0x350   :  { %v1569_v17 = vsel %vm868_vm0, %v14275_v31, %v12973_v29  ;;  %v1744_v30 = vsel %vm868_vm0, %v11711_v54, %v12974_v8  ;;  %v13610_v8 = vld [vmem:[%s14318_s24 + $0xf8] sm:$0xff]   ;;  %v13611_v29 = vld [vmem:[%s14318_s24 + $0x100] sm:$0xff]  }
 0x351   :  { %v2272_v32 = vpack.c.bf16 %v1744_v30, %v1569_v17  ;;  %v2267_v33 = vpop.permute.xlu0 %2266  ;;  %v13612_v17 = vld [vmem:[%s14318_s24 + $0x108] sm:$0xff]   ;;  %v13613_v30 = vld [vmem:[%s14318_s24 + $0x110] sm:$0xff]  }
 0x352   :  { %v2269_v39 = vsel %vm868_vm0, %v11777_v57, %v2267_v33 }
 0x353   :  { %12201 = vmatpush3.bf16.msra.mxu1 %v2272_v32  ;;  %v2274_v31 = vpack.c.bf16 %v2269_v39, %v2269_v39  ;;  %v13614_v32 = vld [vmem:[%s14318_s24 + $0x118] sm:$0xff]  }
 0x354   :  { %12202 = vmatprep.subr.bf16.mxu1 %v16267_v25 }
 0x355   :  { %v2299_v37 = vsel %vm532_vm4, %v2274_v31, 0  ;;  %vm2447_vm4 = vcmask 130048  }
 0x362   :  { %v2287_v56 = vpop.permute.xlu0 %2286 }
 0x36d   :  { %v12977_v34 = vpop.permute.xlu1 %12976 }
 0x36e   :  { %v12979_v18 = vunpack.i.h.bf16 %v12977_v34  ;;  %v12978_v35 = vunpack.i.l.bf16 %v12977_v34 }
 0x370   :  { %v2094_v40 = vsel %vm868_vm0, %v11755_v5, %v12979_v18  ;;  %v1919_v41 = vsel %vm868_vm0, %v14278_v46, %v12978_v35  ;;  %v13582_v46 = vld [vmem:[%s14318_s24 + $0x28] sm:$0xff]   ;;  %v13591_v5 = vld [vmem:[%s14318_s24 + $0x50] sm:$0xff]  }
 0x371   :  { %v2273_v42 = vpack.c.bf16 %v2094_v40, %v1919_v41  ;;  %12224 = vmatprep.subr.bf16.mxu0 %v13582_v46 }
 0x372   :  { %12225 = vmatpush3.bf16.msra.mxu0 %v13582_v46 }
 0x373   :  { %12203 = vmatpush3.bf16.msra.mxu1 %v2273_v42  ;;  %12226 = vmatprep.subr.bf16.mxu0 %v13584_v48 }
 0x374   :  { %12204 = vmatprep.subr.bf16.mxu1 %v16267_v25 }
 0x376   :  { %12227 = vmatpush3.bf16.msra.mxu0 %v13584_v48 }
 0x377   :  { %12205 = vmatpush3.bf16.msra.mxu1 %v2299_v37  ;;  %12228 = vmatprep.subr.bf16.mxu0 %v13586_v49 }
 0x378   :  { %12210 = vmatprep.subr.bf16.mxu1 %v13579_v43 }
 0x37a   :  { %12207 = vmatmul.mubr.msk.bf16.vlgmr.msra.gmra.mrb[24].mxu1 %vm2294_vm1, %v13578_v36  ;;  %12229 = vmatpush3.bf16.msra.mxu0 %v13586_v49 }
 0x37b   :  { %12211 = vmatpush3.bf16.msra.mxu1 %v13579_v43  ;;  %12246 = vmatprep.subr.bf16.mxu0 %v13588_v1 }
 0x37c   :  { %12212 = vmatprep.subr.bf16.mxu1 %v13581_v45 }
 0x37e   :  { %v2282_v51 = vpop.permute.xlu1 %2281 }
 0x37f   :  { %12213 = vmatpush3.bf16.msra.mxu1 %v13581_v45 }
 0x380   :  { %12214 = vmatprep.subr.bf16.mxu1 %v13583_v47 }
 0x383   :  { %12215 = vmatpush3.bf16.msra.mxu1 %v13583_v47 }
 0x384   :  { %12216 = vmatprep.subr.bf16.mxu1 %v13585_v38 }
 0x387   :  { %12217 = vmatpush3.bf16.msra.mxu1 %v13585_v38 }
 0x388   :  { %12234 = vmatprep.subr.bf16.mxu1 %v13587_v50 }
 0x44d   :  { %v2335_v52 = vpop.f32.mrb[24].mxu1 }
 0x44e   :  { %v2336_v53 = vadd.f32 %v2335_v52, %v2282_v51  ;;  %v12208_v54 = vpop.f32.mrb[25].mxu1 }
 0x44f   :  { %v2338_v55 = vpop.f32.mrb[26].mxu1 }
 0x450   :  { %v2344_v57 = vmul.f32 0.2, %v2336_v53  ;;  %v2339_v58 = vadd.f32 %v2338_v55, %v2287_v56  ;;  %v12209_v59 = vpop.f32.mrb[27].mxu1  ;;  %vm2342_vm2 = vcmp.ge.f32.partialorder %v2336_v53, 0.0 }
 0x452   :  { %vm2343_vm3 = vcmp.ge.f32.partialorder %v2339_v58, 0.0  ;;  %v2345_v60 = vmul.f32 0.2, %v2339_v58  ;;  %v14330_v61 = vsel %vm2342_vm2, %v2336_v53, %v2344_v57  ;;  %vm4476_vm2 = vcmask 7168  }
 0x453   :  { %16275 = vst [vmem:[#allocation2_spill] sm:$0xff] %v14330_v61 }
 0x454   :  { %v14332_v62 = vsel %vm2343_vm3, %v2339_v58, %v2345_v60 }
 0x455   :  { %16276 = vst [vmem:[#allocation3_spill] sm:$0xff] %v14332_v62  ;;  %v14336_v3 = vpack.c.bf16 %v14332_v62, %v14330_v61 }
 0x457   :  { %2350 = vrot.lane.b32.xlu1 %v14336_v3, %s13837_s6  ;;  %12218 = vmatprep.mubr.msk.bf16.mxu1 %vm868_vm0, %v14336_v3 }
 0x458   :  { %12230 = vmatprep.mubr.msk.bf16.mxu0 %vm868_vm0, %v14336_v3 }
 0x4c9   :  { %v14344_v63 = vpop.permute.xlu1 %2350 }
 0x4ca   :  { %12219 = vmatmul.mubr.msk.bf16.vlgmr.msra.gmra.mrb[28].mxu1 %vm868_vm0, %v14344_v63  ;;  %12231 = vmatmul.mubr.msk.bf16.vlgmr.msra.gmra.mrb[20].mxu0 %vm868_vm0, %v14344_v63 }
 0x4cb   :  { %12235 = vmatpush3.bf16.msra.mxu1 %v13587_v50  ;;  %12247 = vmatpush3.bf16.msra.mxu0 %v13588_v1 }
 0x4cc   :  { %12242 = vmatprep.mubr.msk.bf16.mxu1 %vm868_vm0, %v14336_v3  ;;  %12254 = vmatprep.mubr.msk.bf16.mxu0 %vm868_vm0, %v14336_v3 }
 0x4cd   :  { %12236 = vmatprep.subr.bf16.mxu1 %v13589_v0  ;;  %12248 = vmatprep.subr.bf16.mxu0 %v13590_v2 }
 0x4cf   :  { %12237 = vmatpush3.bf16.msra.mxu1 %v13589_v0  ;;  %12249 = vmatpush3.bf16.msra.mxu0 %v13590_v2 }
 0x4d0   :  { %12238 = vmatprep.subr.bf16.mxu1 %v13591_v5  ;;  %12250 = vmatprep.subr.bf16.mxu0 %v13592_v6 }
 0x4d3   :  { %12239 = vmatpush3.bf16.msra.mxu1 %v13591_v5  ;;  %12251 = vmatpush3.bf16.msra.mxu0 %v13592_v6 }
 0x4d4   :  { %12240 = vmatprep.subr.bf16.mxu1 %v13593_v26  ;;  %12252 = vmatprep.subr.bf16.mxu0 %v13594_v7 }
 0x4d7   :  { %12241 = vmatpush3.bf16.msra.mxu1 %v13593_v26  ;;  %12253 = vmatpush3.bf16.msra.mxu0 %v13594_v7 }
 0x4d8   :  { %12258 = vmatprep.subr.bf16.mxu1 %v13595_v12  ;;  %12270 = vmatprep.subr.bf16.mxu0 %v13596_v10 }
 0x4da   :  { %12243 = vmatmul.mubr.msk.bf16.vlgmr.msra.gmra.mrb[32].mxu1 %vm868_vm0, %v14344_v63  ;;  %12255 = vmatmul.mubr.msk.bf16.vlgmr.msra.gmra.mrb[24].mxu0 %vm868_vm0, %v14344_v63 }
 0x4db   :  { %12259 = vmatpush3.bf16.msra.mxu1 %v13595_v12  ;;  %12266 = vmatprep.mubr.msk.bf16.mxu1 %vm868_vm0, %v14336_v3 }
 0x4dc   :  { %12271 = vmatpush3.bf16.msra.mxu0 %v13596_v10  ;;  %12278 = vmatprep.mubr.msk.bf16.mxu0 %vm868_vm0, %v14336_v3  ;;  %v3199_v10 = vld [vmem:[%s10517_s28] sm:$0xff] }
 0x4dd   :  { %12260 = vmatprep.subr.bf16.mxu1 %v13597_v11  ;;  %12272 = vmatprep.subr.bf16.mxu0 %v13598_v13 }
 0x4df   :  { %12261 = vmatpush3.bf16.msra.mxu1 %v13597_v11  ;;  %v3201_v11 = vld [vmem:[%s10517_s28 + $0x10] sm:$0xff] }
 0x4e0   :  { %12273 = vmatpush3.bf16.msra.mxu0 %v13598_v13  ;;  %12262 = vmatprep.subr.bf16.mxu1 %v13599_v14  ;;  %v13615_v13 = vld [vmem:[%s14451_s2 + $0x4] ss:$8 sps:$4 sm:$0xff]  }
 0x4e1   :  { %12274 = vmatprep.subr.bf16.mxu0 %v13600_v15 }
 0x4e3   :  { %12263 = vmatpush3.bf16.msra.mxu1 %v13599_v14 }
 0x4e4   :  { %12275 = vmatpush3.bf16.msra.mxu0 %v13600_v15  ;;  %12264 = vmatprep.subr.bf16.mxu1 %v13601_v16 }
 0x4e5   :  { %12276 = vmatprep.subr.bf16.mxu0 %v13602_v19 }
 0x4e7   :  { %12265 = vmatpush3.bf16.msra.mxu1 %v13601_v16 }
 0x4e8   :  { %12277 = vmatpush3.bf16.msra.mxu0 %v13602_v19  ;;  %12282 = vmatprep.subr.bf16.mxu1 %v13603_v20 }
 0x4e9   :  { %12294 = vmatprep.subr.bf16.mxu0 %v13604_v21 }
 0x4ea   :  { %12267 = vmatmul.mubr.msk.bf16.vlgmr.msra.gmra.mrb[36].mxu1 %vm868_vm0, %v14344_v63 }
 0x4eb   :  { %12279 = vmatmul.mubr.msk.bf16.vlgmr.msra.gmra.mrb[28].mxu0 %vm868_vm0, %v14344_v63  ;;  %12283 = vmatpush3.bf16.msra.mxu1 %v13603_v20 }
 0x4ec   :  { %12290 = vmatprep.mubr.msk.bf16.mxu1 %vm868_vm0, %v14336_v3  ;;  %12295 = vmatpush3.bf16.msra.mxu0 %v13604_v21  ;;  %v3200_v21 = vld [vmem:[%s10517_s28 + $0x8] sm:$0xff] }
 0x4ed   :  { %12302 = vmatprep.mubr.msk.bf16.mxu0 %vm868_vm0, %v14336_v3  ;;  %12284 = vmatprep.subr.bf16.mxu1 %v13605_v22 }
 0x4ee   :  { %12296 = vmatprep.subr.bf16.mxu0 %v13606_v23 }
 0x4ef   :  { %12285 = vmatpush3.bf16.msra.mxu1 %v13605_v22  ;;  %v3202_v22 = vld [vmem:[%s10517_s28 + $0x18] sm:$0xff] }
 0x4f0   :  { %12297 = vmatpush3.bf16.msra.mxu0 %v13606_v23  ;;  %12286 = vmatprep.subr.bf16.mxu1 %v13607_v24 }
 0x4f1   :  { %12298 = vmatprep.subr.bf16.mxu0 %v13608_v27 }
 0x4f3   :  { %12287 = vmatpush3.bf16.msra.mxu1 %v13607_v24 }
 0x4f4   :  { %12299 = vmatpush3.bf16.msra.mxu0 %v13608_v27  ;;  %12288 = vmatprep.subr.bf16.mxu1 %v13609_v28 }
 0x4f5   :  { %12300 = vmatprep.subr.bf16.mxu0 %v13610_v8 }
 0x4f7   :  { %12289 = vmatpush3.bf16.msra.mxu1 %v13609_v28 }
 0x4f8   :  { %12301 = vmatpush3.bf16.msra.mxu0 %v13610_v8  ;;  %12306 = vmatprep.subr.bf16.mxu1 %v13611_v29 }
 0x4f9   :  { %3247 = vmatprep.subr.bf16.mxu0 %v16269_v4 }
 0x4fa   :  { %12291 = vmatmul.mubr.msk.bf16.vlgmr.msra.gmra.mrb[40].mxu1 %vm868_vm0, %v14344_v63 }
 0x4fb   :  { %12303 = vmatmul.mubr.msk.bf16.vlgmr.msra.gmra.mrb[32].mxu0 %vm868_vm0, %v14344_v63  ;;  %12307 = vmatpush3.bf16.msra.mxu1 %v13611_v29 }
 0x4fc   :  { %12314 = vmatprep.mubr.msk.bf16.mxu1 %vm868_vm0, %v14336_v3  ;;  %12308 = vmatprep.subr.bf16.mxu1 %v13612_v17 }
 0x4fd   :  { %11080 = vmatprep.mubr.msk.bf16.mxu0 %vm2447_vm4, %v13615_v13 }
 0x4ff   :  { %12309 = vmatpush3.bf16.msra.mxu1 %v13612_v17 }
 0x500   :  { %12310 = vmatprep.subr.bf16.mxu1 %v13613_v30 }
 0x503   :  { %12311 = vmatpush3.bf16.msra.mxu1 %v13613_v30 }
 0x504   :  { %12312 = vmatprep.subr.bf16.mxu1 %v13614_v32 }
 0x507   :  { %12313 = vmatpush3.bf16.msra.mxu1 %v13614_v32 }
 0x50a   :  { %12315 = vmatmul.mubr.msk.bf16.vlgmr.msra.gmra.mrb[44].mxu1 %vm868_vm0, %v14344_v63 }
 0x59d   :  { %v12220_v33 = vpop.f32.mrb[28].mxu1  ;;  %v12232_v34 = vpop.f32.mrb[20].mxu0 }
 0x59e   :  { %v14405_v18 = vpop.f32.mrb[29].mxu1  ;;  %v14407_v35 = vpop.f32.mrb[21].mxu0 }
 0x59f   :  { %v12221_v39 = vpop.f32.mrb[30].mxu1  ;;  %v12233_v40 = vpop.f32.mrb[22].mxu0 }
 0x5a0   :  { %v12981_v41 = vpack.i.bf16 %v12221_v39, %v12220_v33  ;;  %v12986_v42 = vpack.i.bf16 %v12233_v40, %v12232_v34  ;;  %v14409_v31 = vpop.f32.mrb[31].mxu1  ;;  %v14411_v37 = vpop.f32.mrb[23].mxu0 }
 0x5a2   :  { %12987 = vrot.lane.b32.xlu1 %v12986_v42, %s13826_s15  ;;  %12982 = vrot.lane.b32.xlu0 %v12981_v41, %s13826_s15 }
 0x5ad   :  { %v12244_v36 = vpop.f32.mrb[32].mxu1  ;;  %v12256_v43 = vpop.f32.mrb[24].mxu0 }
 0x5ae   :  { %v14415_v44 = vpop.f32.mrb[33].mxu1  ;;  %v14417_v45 = vpop.f32.mrb[25].mxu0 }
 0x5af   :  { %v12245_v46 = vpop.f32.mrb[34].mxu1  ;;  %v12257_v47 = vpop.f32.mrb[26].mxu0 }
 0x5b0   :  { %v12991_v48 = vpack.i.bf16 %v12245_v46, %v12244_v36  ;;  %v12996_v38 = vpack.i.bf16 %v12257_v47, %v12256_v43  ;;  %v14419_v49 = vpop.f32.mrb[35].mxu1  ;;  %v14421_v50 = vpop.f32.mrb[27].mxu0 }
 0x5b2   :  { %12997 = vrot.lane.b32.xlu1 %v12996_v38, %s13826_s15  ;;  %12992 = vrot.lane.b32.xlu0 %v12991_v48, %s13826_s15 }
 0x5bd   :  { %v12268_v1 = vpop.f32.mrb[36].mxu1 }
 0x5be   :  { %v12280_v51 = vpop.f32.mrb[28].mxu0  ;;  %v14425_v52 = vpop.f32.mrb[37].mxu1 }
 0x5bf   :  { %v14427_v53 = vpop.f32.mrb[29].mxu0  ;;  %v12269_v54 = vpop.f32.mrb[38].mxu1 }
 0x5c0   :  { %v13001_v56 = vpack.i.bf16 %v12269_v54, %v12268_v1  ;;  %v12281_v55 = vpop.f32.mrb[30].mxu0  ;;  %v14429_v57 = vpop.f32.mrb[39].mxu1 }
 0x5c1   :  { %v13006_v58 = vpack.i.bf16 %v12281_v55, %v12280_v51  ;;  %v14431_v59 = vpop.f32.mrb[31].mxu0 }
 0x5c2   :  { %13002 = vrot.lane.b32.xlu0 %v13001_v56, %s13826_s15 }
 0x5c3   :  { %13007 = vrot.lane.b32.xlu1 %v13006_v58, %s13826_s15 }
 0x5cd   :  { %v12292_v60 = vpop.f32.mrb[40].mxu1 }
 0x5ce   :  { %v12304_v3 = vpop.f32.mrb[32].mxu0  ;;  %v14438_v63 = vpop.f32.mrb[41].mxu1 }
 0x5cf   :  { %v14440_v0 = vpop.f32.mrb[33].mxu0  ;;  %v12293_v2 = vpop.f32.mrb[42].mxu1 }
 0x5d0   :  { %v13011_v5 = vpack.i.bf16 %v12293_v2, %v12292_v60  ;;  %v12305_v6 = vpop.f32.mrb[34].mxu0  ;;  %v14442_v26 = vpop.f32.mrb[43].mxu1 }
 0x5d1   :  { %v13016_v7 = vpack.i.bf16 %v12305_v6, %v12304_v3  ;;  %v14444_v12 = vpop.f32.mrb[35].mxu0 }
 0x5d2   :  { %13012 = vrot.lane.b32.xlu0 %v13011_v5, %s13826_s15 }
 0x5d3   :  { %13017 = vrot.lane.b32.xlu1 %v13016_v7, %s13826_s15 }
 0x5d7   :  { %3205 = vperm.xlu1 %12980, %v3199_v10  }
 0x5db   :  { %3215 = vperm.xlu1 %12980, %v3201_v11  }
 0x5dd   :  { %v12316_v14 = vpop.f32.mrb[44].mxu1 }
 0x5de   :  { %v14454_v15 = vpop.f32.mrb[45].mxu1 }
 0x5df   :  { %v12317_v16 = vpop.f32.mrb[46].mxu1 }
 0x5e0   :  { %v13021_v19 = vpack.i.bf16 %v12317_v16, %v12316_v14  ;;  %v14457_v20 = vpop.f32.mrb[47].mxu1 }
 0x5e2   :  { %13022 = vrot.lane.b32.xlu0 %v13021_v19, %s13826_s15  ;;  %v13617_v19 = vld [vmem:[%s14451_s2] ss:$8 sps:$4 sm:$0xff]  }
 0x5e6   :  { %3210 = vperm.xlu0 %12959, %v3200_v21   ;;  %v13618_v21 = vld [vmem:[%s14451_s2 + $0x14] ss:$8 sps:$4 sm:$0xff]  }
 0x5ea   :  { %3220 = vperm.xlu0 %12959, %v3202_v22   ;;  %v13620_v22 = vld [vmem:[%s14451_s2 + $0x10] ss:$8 sps:$4 sm:$0xff]  }
 0x614   :  { %v12988_v23 = vpop.permute.xlu1 %12987  ;;  %v12983_v24 = vpop.permute.xlu0 %12982 }
 0x615   :  { %v12990_v27 = vunpack.i.h.bf16 %v12988_v23  ;;  %v12989_v28 = vunpack.i.l.bf16 %v12988_v23  ;;  %v12985_v8 = vunpack.i.h.bf16 %v12983_v24  ;;  %v12984_v29 = vunpack.i.l.bf16 %v12983_v24  ;;  %v13621_v23 = vld [vmem:[%s13888_s13] sm:$0xff]   ;;  %v13622_v24 = vld [vmem:[%s13888_s13 + $0x18] sm:$0xff]  }
 0x616   :  { %12828 = vmatprep.subr.bf16.mxu1 %v13621_v23 }
 0x617   :  { %v2540_v17 = vsel %vm2447_vm4, %v14407_v35, %v12989_v28  ;;  %v2541_v30 = vsel %vm2447_vm4, %v14411_v37, %v12990_v27  ;;  %v2448_v32 = vsel %vm2447_vm4, %v14405_v18, %v12984_v29  ;;  %v2449_v33 = vsel %vm2447_vm4, %v14409_v31, %v12985_v8  ;;  %12829 = vmatpush3.bf16.msra.mxu1 %v13621_v23 }
 0x618   :  { %v3186_v34 = vpack.c.bf16 %v2449_v33, %v2448_v32  ;;  %v3187_v39 = vpack.c.bf16 %v2541_v30, %v2540_v17 }
 0x61a   :  { %3248 = vmatpush1.bf16.msra.mxu0 %v3186_v34  ;;  %v13623_v34 = vld [vmem:[%s13888_s13 + $0x8] sm:$0xff]  }
 0x61b   :  { %3249 = vmatprep.subr.bf16.mxu0 %v16269_v4  ;;  %12328 = vmatprep.subr.bf16.mxu1 %v13623_v34 }
 0x61e   :  { %3250 = vmatpush1.bf16.msra.mxu0 %v3187_v39 }
 0x61f   :  { %3251 = vmatprep.subr.bf16.mxu0 %v16269_v4 }
 0x624   :  { %v12998_v40 = vpop.permute.xlu1 %12997  ;;  %v12993_v41 = vpop.permute.xlu0 %12992 }
 0x625   :  { %v13000_v35 = vunpack.i.h.bf16 %v12998_v40  ;;  %v12999_v42 = vunpack.i.l.bf16 %v12998_v40  ;;  %v12995_v36 = vunpack.i.h.bf16 %v12993_v41  ;;  %v12994_v37 = vunpack.i.l.bf16 %v12993_v41 }
 0x627   :  { %v2724_v18 = vsel %vm2447_vm4, %v14417_v45, %v12999_v42  ;;  %v2725_v31 = vsel %vm2447_vm4, %v14421_v50, %v13000_v35  ;;  %v2632_v43 = vsel %vm2447_vm4, %v14415_v44, %v12994_v37  ;;  %v2633_v46 = vsel %vm2447_vm4, %v14419_v49, %v12995_v36 }
 0x628   :  { %v3188_v47 = vpack.c.bf16 %v2633_v46, %v2632_v43  ;;  %v3189_v48 = vpack.c.bf16 %v2725_v31, %v2724_v18 }
 0x62a   :  { %3252 = vmatpush1.bf16.msra.mxu0 %v3188_v47 }
 0x62b   :  { %3253 = vmatprep.subr.bf16.mxu0 %v16269_v4 }
 0x62e   :  { %3254 = vmatpush1.bf16.msra.mxu0 %v3189_v48 }
 0x62f   :  { %3255 = vmatprep.subr.bf16.mxu0 %v16269_v4 }
 0x634   :  { %v13003_v38 = vpop.permute.xlu0 %13002 }
 0x635   :  { %v13008_v1 = vpop.permute.xlu1 %13007  ;;  %v13005_v45 = vunpack.i.h.bf16 %v13003_v38  ;;  %v13004_v51 = vunpack.i.l.bf16 %v13003_v38 }
 0x636   :  { %v13010_v54 = vunpack.i.h.bf16 %v13008_v1  ;;  %v13009_v50 = vunpack.i.l.bf16 %v13008_v1 }
 0x637   :  { %v2816_v44 = vsel %vm2447_vm4, %v14425_v52, %v13004_v51  ;;  %v2817_v49 = vsel %vm2447_vm4, %v14429_v57, %v13005_v45  ;;  %v13624_v51 = vld [vmem:[%s13888_s13 + $0x28] sm:$0xff]  }
 0x638   :  { %v2908_v56 = vsel %vm2447_vm4, %v14427_v53, %v13009_v50  ;;  %v2909_v55 = vsel %vm2447_vm4, %v14431_v59, %v13010_v54  ;;  %v3190_v58 = vpack.c.bf16 %v2817_v49, %v2816_v44  ;;  %v13626_v54 = vld [vmem:[%s13888_s13 + $0x38] sm:$0xff]   ;;  %v13625_v49 = vld [vmem:[%s13888_s13 + $0x10] sm:$0xff]  }
 0x639   :  { %v3191_v60 = vpack.c.bf16 %v2909_v55, %v2908_v56  ;;  %v13627_v56 = vld [vmem:[%s13888_s13 + $0x20] sm:$0xff]   ;;  %v13628_v55 = vld [vmem:[%s13888_s13 + $0x30] sm:$0xff]  }
 0x63a   :  { %3256 = vmatpush1.bf16.msra.mxu0 %v3190_v58  ;;  %v13629_v58 = vld [vmem:[%s13888_s13 + $0x40] sm:$0xff]   ;;  %s13844_s13 = smov 6  }
 0x63b   :  { %3257 = vmatprep.subr.bf16.mxu0 %v16269_v4  ;;  %s14662_s5 = sld [smem:[%s16266_s0 + %s13844_s13]]  }
 0x63c   :  { %s10525_s13 = sld [smem:[%s16266_s0 + %s13849_s30]]  }
 0x63e   :  { %3258 = vmatpush1.bf16.msra.mxu0 %v3191_v60 }
 0x63f   :  { %3259 = vmatprep.subr.bf16.mxu0 %v16269_v4 }
 0x644   :  { %v13013_v3 = vpop.permute.xlu0 %13012 }
 0x645   :  { %v13018_v2 = vpop.permute.xlu1 %13017  ;;  %v13015_v52 = vunpack.i.h.bf16 %v13013_v3  ;;  %v13014_v5 = vunpack.i.l.bf16 %v13013_v3 }
 0x646   :  { %v13020_v6 = vunpack.i.h.bf16 %v13018_v2  ;;  %v13019_v57 = vunpack.i.l.bf16 %v13018_v2 }
 0x647   :  { %v3000_v53 = vsel %vm2447_vm4, %v14438_v63, %v13014_v5  ;;  %v3001_v59 = vsel %vm2447_vm4, %v14442_v26, %v13015_v52 }
 0x648   :  { %v3092_v7 = vsel %vm2447_vm4, %v14440_v0, %v13019_v57  ;;  %v3093_v10 = vsel %vm2447_vm4, %v14444_v12, %v13020_v6  ;;  %v3192_v11 = vpack.c.bf16 %v3001_v59, %v3000_v53 }
 0x649   :  { %v3193_v13 = vpack.c.bf16 %v3093_v10, %v3092_v7 }
 0x64a   :  { %3260 = vmatpush1.bf16.msra.mxu0 %v3192_v11 }
 0x64b   :  { %3261 = vmatprep.subr.bf16.mxu0 %v16269_v4 }
 0x64e   :  { %3262 = vmatpush1.bf16.msra.mxu0 %v3193_v13 }
 0x64f   :  { %3263 = vmatprep.subr.bf16.mxu0 %v16269_v4 }
 0x654   :  { %v13023_v63 = vpop.permute.xlu0 %13022 }
 0x655   :  { %v13025_v14 = vunpack.i.h.bf16 %v13023_v63  ;;  %v13024_v26 = vunpack.i.l.bf16 %v13023_v63 }
 0x657   :  { %v3184_v0 = vsel %vm2447_vm4, %v14454_v15, %v13024_v26  ;;  %v3185_v12 = vsel %vm2447_vm4, %v14457_v20, %v13025_v14  ;;  %v3206_v15 = vpop.permute.xlu1 %3205 }
 0x658   :  { %v3194_v16 = vpack.c.bf16 %v3185_v12, %v3184_v0 }
 0x65a   :  { %3264 = vmatpush1.bf16.msra.mxu0 %v3194_v16 }
 0x65b   :  { %12318 = vmatprep.subr.bf16.mxu0 %v13621_v23  ;;  %v3216_v41 = vpop.permute.xlu1 %3215 }
 0x65d   :  { %3280 = vmatmul.mubr.bf16.vlgmr.msra.gmra.mrb[36].mxu0 %v13617_v19 }
 0x65e   :  { %11081 = vmatprep.mubr.msk.bf16.mxu0 %vm2447_vm4, %v13618_v21  ;;  %12319 = vmatpush3.bf16.msra.mxu0 %v13621_v23 }
 0x65f   :  { %12348 = vmatprep.subr.bf16.mxu0 %v13622_v24 }
 0x665   :  { %3288 = vmatmul.mubr.bf16.gmra.mrb[40].mxu0 %v13620_v22  ;;  %v3211_v8 = vpop.permute.xlu0 %3210 }
 0x669   :  { %v3221_v18 = vpop.permute.xlu0 %3220 }
 0x730   :  { %v3281_v27 = vpop.f32.mrb[36].mxu0 }
 0x731   :  { %v3282_v20 = vadd.f32 %v3281_v27, %v3206_v15  ;;  %v3283_v28 = vpop.f32.mrb[37].mxu0 }
 0x732   :  { %v3284_v29 = vpop.f32.mrb[38].mxu0 }
 0x733   :  { %v3300_v17 = vmul.f32 0.2, %v3282_v20  ;;  %v3285_v30 = vadd.f32 %v3284_v29, %v3211_v8  ;;  %v3286_v32 = vpop.f32.mrb[39].mxu0  ;;  %vm3296_vm5 = vcmp.ge.f32.partialorder %v3282_v20, 0.0 }
 0x735   :  { %vm3297_vm6 = vcmp.ge.f32.partialorder %v3285_v30, 0.0  ;;  %v3301_v33 = vmul.f32 0.2, %v3285_v30  ;;  %v14511_v39 = vsel %vm3296_vm5, %v3282_v20, %v3300_v17 }
 0x737   :  { %v14513_v40 = vsel %vm3297_vm6, %v3285_v30, %v3301_v33 }
 0x738   :  { %v14517_v35 = vpack.c.bf16 %v14513_v40, %v14511_v39  ;;  %v3289_v42 = vpop.f32.mrb[40].mxu0 }
 0x739   :  { %v3290_v36 = vadd.f32 %v3289_v42, %v3216_v41  ;;  %v3291_v37 = vpop.f32.mrb[41].mxu0 }
 0x73a   :  { %v3292_v31 = vpop.f32.mrb[42].mxu0  ;;  %3312 = vrot.lane.b32.xlu1 %v14517_v35, %s13828_s17  ;;  %12320 = vmatprep.mubr.msk.bf16.mxu0 %vm2447_vm4, %v14517_v35 }
 0x73b   :  { %v3302_v43 = vmul.f32 0.2, %v3290_v36  ;;  %v3293_v46 = vadd.f32 %v3292_v31, %v3221_v18  ;;  %v3294_v47 = vpop.f32.mrb[43].mxu0  ;;  %vm3298_vm7 = vcmp.ge.f32.partialorder %v3290_v36, 0.0 }
 0x73d   :  { %vm3299_vm8 = vcmp.ge.f32.partialorder %v3293_v46, 0.0  ;;  %v3303_v48 = vmul.f32 0.2, %v3293_v46  ;;  %v14523_v38 = vsel %vm3298_vm7, %v3290_v36, %v3302_v43 }
 0x73f   :  { %v14525_v1 = vsel %vm3299_vm8, %v3293_v46, %v3303_v48 }
 0x740   :  { %v3309_v45 = vpack.c.bf16 %v14525_v1, %v14523_v38 }
 0x742   :  { %3314 = vrot.lane.b32.xlu0 %v3309_v45, %s13828_s17  ;;  %12321 = vmatmul.mubr.msk.bf16.vlgmr.msra.gmra.mrb[44].mxu0 %vm2447_vm4, %v3309_v45 }
 0x743   :  { %12350 = vmatprep.mubr.msk.bf16.mxu0 %vm2447_vm4, %v14517_v35  ;;  %12349 = vmatpush3.bf16.msra.mxu0 %v13622_v24 }
 0x744   :  { %12368 = vmatprep.subr.bf16.mxu0 %v13624_v51 }
 0x74a   :  { %12351 = vmatmul.mubr.msk.bf16.vlgmr.msra.gmra.mrb[48].mxu0 %vm2447_vm4, %v3309_v45 }
 0x74b   :  { %12369 = vmatpush3.bf16.msra.mxu0 %v13624_v51 }
 0x74c   :  { %12388 = vmatprep.subr.bf16.mxu0 %v13626_v54 }
 0x7ac   :  { %v3313_v50 = vpop.permute.xlu1 %3312 }
 0x7ad   :  { %12324 = vmatprep.mubr.msk.bf16.mxu1 %vm2447_vm4, %v3313_v50  ;;  %12354 = vmatprep.mubr.msk.bf16.mxu0 %vm2447_vm4, %v3313_v50 }
 0x7b4   :  { %v3315_v44 = vpop.permute.xlu0 %3314 }
 0x7b5   :  { %12325 = vmatmul.mubr.msk.bf16.vlgmr.msra.gmra.mrb[48].mxu1 %vm2447_vm4, %v3315_v44  ;;  %12355 = vmatmul.mubr.msk.bf16.gmra.mrb[52].mxu0 %vm2447_vm4, %v3315_v44 }
 0x7b6   :  { %12330 = vmatprep.mubr.msk.bf16.mxu1 %vm2447_vm4, %v14517_v35  ;;  %12370 = vmatprep.mubr.msk.bf16.mxu0 %vm2447_vm4, %v14517_v35 }
 0x7b7   :  { %12329 = vmatpush3.bf16.msra.mxu1 %v13623_v34 }
 0x7b8   :  { %12338 = vmatprep.subr.bf16.mxu1 %v13625_v49 }
 0x7bd   :  { %12331 = vmatmul.mubr.msk.bf16.vlgmr.msra.gmra.mrb[52].mxu1 %vm2447_vm4, %v3309_v45  ;;  %12371 = vmatmul.mubr.msk.bf16.vlgmr.msra.gmra.mrb[56].mxu0 %vm2447_vm4, %v3309_v45 }
 0x7be   :  { %12334 = vmatprep.mubr.msk.bf16.mxu1 %vm2447_vm4, %v3313_v50  ;;  %12374 = vmatprep.mubr.msk.bf16.mxu0 %vm2447_vm4, %v3313_v50 }
 0x7bf   :  { %12339 = vmatpush3.bf16.msra.mxu1 %v13625_v49  ;;  %12389 = vmatpush3.bf16.msra.mxu0 %v13626_v54 }
 0x7c0   :  { %12358 = vmatprep.subr.bf16.mxu1 %v13627_v56 }
 0x7c5   :  { %12335 = vmatmul.mubr.msk.bf16.gmra.mrb[56].mxu1 %vm2447_vm4, %v3315_v44  ;;  %12375 = vmatmul.mubr.msk.bf16.gmra.mrb[60].mxu0 %vm2447_vm4, %v3315_v44 }
 0x7c6   :  { %12340 = vmatprep.mubr.msk.bf16.mxu1 %vm2447_vm4, %v14517_v35  ;;  %12390 = vmatprep.mubr.msk.bf16.mxu0 %vm2447_vm4, %v14517_v35 }
 0x7cd   :  { %12341 = vmatmul.mubr.msk.bf16.vlgmr.msra.gmra.mrb[60].mxu1 %vm2447_vm4, %v3309_v45  ;;  %12391 = vmatmul.mubr.msk.bf16.vlgmr.msra.gmra.mrb[64].mxu0 %vm2447_vm4, %v3309_v45 }
 0x7ce   :  { %12344 = vmatprep.mubr.msk.bf16.mxu1 %vm2447_vm4, %v3313_v50  ;;  %12394 = vmatprep.mubr.msk.bf16.mxu0 %vm2447_vm4, %v3313_v50 }
 0x7cf   :  { %12359 = vmatpush3.bf16.msra.mxu1 %v13627_v56 }
 0x7d0   :  { %12378 = vmatprep.subr.bf16.mxu1 %v13628_v55 }
 0x7d5   :  { %12345 = vmatmul.mubr.msk.bf16.gmra.mrb[64].mxu1 %vm2447_vm4, %v3315_v44  ;;  %12395 = vmatmul.mubr.msk.bf16.gmra.mrb[68].mxu0 %vm2447_vm4, %v3315_v44 }
 0x7d6   :  { %12360 = vmatprep.mubr.msk.bf16.mxu1 %vm2447_vm4, %v14517_v35 }
 0x7dd   :  { %12361 = vmatmul.mubr.msk.bf16.vlgmr.msra.gmra.mrb[68].mxu1 %vm2447_vm4, %v3309_v45 }
 0x7de   :  { %12364 = vmatprep.mubr.msk.bf16.mxu1 %vm2447_vm4, %v3313_v50  ;;  %12379 = vmatpush3.bf16.msra.mxu1 %v13628_v55 }
 0x7df   :  { %12398 = vmatprep.subr.bf16.mxu1 %v13629_v58 }
 0x7e5   :  { %12365 = vmatmul.mubr.msk.bf16.gmra.mrb[72].mxu1 %vm2447_vm4, %v3315_v44 }
 0x7e6   :  { %12380 = vmatprep.mubr.msk.bf16.mxu1 %vm2447_vm4, %v14517_v35 }
 0x7ed   :  { %12381 = vmatmul.mubr.msk.bf16.vlgmr.msra.gmra.mrb[76].mxu1 %vm2447_vm4, %v3309_v45 }
 0x7ee   :  { %12384 = vmatprep.mubr.msk.bf16.mxu1 %vm2447_vm4, %v3313_v50  ;;  %12399 = vmatpush3.bf16.msra.mxu1 %v13629_v58 }
 0x7f5   :  { %12385 = vmatmul.mubr.msk.bf16.gmra.mrb[80].mxu1 %vm2447_vm4, %v3315_v44 }
 0x7f6   :  { %12400 = vmatprep.mubr.msk.bf16.mxu1 %vm2447_vm4, %v14517_v35 }
 0x7fd   :  { %12401 = vmatmul.mubr.msk.bf16.vlgmr.msra.gmra.mrb[84].mxu1 %vm2447_vm4, %v3309_v45 }
 0x7fe   :  { %12404 = vmatprep.mubr.msk.bf16.mxu1 %vm2447_vm4, %v3313_v50 }
 0x805   :  { %12405 = vmatmul.mubr.msk.bf16.gmra.mrb[88].mxu1 %vm2447_vm4, %v3315_v44 }
 0x815   :  { %v14579_v60 = vpop.f32.mrb[44].mxu0 }
 0x816   :  { %v14581_v3 = vpop.f32.mrb[45].mxu0 }
 0x817   :  { %v14583_v2 = vpop.f32.mrb[46].mxu0 }
 0x818   :  { %v14585_v52 = vpop.f32.mrb[47].mxu0 }
 0x81d   :  { %v14587_v5 = vpop.f32.mrb[48].mxu0 }
 0x81e   :  { %v14589_v6 = vpop.f32.mrb[49].mxu0 }
 0x81f   :  { %v14591_v57 = vpop.f32.mrb[50].mxu0 }
 0x820   :  { %v14593_v53 = vpop.f32.mrb[51].mxu0 }
 0x888   :  { %v12326_v59 = vpop.f32.mrb[48].mxu1  ;;  %v14595_v7 = vpop.f32.mrb[52].mxu0 }
 0x889   :  { %v3386_v10 = vpop.f32.mrb[49].mxu1  ;;  %v3669_v11 = vpop.f32.mrb[53].mxu0 }
 0x88a   :  { %v12327_v13 = vpop.f32.mrb[50].mxu1  ;;  %v12357_v63 = vpop.f32.mrb[54].mxu0 }
 0x88b   :  { %v13041_v14 = vpack.i.bf16 %v12327_v13, %v12326_v59  ;;  %v13101_v26 = vpack.i.bf16 %v12357_v63, %v14595_v7  ;;  %v3389_v0 = vpop.f32.mrb[51].mxu1  ;;  %v3672_v12 = vpop.f32.mrb[55].mxu0 }
 0x88c   :  { %v13026_v16 = vpack.i.bf16 %v3389_v0, %v3386_v10  ;;  %v13091_v19 = vpack.i.bf16 %v3672_v12, %v3669_v11 }
 0x88e   :  { %13027 = vrot.lane.b32.xlu0 %v13026_v16, %s13839_s12 }
 0x890   :  { %v14599_v21 = vpop.f32.mrb[52].mxu1  ;;  %v14601_v22 = vpop.f32.mrb[56].mxu0 }
 0x891   :  { %v14603_v23 = vpop.f32.mrb[53].mxu1  ;;  %v14605_v24 = vpop.f32.mrb[57].mxu0 }
 0x892   :  { %13042 = vrot.lane.b32.xlu0 %v13041_v14, %s13839_s12  ;;  %v14608_v15 = vpop.f32.mrb[54].mxu1  ;;  %v14610_v27 = vpop.f32.mrb[58].mxu0 }
 0x893   :  { %v14612_v20 = vpop.f32.mrb[55].mxu1  ;;  %v14614_v28 = vpop.f32.mrb[59].mxu0 }
 0x898   :  { %v12336_v8 = vpop.f32.mrb[56].mxu1  ;;  %v12376_v29 = vpop.f32.mrb[60].mxu0 }
 0x899   :  { %v3481_v17 = vpop.f32.mrb[57].mxu1  ;;  %v3857_v30 = vpop.f32.mrb[61].mxu0 }
 0x89a   :  { %v12337_v32 = vpop.f32.mrb[58].mxu1  ;;  %v12377_v33 = vpop.f32.mrb[62].mxu0 }
 0x89b   :  { %v13061_v34 = vpack.i.bf16 %v12337_v32, %v12336_v8  ;;  %v13056_v41 = vpack.i.bf16 %v12377_v33, %v12376_v29  ;;  %v3484_v35 = vpop.f32.mrb[59].mxu1  ;;  %v3860_v42 = vpop.f32.mrb[63].mxu0 }
 0x89c   :  { %v13051_v36 = vpack.i.bf16 %v3484_v35, %v3481_v17  ;;  %v13046_v37 = vpack.i.bf16 %v3860_v42, %v3857_v30 }
 0x89e   :  { %13052 = vrot.lane.b32.xlu0 %v13051_v36, %s13839_s12 }
 0x8a0   :  { %v14617_v18 = vpop.f32.mrb[60].mxu1  ;;  %v14619_v31 = vpop.f32.mrb[64].mxu0 }
 0x8a1   :  { %v14621_v43 = vpop.f32.mrb[61].mxu1  ;;  %v14623_v46 = vpop.f32.mrb[65].mxu0 }
 0x8a2   :  { %13062 = vrot.lane.b32.xlu0 %v13061_v34, %s13839_s12  ;;  %v14626_v47 = vpop.f32.mrb[62].mxu1  ;;  %v14628_v48 = vpop.f32.mrb[66].mxu0 }
 0x8a3   :  { %v14630_v45 = vpop.f32.mrb[63].mxu1  ;;  %v14632_v51 = vpop.f32.mrb[67].mxu0 }
 0x8a8   :  { %v12346_v54 = vpop.f32.mrb[64].mxu1  ;;  %v12396_v50 = vpop.f32.mrb[68].mxu0 }
 0x8a9   :  { %v3575_v44 = vpop.f32.mrb[65].mxu1  ;;  %v4045_v49 = vpop.f32.mrb[69].mxu0 }
 0x8aa   :  { %v12347_v56 = vpop.f32.mrb[66].mxu1  ;;  %v12397_v55 = vpop.f32.mrb[70].mxu0 }
 0x8ab   :  { %v13081_v58 = vpack.i.bf16 %v12347_v56, %v12346_v54  ;;  %v13096_v59 = vpack.i.bf16 %v12397_v55, %v12396_v50  ;;  %v3578_v7 = vpop.f32.mrb[67].mxu1  ;;  %v4048_v10 = vpop.f32.mrb[71].mxu0  ;;  %v13632_v55 = vld [vmem:[%s14662_s5 + $0x4] ss:$12 sps:$4 sm:$0xff]  }
 0x8ac   :  { %v13066_v11 = vpack.i.bf16 %v3578_v7, %v3575_v44  ;;  %v13086_v13 = vpack.i.bf16 %v4048_v10, %v4045_v49  ;;  %4293 = vmatprep.mubr.bf16.mxu0 %v13632_v55 }
 0x8ae   :  { %13067 = vrot.lane.b32.xlu0 %v13066_v11, %s13839_s12 }
 0x8b0   :  { %v14635_v63 = vpop.f32.mrb[68].mxu1 }
 0x8b1   :  { %v14637_v14 = vpop.f32.mrb[69].mxu1 }
 0x8b2   :  { %13082 = vrot.lane.b32.xlu0 %v13081_v58, %s13839_s12  ;;  %v14640_v0 = vpop.f32.mrb[70].mxu1 }
 0x8b3   :  { %v14642_v12 = vpop.f32.mrb[71].mxu1 }
 0x8b6   :  { %13092 = vrot.lane.b32.xlu0 %v13091_v19, %s13839_s12 }
 0x8b8   :  { %v12366_v16 = vpop.f32.mrb[72].mxu1 }
 0x8b9   :  { %v3763_v8 = vpop.f32.mrb[73].mxu1 }
 0x8ba   :  { %v12367_v29 = vpop.f32.mrb[74].mxu1  ;;  %13102 = vrot.lane.b32.xlu0 %v13101_v26, %s13839_s12 }
 0x8bb   :  { %v13036_v17 = vpack.i.bf16 %v12367_v29, %v12366_v16  ;;  %v3766_v30 = vpop.f32.mrb[75].mxu1 }
 0x8bc   :  { %v13031_v32 = vpack.i.bf16 %v3766_v30, %v3763_v8  ;;  %v13635_v8 = vld [vmem:[%s14662_s5 + $0x8] ss:$12 sps:$4 sm:$0xff]   ;;  %v4203_v30 = vld [vmem:[%s10518_s11 + $0x18] sm:$0xff] }
 0x8bd   :  { %12412 = vmatprep.mubr.msk.bf16.mxu1 %vm4254_vm10, %v13635_v8 }
 0x8be   :  { %13032 = vrot.lane.b32.xlu1 %v13031_v32, %s13839_s12  ;;  %v4202_v32 = vld [vmem:[%s10518_s11 + $0x10] sm:$0xff] }
 0x8c0   :  { %v14647_v33 = vpop.f32.mrb[76].mxu1 }
 0x8c1   :  { %v14649_v34 = vpop.f32.mrb[77].mxu1 }
 0x8c2   :  { %13037 = vrot.lane.b32.xlu1 %v13036_v17, %s13839_s12  ;;  %v14652_v35 = vpop.f32.mrb[78].mxu1  ;;  %v4200_v17 = vld [vmem:[%s10518_s11] sm:$0xff] }
 0x8c3   :  { %v14654_v42 = vpop.f32.mrb[79].mxu1 }
 0x8c6   :  { %13047 = vrot.lane.b32.xlu1 %v13046_v37, %s13839_s12 }
 0x8c8   :  { %v12386_v19 = vpop.f32.mrb[80].mxu1 }
 0x8c9   :  { %v3951_v36 = vpop.f32.mrb[81].mxu1 }
 0x8ca   :  { %v12387_v26 = vpop.f32.mrb[82].mxu1  ;;  %13057 = vrot.lane.b32.xlu1 %v13056_v41, %s13839_s12 }
 0x8cb   :  { %v13076_v54 = vpack.i.bf16 %v12387_v26, %v12386_v19  ;;  %v3954_v50 = vpop.f32.mrb[83].mxu1 }
 0x8cc   :  { %v13071_v44 = vpack.i.bf16 %v3954_v50, %v3951_v36 }
 0x8ce   :  { %13072 = vrot.lane.b32.xlu1 %v13071_v44, %s13839_s12 }
 0x8d0   :  { %v14664_v49 = vpop.f32.mrb[84].mxu1 }
 0x8d1   :  { %v14666_v37 = vpop.f32.mrb[85].mxu1 }
 0x8d2   :  { %v14668_v56 = vpop.f32.mrb[86].mxu1  ;;  %13077 = vrot.lane.b32.xlu1 %v13076_v54, %s13839_s12 }
 0x8d3   :  { %v14671_v41 = vpop.f32.mrb[87].mxu1 }
 0x8d6   :  { %13087 = vrot.lane.b32.xlu1 %v13086_v13, %s13839_s12  ;;  %v4201_v13 = vld [vmem:[%s10518_s11 + $0x8] sm:$0xff]  ;;  %s13857_s11 = smov 25  }
 0x8d8   :  { %v12406_v58 = vpop.f32.mrb[88].mxu1 }
 0x8d9   :  { %v4139_v7 = vpop.f32.mrb[89].mxu1 }
 0x8da   :  { %v12407_v10 = vpop.f32.mrb[90].mxu1  ;;  %13097 = vrot.lane.b32.xlu1 %v13096_v59, %s13839_s12 }
 0x8db   :  { %v13111_v11 = vpack.i.bf16 %v12407_v10, %v12406_v58  ;;  %v4142_v16 = vpop.f32.mrb[91].mxu1 }
 0x8dc   :  { %v13106_v29 = vpack.i.bf16 %v4142_v16, %v4139_v7 }
 0x8dd   :  { %13112 = vrot.lane.b32.xlu0 %v13111_v11, %s13839_s12 }
 0x8de   :  { %13107 = vrot.lane.b32.xlu1 %v13106_v29, %s13839_s12 }
 0x8e1   :  { %4211 = vperm.xlu0 %12959, %v4201_v13  }
 0x8e2   :  { %4206 = vperm.xlu1 %12980, %v4200_v17  }
 0x8e5   :  { %4221 = vperm.xlu0 %12959, %v4203_v30  }
 0x8e6   :  { %4216 = vperm.xlu1 %12980, %v4202_v32  }
 0x900   :  { %v13028_v59 = vpop.permute.xlu0 %13027 }
 0x901   :  { %v13030_v19 = vunpack.i.h.bf16 %v13028_v59  ;;  %v13029_v36 = vunpack.i.l.bf16 %v13028_v59 }
 0x903   :  { %v3418_v26 = vsel %vm3417_vm11, %v14581_v3, %v13029_v36  ;;  %v3419_v54 = vsel %vm3417_vm11, %v14585_v52, %v13030_v19 }
 0x904   :  { %v13043_v50 = vpop.permute.xlu0 %13042  ;;  %v4174_v44 = vpack.c.bf16 %v3419_v54, %v3418_v26 }
 0x905   :  { %v13045_v55 = vunpack.i.h.bf16 %v13043_v50  ;;  %v13044_v58 = vunpack.i.l.bf16 %v13043_v50 }
 0x907   :  { %v3420_v7 = vsel %vm3417_vm11, %v14579_v60, %v13044_v58  ;;  %v3421_v10 = vsel %vm3417_vm11, %v14583_v2, %v13045_v55 }
 0x908   :  { %v4175_v11 = vpack.c.bf16 %v3421_v10, %v3420_v7 }
 0x910   :  { %v13053_v16 = vpop.permute.xlu0 %13052 }
 0x911   :  { %v13055_v8 = vunpack.i.h.bf16 %v13053_v16  ;;  %v13054_v29 = vunpack.i.l.bf16 %v13053_v16 }
 0x913   :  { %v3513_v3 = vsel %vm3417_vm11, %v14612_v20, %v13055_v8  ;;  %v3512_v52 = vsel %vm3417_vm11, %v14603_v23, %v13054_v29 }
 0x914   :  { %v13063_v13 = vpop.permute.xlu0 %13062  ;;  %v4176_v17 = vpack.c.bf16 %v3513_v3, %v3512_v52 }
 0x915   :  { %v13065_v30 = vunpack.i.h.bf16 %v13063_v13  ;;  %v13064_v32 = vunpack.i.l.bf16 %v13063_v13 }
 0x917   :  { %v3515_v60 = vsel %vm3417_vm11, %v14608_v15, %v13065_v30  ;;  %v3514_v2 = vsel %vm3417_vm11, %v14599_v21, %v13064_v32 }
 0x918   :  { %v4177_v59 = vpack.c.bf16 %v3515_v60, %v3514_v2 }
 0x920   :  { %v13068_v19 = vpop.permute.xlu0 %13067 }
 0x921   :  { %v13070_v36 = vunpack.i.h.bf16 %v13068_v19  ;;  %v13069_v26 = vunpack.i.l.bf16 %v13068_v19 }
 0x923   :  { %v14701_v20 = vsel %vm3417_vm11, %v14630_v45, %v13070_v36  ;;  %v3606_v23 = vsel %vm3417_vm11, %v14621_v43, %v13069_v26 }
 0x924   :  { %v13083_v54 = vpop.permute.xlu0 %13082  ;;  %v4178_v50 = vpack.c.bf16 %v14701_v20, %v3606_v23 }
 0x925   :  { %v13085_v55 = vunpack.i.h.bf16 %v13083_v54  ;;  %v13084_v58 = vunpack.i.l.bf16 %v13083_v54 }
 0x927   :  { %v14708_v15 = vsel %vm3417_vm11, %v14626_v47, %v13085_v55  ;;  %v14712_v21 = vsel %vm3417_vm11, %v14617_v18, %v13084_v58 }
 0x928   :  { %v13093_v7 = vpop.permute.xlu0 %13092  ;;  %v4179_v45 = vpack.c.bf16 %v14708_v15, %v14712_v21 }
 0x929   :  { %v13095_v10 = vunpack.i.h.bf16 %v13093_v7  ;;  %v13094_v16 = vunpack.i.l.bf16 %v13093_v7 }
 0x92b   :  { %v14718_v43 = vsel %vm3417_vm11, %v14593_v53, %v13095_v10  ;;  %v14722_v8 = vsel %vm3417_vm11, %v14589_v6, %v13094_v16 }
 0x92c   :  { %v13103_v47 = vpop.permute.xlu0 %13102  ;;  %v4180_v29 = vpack.c.bf16 %v14718_v43, %v14722_v8 }
 0x92d   :  { %v13105_v18 = vunpack.i.h.bf16 %v13103_v47  ;;  %v13104_v3 = vunpack.i.l.bf16 %v13103_v47 }
 0x92f   :  { %v14728_v52 = vsel %vm3417_vm11, %v14591_v57, %v13105_v18  ;;  %v14732_v13 = vsel %vm3417_vm11, %v14587_v5, %v13104_v3 }
 0x930   :  { %v13033_v53 = vpop.permute.xlu1 %13032  ;;  %v4181_v30 = vpack.c.bf16 %v14728_v52, %v14732_v13 }
 0x931   :  { %v13035_v6 = vunpack.i.h.bf16 %v13033_v53  ;;  %v13034_v32 = vunpack.i.l.bf16 %v13033_v53 }
 0x933   :  { %v3794_v60 = vsel %vm3417_vm11, %v14637_v14, %v13034_v32  ;;  %v3795_v2 = vsel %vm3417_vm11, %v14642_v12, %v13035_v6 }
 0x934   :  { %v13038_v19 = vpop.permute.xlu1 %13037  ;;  %v4182_v36 = vpack.c.bf16 %v3795_v2, %v3794_v60 }
 0x935   :  { %v13040_v57 = vunpack.i.h.bf16 %v13038_v19  ;;  %v13039_v26 = vunpack.i.l.bf16 %v13038_v19 }
 0x936   :  { %11886 = vmatprep.subr.bf16.mxu0 %v4182_v36 }
 0x937   :  { %11887 = vmatpush3.bf16.msra.mxu0 %v4174_v44  ;;  %v3796_v5 = vsel %vm3417_vm11, %v14635_v63, %v13039_v26  ;;  %v3797_v20 = vsel %vm3417_vm11, %v14640_v0, %v13040_v57 }
 0x938   :  { %v13048_v23 = vpop.permute.xlu1 %13047  ;;  %v4183_v54 = vpack.c.bf16 %v3797_v20, %v3796_v5 }
 0x939   :  { %v13050_v55 = vunpack.i.h.bf16 %v13048_v23  ;;  %v13049_v58 = vunpack.i.l.bf16 %v13048_v23  ;;  %v13630_v23 = vld [vmem:[%s14662_s5] ss:$12 sps:$4 sm:$0xff]  }
 0x93a   :  { %11888 = vmatprep.subr.bf16.mxu0 %v4183_v54  ;;  %v13633_v54 = vld [vmem:[%s14662_s5 + $0x1c] ss:$12 sps:$4 sm:$0xff]  }
 0x93b   :  { %11889 = vmatpush3.bf16.msra.mxu0 %v4175_v11  ;;  %v3888_v14 = vsel %vm3417_vm11, %v14605_v24, %v13049_v58  ;;  %v3889_v12 = vsel %vm3417_vm11, %v14614_v28, %v13050_v55 }
 0x93c   :  { %v13058_v15 = vpop.permute.xlu1 %13057  ;;  %v4184_v44 = vpack.c.bf16 %v3889_v12, %v3888_v14 }
 0x93d   :  { %v13060_v21 = vunpack.i.h.bf16 %v13058_v15  ;;  %v13059_v7 = vunpack.i.l.bf16 %v13058_v15 }
 0x93e   :  { %11890 = vmatprep.subr.bf16.mxu0 %v4184_v44 }
 0x93f   :  { %11891 = vmatpush3.bf16.msra.mxu0 %v4176_v17  ;;  %v3890_v63 = vsel %vm3417_vm11, %v14601_v22, %v13059_v7  ;;  %v3891_v0 = vsel %vm3417_vm11, %v14610_v27, %v13060_v21 }
 0x940   :  { %v13073_v10 = vpop.permute.xlu1 %13072  ;;  %v4185_v11 = vpack.c.bf16 %v3891_v0, %v3890_v63 }
 0x941   :  { %v13075_v16 = vunpack.i.h.bf16 %v13073_v10  ;;  %v13074_v47 = vunpack.i.l.bf16 %v13073_v10 }
 0x942   :  { %11892 = vmatprep.subr.bf16.mxu0 %v4185_v11 }
 0x943   :  { %11893 = vmatpush3.bf16.msra.mxu0 %v4177_v59  ;;  %v3982_v24 = vsel %vm3417_vm11, %v14649_v34, %v13074_v47  ;;  %v3983_v28 = vsel %vm3417_vm11, %v14654_v42, %v13075_v16 }
 0x944   :  { %v13078_v18 = vpop.permute.xlu1 %13077  ;;  %v4186_v17 = vpack.c.bf16 %v3983_v28, %v3982_v24 }
 0x945   :  { %v13080_v3 = vunpack.i.h.bf16 %v13078_v18  ;;  %v13079_v53 = vunpack.i.l.bf16 %v13078_v18 }
 0x946   :  { %11894 = vmatprep.subr.bf16.mxu0 %v4186_v17 }
 0x947   :  { %11895 = vmatpush3.bf16.msra.mxu0 %v4178_v50  ;;  %v3984_v22 = vsel %vm3417_vm11, %v14647_v33, %v13079_v53  ;;  %v3985_v27 = vsel %vm3417_vm11, %v14652_v35, %v13080_v3 }
 0x948   :  { %v13088_v6 = vpop.permute.xlu1 %13087  ;;  %v4187_v59 = vpack.c.bf16 %v3985_v27, %v3984_v22  ;;  %v11160_v27 = vld [vmem:[%s14791_s20 + $0x4] sm:$0x3] }
 0x949   :  { %v13090_v32 = vunpack.i.h.bf16 %v13088_v6  ;;  %v13089_v60 = vunpack.i.l.bf16 %v13088_v6  ;;  %v11165_v6 = vld [vmem:[%s14791_s20 + $0x6] sm:$0x3] }
 0x94a   :  { %11896 = vmatprep.subr.bf16.mxu0 %v4187_v59 }
 0x94b   :  { %11897 = vmatpush3.bf16.msra.mxu0 %v4179_v45  ;;  %v4076_v34 = vsel %vm3417_vm11, %v14623_v46, %v13089_v60  ;;  %v4077_v42 = vsel %vm3417_vm11, %v14632_v51, %v13090_v32 }
 0x94c   :  { %v13098_v2 = vpop.permute.xlu1 %13097  ;;  %v4188_v50 = vpack.c.bf16 %v4077_v42, %v4076_v34 }
 0x94d   :  { %v13100_v19 = vunpack.i.h.bf16 %v13098_v2  ;;  %v13099_v33 = vunpack.i.l.bf16 %v13098_v2 }
 0x94e   :  { %11898 = vmatprep.subr.bf16.mxu0 %v4188_v50 }
 0x94f   :  { %v13113_v36 = vpop.permute.xlu0 %13112  ;;  %11899 = vmatpush3.bf16.msra.mxu0 %v4180_v29  ;;  %v4078_v35 = vsel %vm3417_vm11, %v14619_v31, %v13099_v33  ;;  %v4079_v46 = vsel %vm3417_vm11, %v14628_v48, %v13100_v19 }
 0x950   :  { %v13115_v45 = vunpack.i.h.bf16 %v13113_v36  ;;  %v13114_v51 = vunpack.i.l.bf16 %v13113_v36  ;;  %v13108_v57 = vpop.permute.xlu1 %13107  ;;  %v4189_v26 = vpack.c.bf16 %v4079_v46, %v4078_v35 }
 0x951   :  { %v13110_v5 = vunpack.i.h.bf16 %v13108_v57  ;;  %v13109_v20 = vunpack.i.l.bf16 %v13108_v57 }
 0x952   :  { %11900 = vmatprep.subr.bf16.mxu0 %v4189_v26  ;;  %v4172_v43 = vsel %vm3417_vm11, %v14664_v49, %v13114_v51  ;;  %v4173_v31 = vsel %vm3417_vm11, %v14668_v56, %v13115_v45  ;;  %v13636_v49 = vld [vmem:[%s14662_s5 + $0x18] ss:$12 sps:$4 sm:$0xff]   ;;  %v13637_v56 = vld [vmem:[%s14662_s5 + $0x20] ss:$12 sps:$4 sm:$0xff]  }
 0x953   :  { %11901 = vmatpush3.bf16.msra.mxu0 %v4181_v30  ;;  %v4170_v48 = vsel %vm3417_vm11, %v14666_v37, %v13109_v20  ;;  %v4171_v8 = vsel %vm3417_vm11, %v14671_v41, %v13110_v5  ;;  %v4191_v29 = vpack.c.bf16 %v4173_v31, %v4172_v43  ;;  %v4379_v37 = vld [vmem:[%s14791_s20] sm:$0x3]  ;;  %v11155_v41 = vld [vmem:[%s14791_s20 + $0x2] sm:$0x3]  ;;  %v4574_v20 = vsel %vm572_vm9, %v11160_v27, 0 }
 0x954   :  { %v4190_v55 = vpack.c.bf16 %v4171_v8, %v4170_v48  ;;  %12895 = vmatprep.subr.msk.bf16.mxu0 %vm572_vm9, %v11155_v41  ;;  %v4393_v52 = vsel %vm572_vm9, %v4379_v37, 0  ;;  %v4484_v13 = vsel %vm572_vm9, %v11155_v41, 0  ;;  %v11170_v43 = vld [vmem:[%s14791_s20 + $0x8] sm:$0x3]  ;;  %v11175_v31 = vld [vmem:[%s14791_s20 + $0xa] sm:$0x3] }
 0x955   :  { %v11190_v41 = vld [vmem:[%s14791_s20 + $0x10] sm:$0x3] }
 0x956   :  { %4294 = vmatmul.mubr.bf16.vlgmr.msra.gmra.mrb[72].mxu0 %v13630_v23  ;;  %12408 = vmatprep.subr.bf16.mxu1 %v4190_v55  ;;  %v4664_v23 = vsel %vm572_vm9, %v11165_v6, 0 }
 0x957   :  { %12409 = vmatpush3.bf16.msra.mxu1 %v4190_v55  ;;  %4301 = vmatprep.mubr.bf16.mxu0 %v13633_v54  ;;  %v4844_v54 = vsel %vm572_vm9, %v11175_v31, 0  ;;  %v11180_v55 = vld [vmem:[%s14791_s20 + $0xc] sm:$0x3] }
 0x958   :  { %12410 = vmatprep.subr.bf16.mxu1 %v4191_v29  ;;  %12427 = vmatpush3.bf16.msra.mxu0 %v4484_v13 }
 0x959   :  { %12897 = vmatprep.subr.msk.bf16.mxu0 %vm572_vm9, %v11165_v6 }
 0x95b   :  { %12411 = vmatpush3.bf16.msra.mxu1 %v4191_v29  ;;  %v4754_v29 = vsel %vm572_vm9, %v11170_v43, 0 }
 0x95c   :  { %12894 = vmatprep.subr.msk.bf16.mxu1 %vm572_vm9, %v4379_v37 }
 0x95e   :  { %4302 = vmatmul.mubr.bf16.gmra.mrb[76].mxu0 %v13636_v49  ;;  %12413 = vmatmul.mubr.msk.bf16.vlgmr.msra.gmra.mrb[92].mxu1 %vm4254_vm10, %v13637_v56  ;;  %v11185_v49 = vld [vmem:[%s14791_s20 + $0xe] sm:$0x3]  ;;  %v4934_v56 = vsel %vm572_vm9, %v11180_v55, 0  ;;  %s15401_s20 = sld [smem:[%s16266_s0 + %s13857_s11]]  }
 0x95f   :  { %12417 = vmatpush3.bf16.msra.mxu1 %v4393_v52  ;;  %v5024_v37 = vsel %vm572_vm9, %v11185_v49, 0  ;;  %v5114_v52 = vsel %vm572_vm9, %v11190_v41, 0  ;;  %s16005_s11 = sld [smem:[%s16266_s0 + %s13864_s8]]  }
 0x960   :  { %v4212_v7 = vpop.permute.xlu0 %4211  ;;  %12896 = vmatprep.subr.msk.bf16.mxu1 %vm572_vm9, %v11160_v27 }
 0x961   :  { %v4207_v58 = vpop.permute.xlu1 %4206 }
 0x964   :  { %v4222_v60 = vpop.permute.xlu0 %4221 }
 0x965   :  { %v4217_v63 = vpop.permute.xlu1 %4216 }
 0xa29   :  { %v11902_v30 = vpop.f32.mrb[72].mxu0 }
 0xa2a   :  { %v11903_v14 = vpop.f32.mrb[73].mxu0 }
 0xa2b   :  { %v11904_v12 = vadd.f32 %v11903_v14, %v11902_v30  ;;  %v11905_v15 = vpop.f32.mrb[74].mxu0 }
 0xa2c   :  { %v11906_v44 = vpop.f32.mrb[75].mxu0 }
 0xa2d   :  { %v11907_v21 = vadd.f32 %v11906_v44, %v11905_v15  ;;  %v4296_v11 = vadd.f32 %v11904_v12, %v4207_v58 }
 0xa2f   :  { %v4299_v53 = vadd.f32 %v11907_v21, %v4212_v7 }
 0xa31   :  { %v11908_v0 = vpop.f32.mrb[76].mxu0  ;;  %v12414_v10 = vpop.f32.mrb[92].mxu1 }
 0xa32   :  { %v11909_v16 = vpop.f32.mrb[77].mxu0  ;;  %v4344_v47 = vpop.f32.mrb[93].mxu1 }
 0xa33   :  { %v11910_v24 = vadd.f32 %v11909_v16, %v11908_v0  ;;  %v4345_v28 = vadd.f32 %v4344_v47, %v4296_v11  ;;  %v11911_v18 = vpop.f32.mrb[78].mxu0  ;;  %v12415_v17 = vpop.f32.mrb[94].mxu1 }
 0xa34   :  { %v11912_v3 = vpop.f32.mrb[79].mxu0  ;;  %v4347_v22 = vpop.f32.mrb[95].mxu1 }
 0xa35   :  { %v4304_v59 = vadd.f32 %v11910_v24, %v4217_v63  ;;  %v11913_v32 = vadd.f32 %v11912_v3, %v11911_v18  ;;  %v4363_v34 = vmul.f32 0.2, %v4345_v28  ;;  %v4348_v42 = vadd.f32 %v4347_v22, %v4299_v53 }
 0xa36   :  { %vm4359_vm12 = vcmp.ge.f32.partialorder %v4345_v28, 0.0 }
 0xa37   :  { %v4353_v2 = vadd.f32 %v12414_v10, %v4304_v59  ;;  %v4307_v50 = vadd.f32 %v11913_v32, %v4222_v60  ;;  %vm4360_vm13 = vcmp.ge.f32.partialorder %v4348_v42, 0.0  ;;  %v4364_v19 = vmul.f32 0.2, %v4348_v42 }
 0xa38   :  { %v14803_v35 = vsel %vm4359_vm12, %v4345_v28, %v4363_v34 }
 0xa39   :  { %v4365_v33 = vmul.f32 0.2, %v4353_v2  ;;  %v4356_v36 = vadd.f32 %v12415_v17, %v4307_v50  ;;  %vm4361_vm14 = vcmp.ge.f32.partialorder %v4353_v2, 0.0  ;;  %v14805_v46 = vsel %vm4360_vm13, %v4348_v42, %v4364_v19 }
 0xa3a   :  { %v14809_v51 = vpack.c.bf16 %v14805_v46, %v14803_v35 }
 0xa3b   :  { %vm4362_vm1 = vcmp.ge.f32.partialorder %v4356_v36, 0.0  ;;  %v4366_v45 = vmul.f32 0.2, %v4356_v36  ;;  %v14811_v57 = vsel %vm4361_vm14, %v4353_v2, %v4365_v33 }
 0xa3c   :  { %4375 = vrot.lane.b32.xlu1 %v14809_v51, %s13846_s21  ;;  %12418 = vmatprep.mubr.msk.bf16.mxu1 %vm3417_vm11, %v14809_v51 }
 0xa3d   :  { %v14813_v26 = vsel %vm4362_vm1, %v4356_v36, %v4366_v45  ;;  %12428 = vmatprep.mubr.msk.bf16.mxu0 %vm3417_vm11, %v14809_v51 }
 0xa3e   :  { %v4372_v5 = vpack.c.bf16 %v14813_v26, %v14811_v57 }
 0xa40   :  { %4377 = vrot.lane.b32.xlu0 %v4372_v5, %s13846_s21  ;;  %12419 = vmatmul.mubr.msk.bf16.vlgmr.msra.gmra.mrb[96].mxu1 %vm3417_vm11, %v4372_v5 }
 0xa41   :  { %12429 = vmatmul.mubr.msk.bf16.vlgmr.msra.gmra.mrb[80].mxu0 %vm3417_vm11, %v4372_v5  ;;  %12437 = vmatpush3.bf16.msra.mxu1 %v4574_v20 }
 0xa42   :  { %12447 = vmatpush3.bf16.msra.mxu0 %v4664_v23  ;;  %12898 = vmatprep.subr.msk.bf16.mxu1 %vm572_vm9, %v11170_v43 }
 0xa43   :  { %12899 = vmatprep.subr.msk.bf16.mxu0 %vm572_vm9, %v11175_v31 }
 0xaae   :  { %v4376_v48 = vpop.permute.xlu1 %4375 }
 0xaaf   :  { %12422 = vmatprep.mubr.msk.bf16.mxu1 %vm3417_vm11, %v4376_v48  ;;  %12432 = vmatprep.mubr.msk.bf16.mxu0 %vm3417_vm11, %v4376_v48 }
 0xab2   :  { %v4378_v8 = vpop.permute.xlu0 %4377 }
 0xab3   :  { %12423 = vmatmul.mubr.msk.bf16.gmra.mrb[100].mxu1 %vm3417_vm11, %v4378_v8  ;;  %12433 = vmatmul.mubr.msk.bf16.gmra.mrb[84].mxu0 %vm3417_vm11, %v4378_v8 }
 0xab4   :  { %12438 = vmatprep.mubr.msk.bf16.mxu1 %vm3417_vm11, %v14809_v51  ;;  %12448 = vmatprep.mubr.msk.bf16.mxu0 %vm3417_vm11, %v14809_v51 }
 0xabb   :  { %12439 = vmatmul.mubr.msk.bf16.vlgmr.msra.gmra.mrb[104].mxu1 %vm3417_vm11, %v4372_v5  ;;  %12449 = vmatmul.mubr.msk.bf16.vlgmr.msra.gmra.mrb[88].mxu0 %vm3417_vm11, %v4372_v5 }
 0xabc   :  { %12442 = vmatprep.mubr.msk.bf16.mxu1 %vm3417_vm11, %v4376_v48  ;;  %12452 = vmatprep.mubr.msk.bf16.mxu0 %vm3417_vm11, %v4376_v48 }
 0xabd   :  { %12457 = vmatpush3.bf16.msra.mxu1 %v4754_v29  ;;  %12467 = vmatpush3.bf16.msra.mxu0 %v4844_v54 }
 0xabe   :  { %12900 = vmatprep.subr.msk.bf16.mxu1 %vm572_vm9, %v11180_v55  ;;  %12901 = vmatprep.subr.msk.bf16.mxu0 %vm572_vm9, %v11185_v49 }
 0xac3   :  { %12443 = vmatmul.mubr.msk.bf16.gmra.mrb[108].mxu1 %vm3417_vm11, %v4378_v8  ;;  %12453 = vmatmul.mubr.msk.bf16.gmra.mrb[92].mxu0 %vm3417_vm11, %v4378_v8 }
 0xac4   :  { %12458 = vmatprep.mubr.msk.bf16.mxu1 %vm3417_vm11, %v14809_v51  ;;  %12468 = vmatprep.mubr.msk.bf16.mxu0 %vm3417_vm11, %v14809_v51 }
 0xacb   :  { %12459 = vmatmul.mubr.msk.bf16.vlgmr.msra.gmra.mrb[112].mxu1 %vm3417_vm11, %v4372_v5  ;;  %12469 = vmatmul.mubr.msk.bf16.vlgmr.msra.gmra.mrb[96].mxu0 %vm3417_vm11, %v4372_v5 }
 0xacc   :  { %12462 = vmatprep.mubr.msk.bf16.mxu1 %vm3417_vm11, %v4376_v48  ;;  %12472 = vmatprep.mubr.msk.bf16.mxu0 %vm3417_vm11, %v4376_v48 }
 0xacd   :  { %12477 = vmatpush3.bf16.msra.mxu1 %v4934_v56  ;;  %12487 = vmatpush3.bf16.msra.mxu0 %v5024_v37 }
 0xace   :  { %12902 = vmatprep.subr.msk.bf16.mxu1 %vm572_vm9, %v11190_v41 }
 0xad3   :  { %12463 = vmatmul.mubr.msk.bf16.gmra.mrb[116].mxu1 %vm3417_vm11, %v4378_v8  ;;  %12473 = vmatmul.mubr.msk.bf16.gmra.mrb[100].mxu0 %vm3417_vm11, %v4378_v8 }
 0xad4   :  { %12478 = vmatprep.mubr.msk.bf16.mxu1 %vm3417_vm11, %v14809_v51  ;;  %12488 = vmatprep.mubr.msk.bf16.mxu0 %vm3417_vm11, %v14809_v51 }
 0xadb   :  { %12479 = vmatmul.mubr.msk.bf16.vlgmr.msra.gmra.mrb[120].mxu1 %vm3417_vm11, %v4372_v5  ;;  %12489 = vmatmul.mubr.msk.bf16.vlgmr.msra.gmra.mrb[104].mxu0 %vm3417_vm11, %v4372_v5 }
 0xadc   :  { %12482 = vmatprep.mubr.msk.bf16.mxu1 %vm3417_vm11, %v4376_v48  ;;  %12492 = vmatprep.mubr.msk.bf16.mxu0 %vm3417_vm11, %v4376_v48 }
 0xadd   :  { %12497 = vmatpush3.bf16.msra.mxu1 %v5114_v52 }
 0xae3   :  { %12483 = vmatmul.mubr.msk.bf16.gmra.mrb[124].mxu1 %vm3417_vm11, %v4378_v8  ;;  %12493 = vmatmul.mubr.msk.bf16.gmra.mrb[108].mxu0 %vm3417_vm11, %v4378_v8 }
 0xae4   :  { %12498 = vmatprep.mubr.msk.bf16.mxu1 %vm3417_vm11, %v14809_v51 }
 0xaeb   :  { %12499 = vmatmul.mubr.msk.bf16.vlgmr.msra.gmra.mrb[128].mxu1 %vm3417_vm11, %v4372_v5 }
 0xaec   :  { %12502 = vmatprep.mubr.msk.bf16.mxu1 %vm3417_vm11, %v4376_v48 }
 0xaf3   :  { %12503 = vmatmul.mubr.msk.bf16.gmra.mrb[132].mxu1 %vm3417_vm11, %v4378_v8 }
 0xb13   :  { %v14882_v13 = vpop.f32.mrb[96].mxu1 }
 0xb14   :  { %v14884_v30 = vpop.f32.mrb[80].mxu0  ;;  %v14886_v58 = vpop.f32.mrb[97].mxu1 }
 0xb15   :  { %v14888_v14 = vpop.f32.mrb[81].mxu0  ;;  %v14890_v12 = vpop.f32.mrb[98].mxu1 }
 0xb16   :  { %v14892_v15 = vpop.f32.mrb[82].mxu0  ;;  %v14894_v44 = vpop.f32.mrb[99].mxu1 }
 0xb17   :  { %v14896_v21 = vpop.f32.mrb[83].mxu0 }
 0xb86   :  { %v12424_v7 = vpop.f32.mrb[100].mxu1  ;;  %v12434_v63 = vpop.f32.mrb[84].mxu0 }
 0xb87   :  { %v4445_v0 = vpop.f32.mrb[101].mxu1  ;;  %v4536_v10 = vpop.f32.mrb[85].mxu0 }
 0xb88   :  { %v12425_v11 = vpop.f32.mrb[102].mxu1  ;;  %v12435_v16 = vpop.f32.mrb[86].mxu0 }
 0xb89   :  { %v13131_v47 = vpack.i.bf16 %v12425_v11, %v12424_v7  ;;  %v13151_v24 = vpack.i.bf16 %v12435_v16, %v12434_v63  ;;  %v4448_v28 = vpop.f32.mrb[103].mxu1  ;;  %v4539_v18 = vpop.f32.mrb[87].mxu0 }
 0xb8a   :  { %v13116_v17 = vpack.i.bf16 %v4448_v28, %v4445_v0  ;;  %v13136_v3 = vpack.i.bf16 %v4539_v18, %v4536_v10 }
 0xb8c   :  { %13117 = vrot.lane.b32.xlu0 %v13116_v17, %s13825_s14 }
 0xb8e   :  { %v14899_v53 = vpop.f32.mrb[104].mxu1  ;;  %v14901_v22 = vpop.f32.mrb[88].mxu0 }
 0xb8f   :  { %v14903_v27 = vpop.f32.mrb[105].mxu1  ;;  %v14905_v6 = vpop.f32.mrb[89].mxu0 }
 0xb90   :  { %v14907_v59 = vpop.f32.mrb[90].mxu0  ;;  %13132 = vrot.lane.b32.xlu0 %v13131_v47, %s13825_s14  ;;  %v14910_v32 = vpop.f32.mrb[106].mxu1 }
 0xb91   :  { %v14912_v60 = vpop.f32.mrb[107].mxu1  ;;  %v14914_v34 = vpop.f32.mrb[91].mxu0 }
 0xb94   :  { %13137 = vrot.lane.b32.xlu0 %v13136_v3, %s13825_s14 }
 0xb96   :  { %v12444_v42 = vpop.f32.mrb[108].mxu1  ;;  %v12454_v2 = vpop.f32.mrb[92].mxu0 }
 0xb97   :  { %v4626_v50 = vpop.f32.mrb[109].mxu1  ;;  %v4716_v19 = vpop.f32.mrb[93].mxu0 }
 0xb98   :  { %v12455_v33 = vpop.f32.mrb[94].mxu0  ;;  %13152 = vrot.lane.b32.xlu0 %v13151_v24, %s13825_s14  ;;  %v12445_v36 = vpop.f32.mrb[110].mxu1 }
 0xb99   :  { %v13191_v45 = vpack.i.bf16 %v12455_v33, %v12454_v2  ;;  %v13171_v51 = vpack.i.bf16 %v12445_v36, %v12444_v42  ;;  %v4629_v5 = vpop.f32.mrb[111].mxu1  ;;  %v4719_v20 = vpop.f32.mrb[95].mxu0 }
 0xb9a   :  { %v13156_v23 = vpack.i.bf16 %v4629_v5, %v4626_v50  ;;  %v13176_v43 = vpack.i.bf16 %v4719_v20, %v4716_v19 }
 0xb9c   :  { %13157 = vrot.lane.b32.xlu0 %v13156_v23, %s13825_s14 }
 0xb9e   :  { %v14919_v31 = vpop.f32.mrb[112].mxu1  ;;  %v14921_v48 = vpop.f32.mrb[96].mxu0 }
 0xb9f   :  { %v14923_v8 = vpop.f32.mrb[113].mxu1  ;;  %v14925_v29 = vpop.f32.mrb[97].mxu0 }
 0xba0   :  { %v14927_v54 = vpop.f32.mrb[98].mxu0  ;;  %13172 = vrot.lane.b32.xlu0 %v13171_v51, %s13825_s14  ;;  %v14930_v55 = vpop.f32.mrb[114].mxu1 }
 0xba1   :  { %v14932_v49 = vpop.f32.mrb[115].mxu1  ;;  %v14934_v56 = vpop.f32.mrb[99].mxu0 }
 0xba4   :  { %13177 = vrot.lane.b32.xlu0 %v13176_v43, %s13825_s14 }
 0xba6   :  { %v12464_v37 = vpop.f32.mrb[116].mxu1  ;;  %v12474_v41 = vpop.f32.mrb[100].mxu0 }
 0xba7   :  { %v4806_v52 = vpop.f32.mrb[117].mxu1  ;;  %v4896_v7 = vpop.f32.mrb[101].mxu0 }
 0xba8   :  { %v12475_v63 = vpop.f32.mrb[102].mxu0  ;;  %13192 = vrot.lane.b32.xlu0 %v13191_v45, %s13825_s14  ;;  %v12465_v0 = vpop.f32.mrb[118].mxu1 }
 0xba9   :  { %v13146_v10 = vpack.i.bf16 %v12475_v63, %v12474_v41  ;;  %v13126_v11 = vpack.i.bf16 %v12465_v0, %v12464_v37  ;;  %v4809_v16 = vpop.f32.mrb[119].mxu1  ;;  %v4899_v47 = vpop.f32.mrb[103].mxu0 }
 0xbaa   :  { %v13121_v24 = vpack.i.bf16 %v4809_v16, %v4806_v52  ;;  %v13141_v28 = vpack.i.bf16 %v4899_v47, %v4896_v7  ;;  %v13640_v47 = vld [vmem:[%s14962_s25 + $0x4] ss:$12 sps:$4 sm:$0xff]  }
 0xbab   :  { %5319 = vmatprep.mubr.bf16.mxu0 %v13640_v47  ;;  %v5405_v47 = vld [vmem:[%s10525_s13 + $0x10] sm:$0xff] }
 0xbac   :  { %13122 = vrot.lane.b32.xlu1 %v13121_v24, %s13825_s14 }
 0xbae   :  { %v14939_v18 = vpop.f32.mrb[120].mxu1  ;;  %v14941_v17 = vpop.f32.mrb[104].mxu0 }
 0xbaf   :  { %v14943_v3 = vpop.f32.mrb[121].mxu1  ;;  %v14945_v42 = vpop.f32.mrb[105].mxu0 }
 0xbb0   :  { %v14947_v2 = vpop.f32.mrb[106].mxu0  ;;  %13127 = vrot.lane.b32.xlu1 %v13126_v11, %s13825_s14  ;;  %v14950_v50 = vpop.f32.mrb[122].mxu1 }
 0xbb1   :  { %v14952_v19 = vpop.f32.mrb[123].mxu1  ;;  %v14954_v33 = vpop.f32.mrb[107].mxu0 }
 0xbb4   :  { %13142 = vrot.lane.b32.xlu1 %v13141_v28, %s13825_s14 }
 0xbb6   :  { %v12484_v36 = vpop.f32.mrb[124].mxu1  ;;  %v12494_v45 = vpop.f32.mrb[108].mxu0 }
 0xbb7   :  { %v4986_v51 = vpop.f32.mrb[125].mxu1  ;;  %v5076_v5 = vpop.f32.mrb[109].mxu0 }
 0xbb8   :  { %v12495_v20 = vpop.f32.mrb[110].mxu0  ;;  %13147 = vrot.lane.b32.xlu1 %v13146_v10, %s13825_s14  ;;  %v12485_v23 = vpop.f32.mrb[126].mxu1 }
 0xbb9   :  { %v13186_v43 = vpack.i.bf16 %v12495_v20, %v12494_v45  ;;  %v13166_v37 = vpack.i.bf16 %v12485_v23, %v12484_v36  ;;  %v4989_v41 = vpop.f32.mrb[127].mxu1  ;;  %v5079_v52 = vpop.f32.mrb[111].mxu0  ;;  %v5228_v23 = vld [vmem:[%s10519_s29 + $0x8] sm:$0xff] }
 0xbba   :  { %v13161_v7 = vpack.i.bf16 %v4989_v41, %v4986_v51  ;;  %v13181_v63 = vpack.i.bf16 %v5079_v52, %v5076_v5  ;;  %v13643_v5 = vld [vmem:[%s14962_s25 + $0x8] ss:$12 sps:$4 sm:$0xff]  }
 0xbbb   :  { %12510 = vmatprep.mubr.msk.bf16.mxu1 %vm4254_vm10, %v13643_v5  ;;  %v5229_v41 = vld [vmem:[%s10519_s29 + $0x10] sm:$0xff]  ;;  %v5404_v52 = vld [vmem:[%s10525_s13 + $0x8] sm:$0xff]  ;;  %v5611_v5 = vld [vmem:[%s14992_s18] sm:$0xff] }
 0xbbc   :  { %13162 = vrot.lane.b32.xlu1 %v13161_v7, %s13825_s14  ;;  %v5403_v7 = vld [vmem:[%s10525_s13] sm:$0xff] }
 0xbbe   :  { %v14964_v0 = vpop.f32.mrb[128].mxu1 }
 0xbbf   :  { %v14966_v10 = vpop.f32.mrb[129].mxu1 }
 0xbc0   :  { %13167 = vrot.lane.b32.xlu1 %v13166_v37, %s13825_s14  ;;  %v14969_v11 = vpop.f32.mrb[130].mxu1  ;;  %v5227_v37 = vld [vmem:[%s10519_s29] sm:$0xff] }
 0xbc1   :  { %v14971_v16 = vpop.f32.mrb[131].mxu1 }
 0xbc4   :  { %13182 = vrot.lane.b32.xlu1 %v13181_v63, %s13825_s14  ;;  %v5406_v63 = vld [vmem:[%s10525_s13 + $0x18] sm:$0xff]  ;;  %s13855_s13 = smov 23  }
 0xbc5   :  { %s15237_s5 = sld [smem:[%s16266_s0 + %s13855_s13]]  }
 0xbc6   :  { %v12504_v24 = vpop.f32.mrb[132].mxu1 }
 0xbc7   :  { %v5166_v28 = vpop.f32.mrb[133].mxu1 }
 0xbc8   :  { %13187 = vrot.lane.b32.xlu1 %v13186_v43, %s13825_s14  ;;  %v12505_v36 = vpop.f32.mrb[134].mxu1  ;;  %v5230_v43 = vld [vmem:[%s10519_s29 + $0x18] sm:$0xff]  ;;  %s10526_s29 = sld [smem:[%s16266_s0 + %s13853_s27]]  }
 0xbc9   :  { %v13201_v45 = vpack.i.bf16 %v12505_v36, %v12504_v24  ;;  %v5169_v51 = vpop.f32.mrb[135].mxu1  ;;  %v5505_v24 = vld [vmem:[%s10527_s7 + $0x8] sm:$0xff]  ;;  %v5507_v36 = vld [vmem:[%s10527_s7 + $0x18] sm:$0xff] }
 0xbca   :  { %v13196_v20 = vpack.i.bf16 %v5169_v51, %v5166_v28  ;;  %v5504_v28 = vld [vmem:[%s10527_s7] sm:$0xff]  ;;  %v5612_v51 = vld [vmem:[%s14992_s18 + $0x8] sm:$0xff] }
 0xbcb   :  { %13202 = vrot.lane.b32.xlu0 %v13201_v45, %s13825_s14  ;;  %v5506_v45 = vld [vmem:[%s10527_s7 + $0x10] sm:$0xff]  ;;  %s13856_s7 = smov 33  }
 0xbcc   :  { %13197 = vrot.lane.b32.xlu1 %v13196_v20, %s13825_s14  ;;  %v5614_v20 = vld [vmem:[%s14992_s18 + $0x18] sm:$0xff]  ;;  %s13854_s14 = smov 21   ;;  %s15264_s10 = sld [smem:[%s16266_s0 + %s13856_s7]]  }
 0xbcd   :  { %s15208_s2 = sld [smem:[%s16266_s0 + %s13854_s14]]   ;;  %s13869_s14 = smov 37  }
 0xbcf   :  { %5238 = vperm.xlu0 %12959, %v5228_v23   ;;  %v5613_v23 = vld [vmem:[%s14992_s18 + $0x10] sm:$0xff] }
 0xbd0   :  { %5233 = vperm.xlu1 %12980, %v5227_v37   ;;  %v11220_v37 = vld [vmem:[%s14992_s18 + $0x28] sm:$0xff] }
 0xbd3   :  { %5248 = vperm.xlu0 %12959, %v5230_v43   ;;  %v11219_v43 = vld [vmem:[%s14992_s18 + $0x20] sm:$0xff] }
 0xbd4   :  { %5243 = vperm.xlu1 %12980, %v5229_v41   ;;  %v11222_v41 = vld [vmem:[%s14992_s18 + $0x38] sm:$0xff] }
 0xbd7   :  { %5414 = vperm.xlu0 %12959, %v5404_v52   ;;  %v11221_v52 = vld [vmem:[%s14992_s18 + $0x30] sm:$0xff] }
 0xbd8   :  { %5409 = vperm.xlu1 %12980, %v5403_v7   ;;  %v11232_v7 = vld [vmem:[%s14992_s18 + $0x48] sm:$0xff] }
 0xbdb   :  { %5424 = vperm.xlu0 %12959, %v5406_v63   ;;  %v11231_v63 = vld [vmem:[%s14992_s18 + $0x40] sm:$0xff] }
 0xbdc   :  { %5419 = vperm.xlu1 %12980, %v5405_v47   ;;  %v11234_v47 = vld [vmem:[%s14992_s18 + $0x58] sm:$0xff] }
 0xbdf   :  { %5515 = vperm.xlu0 %12959, %v5505_v24   ;;  %v11233_v24 = vld [vmem:[%s14992_s18 + $0x50] sm:$0xff] }
 0xbe0   :  { %5510 = vperm.xlu1 %12980, %v5504_v28   ;;  %v11244_v28 = vld [vmem:[%s14992_s18 + $0x68] sm:$0xff] }
 0xbe3   :  { %5525 = vperm.xlu0 %12959, %v5507_v36   ;;  %v11243_v36 = vld [vmem:[%s14992_s18 + $0x60] sm:$0xff] }
 0xbe4   :  { %5520 = vperm.xlu1 %12980, %v5506_v45  }
 0xbe7   :  { %5622 = vperm.xlu0 %12959, %v5612_v51  }
 0xbe8   :  { %5617 = vperm.xlu1 %12980, %v5611_v5  }
 0xbeb   :  { %5632 = vperm.xlu0 %12959, %v5614_v20   ;;  %v11246_v20 = vld [vmem:[%s14992_s18 + $0x78] sm:$0xff] }
 0xbec   :  { %5627 = vperm.xlu1 %12980, %v5613_v23  }
 0xbef   :  { %5731 = vperm.xlu0 %12959, %v11220_v37  }
 0xbf0   :  { %5726 = vperm.xlu1 %12980, %v11219_v43   ;;  %v11245_v43 = vld [vmem:[%s14992_s18 + $0x70] sm:$0xff] }
 0xbf3   :  { %5741 = vperm.xlu0 %12959, %v11222_v41  }
 0xbf4   :  { %5736 = vperm.xlu1 %12980, %v11221_v52  }
 0xbf7   :  { %5840 = vperm.xlu0 %12959, %v11232_v7  }
 0xbf8   :  { %5835 = vperm.xlu1 %12980, %v11231_v63  }
 0xbfb   :  { %5850 = vperm.xlu0 %12959, %v11234_v47   ;;  %v11256_v47 = vld [vmem:[%s14992_s18 + $0x88] sm:$0xff] }
 0xbfc   :  { %5845 = vperm.xlu1 %12980, %v11233_v24   ;;  %v11255_v24 = vld [vmem:[%s14992_s18 + $0x80] sm:$0xff] }
 0xbfe   :  { %v13118_v45 = vpop.permute.xlu0 %13117 }
 0xbff   :  { %v13120_v51 = vunpack.i.h.bf16 %v13118_v45  ;;  %v13119_v5 = vunpack.i.l.bf16 %v13118_v45  ;;  %5949 = vperm.xlu0 %12959, %v11244_v28  }
 0xc00   :  { %5944 = vperm.xlu1 %12980, %v11243_v36  }
 0xc01   :  { %v15011_v23 = vsel %vm4476_vm2, %v14894_v44, %v13120_v51  ;;  %v15015_v37 = vsel %vm4476_vm2, %v14886_v58, %v13119_v5  ;;  %v11258_v5 = vld [vmem:[%s14992_s18 + $0x98] sm:$0xff] }
 0xc02   :  { %v13133_v41 = vpop.permute.xlu0 %13132  ;;  %v5201_v52 = vpack.c.bf16 %v15011_v23, %v15015_v37 }
 0xc03   :  { %v13135_v7 = vunpack.i.h.bf16 %v13133_v41  ;;  %v13134_v63 = vunpack.i.l.bf16 %v13133_v41  ;;  %5959 = vperm.xlu0 %12959, %v11246_v20   ;;  %v11257_v20 = vld [vmem:[%s14992_s18 + $0x90] sm:$0xff] }
 0xc04   :  { %5954 = vperm.xlu1 %12980, %v11245_v43  }
 0xc05   :  { %v15023_v44 = vsel %vm4476_vm2, %v14890_v12, %v13135_v7  ;;  %v15027_v58 = vsel %vm4476_vm2, %v14882_v13, %v13134_v63 }
 0xc06   :  { %v13138_v28 = vpop.permute.xlu0 %13137  ;;  %v5202_v36 = vpack.c.bf16 %v15023_v44, %v15027_v58 }
 0xc07   :  { %v13140_v45 = vunpack.i.h.bf16 %v13138_v28  ;;  %v13139_v51 = vunpack.i.l.bf16 %v13138_v28  ;;  %6058 = vperm.xlu0 %12959, %v11256_v47   ;;  %v11268_v47 = vld [vmem:[%s14992_s18 + $0xa8] sm:$0xff] }
 0xc08   :  { %6053 = vperm.xlu1 %12980, %v11255_v24   ;;  %v11267_v24 = vld [vmem:[%s14992_s18 + $0xa0] sm:$0xff] }
 0xc09   :  { %v15035_v12 = vsel %vm4476_vm2, %v14896_v21, %v13140_v45  ;;  %v15039_v13 = vsel %vm4476_vm2, %v14888_v14, %v13139_v51 }
 0xc0a   :  { %v13153_v43 = vpop.permute.xlu0 %13152  ;;  %v5203_v41 = vpack.c.bf16 %v15035_v12, %v15039_v13 }
 0xc0b   :  { %v13155_v7 = vunpack.i.h.bf16 %v13153_v43  ;;  %v13154_v63 = vunpack.i.l.bf16 %v13153_v43  ;;  %6068 = vperm.xlu0 %12959, %v11258_v5   ;;  %v11269_v43 = vld [vmem:[%s14992_s18 + $0xb0] sm:$0xff] }
 0xc0c   :  { %6063 = vperm.xlu1 %12980, %v11257_v20   ;;  %v11270_v20 = vld [vmem:[%s14992_s18 + $0xb8] sm:$0xff]  ;;  %s13865_s18 = smov 31  }
 0xc0d   :  { %v15052_v14 = vsel %vm4476_vm2, %v14892_v15, %v13155_v7  ;;  %v15056_v21 = vsel %vm4476_vm2, %v14884_v30, %v13154_v63 }
 0xc0e   :  { %v13158_v28 = vpop.permute.xlu0 %13157 }
 0xc0f   :  { %v13160_v51 = vunpack.i.h.bf16 %v13158_v28  ;;  %v13159_v5 = vunpack.i.l.bf16 %v13158_v28  ;;  %6167 = vperm.xlu0 %12959, %v11268_v47   ;;  %v6288_v47 = vld [vmem:[%s15048_s23 + $0x8] sm:$0xff] }
 0xc10   :  { %6162 = vperm.xlu1 %12980, %v11267_v24   ;;  %v6287_v24 = vld [vmem:[%s15048_s23] sm:$0xff] }
 0xc11   :  { %v15064_v15 = vsel %vm4476_vm2, %v14912_v60, %v13160_v51  ;;  %v15068_v30 = vsel %vm4476_vm2, %v14903_v27, %v13159_v5 }
 0xc12   :  { %v13173_v7 = vpop.permute.xlu0 %13172 }
 0xc13   :  { %v13175_v25 = vunpack.i.h.bf16 %v13173_v7  ;;  %v13174_v28 = vunpack.i.l.bf16 %v13173_v7  ;;  %6177 = vperm.xlu0 %12959, %v11270_v20   ;;  %v6290_v20 = vld [vmem:[%s15048_s23 + $0x18] sm:$0xff] }
 0xc14   :  { %6172 = vperm.xlu1 %12980, %v11269_v43  }
 0xc15   :  { %v15076_v60 = vsel %vm4476_vm2, %v14910_v32, %v13175_v25  ;;  %v15080_v27 = vsel %vm4476_vm2, %v14899_v53, %v13174_v28  ;;  %v6289_v32 = vld [vmem:[%s15048_s23 + $0x10] sm:$0xff] }
 0xc16   :  { %v13178_v51 = vpop.permute.xlu0 %13177 }
 0xc17   :  { %v13180_v4 = vunpack.i.h.bf16 %v13178_v51  ;;  %v13179_v7 = vunpack.i.l.bf16 %v13178_v51  ;;  %6322 = vperm.xlu0 %12959, %v6288_v47   ;;  %v6292_v47 = vld [vmem:[%s15048_s23 + $0x28] sm:$0xff] }
 0xc18   :  { %6317 = vperm.xlu1 %12980, %v6287_v24  }
 0xc19   :  { %v15088_v25 = vsel %vm4476_vm2, %v14914_v34, %v13180_v4  ;;  %v15092_v53 = vsel %vm4476_vm2, %v14905_v6, %v13179_v7  ;;  %v6291_v34 = vld [vmem:[%s15048_s23 + $0x20] sm:$0xff] }
 0xc1a   :  { %v13193_v43 = vpop.permute.xlu0 %13192 }
 0xc1b   :  { %v13195_v5 = vunpack.i.h.bf16 %v13193_v43  ;;  %v13194_v51 = vunpack.i.l.bf16 %v13193_v43  ;;  %6332 = vperm.xlu0 %12959, %v6290_v20   ;;  %v6294_v20 = vld [vmem:[%s15048_s23 + $0x38] sm:$0xff] }
 0xc1c   :  { %6327 = vperm.xlu1 %12980, %v6289_v32  }
 0xc1d   :  { %v15100_v4 = vsel %vm4476_vm2, %v14907_v59, %v13195_v5  ;;  %v15104_v6 = vsel %vm4476_vm2, %v14901_v22, %v13194_v51  ;;  %v6293_v5 = vld [vmem:[%s15048_s23 + $0x30] sm:$0xff] }
 0xc1e   :  { %v13123_v24 = vpop.permute.xlu1 %13122  ;;  %v5208_v7 = vpack.c.bf16 %v15100_v4, %v15104_v6  ;;  %v13646_v4 = vld [vmem:[%s13883_s9] sm:$0xff]  }
 0xc1f   :  { %v13125_v28 = vunpack.i.h.bf16 %v13123_v24  ;;  %v13124_v63 = vunpack.i.l.bf16 %v13123_v24  ;;  %6342 = vperm.xlu0 %12959, %v6292_v47  }
 0xc20   :  { %6337 = vperm.xlu1 %12980, %v6291_v34  }
 0xc21   :  { %v4837_v32 = vsel %vm4476_vm2, %v14923_v8, %v13124_v63  ;;  %v4838_v59 = vsel %vm4476_vm2, %v14932_v49, %v13125_v28 }
 0xc22   :  { %v13128_v43 = vpop.permute.xlu1 %13127  ;;  %v5209_v22 = vpack.c.bf16 %v4838_v59, %v4837_v32 }
 0xc23   :  { %v13130_v51 = vunpack.i.h.bf16 %v13128_v43  ;;  %v13129_v45 = vunpack.i.l.bf16 %v13128_v43  ;;  %6352 = vperm.xlu0 %12959, %v6294_v20  }
 0xc24   :  { %11963 = vmatprep.subr.bf16.mxu0 %v5209_v22  ;;  %6347 = vperm.xlu1 %12980, %v6293_v5  }
 0xc25   :  { %11964 = vmatpush3.bf16.msra.mxu0 %v5201_v52  ;;  %v4839_v47 = vsel %vm4476_vm2, %v14919_v31, %v13129_v45  ;;  %v4840_v8 = vsel %vm4476_vm2, %v14930_v55, %v13130_v51 }
 0xc26   :  { %v13143_v63 = vpop.permute.xlu1 %13142  ;;  %v5210_v49 = vpack.c.bf16 %v4840_v8, %v4839_v47  ;;  %v16280_v8 = vpack.c.bf16 %v15088_v25, %v15092_v53 }
 0xc27   :  { %v13145_v28 = vunpack.i.h.bf16 %v13143_v63  ;;  %v13144_v34 = vunpack.i.l.bf16 %v13143_v63 }
 0xc28   :  { %11965 = vmatprep.subr.bf16.mxu0 %v5210_v49 }
 0xc29   :  { %11966 = vmatpush3.bf16.msra.mxu0 %v5202_v36  ;;  %v4927_v24 = vsel %vm4476_vm2, %v14925_v29, %v13144_v34  ;;  %v4928_v23 = vsel %vm4476_vm2, %v14934_v56, %v13145_v28  ;;  %v16277_v56 = vpack.c.bf16 %v15052_v14, %v15056_v21 }
 0xc2a   :  { %v13148_v37 = vpop.permute.xlu1 %13147  ;;  %v5211_v31 = vpack.c.bf16 %v4928_v23, %v4927_v24  ;;  %v13638_v23 = vld [vmem:[%s14962_s25] ss:$12 sps:$4 sm:$0xff]  }
 0xc2b   :  { %v13150_v52 = vunpack.i.h.bf16 %v13148_v37  ;;  %v13149_v45 = vunpack.i.l.bf16 %v13148_v37 }
 0xc2c   :  { %11967 = vmatprep.subr.bf16.mxu0 %v5211_v31  ;;  %v13641_v31 = vld [vmem:[%s14962_s25 + $0x1c] ss:$12 sps:$4 sm:$0xff]  }
 0xc2d   :  { %11968 = vmatpush3.bf16.msra.mxu0 %v5203_v41  ;;  %v4929_v55 = vsel %vm4476_vm2, %v14921_v48, %v13149_v45  ;;  %v4930_v44 = vsel %vm4476_vm2, %v14927_v54, %v13150_v52  ;;  %v16278_v54 = vpack.c.bf16 %v15064_v15, %v15068_v30 }
 0xc2e   :  { %v13163_v58 = vpop.permute.xlu1 %13162  ;;  %v5212_v29 = vpack.c.bf16 %v4930_v44, %v4929_v55 }
 0xc2f   :  { %v13165_v36 = vunpack.i.h.bf16 %v13163_v58  ;;  %v13164_v20 = vunpack.i.l.bf16 %v13163_v58 }
 0xc30   :  { %11969 = vmatprep.subr.bf16.mxu0 %v5212_v29 }
 0xc31   :  { %11970 = vmatpush3.bf16.msra.mxu0 %v16277_v56  ;;  %v5017_v32 = vsel %vm4476_vm2, %v14943_v3, %v13164_v20  ;;  %v5018_v12 = vsel %vm4476_vm2, %v14952_v19, %v13165_v36  ;;  %v16279_v19 = vpack.c.bf16 %v15076_v60, %v15080_v27 }
 0xc32   :  { %v13168_v13 = vpop.permute.xlu1 %13167  ;;  %v5213_v48 = vpack.c.bf16 %v5018_v12, %v5017_v32 }
 0xc33   :  { %v13170_v41 = vunpack.i.h.bf16 %v13168_v13  ;;  %v13169_v59 = vunpack.i.l.bf16 %v13168_v13 }
 0xc34   :  { %11971 = vmatprep.subr.bf16.mxu0 %v5213_v48 }
 0xc35   :  { %11972 = vmatpush3.bf16.msra.mxu0 %v16278_v54  ;;  %v5019_v5 = vsel %vm4476_vm2, %v14939_v18, %v13169_v59  ;;  %v5020_v14 = vsel %vm4476_vm2, %v14950_v50, %v13170_v41 }
 0xc36   :  { %v13183_v21 = vpop.permute.xlu1 %13182  ;;  %v5214_v3 = vpack.c.bf16 %v5020_v14, %v5019_v5 }
 0xc37   :  { %v13185_v43 = vunpack.i.h.bf16 %v13183_v21  ;;  %v13184_v22 = vunpack.i.l.bf16 %v13183_v21 }
 0xc38   :  { %11973 = vmatprep.subr.bf16.mxu0 %v5214_v3 }
 0xc39   :  { %11974 = vmatpush3.bf16.msra.mxu0 %v16279_v19  ;;  %v5107_v51 = vsel %vm4476_vm2, %v14945_v42, %v13184_v22  ;;  %v5108_v15 = vsel %vm4476_vm2, %v14954_v33, %v13185_v43 }
 0xc3a   :  { %v13188_v30 = vpop.permute.xlu1 %13187  ;;  %v5215_v18 = vpack.c.bf16 %v5108_v15, %v5107_v51 }
 0xc3b   :  { %v13190_v47 = vunpack.i.h.bf16 %v13188_v30  ;;  %v13189_v50 = vunpack.i.l.bf16 %v13188_v30 }
 0xc3c   :  { %11975 = vmatprep.subr.bf16.mxu0 %v5215_v18 }
 0xc3d   :  { %11976 = vmatpush3.bf16.msra.mxu0 %v16280_v8  ;;  %v13203_v63 = vpop.permute.xlu0 %13202  ;;  %v5109_v60 = vsel %vm4476_vm2, %v14941_v17, %v13189_v50  ;;  %v5110_v42 = vsel %vm4476_vm2, %v14947_v2, %v13190_v47 }
 0xc3e   :  { %v13205_v27 = vunpack.i.h.bf16 %v13203_v63  ;;  %v13204_v33 = vunpack.i.l.bf16 %v13203_v63  ;;  %v13198_v49 = vpop.permute.xlu1 %13197  ;;  %v5216_v28 = vpack.c.bf16 %v5110_v42, %v5109_v60 }
 0xc3f   :  { %v13200_v34 = vunpack.i.h.bf16 %v13198_v49  ;;  %v13199_v24 = vunpack.i.l.bf16 %v13198_v49  ;;  %v13647_v49 = vld [vmem:[%s13883_s9 + $0x8] sm:$0xff]  }
 0xc40   :  { %11977 = vmatprep.subr.bf16.mxu0 %v5216_v28  ;;  %v5199_v25 = vsel %vm4476_vm2, %v14964_v0, %v13204_v33  ;;  %v5200_v17 = vsel %vm4476_vm2, %v14969_v11, %v13205_v27  ;;  %v13644_v0 = vld [vmem:[%s14962_s25 + $0x18] ss:$12 sps:$4 sm:$0xff]   ;;  %v13645_v11 = vld [vmem:[%s14962_s25 + $0x20] ss:$12 sps:$4 sm:$0xff]  }
 0xc41   :  { %11978 = vmatpush3.bf16.msra.mxu0 %v5208_v7  ;;  %v5197_v2 = vsel %vm4476_vm2, %v14966_v10, %v13199_v24  ;;  %v5198_v53 = vsel %vm4476_vm2, %v14971_v16, %v13200_v34  ;;  %v5218_v37 = vpack.c.bf16 %v5200_v17, %v5199_v25  ;;  %v5492_v28 = vld [vmem:[%s10508_s26] sm:$0xff]  ;;  %v5493_v34 = vld [vmem:[%s10508_s26 + $0x8] sm:$0xff]  ;;  %v5495_v25 = vld [vmem:[%s10508_s26 + $0x18] sm:$0xff] }
 0xc42   :  { %v5217_v52 = vpack.c.bf16 %v5198_v53, %v5197_v2  ;;  %v5500_v24 = vpack.c.bf16 %v5493_v34, %v5492_v28  ;;  %v13648_v2 = vld [vmem:[%s10526_s29] sm:$0xff]  }
 0xc44   :  { %5320 = vmatmul.mubr.bf16.vlgmr.msra.gmra.mrb[112].mxu0 %v13638_v23  ;;  %12506 = vmatprep.subr.bf16.mxu1 %v5217_v52  ;;  %v5494_v23 = vld [vmem:[%s10508_s26 + $0x10] sm:$0xff]  ;;  %s13860_s26 = smov 34  }
 0xc45   :  { %12507 = vmatpush3.bf16.msra.mxu1 %v5217_v52  ;;  %5327 = vmatprep.mubr.bf16.mxu0 %v13641_v31  ;;  %v5501_v17 = vpack.c.bf16 %v5495_v25, %v5494_v23  ;;  %s15613_s28 = sld [smem:[%s16266_s0 + %s13860_s26]]  }
 0xc46   :  { %12508 = vmatprep.subr.bf16.mxu1 %v5218_v37 }
 0xc49   :  { %12509 = vmatpush3.bf16.msra.mxu1 %v5218_v37 }
 0xc4c   :  { %5328 = vmatmul.mubr.bf16.gmra.mrb[116].mxu0 %v13644_v0  ;;  %12511 = vmatmul.mubr.msk.bf16.vlgmr.msra.gmra.mrb[136].mxu1 %vm4254_vm10, %v13645_v11 }
 0xc4d   :  { %12518 = vmatprep.mubr.msk.bf16.mxu1 %vm4254_vm10, %v13646_v4 }
 0xc4e   :  { %v5239_v58 = vpop.permute.xlu0 %5238 }
 0xc4f   :  { %v5234_v6 = vpop.permute.xlu1 %5233 }
 0xc52   :  { %v5249_v43 = vpop.permute.xlu0 %5248 }
 0xc53   :  { %v5244_v29 = vpop.permute.xlu1 %5243 }
 0xc56   :  { %v5415_v53 = vpop.permute.xlu0 %5414 }
 0xc57   :  { %v5410_v37 = vpop.permute.xlu1 %5409 }
 0xc5a   :  { %v5425_v52 = vpop.permute.xlu0 %5424 }
 0xc5b   :  { %v5420_v11 = vpop.permute.xlu1 %5419 }
 0xd17   :  { %v11979_v10 = vpop.f32.mrb[112].mxu0 }
 0xd18   :  { %v11980_v16 = vpop.f32.mrb[113].mxu0 }
 0xd19   :  { %v11981_v7 = vadd.f32 %v11980_v16, %v11979_v10  ;;  %v11982_v45 = vpop.f32.mrb[114].mxu0 }
 0xd1a   :  { %v11983_v55 = vpop.f32.mrb[115].mxu0 }
 0xd1b   :  { %v11984_v44 = vadd.f32 %v11983_v55, %v11982_v45  ;;  %v5322_v56 = vadd.f32 %v11981_v7, %v5234_v6 }
 0xd1d   :  { %v5325_v5 = vadd.f32 %v11984_v44, %v5239_v58  ;;  %v13649_v58 = vld [vmem:[%s10526_s29 + $0x8] sm:$0xff]  }
 0xd1f   :  { %v11985_v36 = vpop.f32.mrb[116].mxu0  ;;  %v12512_v20 = vpop.f32.mrb[136].mxu1 }
 0xd20   :  { %v11986_v32 = vpop.f32.mrb[117].mxu0  ;;  %v5370_v12 = vpop.f32.mrb[137].mxu1 }
 0xd21   :  { %v11987_v13 = vadd.f32 %v11986_v32, %v11985_v36  ;;  %v5371_v48 = vadd.f32 %v5370_v12, %v5322_v56  ;;  %v11988_v41 = vpop.f32.mrb[118].mxu0  ;;  %v12513_v59 = vpop.f32.mrb[138].mxu1 }
 0xd22   :  { %v11989_v54 = vpop.f32.mrb[119].mxu0  ;;  %v5373_v14 = vpop.f32.mrb[139].mxu1 }
 0xd23   :  { %v5330_v21 = vadd.f32 %v11987_v13, %v5244_v29  ;;  %v11990_v3 = vadd.f32 %v11989_v54, %v11988_v41  ;;  %v5389_v22 = vmul.f32 0.2, %v5371_v48  ;;  %v5374_v19 = vadd.f32 %v5373_v14, %v5325_v5  ;;  %v13650_v29 = vld [vmem:[%s15208_s2] sm:$0xff]   ;;  %v5511_v36 = vpop.permute.xlu1 %5510 }
 0xd24   :  { %vm5385_vm3 = vcmp.ge.f32.partialorder %v5371_v48, 0.0  ;;  %12538 = vmatprep.mubr.msk.bf16.mxu0 %vm4254_vm10, %v13650_v29 }
 0xd25   :  { %v5379_v51 = vadd.f32 %v12512_v20, %v5330_v21  ;;  %v5333_v15 = vadd.f32 %v11990_v3, %v5249_v43  ;;  %vm5386_vm5 = vcmp.ge.f32.partialorder %v5374_v19, 0.0  ;;  %v5390_v30 = vmul.f32 0.2, %v5374_v19  ;;  %v5516_v20 = vpop.permute.xlu0 %5515 }
 0xd26   :  { %v15182_v50 = vsel %vm5385_vm3, %v5371_v48, %v5389_v22 }
 0xd27   :  { %v5391_v18 = vmul.f32 0.2, %v5379_v51  ;;  %v5382_v47 = vadd.f32 %v12513_v59, %v5333_v15  ;;  %v15184_v8 = vsel %vm5386_vm5, %v5374_v19, %v5390_v30  ;;  %vm5387_vm6 = vcmp.ge.f32.partialorder %v5379_v51, 0.0  ;;  %v5521_v56 = vpop.permute.xlu1 %5520 }
 0xd28   :  { %v5401_v60 = vpack.c.bf16 %v15184_v8, %v15182_v50 }
 0xd29   :  { %v5392_v63 = vmul.f32 0.2, %v5382_v47  ;;  %vm5388_vm7 = vcmp.ge.f32.partialorder %v5382_v47, 0.0  ;;  %v15188_v42 = vsel %vm5387_vm6, %v5379_v51, %v5391_v18  ;;  %v5526_v48 = vpop.permute.xlu0 %5525 }
 0xd2a   :  { %12514 = vmatprep.subr.bf16.mxu1 %v5401_v60 }
 0xd2b   :  { %v15190_v27 = vsel %vm5388_vm7, %v5382_v47, %v5392_v63  ;;  %12515 = vmatpush3.bf16.msra.mxu1 %v5401_v60  ;;  %v13651_v63 = vld [vmem:[%s15208_s2 + $0x8] sm:$0xff]   ;;  %v13652_v60 = vld [vmem:[%s15208_s2 + $0x10] sm:$0xff]  }
 0xd2c   :  { %v5402_v33 = vpack.c.bf16 %v15190_v27, %v15188_v42 }
 0xd2e   :  { %12516 = vmatprep.subr.bf16.mxu1 %v5402_v33 }
 0xd2f   :  { %12517 = vmatpush3.bf16.msra.mxu1 %v5402_v33  ;;  %v5618_v33 = vpop.permute.xlu1 %5617 }
 0xd30   :  { %12522 = vmatprep.subr.bf16.mxu1 %v5500_v24 }
 0xd32   :  { %12519 = vmatmul.mubr.msk.bf16.vlgmr.msra.gmra.mrb[140].mxu1 %vm4254_vm10, %v13647_v49  ;;  %v5623_v49 = vpop.permute.xlu0 %5622 }
 0xd33   :  { %12523 = vmatpush3.bf16.msra.mxu1 %v5500_v24  ;;  %12530 = vmatprep.mubr.msk.bf16.mxu1 %vm868_vm0, %v13648_v2  ;;  %v5628_v28 = vpop.permute.xlu1 %5627 }
 0xd34   :  { %12524 = vmatprep.subr.bf16.mxu1 %v5501_v17 }
 0xd36   :  { %v5633_v25 = vpop.permute.xlu0 %5632 }
 0xd37   :  { %12525 = vmatpush3.bf16.msra.mxu1 %v5501_v17  ;;  %v5727_v29 = vpop.permute.xlu1 %5726 }
 0xe05   :  { %v12520_v31 = vpop.f32.mrb[140].mxu1 }
 0xe06   :  { %v5477_v0 = vpop.f32.mrb[141].mxu1  ;;  %v5486_v10 = vadd.f32 %v12520_v31, %v5420_v11 }
 0xe07   :  { %v12521_v4 = vpop.f32.mrb[142].mxu1  ;;  %v5478_v7 = vadd.f32 %v5477_v0, %v5410_v37 }
 0xe08   :  { %v5489_v6 = vadd.f32 %v12521_v4, %v5425_v52  ;;  %v5480_v16 = vpop.f32.mrb[143].mxu1 }
 0xe09   :  { %v5481_v45 = vadd.f32 %v5480_v16, %v5415_v53 }
 0xe0a   :  { %v5503_v55 = vpack.c.bf16 %v5489_v6, %v5486_v10 }
 0xe0b   :  { %v5502_v44 = vpack.c.bf16 %v5481_v45, %v5478_v7 }
 0xe0d   :  { %12526 = vmatprep.subr.bf16.mxu1 %v5502_v44 }
 0xe0e   :  { %12527 = vmatpush3.bf16.msra.mxu1 %v5502_v44  ;;  %v13653_v44 = vld [vmem:[%s15208_s2 + $0x18] sm:$0xff]  }
 0xe0f   :  { %12528 = vmatprep.subr.bf16.mxu1 %v5503_v55 }
 0xe12   :  { %12529 = vmatpush3.bf16.msra.mxu1 %v5503_v55 }
 0xe15   :  { %12531 = vmatmul.mubr.msk.bf16.vlgmr.msra.gmra.mrb[144].mxu1 %vm868_vm0, %v13649_v58  ;;  %v13654_v58 = vld [vmem:[%s15208_s2 + $0x20] sm:$0xff]  }
 0xe16   :  { %12546 = vmatprep.mubr.msk.bf16.mxu1 %vm4254_vm10, %v13652_v60 }
 0xee8   :  { %v12532_v32 = vpop.f32.mrb[144].mxu1 }
 0xee9   :  { %v5587_v12 = vadd.f32 %v12532_v32, %v5521_v56  ;;  %v5578_v13 = vpop.f32.mrb[145].mxu1 }
 0xeea   :  { %v5579_v41 = vadd.f32 %v5578_v13, %v5511_v36  ;;  %v12533_v59 = vpop.f32.mrb[146].mxu1  ;;  %v5732_v36 = vpop.permute.xlu0 %5731 }
 0xeeb   :  { %v5599_v54 = vmul.f32 0.2, %v5587_v12  ;;  %v5590_v5 = vadd.f32 %v12533_v59, %v5526_v48  ;;  %v5581_v14 = vpop.f32.mrb[147].mxu1  ;;  %vm5595_vm8 = vcmp.ge.f32.partialorder %v5587_v12, 0.0 }
 0xeec   :  { %v5597_v21 = vmul.f32 0.2, %v5579_v41  ;;  %v5582_v3 = vadd.f32 %v5581_v14, %v5516_v20  ;;  %vm5593_vm12 = vcmp.ge.f32.partialorder %v5579_v41, 0.0  ;;  %v5737_v20 = vpop.permute.xlu1 %5736 }
 0xeed   :  { %vm5596_vm13 = vcmp.ge.f32.partialorder %v5590_v5, 0.0  ;;  %v5600_v43 = vmul.f32 0.2, %v5590_v5  ;;  %v5603_v19 = vsel %vm5595_vm8, %v5587_v12, %v5599_v54 }
 0xeee   :  { %vm5594_vm14 = vcmp.ge.f32.partialorder %v5582_v3, 0.0  ;;  %v5598_v22 = vmul.f32 0.2, %v5582_v3  ;;  %v5601_v15 = vsel %vm5593_vm12, %v5579_v41, %v5597_v21  ;;  %v5742_v13 = vpop.permute.xlu0 %5741 }
 0xeef   :  { %v5604_v51 = vsel %vm5596_vm13, %v5590_v5, %v5600_v43 }
 0xef0   :  { %v5602_v30 = vsel %vm5594_vm14, %v5582_v3, %v5598_v22  ;;  %v5610_v18 = vpack.c.bf16 %v5604_v51, %v5603_v19  ;;  %v5836_v60 = vpop.permute.xlu1 %5835 }
 0xef1   :  { %v5609_v47 = vpack.c.bf16 %v5602_v30, %v5601_v15 }
 0xef3   :  { %12534 = vmatprep.subr.bf16.mxu0 %v5609_v47 }
 0xef4   :  { %12535 = vmatpush3.bf16.msra.mxu0 %v5609_v47  ;;  %v13655_v47 = vld [vmem:[%s15208_s2 + $0x28] sm:$0xff]  }
 0xef5   :  { %12536 = vmatprep.subr.bf16.mxu0 %v5610_v18 }
 0xef8   :  { %12537 = vmatpush3.bf16.msra.mxu0 %v5610_v18 }
 0xefb   :  { %12539 = vmatmul.mubr.msk.bf16.vlgmr.msra.gmra.mrb[120].mxu0 %vm4254_vm10, %v13651_v63  ;;  %v13656_v63 = vld [vmem:[%s15208_s2 + $0x30] sm:$0xff]  }
 0xefc   :  { %12554 = vmatprep.mubr.msk.bf16.mxu0 %vm4254_vm10, %v13654_v58 }
 0xfce   :  { %v12540_v34 = vpop.f32.mrb[120].mxu0 }
 0xfcf   :  { %v5694_v24 = vadd.f32 %v12540_v34, %v5628_v28  ;;  %v5685_v23 = vpop.f32.mrb[121].mxu0 }
 0xfd0   :  { %v5686_v17 = vadd.f32 %v5685_v23, %v5618_v33  ;;  %v12541_v2 = vpop.f32.mrb[122].mxu0  ;;  %v5841_v33 = vpop.permute.xlu0 %5840 }
 0xfd1   :  { %v5706_v53 = vmul.f32 0.2, %v5694_v24  ;;  %v5697_v37 = vadd.f32 %v12541_v2, %v5633_v25  ;;  %v5688_v31 = vpop.f32.mrb[123].mxu0  ;;  %vm5702_vm1 = vcmp.ge.f32.partialorder %v5694_v24, 0.0 }
 0xfd2   :  { %v5704_v52 = vmul.f32 0.2, %v5686_v17  ;;  %v5689_v0 = vadd.f32 %v5688_v31, %v5623_v49  ;;  %vm5700_vm2 = vcmp.ge.f32.partialorder %v5686_v17, 0.0  ;;  %v5846_v49 = vpop.permute.xlu1 %5845 }
 0xfd3   :  { %vm5703_vm3 = vcmp.ge.f32.partialorder %v5697_v37, 0.0  ;;  %v5707_v11 = vmul.f32 0.2, %v5697_v37  ;;  %v5710_v10 = vsel %vm5702_vm1, %v5694_v24, %v5706_v53 }
 0xfd4   :  { %vm5701_vm5 = vcmp.ge.f32.partialorder %v5689_v0, 0.0  ;;  %v5705_v4 = vmul.f32 0.2, %v5689_v0  ;;  %v5708_v16 = vsel %vm5700_vm2, %v5686_v17, %v5704_v52  ;;  %v5851_v23 = vpop.permute.xlu0 %5850 }
 0xfd5   :  { %v5711_v6 = vsel %vm5703_vm3, %v5697_v37, %v5707_v11 }
 0xfd6   :  { %v5709_v7 = vsel %vm5701_vm5, %v5689_v0, %v5705_v4  ;;  %v5718_v45 = vpack.c.bf16 %v5711_v6, %v5710_v10  ;;  %v5945_v58 = vpop.permute.xlu1 %5944 }
 0xfd7   :  { %v5717_v55 = vpack.c.bf16 %v5709_v7, %v5708_v16 }
 0xfd9   :  { %12542 = vmatprep.subr.bf16.mxu1 %v5717_v55 }
 0xfda   :  { %12543 = vmatpush3.bf16.msra.mxu1 %v5717_v55  ;;  %v13657_v55 = vld [vmem:[%s15208_s2 + $0x38] sm:$0xff]  }
 0xfdb   :  { %12544 = vmatprep.subr.bf16.mxu1 %v5718_v45 }
 0xfde   :  { %12545 = vmatpush3.bf16.msra.mxu1 %v5718_v45 }
 0xfe1   :  { %12547 = vmatmul.mubr.msk.bf16.vlgmr.msra.gmra.mrb[148].mxu1 %vm4254_vm10, %v13653_v44  ;;  %v13658_v44 = vld [vmem:[%s15208_s2 + $0x40] sm:$0xff]  }
 0xfe2   :  { %12562 = vmatprep.mubr.msk.bf16.mxu1 %vm4254_vm10, %v13656_v63 }
0x10b4   :  { %v12548_v56 = vpop.f32.mrb[148].mxu1 }
0x10b5   :  { %v5803_v32 = vadd.f32 %v12548_v56, %v5737_v20  ;;  %v5794_v12 = vpop.f32.mrb[149].mxu1 }
0x10b6   :  { %v5795_v48 = vadd.f32 %v5794_v12, %v5727_v29  ;;  %v12549_v41 = vpop.f32.mrb[150].mxu1  ;;  %v5950_v29 = vpop.permute.xlu0 %5949 }
0x10b7   :  { %v5815_v59 = vmul.f32 0.2, %v5803_v32  ;;  %v5806_v54 = vadd.f32 %v12549_v41, %v5742_v13  ;;  %v5797_v5 = vpop.f32.mrb[151].mxu1  ;;  %vm5811_vm6 = vcmp.ge.f32.partialorder %v5803_v32, 0.0 }
0x10b8   :  { %v5813_v14 = vmul.f32 0.2, %v5795_v48  ;;  %v5798_v21 = vadd.f32 %v5797_v5, %v5732_v36  ;;  %vm5809_vm7 = vcmp.ge.f32.partialorder %v5795_v48, 0.0  ;;  %v5955_v36 = vpop.permute.xlu1 %5954 }
0x10b9   :  { %vm5812_vm8 = vcmp.ge.f32.partialorder %v5806_v54, 0.0  ;;  %v5816_v3 = vmul.f32 0.2, %v5806_v54  ;;  %v5819_v22 = vsel %vm5811_vm6, %v5803_v32, %v5815_v59 }
0x10ba   :  { %vm5810_vm12 = vcmp.ge.f32.partialorder %v5798_v21, 0.0  ;;  %v5814_v43 = vmul.f32 0.2, %v5798_v21  ;;  %v5817_v51 = vsel %vm5809_vm7, %v5795_v48, %v5813_v14  ;;  %v5960_v12 = vpop.permute.xlu0 %5959 }
0x10bb   :  { %v5820_v19 = vsel %vm5812_vm8, %v5806_v54, %v5816_v3 }
0x10bc   :  { %v5818_v15 = vsel %vm5810_vm12, %v5798_v21, %v5814_v43  ;;  %v5827_v30 = vpack.c.bf16 %v5820_v19, %v5819_v22  ;;  %v6054_v63 = vpop.permute.xlu1 %6053 }
0x10bd   :  { %v5826_v18 = vpack.c.bf16 %v5818_v15, %v5817_v51 }
0x10bf   :  { %12550 = vmatprep.subr.bf16.mxu0 %v5826_v18 }
0x10c0   :  { %12551 = vmatpush3.bf16.msra.mxu0 %v5826_v18  ;;  %v13659_v18 = vld [vmem:[%s15208_s2 + $0x48] sm:$0xff]  }
0x10c1   :  { %12552 = vmatprep.subr.bf16.mxu0 %v5827_v30 }
0x10c4   :  { %12553 = vmatpush3.bf16.msra.mxu0 %v5827_v30 }
0x10c7   :  { %12555 = vmatmul.mubr.msk.bf16.vlgmr.msra.gmra.mrb[124].mxu0 %vm4254_vm10, %v13655_v47  ;;  %v13660_v47 = vld [vmem:[%s15208_s2 + $0x50] sm:$0xff]  }
0x10c8   :  { %12570 = vmatprep.mubr.msk.bf16.mxu0 %vm4254_vm10, %v13658_v44 }
0x119a   :  { %v12556_v28 = vpop.f32.mrb[124].mxu0 }
0x119b   :  { %v5912_v34 = vadd.f32 %v12556_v28, %v5846_v49  ;;  %v5903_v24 = vpop.f32.mrb[125].mxu0 }
0x119c   :  { %v5904_v25 = vadd.f32 %v5903_v24, %v5836_v60  ;;  %v12557_v17 = vpop.f32.mrb[126].mxu0  ;;  %v6059_v60 = vpop.permute.xlu0 %6058 }
0x119d   :  { %v5924_v2 = vmul.f32 0.2, %v5912_v34  ;;  %v5915_v53 = vadd.f32 %v12557_v17, %v5851_v23  ;;  %v5906_v37 = vpop.f32.mrb[127].mxu0  ;;  %vm5920_vm13 = vcmp.ge.f32.partialorder %v5912_v34, 0.0 }
0x119e   :  { %v5922_v31 = vmul.f32 0.2, %v5904_v25  ;;  %v5907_v52 = vadd.f32 %v5906_v37, %v5841_v33  ;;  %vm5918_vm14 = vcmp.ge.f32.partialorder %v5904_v25, 0.0  ;;  %v6064_v33 = vpop.permute.xlu1 %6063 }
0x119f   :  { %vm5921_vm1 = vcmp.ge.f32.partialorder %v5915_v53, 0.0  ;;  %v5925_v0 = vmul.f32 0.2, %v5915_v53  ;;  %v5928_v4 = vsel %vm5920_vm13, %v5912_v34, %v5924_v2 }
0x11a0   :  { %vm5919_vm2 = vcmp.ge.f32.partialorder %v5907_v52, 0.0  ;;  %v5923_v11 = vmul.f32 0.2, %v5907_v52  ;;  %v5926_v6 = vsel %vm5918_vm14, %v5904_v25, %v5922_v31  ;;  %v6069_v24 = vpop.permute.xlu0 %6068 }
0x11a1   :  { %v5929_v10 = vsel %vm5921_vm1, %v5915_v53, %v5925_v0 }
0x11a2   :  { %v5927_v16 = vsel %vm5919_vm2, %v5907_v52, %v5923_v11  ;;  %v5936_v7 = vpack.c.bf16 %v5929_v10, %v5928_v4  ;;  %v6163_v44 = vpop.permute.xlu1 %6162 }
0x11a3   :  { %v5935_v45 = vpack.c.bf16 %v5927_v16, %v5926_v6 }
0x11a5   :  { %12558 = vmatprep.subr.bf16.mxu1 %v5935_v45 }
0x11a6   :  { %12559 = vmatpush3.bf16.msra.mxu1 %v5935_v45  ;;  %v13661_v45 = vld [vmem:[%s15208_s2 + $0x58] sm:$0xff]   ;;  %s10544_s2 = sld [smem:[%s16266_s0 + %s13869_s14]]  }
0x11a7   :  { %12560 = vmatprep.subr.bf16.mxu1 %v5936_v7 }
0x11aa   :  { %12561 = vmatpush3.bf16.msra.mxu1 %v5936_v7 }
0x11ad   :  { %12563 = vmatmul.mubr.msk.bf16.vlgmr.msra.gmra.mrb[152].mxu1 %vm4254_vm10, %v13657_v55  ;;  %v13662_v55 = vld [vmem:[%s15237_s5] sm:$0xff]  }
0x11ae   :  { %12578 = vmatprep.mubr.msk.bf16.mxu1 %vm4254_vm10, %v13660_v47  ;;  %v13665_v47 = vld [vmem:[%s15237_s5 + $0x18] sm:$0xff]  }
0x1280   :  { %v12564_v20 = vpop.f32.mrb[152].mxu1 }
0x1281   :  { %v6021_v56 = vadd.f32 %v12564_v20, %v5955_v36  ;;  %v6012_v32 = vpop.f32.mrb[153].mxu1 }
0x1282   :  { %v6013_v13 = vadd.f32 %v6012_v32, %v5945_v58  ;;  %v12565_v48 = vpop.f32.mrb[154].mxu1  ;;  %v6168_v58 = vpop.permute.xlu0 %6167 }
0x1283   :  { %v6033_v41 = vmul.f32 0.2, %v6021_v56  ;;  %v6024_v59 = vadd.f32 %v12565_v48, %v5960_v12  ;;  %v6015_v54 = vpop.f32.mrb[155].mxu1  ;;  %vm6029_vm3 = vcmp.ge.f32.partialorder %v6021_v56, 0.0 }
0x1284   :  { %v6031_v5 = vmul.f32 0.2, %v6013_v13  ;;  %v6016_v14 = vadd.f32 %v6015_v54, %v5950_v29  ;;  %vm6027_vm5 = vcmp.ge.f32.partialorder %v6013_v13, 0.0  ;;  %v6173_v29 = vpop.permute.xlu1 %6172 }
0x1285   :  { %vm6030_vm6 = vcmp.ge.f32.partialorder %v6024_v59, 0.0  ;;  %v6034_v21 = vmul.f32 0.2, %v6024_v59  ;;  %v6037_v43 = vsel %vm6029_vm3, %v6021_v56, %v6033_v41 }
0x1286   :  { %vm6028_vm7 = vcmp.ge.f32.partialorder %v6016_v14, 0.0  ;;  %v6032_v3 = vmul.f32 0.2, %v6016_v14  ;;  %v6035_v19 = vsel %vm6027_vm5, %v6013_v13, %v6031_v5  ;;  %v6178_v32 = vpop.permute.xlu0 %6177 }
0x1287   :  { %v6038_v22 = vsel %vm6030_vm6, %v6024_v59, %v6034_v21 }
0x1288   :  { %v6036_v51 = vsel %vm6028_vm7, %v6016_v14, %v6032_v3  ;;  %v6045_v15 = vpack.c.bf16 %v6038_v22, %v6037_v43 }
0x1289   :  { %v6044_v30 = vpack.c.bf16 %v6036_v51, %v6035_v19 }
0x128b   :  { %12566 = vmatprep.subr.bf16.mxu0 %v6044_v30 }
0x128c   :  { %12567 = vmatpush3.bf16.msra.mxu0 %v6044_v30  ;;  %v13663_v30 = vld [vmem:[%s15237_s5 + $0x8] sm:$0xff]  }
0x128d   :  { %12568 = vmatprep.subr.bf16.mxu0 %v6045_v15 }
0x1290   :  { %12569 = vmatpush3.bf16.msra.mxu0 %v6045_v15 }
0x1293   :  { %12571 = vmatmul.mubr.msk.bf16.vlgmr.msra.gmra.mrb[128].mxu0 %vm4254_vm10, %v13659_v18  ;;  %v13664_v18 = vld [vmem:[%s15237_s5 + $0x10] sm:$0xff]  }
0x1366   :  { %v12572_v49 = vpop.f32.mrb[128].mxu0 }
0x1367   :  { %v6130_v28 = vadd.f32 %v12572_v49, %v6064_v33  ;;  %v6121_v34 = vpop.f32.mrb[129].mxu0 }
0x1368   :  { %v6122_v23 = vadd.f32 %v6121_v34, %v6054_v63  ;;  %v12573_v25 = vpop.f32.mrb[130].mxu0  ;;  %v6318_v63 = vpop.permute.xlu1 %6317 }
0x1369   :  { %v6142_v17 = vmul.f32 0.2, %v6130_v28  ;;  %v6133_v2 = vadd.f32 %v12573_v25, %v6069_v24  ;;  %v6124_v53 = vpop.f32.mrb[131].mxu0  ;;  %vm6138_vm8 = vcmp.ge.f32.partialorder %v6130_v28, 0.0 }
0x136a   :  { %v6140_v37 = vmul.f32 0.2, %v6122_v23  ;;  %v6125_v31 = vadd.f32 %v6124_v53, %v6059_v60  ;;  %vm6136_vm12 = vcmp.ge.f32.partialorder %v6122_v23, 0.0  ;;  %v6323_v60 = vpop.permute.xlu0 %6322 }
0x136b   :  { %vm6139_vm13 = vcmp.ge.f32.partialorder %v6133_v2, 0.0  ;;  %v6143_v52 = vmul.f32 0.2, %v6133_v2  ;;  %v6146_v11 = vsel %vm6138_vm8, %v6130_v28, %v6142_v17 }
0x136c   :  { %vm6137_vm14 = vcmp.ge.f32.partialorder %v6125_v31, 0.0  ;;  %v6141_v0 = vmul.f32 0.2, %v6125_v31  ;;  %v6144_v10 = vsel %vm6136_vm12, %v6122_v23, %v6140_v37  ;;  %v6328_v33 = vpop.permute.xlu1 %6327 }
0x136d   :  { %v6147_v4 = vsel %vm6139_vm13, %v6133_v2, %v6143_v52 }
0x136e   :  { %v6145_v6 = vsel %vm6137_vm14, %v6125_v31, %v6141_v0  ;;  %v6154_v16 = vpack.c.bf16 %v6147_v4, %v6146_v11  ;;  %v6333_v49 = vpop.permute.xlu0 %6332 }
0x136f   :  { %v6153_v7 = vpack.c.bf16 %v6145_v6, %v6144_v10 }
0x1370   :  { %v6338_v23 = vpop.permute.xlu1 %6337 }
0x1371   :  { %12574 = vmatprep.subr.bf16.mxu1 %v6153_v7 }
0x1372   :  { %12575 = vmatpush3.bf16.msra.mxu1 %v6153_v7  ;;  %v6343_v37 = vpop.permute.xlu0 %6342 }
0x1373   :  { %12576 = vmatprep.subr.bf16.mxu1 %v6154_v16 }
0x1374   :  { %v6348_v4 = vpop.permute.xlu1 %6347 }
0x1376   :  { %12577 = vmatpush3.bf16.msra.mxu1 %v6154_v16 }
0x1379   :  { %12579 = vmatmul.mubr.msk.bf16.vlgmr.msra.gmra.mrb[156].mxu1 %vm4254_vm10, %v13661_v45 }
0x137a   :  { %12586 = vmatprep.mubr.msk.bf16.mxu1 %vm4254_vm10, %v13662_v55  ;;  %v6353_v55 = vpop.permute.xlu0 %6352 }
0x144c   :  { %v12580_v36 = vpop.f32.mrb[156].mxu1 }
0x144d   :  { %v6239_v20 = vadd.f32 %v12580_v36, %v6173_v29  ;;  %v6230_v56 = vpop.f32.mrb[157].mxu1 }
0x144e   :  { %v6231_v12 = vadd.f32 %v6230_v56, %v6163_v44  ;;  %v12581_v13 = vpop.f32.mrb[158].mxu1 }
0x144f   :  { %v6251_v48 = vmul.f32 0.2, %v6239_v20  ;;  %v6242_v41 = vadd.f32 %v12581_v13, %v6178_v32  ;;  %v6233_v59 = vpop.f32.mrb[159].mxu1  ;;  %vm6247_vm1 = vcmp.ge.f32.partialorder %v6239_v20, 0.0 }
0x1450   :  { %v6249_v54 = vmul.f32 0.2, %v6231_v12  ;;  %v6234_v5 = vadd.f32 %v6233_v59, %v6168_v58  ;;  %vm6245_vm2 = vcmp.ge.f32.partialorder %v6231_v12, 0.0 }
0x1451   :  { %vm6248_vm3 = vcmp.ge.f32.partialorder %v6242_v41, 0.0  ;;  %v6252_v14 = vmul.f32 0.2, %v6242_v41  ;;  %v6255_v3 = vsel %vm6247_vm1, %v6239_v20, %v6251_v48 }
0x1452   :  { %vm6246_vm5 = vcmp.ge.f32.partialorder %v6234_v5, 0.0  ;;  %v6250_v21 = vmul.f32 0.2, %v6234_v5  ;;  %v6253_v22 = vsel %vm6245_vm2, %v6231_v12, %v6249_v54 }
0x1453   :  { %v6256_v43 = vsel %vm6248_vm3, %v6242_v41, %v6252_v14  ;;  %v13667_v14 = vld [vmem:[%s15237_s5 + $0x28] sm:$0xff]  }
0x1454   :  { %v6254_v19 = vsel %vm6246_vm5, %v6234_v5, %v6250_v21  ;;  %v6286_v51 = vpack.c.bf16 %v6256_v43, %v6255_v3  ;;  %v13666_v5 = vld [vmem:[%s15237_s5 + $0x20] sm:$0xff]   ;;  %v13668_v21 = vld [vmem:[%s15237_s5 + $0x30] sm:$0xff]  }
0x1455   :  { %v6285_v15 = vpack.c.bf16 %v6254_v19, %v6253_v22 }
0x1457   :  { %12582 = vmatprep.subr.bf16.mxu1 %v6285_v15 }
0x1458   :  { %12583 = vmatpush3.bf16.msra.mxu1 %v6285_v15  ;;  %v13669_v15 = vld [vmem:[%s15237_s5 + $0x38] sm:$0xff]  }
0x1459   :  { %12584 = vmatprep.subr.bf16.mxu1 %v6286_v51 }
0x145c   :  { %12585 = vmatpush3.bf16.msra.mxu1 %v6286_v51 }
0x145f   :  { %12587 = vmatmul.mubr.msk.bf16.vlgmr.msra.gmra.mrb[160].mxu1 %vm4254_vm10, %v13663_v30 }
0x1460   :  { %12590 = vmatprep.mubr.msk.bf16.mxu1 %vm4254_vm10, %v13664_v18 }
0x1467   :  { %12591 = vmatmul.mubr.msk.bf16.gmra.mrb[164].mxu1 %vm4254_vm10, %v13665_v47 }
0x1468   :  { %12594 = vmatprep.mubr.msk.bf16.mxu1 %vm4254_vm10, %v13666_v5 }
0x146f   :  { %12595 = vmatmul.mubr.msk.bf16.gmra.mrb[168].mxu1 %vm4254_vm10, %v13667_v14 }
0x1470   :  { %12598 = vmatprep.mubr.msk.bf16.mxu1 %vm4254_vm10, %v13668_v21 }
0x1477   :  { %12599 = vmatmul.mubr.msk.bf16.gmra.mrb[172].mxu1 %vm4254_vm10, %v13669_v15 }
0x1532   :  { %v12588_v28 = vpop.f32.mrb[160].mxu1 }
0x1533   :  { %v6610_v34 = vadd.f32 %v12588_v28, %v6328_v33  ;;  %v6601_v24 = vpop.f32.mrb[161].mxu1 }
0x1534   :  { %v6602_v25 = vadd.f32 %v6601_v24, %v6318_v63  ;;  %v12589_v17 = vpop.f32.mrb[162].mxu1 }
0x1535   :  { %v6613_v2 = vadd.f32 %v12589_v17, %v6333_v49  ;;  %v6604_v53 = vpop.f32.mrb[163].mxu1  ;;  %v6714_v52 = vadd.f32 1.0, %v6610_v34 }
0x1536   :  { %v6605_v31 = vadd.f32 %v6604_v53, %v6323_v60  ;;  %v6712_v0 = vadd.f32 1.0, %v6602_v25  ;;  %v11306_v25 = vld [vmem:[%s15264_s10 + $0x4] sm:$0x1]  ;;  %v11303_v53 = vld [vmem:[%s15264_s10 + $0x1] sm:$0x1] }
0x1537   :  { %v6715_v11 = vadd.f32 1.0, %v6613_v2  ;;  %v6718_v16 = vmul.f32 %v6714_v52, %v15188_v42  ;;  %v6935_v2 = vunpack.c.l.bf16 %v11306_v25 }
0x1538   :  { %v6713_v10 = vadd.f32 1.0, %v6605_v31  ;;  %v6716_v44 = vmul.f32 %v6712_v0, %v15182_v50 }
0x1539   :  { %v6719_v36 = vmul.f32 %v6715_v11, %v15190_v27  ;;  %v15274_v0 = vrot.slane %v6935_v2, %v13942_v9 }
0x153a   :  { %v12592_v6 = vpop.f32.mrb[164].mxu1  ;;  %v6717_v12 = vmul.f32 %v6713_v10, %v15184_v8 }
0x153b   :  { %v6626_v7 = vadd.f32 %v12592_v6, %v6348_v4  ;;  %v6617_v45 = vpop.f32.mrb[165].mxu1 }
0x153c   :  { %v6618_v58 = vadd.f32 %v6617_v45, %v6338_v23  ;;  %v12593_v29 = vpop.f32.mrb[166].mxu1  ;;  %v6746_v23 = vld [vmem:[%s15264_s10] sm:$0x1] }
0x153d   :  { %v6722_v20 = vadd.f32 %v6718_v16, %v6626_v7  ;;  %v6629_v56 = vadd.f32 %v12593_v29, %v6353_v55  ;;  %v6620_v32 = vpop.f32.mrb[167].mxu1  ;;  %v6755_v17 = vunpack.c.l.bf16 %v6746_v23  ;;  %v6830_v7 = vunpack.c.l.bf16 %v11303_v53 }
0x153e   :  { %v6720_v13 = vadd.f32 %v6716_v44, %v6618_v58  ;;  %v6621_v48 = vadd.f32 %v6620_v32, %v6343_v37  ;;  %v11307_v37 = vld [vmem:[%s15264_s10 + $0x5] sm:$0x1] }
0x153f   :  { %v6730_v42 = vmul.f32 0.2, %v6722_v20  ;;  %v6723_v41 = vadd.f32 %v6719_v36, %v6629_v56  ;;  %vm6726_vm6 = vcmp.ge.f32.partialorder %v6722_v20, 0.0  ;;  %v15271_v52 = vrot.slane %v6755_v17, %v13942_v9 }
0x1540   :  { %v6728_v59 = vmul.f32 0.2, %v6720_v13  ;;  %v6721_v54 = vadd.f32 %v6717_v12, %v6621_v48  ;;  %vm6724_vm7 = vcmp.ge.f32.partialorder %v6720_v13, 0.0  ;;  %v6970_v45 = vunpack.c.l.bf16 %v11307_v37  ;;  %v13670_v12 = vld [vmem:[%s15237_s5 + $0x40] sm:$0xff]  }
0x1541   :  { %vm6727_vm8 = vcmp.ge.f32.partialorder %v6723_v41, 0.0  ;;  %v6731_v50 = vmul.f32 0.2, %v6723_v41  ;;  %v6734_v3 = vsel %vm6726_vm6, %v6722_v20, %v6730_v42  ;;  %12602 = vmatprep.mubr.msk.bf16.mxu1 %vm4254_vm10, %v13670_v12 }
0x1542   :  { %vm6725_vm12 = vcmp.ge.f32.partialorder %v6721_v54, 0.0  ;;  %v6729_v27 = vmul.f32 0.2, %v6721_v54  ;;  %v6732_v22 = vsel %vm6724_vm7, %v6720_v13, %v6728_v59  ;;  %v13671_v13 = vld [vmem:[%s15237_s5 + $0x48] sm:$0xff]   ;;  %v15306_v59 = vrot.slane %v6970_v45, %v13942_v9 }
0x1543   :  { %v6735_v43 = vsel %vm6727_vm8, %v6723_v41, %v6731_v50  ;;  %v15303_v41 = vrot.slane %v6830_v7, %v13942_v9  ;;  %v11308_v50 = vld [vmem:[%s15264_s10 + $0x6] sm:$0x1]  ;;  %12603 = vmatmul.mubr.msk.bf16.gmra.mrb[176].mxu1 %vm4254_vm10, %v13671_v13 }
0x1544   :  { %v6733_v8 = vsel %vm6725_vm12, %v6721_v54, %v6729_v27  ;;  %v6737_v19 = vpack.c.bf16 %v6735_v43, %v6734_v3  ;;  %v13221_v34 = vpack.i.bf16 %v6735_v43, %v6734_v3  ;;  %v11304_v54 = vld [vmem:[%s15264_s10 + $0x2] sm:$0x1]  ;;  %v7005_v21 = vunpack.c.l.bf16 %v11308_v50 }
0x1545   :  { %v6736_v51 = vpack.c.bf16 %v6733_v8, %v6732_v22  ;;  %v13216_v24 = vpack.i.bf16 %v6733_v8, %v6732_v22  ;;  %v6865_v14 = vunpack.c.l.bf16 %v11304_v54 }
0x1546   :  { %6742 = vrot.lane.b32.xlu0 %v6737_v19, %s13827_s16 }
0x1547   :  { %6740 = vrot.lane.b32.xlu1 %v6736_v51, %s13827_s16  ;;  %v15329_v15 = vrot.slane %v6865_v14, %v13942_v9 }
0x15b8   :  { %v6743_v30 = vpop.permute.xlu0 %6742 }
0x15b9   :  { %v6753_v18 = vunpack.c.l.bf16 %v6743_v30  ;;  %v6754_v47 = vunpack.c.h.bf16 %v6743_v30  ;;  %v6741_v63 = vpop.permute.xlu1 %6740  ;;  %v15332_v30 = vrot.slane %v7005_v21, %v13942_v9 }
0x15ba   :  { %v6751_v60 = vunpack.c.l.bf16 %v6741_v63  ;;  %v6752_v33 = vunpack.c.h.bf16 %v6741_v63 }
0x15bb   :  { %v13211_v49 = vpack.i.bf16 %v6754_v47, %v6753_v18  ;;  %v13672_v18 = vld [vmem:[%s15237_s5 + $0x50] sm:$0xff]   ;;  %v13673_v47 = vld [vmem:[%s15237_s5 + $0x58] sm:$0xff]  }
0x15bc   :  { %v13206_v28 = vpack.i.bf16 %v6752_v33, %v6751_v60  ;;  %12606 = vmatprep.mubr.msk.bf16.mxu1 %vm4254_vm10, %v13672_v18 }
0x15bd   :  { %13212 = vperm.xlu0 %12959, %v13211_v49   ;;  %12607 = vmatmul.mubr.msk.bf16.gmra.mrb[180].mxu1 %vm4254_vm10, %v13673_v47 }
0x15be   :  { %13207 = vperm.xlu1 %12980, %v13206_v28   ;;  %v11305_v28 = vld [vmem:[%s15264_s10 + $0x3] sm:$0x1] }
0x15bf   :  { %v6900_v25 = vunpack.c.l.bf16 %v11305_v28 }
0x15c1   :  { %13222 = vperm.xlu0 %12959, %v13221_v34   ;;  %v11309_v34 = vld [vmem:[%s15264_s10 + $0x7] sm:$0x1]  ;;  %v15361_v45 = vrot.slane %v6900_v25, %v13942_v9 }
0x15c2   :  { %13217 = vperm.xlu1 %12980, %v13216_v24   ;;  %v7040_v17 = vunpack.c.l.bf16 %v11309_v34 }
0x163c   :  { %v13213_v31 = vpop.permute.xlu0 %13212 }
0x163d   :  { %v15276_v11 = vunpack.i.h.bf16 %v13213_v31  ;;  %v15278_v4 = vunpack.i.l.bf16 %v13213_v31  ;;  %v13208_v10 = vpop.permute.xlu1 %13207 }
0x163e   :  { %v15280_v6 = vunpack.i.h.bf16 %v13208_v10  ;;  %v15282_v16 = vunpack.i.l.bf16 %v13208_v10 }
0x163f   :  { %v6806_v36 = vmul.f32 %v15278_v4, %v15271_v52  ;;  %v6807_v20 = vmul.f32 %v15276_v11, %v15271_v52  ;;  %v6946_v56 = vmul.f32 %v15278_v4, %v15274_v0  ;;  %v6947_v32 = vmul.f32 %v15276_v11, %v15274_v0 }
0x1640   :  { %v6804_v55 = vmul.f32 %v15282_v16, %v15271_v52  ;;  %v6805_v44 = vmul.f32 %v15280_v6, %v15271_v52  ;;  %v6944_v58 = vmul.f32 %v15282_v16, %v15274_v0  ;;  %v6945_v29 = vmul.f32 %v15280_v6, %v15274_v0 }
0x1641   :  { %v13241_v27 = vpack.i.bf16 %v6807_v20, %v6806_v36  ;;  %v13231_v5 = vpack.i.bf16 %v6947_v32, %v6946_v56  ;;  %v6839_v3 = vmul.f32 %v15282_v16, %v15303_v41  ;;  %v6840_v43 = vmul.f32 %v15280_v6, %v15303_v41  ;;  %v11310_v32 = vld [vmem:[%s15264_s10 + $0x8] sm:$0x1] }
0x1642   :  { %v13236_v48 = vpack.i.bf16 %v6805_v44, %v6804_v55  ;;  %v13226_v42 = vpack.i.bf16 %v6945_v29, %v6944_v58  ;;  %v6979_v22 = vmul.f32 %v15282_v16, %v15306_v59  ;;  %v6980_v8 = vmul.f32 %v15280_v6, %v15306_v59  ;;  %v13674_v44 = vld [vmem:[%s15237_s5 + $0x60] sm:$0xff]   ;;  %v13675_v58 = vld [vmem:[%s15237_s5 + $0x68] sm:$0xff]  }
0x1643   :  { %v6841_v19 = vmul.f32 %v15278_v4, %v15303_v41  ;;  %v6842_v51 = vmul.f32 %v15276_v11, %v15303_v41  ;;  %v13256_v63 = vpack.i.bf16 %v6840_v43, %v6839_v3  ;;  %v6981_v33 = vmul.f32 %v15278_v4, %v15306_v59  ;;  %12610 = vmatprep.mubr.msk.bf16.mxu1 %vm4254_vm10, %v13674_v44 }
0x1644   :  { %13237 = vrot.lane.b32.xlu0 %v13236_v48, %s13839_s12  ;;  %13227 = vrot.lane.b32.xlu1 %v13226_v42, %s13839_s12  ;;  %v13246_v60 = vpack.i.bf16 %v6980_v8, %v6979_v22  ;;  %v6982_v49 = vmul.f32 %v15276_v11, %v15306_v59  ;;  %v6874_v23 = vmul.f32 %v15282_v16, %v15329_v15  ;;  %v7075_v48 = vunpack.c.l.bf16 %v11310_v32 }
0x1645   :  { %v13261_v24 = vpack.i.bf16 %v6842_v51, %v6841_v19  ;;  %v6875_v53 = vmul.f32 %v15280_v6, %v15329_v15  ;;  %v7014_v37 = vmul.f32 %v15282_v16, %v15332_v30  ;;  %v7015_v31 = vmul.f32 %v15280_v6, %v15332_v30  ;;  %12611 = vmatmul.mubr.msk.bf16.gmra.mrb[184].mxu1 %vm4254_vm10, %v13675_v58 }
0x1646   :  { %v13251_v2 = vpack.i.bf16 %v6982_v49, %v6981_v33  ;;  %v6876_v10 = vmul.f32 %v15278_v4, %v15329_v15  ;;  %v6877_v7 = vmul.f32 %v15276_v11, %v15329_v15  ;;  %v15364_v55 = vrot.slane %v7040_v17, %v13942_v9  ;;  %v15416_v33 = vpop.f32.mrb[168].mxu1  ;;  %v6300_v17 = vld [vmem:[%s15048_s23 + $0x68] sm:$0xff] }
0x1647   :  { %v13276_v29 = vpack.i.bf16 %v6875_v53, %v6874_v23  ;;  %v13266_v36 = vpack.i.bf16 %v7015_v31, %v7014_v37  ;;  %v7016_v20 = vmul.f32 %v15278_v4, %v15332_v30  ;;  %v7017_v56 = vmul.f32 %v15276_v11, %v15332_v30  ;;  %v6297_v23 = vld [vmem:[%s15048_s23 + $0x50] sm:$0xff] }
0x1648   :  { %13242 = vrot.lane.b32.xlu0 %v13241_v27, %s13839_s12  ;;  %13232 = vrot.lane.b32.xlu1 %v13231_v5, %s13839_s12  ;;  %v13281_v12 = vpack.i.bf16 %v6877_v7, %v6876_v10  ;;  %v6909_v13 = vmul.f32 %v15282_v16, %v15361_v45  ;;  %v6910_v54 = vmul.f32 %v15280_v6, %v15361_v45  ;;  %v6302_v10 = vld [vmem:[%s15048_s23 + $0x78] sm:$0xff]  ;;  %v6301_v7 = vld [vmem:[%s15048_s23 + $0x70] sm:$0xff] }
0x1649   :  { %v13271_v42 = vpack.i.bf16 %v7017_v56, %v7016_v20  ;;  %v7049_v50 = vmul.f32 %v15282_v16, %v15364_v55  ;;  %v7050_v27 = vmul.f32 %v15280_v6, %v15364_v55  ;;  %v6911_v5 = vmul.f32 %v15278_v4, %v15361_v45  ;;  %v13218_v20 = vpop.permute.xlu1 %13217  ;;  %v13223_v56 = vpop.permute.xlu0 %13222 }
0x164a   :  { %v6912_v14 = vmul.f32 %v15276_v11, %v15361_v45  ;;  %v15392_v21 = vrot.slane %v7075_v48, %v13942_v9  ;;  %v13296_v3 = vpack.i.bf16 %v6910_v54, %v6909_v13  ;;  %v7051_v22 = vmul.f32 %v15278_v4, %v15364_v55 }
0x164b   :  { %v13286_v43 = vpack.i.bf16 %v7050_v27, %v7049_v50  ;;  %v7052_v8 = vmul.f32 %v15276_v11, %v15364_v55  ;;  %v15445_v32 = vunpack.i.h.bf16 %v13218_v20  ;;  %v15449_v13 = vunpack.i.h.bf16 %v13223_v56 }
0x164c   :  { %13257 = vrot.lane.b32.xlu0 %v13256_v63, %s13839_s12  ;;  %13247 = vrot.lane.b32.xlu1 %v13246_v60, %s13839_s12  ;;  %v13301_v9 = vpack.i.bf16 %v6912_v14, %v6911_v5  ;;  %v7086_v19 = vmul.f32 %v15278_v4, %v15392_v21  ;;  %v7087_v18 = vmul.f32 %v15276_v11, %v15392_v21  ;;  %v13678_v60 = vld [vmem:[%s15401_s20 + $0x4] ss:$12 sps:$4 sm:$0xff]   ;;  %v15420_v11 = vpop.f32.mrb[169].mxu1  ;;  %v15451_v48 = vunpack.i.l.bf16 %v13223_v56 }
0x164d   :  { %v13291_v51 = vpack.i.bf16 %v7052_v8, %v7051_v22  ;;  %v7084_v47 = vmul.f32 %v15282_v16, %v15392_v21  ;;  %v7085_v63 = vmul.f32 %v15280_v6, %v15392_v21  ;;  %7226 = vmatprep.mubr.bf16.mxu1 %v13678_v60  ;;  %v6296_v6 = vld [vmem:[%s15048_s23 + $0x48] sm:$0xff]  ;;  %v6295_v16 = vld [vmem:[%s15048_s23 + $0x40] sm:$0xff]  ;;  %v15424_v28 = vpop.f32.mrb[170].mxu1  ;;  %v6801_v50 = vmul.f32 %v15445_v32, %v15271_v52 }
0x164e   :  { %v13311_v4 = vpack.i.bf16 %v7087_v18, %v7086_v19  ;;  %v15426_v34 = vpop.f32.mrb[171].mxu1  ;;  %v6941_v14 = vmul.f32 %v15445_v32, %v15274_v0  ;;  %v6803_v19 = vmul.f32 %v15449_v13, %v15271_v52 }
0x164f   :  { %v13306_v49 = vpack.i.bf16 %v7085_v63, %v7084_v47  ;;  %v15430_v25 = vpop.f32.mrb[172].mxu1 }
0x1650   :  { %13262 = vrot.lane.b32.xlu0 %v13261_v24, %s13839_s12  ;;  %13252 = vrot.lane.b32.xlu1 %v13251_v2, %s13839_s12  ;;  %v6298_v24 = vld [vmem:[%s15048_s23 + $0x58] sm:$0xff]  ;;  %v6299_v2 = vld [vmem:[%s15048_s23 + $0x60] sm:$0xff]  ;;  %v15437_v53 = vpop.f32.mrb[173].mxu1 }
0x1651   :  { %v15439_v37 = vpop.f32.mrb[174].mxu1 }
0x1652   :  { %v15441_v31 = vpop.f32.mrb[175].mxu1 }
0x1654   :  { %13277 = vrot.lane.b32.xlu0 %v13276_v29, %s13839_s12  ;;  %13267 = vrot.lane.b32.xlu1 %v13266_v36, %s13839_s12 }
0x1658   :  { %13282 = vrot.lane.b32.xlu0 %v13281_v12, %s13839_s12  ;;  %13272 = vrot.lane.b32.xlu1 %v13271_v42, %s13839_s12  ;;  %v15447_v12 = vunpack.i.l.bf16 %v13218_v20 }
0x165a   :  { %v6800_v54 = vmul.f32 %v15447_v12, %v15271_v52  ;;  %v6940_v5 = vmul.f32 %v15447_v12, %v15274_v0 }
0x165c   :  { %13297 = vrot.lane.b32.xlu0 %v13296_v3, %s13839_s12  ;;  %13287 = vrot.lane.b32.xlu1 %v13286_v43, %s13839_s12 }
0x1660   :  { %13302 = vrot.lane.b32.xlu0 %v13301_v9, %s13839_s12  ;;  %13292 = vrot.lane.b32.xlu1 %v13291_v51, %s13839_s12  ;;  %v6802_v9 = vmul.f32 %v15451_v48, %v15271_v52 }
0x1664   :  { %13312 = vrot.lane.b32.xlu0 %v13311_v4, %s13839_s12  ;;  %13307 = vrot.lane.b32.xlu1 %v13306_v49, %s13839_s12  ;;  %s13858_s12 = smov 29  }
0x1665   :  { %s10536_s25 = sld [smem:[%s16266_s0 + %s13858_s12]]  }
0x1666   :  { %s16041_s12 = sld [smem:[%s16266_s0 + %s13865_s18]]  }
0x1668   :  { %6362 = vperm.xlu0 %12959, %v6296_v6   ;;  %6357 = vperm.xlu1 %12980, %v6295_v16   ;;  %v6942_v16 = vmul.f32 %v15451_v48, %v15274_v0 }
0x166b   :  { %v7135_v44 = vld [vmem:[%s10536_s25 + $0x8] sm:$0xff]  ;;  %v7134_v58 = vld [vmem:[%s10536_s25] sm:$0xff]  ;;  %v7137_v29 = vld [vmem:[%s10536_s25 + $0x18] sm:$0xff] }
0x166c   :  { %6372 = vperm.xlu0 %12959, %v6298_v24   ;;  %6367 = vperm.xlu1 %12980, %v6297_v23   ;;  %v7136_v36 = vld [vmem:[%s10536_s25 + $0x10] sm:$0xff]  ;;  %v6943_v24 = vmul.f32 %v15449_v13, %v15274_v0  ;;  %s13867_s25 = smov 36  }
0x166d   :  { %s16113_s9 = sld [smem:[%s16266_s0 + %s13867_s25]]  }
0x1670   :  { %6382 = vperm.xlu0 %12959, %v6300_v17   ;;  %6377 = vperm.xlu1 %12980, %v6299_v2  }
0x1674   :  { %6392 = vperm.xlu0 %12959, %v6302_v10   ;;  %6387 = vperm.xlu1 %12980, %v6301_v7   ;;  %v6835_v10 = vmul.f32 %v15447_v12, %v15303_v41  ;;  %v6836_v7 = vmul.f32 %v15445_v32, %v15303_v41 }
0x1678   :  { %7145 = vperm.xlu0 %12959, %v7135_v44   ;;  %7140 = vperm.xlu1 %12980, %v7134_v58  }
0x167c   :  { %7155 = vperm.xlu0 %12959, %v7137_v29   ;;  %7150 = vperm.xlu1 %12980, %v7136_v36  }
0x16b6   :  { %v13238_v42 = vpop.permute.xlu0 %13237  ;;  %v13228_v27 = vpop.permute.xlu1 %13227 }
0x16b7   :  { %v13240_v3 = vunpack.i.h.bf16 %v13238_v42  ;;  %v13239_v43 = vunpack.i.l.bf16 %v13238_v42  ;;  %v13230_v22 = vunpack.i.h.bf16 %v13228_v27  ;;  %v13229_v8 = vunpack.i.l.bf16 %v13228_v27 }
0x16b9   :  { %v6824_v51 = vsel %vm3417_vm11, %v6800_v54, %v13239_v43  ;;  %v6825_v18 = vsel %vm3417_vm11, %v6801_v50, %v13240_v3  ;;  %v6964_v47 = vsel %vm3417_vm11, %v6940_v5, %v13229_v8  ;;  %v6965_v63 = vsel %vm3417_vm11, %v6941_v14, %v13230_v22 }
0x16ba   :  { %v13243_v60 = vpop.permute.xlu0 %13242  ;;  %v13233_v4 = vpop.permute.xlu1 %13232  ;;  %v7116_v49 = vpack.c.bf16 %v6965_v63, %v6964_v47  ;;  %v7108_v6 = vpack.c.bf16 %v6825_v18, %v6824_v51  ;;  %v6975_v54 = vmul.f32 %v15447_v12, %v15306_v59  ;;  %v6976_v50 = vmul.f32 %v15445_v32, %v15306_v59 }
0x16bb   :  { %v13245_v23 = vunpack.i.h.bf16 %v13243_v60  ;;  %v13244_v52 = vunpack.i.l.bf16 %v13243_v60  ;;  %v13235_v17 = vunpack.i.h.bf16 %v13233_v4  ;;  %v13234_v2 = vunpack.i.l.bf16 %v13233_v4 }
0x16bc   :  { %12045 = vmatprep.subr.bf16.mxu1 %v7116_v49  ;;  %v6837_v43 = vmul.f32 %v15451_v48, %v15303_v41  ;;  %v6838_v22 = vmul.f32 %v15449_v13, %v15303_v41  ;;  %v6977_v4 = vmul.f32 %v15451_v48, %v15306_v59  ;;  %v6978_v49 = vmul.f32 %v15449_v13, %v15306_v59 }
0x16bd   :  { %v6827_v44 = vsel %vm3417_vm11, %v6803_v19, %v13245_v23  ;;  %v6826_v58 = vsel %vm3417_vm11, %v6802_v9, %v13244_v52  ;;  %12046 = vmatpush3.bf16.msra.mxu1 %v7108_v6  ;;  %v6966_v29 = vsel %vm3417_vm11, %v6942_v16, %v13234_v2  ;;  %v6967_v0 = vsel %vm3417_vm11, %v6943_v24, %v13235_v17 }
0x16be   :  { %v13258_v36 = vpop.permute.xlu0 %13257  ;;  %v13248_v20 = vpop.permute.xlu1 %13247  ;;  %v7117_v56 = vpack.c.bf16 %v6967_v0, %v6966_v29  ;;  %v7109_v42 = vpack.c.bf16 %v6827_v44, %v6826_v58  ;;  %v6870_v23 = vmul.f32 %v15447_v12, %v15329_v15  ;;  %v6871_v52 = vmul.f32 %v15445_v32, %v15329_v15 }
0x16bf   :  { %v13260_v27 = vunpack.i.h.bf16 %v13258_v36  ;;  %v13259_v5 = vunpack.i.l.bf16 %v13258_v36  ;;  %v13250_v14 = vunpack.i.h.bf16 %v13248_v20  ;;  %v13249_v3 = vunpack.i.l.bf16 %v13248_v20 }
0x16c0   :  { %12047 = vmatprep.subr.bf16.mxu1 %v7117_v56  ;;  %v7010_v0 = vmul.f32 %v15447_v12, %v15332_v30  ;;  %v7011_v36 = vmul.f32 %v15445_v32, %v15332_v30 }
0x16c1   :  { %v6859_v8 = vsel %vm3417_vm11, %v6835_v10, %v13259_v5  ;;  %v6860_v9 = vsel %vm3417_vm11, %v6836_v7, %v13260_v27  ;;  %12048 = vmatpush3.bf16.msra.mxu1 %v7109_v42  ;;  %v6999_v19 = vsel %vm3417_vm11, %v6975_v54, %v13249_v3  ;;  %v7000_v51 = vsel %vm3417_vm11, %v6976_v50, %v13250_v14 }
0x16c2   :  { %v13263_v18 = vpop.permute.xlu0 %13262  ;;  %v13253_v47 = vpop.permute.xlu1 %13252  ;;  %v7118_v63 = vpack.c.bf16 %v7000_v51, %v6999_v19  ;;  %v7110_v60 = vpack.c.bf16 %v6860_v9, %v6859_v8  ;;  %v6872_v50 = vmul.f32 %v15451_v48, %v15329_v15  ;;  %v6873_v27 = vmul.f32 %v15449_v13, %v15329_v15 }
0x16c3   :  { %v13265_v41 = vunpack.i.h.bf16 %v13263_v18  ;;  %v13264_v6 = vunpack.i.l.bf16 %v13263_v18  ;;  %v13255_v16 = vunpack.i.h.bf16 %v13253_v47  ;;  %v13254_v24 = vunpack.i.l.bf16 %v13253_v47 }
0x16c4   :  { %12049 = vmatprep.subr.bf16.mxu1 %v7118_v63  ;;  %v7012_v51 = vmul.f32 %v15451_v48, %v15332_v30  ;;  %v7013_v18 = vmul.f32 %v15449_v13, %v15332_v30 }
0x16c5   :  { %v6862_v17 = vsel %vm3417_vm11, %v6838_v22, %v13265_v41  ;;  %v6861_v2 = vsel %vm3417_vm11, %v6837_v43, %v13264_v6  ;;  %12050 = vmatpush3.bf16.msra.mxu1 %v7110_v60  ;;  %v7001_v10 = vsel %vm3417_vm11, %v6977_v4, %v13254_v24  ;;  %v7002_v59 = vsel %vm3417_vm11, %v6978_v49, %v13255_v16 }
0x16c6   :  { %v13278_v7 = vpop.permute.xlu0 %13277  ;;  %v13268_v44 = vpop.permute.xlu1 %13267  ;;  %v7119_v58 = vpack.c.bf16 %v7002_v59, %v7001_v10  ;;  %v7111_v29 = vpack.c.bf16 %v6862_v17, %v6861_v2  ;;  %v6905_v4 = vmul.f32 %v15447_v12, %v15361_v45  ;;  %v6906_v49 = vmul.f32 %v15445_v32, %v15361_v45 }
0x16c7   :  { %v13280_v20 = vunpack.i.h.bf16 %v13278_v7  ;;  %v13279_v56 = vunpack.i.l.bf16 %v13278_v7  ;;  %v13270_v42 = vunpack.i.h.bf16 %v13268_v44  ;;  %v13269_v54 = vunpack.i.l.bf16 %v13268_v44 }
0x16c8   :  { %12051 = vmatprep.subr.bf16.mxu1 %v7119_v58  ;;  %v7045_v2 = vmul.f32 %v15447_v12, %v15364_v55  ;;  %v7046_v10 = vmul.f32 %v15445_v32, %v15364_v55 }
0x16c9   :  { %v6894_v5 = vsel %vm3417_vm11, %v6870_v23, %v13279_v56  ;;  %v6895_v14 = vsel %vm3417_vm11, %v6871_v52, %v13280_v20  ;;  %12052 = vmatpush3.bf16.msra.mxu1 %v7111_v29  ;;  %v7034_v3 = vsel %vm3417_vm11, %v7010_v0, %v13269_v54  ;;  %v7035_v43 = vsel %vm3417_vm11, %v7011_v36, %v13270_v42 }
0x16ca   :  { %v13283_v22 = vpop.permute.xlu0 %13282  ;;  %v13273_v8 = vpop.permute.xlu1 %13272  ;;  %v7120_v9 = vpack.c.bf16 %v7035_v43, %v7034_v3  ;;  %v7112_v19 = vpack.c.bf16 %v6895_v14, %v6894_v5  ;;  %v6907_v29 = vmul.f32 %v15451_v48, %v15361_v45  ;;  %v6908_v0 = vmul.f32 %v15449_v13, %v15361_v45 }
0x16cb   :  { %v13285_v15 = vunpack.i.h.bf16 %v13283_v22  ;;  %v13284_v47 = vunpack.i.l.bf16 %v13283_v22  ;;  %v13275_v63 = vunpack.i.h.bf16 %v13273_v8  ;;  %v13274_v60 = vunpack.i.l.bf16 %v13273_v8 }
0x16cc   :  { %12053 = vmatprep.subr.bf16.mxu1 %v7120_v9  ;;  %v7047_v14 = vmul.f32 %v15451_v48, %v15364_v55  ;;  %v7048_v3 = vmul.f32 %v15449_v13, %v15364_v55  ;;  %v7080_v9 = vmul.f32 %v15447_v12, %v15392_v21  ;;  %v7082_v12 = vmul.f32 %v15451_v48, %v15392_v21 }
0x16cd   :  { %v6897_v41 = vsel %vm3417_vm11, %v6873_v27, %v13285_v15  ;;  %v6896_v6 = vsel %vm3417_vm11, %v6872_v50, %v13284_v47  ;;  %12054 = vmatpush3.bf16.msra.mxu1 %v7112_v19  ;;  %v7036_v16 = vsel %vm3417_vm11, %v7012_v51, %v13274_v60  ;;  %v7037_v30 = vsel %vm3417_vm11, %v7013_v18, %v13275_v63 }
0x16ce   :  { %v13298_v24 = vpop.permute.xlu0 %13297  ;;  %v13288_v23 = vpop.permute.xlu1 %13287  ;;  %v7121_v52 = vpack.c.bf16 %v7037_v30, %v7036_v16  ;;  %v7113_v17 = vpack.c.bf16 %v6897_v41, %v6896_v6  ;;  %v7081_v19 = vmul.f32 %v15445_v32, %v15392_v21  ;;  %v7083_v32 = vmul.f32 %v15449_v13, %v15392_v21  ;;  %v13676_v30 = vld [vmem:[%s15401_s20] ss:$12 sps:$4 sm:$0xff]   ;;  %v13681_v13 = vld [vmem:[%s15401_s20 + $0x18] ss:$12 sps:$4 sm:$0xff]  }
0x16cf   :  { %v13300_v59 = vunpack.i.h.bf16 %v13298_v24  ;;  %v13299_v7 = vunpack.i.l.bf16 %v13298_v24  ;;  %v13290_v44 = vunpack.i.h.bf16 %v13288_v23  ;;  %v13289_v58 = vunpack.i.l.bf16 %v13288_v23 }
0x16d0   :  { %12055 = vmatprep.subr.bf16.mxu1 %v7121_v52 }
0x16d1   :  { %v6929_v36 = vsel %vm3417_vm11, %v6905_v4, %v13299_v7  ;;  %v6930_v20 = vsel %vm3417_vm11, %v6906_v49, %v13300_v59  ;;  %12056 = vmatpush3.bf16.msra.mxu1 %v7113_v17  ;;  %v7069_v56 = vsel %vm3417_vm11, %v7045_v2, %v13289_v58  ;;  %v7070_v42 = vsel %vm3417_vm11, %v7046_v10, %v13290_v44  ;;  %v13679_v17 = vld [vmem:[%s15401_s20 + $0x1c] ss:$12 sps:$4 sm:$0xff]  }
0x16d2   :  { %v13303_v54 = vpop.permute.xlu0 %13302  ;;  %v13293_v50 = vpop.permute.xlu1 %13292  ;;  %v7122_v27 = vpack.c.bf16 %v7070_v42, %v7069_v56  ;;  %v7114_v5 = vpack.c.bf16 %v6930_v20, %v6929_v36  ;;  %v13682_v10 = vld [vmem:[%s15401_s20 + $0x8] ss:$12 sps:$4 sm:$0xff]   ;;  %v16271_v36 = vmov 1  }
0x16d3   :  { %v13305_v45 = vunpack.i.h.bf16 %v13303_v54  ;;  %v13304_v43 = vunpack.i.l.bf16 %v13303_v54  ;;  %v13295_v22 = vunpack.i.h.bf16 %v13293_v50  ;;  %v13294_v8 = vunpack.i.l.bf16 %v13293_v50 }
0x16d4   :  { %12057 = vmatprep.subr.bf16.mxu1 %v7122_v27 }
0x16d5   :  { %v6932_v51 = vsel %vm3417_vm11, %v6908_v0, %v13305_v45  ;;  %v6931_v18 = vsel %vm3417_vm11, %v6907_v29, %v13304_v43  ;;  %12058 = vmatpush3.bf16.msra.mxu1 %v7114_v5  ;;  %v7071_v15 = vsel %vm3417_vm11, %v7047_v14, %v13294_v8  ;;  %v7072_v55 = vsel %vm3417_vm11, %v7048_v3, %v13295_v22  ;;  %v13683_v29 = vld [vmem:[%s15401_s20 + $0x20] ss:$12 sps:$4 sm:$0xff]  }
0x16d6   :  { %v13313_v47 = vpop.permute.xlu0 %13312  ;;  %v13308_v63 = vpop.permute.xlu1 %13307  ;;  %v7123_v60 = vpack.c.bf16 %v7072_v55, %v7071_v15  ;;  %v7115_v4 = vpack.c.bf16 %v6932_v51, %v6931_v18  ;;  %v7432_v18 = vld [vmem:[%s15613_s28] sm:$0x3]  ;;  %v11323_v15 = vld [vmem:[%s15613_s28 + $0x2] sm:$0x3] }
0x16d7   :  { %v13315_v49 = vunpack.i.h.bf16 %v13313_v47  ;;  %v13314_v41 = vunpack.i.l.bf16 %v13313_v47  ;;  %v13310_v6 = vunpack.i.h.bf16 %v13308_v63  ;;  %v13309_v16 = vunpack.i.l.bf16 %v13308_v63  ;;  %12904 = vmatprep.subr.msk.bf16.mxu0 %vm572_vm9, %v11323_v15 }
0x16d8   :  { %12059 = vmatprep.subr.bf16.mxu1 %v7123_v60  ;;  %v7446_v55 = vsel %vm572_vm9, %v7432_v18, 0  ;;  %v7536_v47 = vsel %vm572_vm9, %v11323_v15, 0 }
0x16d9   :  { %12060 = vmatpush3.bf16.msra.mxu1 %v7115_v4  ;;  %v7104_v24 = vsel %vm3417_vm11, %v7080_v9, %v13309_v16  ;;  %v7105_v23 = vsel %vm3417_vm11, %v7081_v19, %v13310_v6  ;;  %v7106_v52 = vsel %vm3417_vm11, %v7082_v12, %v13314_v41  ;;  %v7107_v48 = vsel %vm3417_vm11, %v7083_v32, %v13315_v49 }
0x16da   :  { %v7124_v2 = vpack.c.bf16 %v7105_v23, %v7104_v24  ;;  %v7125_v21 = vpack.c.bf16 %v7107_v48, %v7106_v52  ;;  %12633 = vmatpush3.bf16.msra.mxu0 %v7536_v47 }
0x16dc   :  { %7227 = vmatmul.mubr.bf16.vlgmr.msra.gmra.mrb[188].mxu1 %v13676_v30  ;;  %12614 = vmatprep.subr.bf16.mxu1 %v7124_v2 }
0x16dd   :  { %12615 = vmatpush3.bf16.msra.mxu1 %v7124_v2  ;;  %7234 = vmatprep.mubr.bf16.mxu1 %v13679_v17 }
0x16de   :  { %12616 = vmatprep.subr.bf16.mxu1 %v7125_v21 }
0x16e1   :  { %12617 = vmatpush3.bf16.msra.mxu1 %v7125_v21 }
0x16e2   :  { %12903 = vmatprep.subr.msk.bf16.mxu1 %vm572_vm9, %v7432_v18 }
0x16e4   :  { %7235 = vmatmul.mubr.bf16.gmra.mrb[192].mxu1 %v13681_v13 }
0x16e5   :  { %12618 = vmatprep.mubr.msk.bf16.mxu1 %vm4254_vm10, %v13682_v10 }
0x16e7   :  { %v6363_v59 = vpop.permute.xlu0 %6362  ;;  %v6358_v7 = vpop.permute.xlu1 %6357 }
0x16e8   :  { %v6637_v44 = vadd.f32 %v15426_v34, %v6363_v59  ;;  %v6634_v58 = vadd.f32 %v15420_v11, %v6358_v7  ;;  %v16281_v34 = vmov 0  }
0x16ea   :  { %7327 = vperm.xlu0 %12959, %v6637_v44   ;;  %7322 = vperm.xlu1 %12980, %v6634_v58  }
0x16eb   :  { %v6368_v0 = vpop.permute.xlu1 %6367  ;;  %v6373_v54 = vpop.permute.xlu0 %6372 }
0x16ec   :  { %12619 = vmatmul.mubr.msk.bf16.vlgmr.msra.gmra.mrb[196].mxu1 %vm4254_vm10, %v13683_v29  ;;  %v6642_v42 = vadd.f32 %v15416_v33, %v6368_v0  ;;  %v6645_v11 = vadd.f32 %v15424_v28, %v6373_v54 }
0x16ed   :  { %12623 = vmatpush3.bf16.msra.mxu1 %v7446_v55 }
0x16ee   :  { %13316 = vset.pattern.permute.xlu1 %v16271_v36 }
0x16ef   :  { %7341 = vperm.xlu1 %13316, %v6634_v58   ;;  %v6378_v20 = vpop.permute.xlu1 %6377  ;;  %v6383_v50 = vpop.permute.xlu0 %6382 }
0x16f0   :  { %v6650_v56 = vadd.f32 %v15437_v53, %v6378_v20  ;;  %v6653_v27 = vadd.f32 %v15441_v31, %v6383_v50 }
0x16f2   :  { %7362 = vperm.xlu0 %12959, %v6650_v56  }
0x16f3   :  { %13317 = vset.pattern.permute.xlu1 %v16281_v34  ;;  %v6388_v53 = vpop.permute.xlu1 %6387  ;;  %v6393_v28 = vpop.permute.xlu0 %6392 }
0x16f4   :  { %7332 = vperm.xlu1 %13317, %v6642_v42   ;;  %v6658_v33 = vadd.f32 %v15430_v25, %v6388_v53  ;;  %v6661_v31 = vadd.f32 %v15439_v37, %v6393_v28  ;;  %v15585_v25 = vpop.f32.mrb[176].mxu1 }
0x16f5   :  { %v15587_v5 = vpop.f32.mrb[177].mxu1 }
0x16f6   :  { %13319 = vset.pattern.permute.xlu0 %v16271_v36  ;;  %v15590_v14 = vpop.f32.mrb[178].mxu1 }
0x16f7   :  { %7345 = vperm.xlu0 %13319, %v6637_v44   ;;  %v15592_v3 = vpop.f32.mrb[179].mxu1  ;;  %v7141_v63 = vpop.permute.xlu1 %7140 }
0x16f8   :  { %7337 = vperm.xlu1 %13317, %v6645_v11   ;;  %v15594_v45 = vpop.f32.mrb[180].mxu1  ;;  %v7146_v49 = vpop.permute.xlu0 %7145 }
0x16f9   :  { %v15596_v43 = vpop.f32.mrb[181].mxu1 }
0x16fa   :  { %v15598_v22 = vpop.f32.mrb[182].mxu1 }
0x16fb   :  { %7349 = vperm.xlu0 %13319, %v6642_v42   ;;  %v15600_v37 = vpop.f32.mrb[183].mxu1  ;;  %v7151_v60 = vpop.permute.xlu1 %7150 }
0x16fc   :  { %13318 = vset.pattern.permute.xlu1 %v16271_v36  ;;  %v7156_v6 = vpop.permute.xlu0 %7155 }
0x16fd   :  { %7353 = vperm.xlu1 %13318, %v6645_v11  }
0x16ff   :  { %7385 = vperm.xlu0 %13319, %v6653_v27  }
0x1701   :  { %13320 = vset.pattern.permute.xlu1 %v16281_v34 }
0x1702   :  { %7367 = vperm.xlu1 %13320, %v6653_v27  }
0x1703   :  { %7389 = vperm.xlu0 %13319, %v6658_v33  }
0x1706   :  { %13321 = vset.pattern.permute.xlu1 %v16271_v36 }
0x1707   :  { %7381 = vperm.xlu1 %13321, %v6650_v56   ;;  %13414 = vset.pattern.permute.xlu0 %v16281_v34 }
0x170b   :  { %13322 = vset.pattern.permute.xlu1 %v16281_v34 }
0x170c   :  { %7372 = vperm.xlu1 %13322, %v6658_v33  }
0x1710   :  { %7377 = vperm.xlu1 %13322, %v6661_v31  }
0x1714   :  { %13323 = vset.pattern.permute.xlu1 %v16271_v36 }
0x1715   :  { %7393 = vperm.xlu1 %13323, %v6661_v31  }
0x1718   :  { %v15602_v8 = vpop.f32.mrb[184].mxu1 }
0x1719   :  { %13415 = vset.pattern.permute.xlu1 %v16281_v34  ;;  %16282 = vst [vmem:[#allocation4_spill] sm:$0xff] %v15602_v8  ;;  %v15604_v9 = vpop.f32.mrb[185].mxu1 }
0x171a   :  { %v15606_v19 = vpop.f32.mrb[186].mxu1 }
0x171b   :  { %16283 = vst [vmem:[#allocation5_spill] sm:$0xff] %v15606_v19  ;;  %v15608_v51 = vpop.f32.mrb[187].mxu1 }
0x171c   :  { %16284 = vst [vmem:[#allocation6_spill] sm:$0xff] %v15608_v51 }
0x1769   :  { %v7323_v4 = vpop.permute.xlu1 %7322  ;;  %v7328_v30 = vpop.permute.xlu0 %7327 }
0x176e   :  { %v7342_v12 = vpop.permute.xlu1 %7341 }
0x176f   :  { %v7356_v11 = vsel %vm3417_vm11, %v7323_v4, %v7342_v12 }
0x1770   :  { %v7400_v55 = vadd.f32 1.0, %v7356_v11 }
0x1771   :  { %v15621_v52 = vpop.permute.xlu0 %7362 }
0x1773   :  { %v7333_v32 = vpop.permute.xlu1 %7332 }
0x1776   :  { %v7346_v10 = vpop.permute.xlu0 %7345 }
0x1777   :  { %v7338_v41 = vpop.permute.xlu1 %7337 }
0x177a   :  { %v7350_v56 = vpop.permute.xlu0 %7349 }
0x177b   :  { %v7358_v4 = vsel %vm3417_vm11, %v7333_v32, %v7350_v56 }
0x177c   :  { %v7354_v16 = vpop.permute.xlu1 %7353 }
0x177e   :  { %v7386_v12 = vpop.permute.xlu0 %7385 }
0x1781   :  { %v15623_v2 = vpop.permute.xlu1 %7367 }
0x1786   :  { %v7382_v7 = vpop.permute.xlu1 %7381 }
0x178b   :  { %v7373_v42 = vpop.permute.xlu1 %7372 }
0x17af   :  { %v12061_v24 = vpop.f32.mrb[188].mxu1 }
0x17b0   :  { %v12062_v23 = vpop.f32.mrb[189].mxu1 }
0x17b1   :  { %v12063_v48 = vadd.f32 %v12062_v23, %v12061_v24  ;;  %v12064_v17 = vpop.f32.mrb[190].mxu1 }
0x17b2   :  { %v12065_v21 = vpop.f32.mrb[191].mxu1 }
0x17b3   :  { %v12066_v13 = vadd.f32 %v12065_v21, %v12064_v17  ;;  %v7229_v27 = vadd.f32 %v12063_v48, %v7141_v63  ;;  %v7357_v17 = vsel %vm3417_vm11, %v7328_v30, %v7346_v10  ;;  %v7378_v63 = vpop.permute.xlu1 %7377 }
0x17b5   :  { %v7232_v15 = vadd.f32 %v12066_v13, %v7146_v49 }
0x17b7   :  { %v12067_v59 = vpop.f32.mrb[192].mxu1 }
0x17b8   :  { %v12068_v44 = vpop.f32.mrb[193].mxu1 }
0x17b9   :  { %v12069_v58 = vadd.f32 %v12068_v44, %v12067_v59  ;;  %v12070_v29 = vpop.f32.mrb[194].mxu1  ;;  %v7401_v44 = vadd.f32 1.0, %v7357_v17 }
0x17ba   :  { %v12071_v0 = vpop.f32.mrb[195].mxu1 }
0x17bb   :  { %v12072_v20 = vadd.f32 %v12071_v0, %v12070_v29  ;;  %v7237_v54 = vadd.f32 %v12069_v58, %v7151_v60  ;;  %v7359_v58 = vsel %vm3417_vm11, %v7338_v41, %v7354_v16  ;;  %v7390_v41 = vpop.permute.xlu0 %7389  ;;  %v7394_v16 = vpop.permute.xlu1 %7393 }
0x17bd   :  { %v7240_v28 = vadd.f32 %v12072_v20, %v7156_v6  ;;  %v7402_v20 = vadd.f32 1.0, %v7358_v4 }
0x17bf   :  { %v12620_v50 = vpop.f32.mrb[196].mxu1 }
0x17c0   :  { %v7286_v53 = vadd.f32 %v12620_v50, %v7237_v54  ;;  %v7277_v33 = vpop.f32.mrb[197].mxu1  ;;  %v7403_v54 = vadd.f32 1.0, %v7359_v58  ;;  %v11338_v58 = vld [vmem:[%s15613_s28 + $0x8] sm:$0x3] }
0x17c1   :  { %v7278_v31 = vadd.f32 %v7277_v33, %v7229_v27  ;;  %v12621_v18 = vpop.f32.mrb[198].mxu1  ;;  %v7398_v33 = vsel %vm3417_vm11, %v7373_v42, %v7390_v41 }
0x17c2   :  { %vm7294_vm13 = vcmp.ge.f32.partialorder %v7286_v53, 0.0  ;;  %v7298_v47 = vmul.f32 0.2, %v7286_v53  ;;  %v7289_v24 = vadd.f32 %v12621_v18, %v7240_v28  ;;  %v7280_v23 = vpop.f32.mrb[199].mxu1  ;;  %v11328_v18 = vld [vmem:[%s15613_s28 + $0x4] sm:$0x3] }
0x17c3   :  { %vm7292_vm14 = vcmp.ge.f32.partialorder %v7278_v31, 0.0  ;;  %v7296_v21 = vmul.f32 0.2, %v7278_v31  ;;  %v7281_v60 = vadd.f32 %v7280_v23, %v7232_v15  ;;  %12905 = vmatprep.subr.msk.bf16.mxu1 %vm572_vm9, %v11328_v18  ;;  %v7399_v23 = vsel %vm3417_vm11, %v7378_v63, %v7394_v16 }
0x17c4   :  { %v7302_v48 = vsel %vm7294_vm13, %v7286_v53, %v7298_v47  ;;  %vm7295_vm1 = vcmp.ge.f32.partialorder %v7289_v24, 0.0  ;;  %v7299_v6 = vmul.f32 0.2, %v7289_v24 }
0x17c5   :  { %v7306_v59 = vadd.f32 %v7302_v48, %v14811_v57  ;;  %v7300_v49 = vsel %vm7292_vm14, %v7278_v31, %v7296_v21  ;;  %vm7293_vm2 = vcmp.ge.f32.partialorder %v7281_v60, 0.0  ;;  %v7297_v13 = vmul.f32 0.2, %v7281_v60 }
0x17c6   :  { %v7304_v30 = vadd.f32 %v7300_v49, %v14803_v35  ;;  %v7303_v10 = vsel %vm7295_vm1, %v7289_v24, %v7299_v6 }
0x17c7   :  { %vm7310_vm3 = vcmp.ge.f32.partialorder %v7306_v59, 0.0  ;;  %v7314_v29 = vmul.f32 0.2, %v7306_v59  ;;  %v7307_v32 = vadd.f32 %v7303_v10, %v14813_v26  ;;  %v7301_v0 = vsel %vm7293_vm2, %v7281_v60, %v7297_v13 }
0x17c8   :  { %vm7308_vm5 = vcmp.ge.f32.partialorder %v7304_v30, 0.0  ;;  %v7312_v56 = vmul.f32 0.2, %v7304_v30  ;;  %v7305_v57 = vadd.f32 %v7301_v0, %v14805_v46  ;;  %v7396_v26 = vsel %vm3417_vm11, %v15621_v52, %v7382_v7  ;;  %v11333_v46 = vld [vmem:[%s15613_s28 + $0x6] sm:$0x3] }
0x17c9   :  { %v7318_v11 = vsel %vm7310_vm3, %v7306_v59, %v7314_v29  ;;  %vm7311_vm6 = vcmp.ge.f32.partialorder %v7307_v32, 0.0  ;;  %v7315_v50 = vmul.f32 0.2, %v7307_v32  ;;  %12906 = vmatprep.subr.msk.bf16.mxu0 %vm572_vm9, %v11333_v46  ;;  %v7397_v52 = vsel %vm3417_vm11, %v15623_v2, %v7386_v12 }
0x17ca   :  { %v7406_v35 = vmul.f32 %v7402_v20, %v7318_v11  ;;  %v7316_v27 = vsel %vm7308_vm5, %v7304_v30, %v7312_v56  ;;  %vm7309_vm7 = vcmp.ge.f32.partialorder %v7305_v57, 0.0  ;;  %v7313_v53 = vmul.f32 0.2, %v7305_v57  ;;  %v11343_v30 = vld [vmem:[%s15613_s28 + $0xa] sm:$0x3] }
0x17cb   :  { %v7404_v28 = vmul.f32 %v7400_v55, %v7316_v27  ;;  %v7319_v31 = vsel %vm7311_vm6, %v7307_v32, %v7315_v50  ;;  %v7626_v2 = vsel %vm572_vm9, %v11328_v18, 0  ;;  %v7716_v12 = vsel %vm572_vm9, %v11333_v46, 0  ;;  %v11348_v20 = vld [vmem:[%s15613_s28 + $0xc] sm:$0x3]  ;;  %v11353_v56 = vld [vmem:[%s15613_s28 + $0xe] sm:$0x3] }
0x17cc   :  { %v7410_v15 = vadd.f32 %v7406_v35, %v7398_v33  ;;  %v7407_v47 = vmul.f32 %v7403_v54, %v7319_v31  ;;  %v7317_v24 = vsel %vm7309_vm7, %v7305_v57, %v7313_v53  ;;  %v7806_v32 = vsel %vm572_vm9, %v11338_v58, 0  ;;  %v11358_v11 = vld [vmem:[%s15613_s28 + $0x10] sm:$0x3]  ;;  %s13868_s28 = smov 32  }
0x17cd   :  { %v7408_v17 = vadd.f32 %v7404_v28, %v7396_v26  ;;  %v7405_v21 = vmul.f32 %v7401_v44, %v7317_v24  ;;  %v7896_v0 = vsel %vm572_vm9, %v11343_v30, 0  ;;  %v7986_v57 = vsel %vm572_vm9, %v11348_v20, 0 }
0x17ce   :  { %v7418_v7 = vmul.f32 0.2, %v7410_v15  ;;  %v7411_v42 = vadd.f32 %v7407_v47, %v7399_v23  ;;  %vm7414_vm8 = vcmp.ge.f32.partialorder %v7410_v15, 0.0  ;;  %v8076_v54 = vsel %vm572_vm9, %v11353_v56, 0 }
0x17cf   :  { %v7416_v55 = vmul.f32 0.2, %v7408_v17  ;;  %v7409_v60 = vadd.f32 %v7405_v21, %v7397_v52  ;;  %vm7412_vm12 = vcmp.ge.f32.partialorder %v7408_v17, 0.0  ;;  %v8166_v50 = vsel %vm572_vm9, %v11358_v11, 0 }
0x17d0   :  { %vm7415_vm13 = vcmp.ge.f32.partialorder %v7411_v42, 0.0  ;;  %v7419_v4 = vmul.f32 0.2, %v7411_v42  ;;  %v7422_v6 = vsel %vm7414_vm8, %v7410_v15, %v7418_v7 }
0x17d1   :  { %vm7413_vm14 = vcmp.ge.f32.partialorder %v7409_v60, 0.0  ;;  %v7417_v48 = vmul.f32 0.2, %v7409_v60  ;;  %v7420_v63 = vsel %vm7412_vm12, %v7408_v17, %v7416_v55 }
0x17d2   :  { %v7423_v59 = vsel %vm7415_vm13, %v7411_v42, %v7419_v4 }
0x17d3   :  { %v15643_v49 = vpack.c.bf16 %v7423_v59, %v7422_v6  ;;  %v7421_v13 = vsel %vm7413_vm14, %v7409_v60, %v7417_v48 }
0x17d4   :  { %v7424_v44 = vpack.c.bf16 %v7421_v13, %v7420_v63 }
0x17d5   :  { %7430 = vrot.lane.b32.xlu1 %v15643_v49, %s13846_s21 }
0x17d6   :  { %7428 = vrot.lane.b32.xlu0 %v7424_v44, %s13846_s21  ;;  %12624 = vmatprep.mubr.msk.bf16.mxu1 %vm3417_vm11, %v7424_v44  ;;  %s13861_s21 = smov 26  }
0x17d7   :  { %12634 = vmatprep.mubr.msk.bf16.mxu0 %vm3417_vm11, %v7424_v44  ;;  %12625 = vmatmul.mubr.msk.bf16.vlgmr.msra.gmra.mrb[200].mxu1 %vm3417_vm11, %v15643_v49  ;;  %s15799_s30 = sld [smem:[%s16266_s0 + %s13861_s21]]  }
0x17d8   :  { %12635 = vmatmul.mubr.msk.bf16.vlgmr.msra.gmra.mrb[132].mxu0 %vm3417_vm11, %v15643_v49  ;;  %12643 = vmatpush3.bf16.msra.mxu1 %v7626_v2 }
0x17d9   :  { %12653 = vmatpush3.bf16.msra.mxu0 %v7716_v12  ;;  %12907 = vmatprep.subr.msk.bf16.mxu1 %vm572_vm9, %v11338_v58 }
0x17da   :  { %12908 = vmatprep.subr.msk.bf16.mxu0 %vm572_vm9, %v11343_v30 }
0x1847   :  { %v7431_v29 = vpop.permute.xlu1 %7430 }
0x1848   :  { %v7429_v10 = vpop.permute.xlu0 %7428 }
0x1849   :  { %12628 = vmatprep.mubr.msk.bf16.mxu1 %vm3417_vm11, %v7429_v10  ;;  %12638 = vmatprep.mubr.msk.bf16.mxu0 %vm3417_vm11, %v7429_v10 }
0x184a   :  { %12629 = vmatmul.mubr.msk.bf16.gmra.mrb[204].mxu1 %vm3417_vm11, %v7431_v29  ;;  %12639 = vmatmul.mubr.msk.bf16.gmra.mrb[136].mxu0 %vm3417_vm11, %v7431_v29 }
0x184b   :  { %12644 = vmatprep.mubr.msk.bf16.mxu1 %vm3417_vm11, %v7424_v44  ;;  %12654 = vmatprep.mubr.msk.bf16.mxu0 %vm3417_vm11, %v7424_v44 }
0x1852   :  { %12645 = vmatmul.mubr.msk.bf16.vlgmr.msra.gmra.mrb[208].mxu1 %vm3417_vm11, %v15643_v49  ;;  %12655 = vmatmul.mubr.msk.bf16.vlgmr.msra.gmra.mrb[140].mxu0 %vm3417_vm11, %v15643_v49 }
0x1853   :  { %12648 = vmatprep.mubr.msk.bf16.mxu1 %vm3417_vm11, %v7429_v10  ;;  %12658 = vmatprep.mubr.msk.bf16.mxu0 %vm3417_vm11, %v7429_v10 }
0x1854   :  { %12663 = vmatpush3.bf16.msra.mxu1 %v7806_v32  ;;  %12673 = vmatpush3.bf16.msra.mxu0 %v7896_v0 }
0x1855   :  { %12909 = vmatprep.subr.msk.bf16.mxu1 %vm572_vm9, %v11348_v20  ;;  %12910 = vmatprep.subr.msk.bf16.mxu0 %vm572_vm9, %v11353_v56 }
0x185a   :  { %12649 = vmatmul.mubr.msk.bf16.gmra.mrb[212].mxu1 %vm3417_vm11, %v7431_v29  ;;  %12659 = vmatmul.mubr.msk.bf16.gmra.mrb[144].mxu0 %vm3417_vm11, %v7431_v29 }
0x185b   :  { %12664 = vmatprep.mubr.msk.bf16.mxu1 %vm3417_vm11, %v7424_v44  ;;  %12674 = vmatprep.mubr.msk.bf16.mxu0 %vm3417_vm11, %v7424_v44 }
0x1862   :  { %12665 = vmatmul.mubr.msk.bf16.vlgmr.msra.gmra.mrb[216].mxu1 %vm3417_vm11, %v15643_v49  ;;  %12675 = vmatmul.mubr.msk.bf16.vlgmr.msra.gmra.mrb[148].mxu0 %vm3417_vm11, %v15643_v49 }
0x1863   :  { %12668 = vmatprep.mubr.msk.bf16.mxu1 %vm3417_vm11, %v7429_v10  ;;  %12678 = vmatprep.mubr.msk.bf16.mxu0 %vm3417_vm11, %v7429_v10 }
0x1864   :  { %12683 = vmatpush3.bf16.msra.mxu1 %v7986_v57  ;;  %12693 = vmatpush3.bf16.msra.mxu0 %v8076_v54 }
0x1865   :  { %12911 = vmatprep.subr.msk.bf16.mxu1 %vm572_vm9, %v11358_v11 }
0x186a   :  { %12669 = vmatmul.mubr.msk.bf16.gmra.mrb[220].mxu1 %vm3417_vm11, %v7431_v29  ;;  %12679 = vmatmul.mubr.msk.bf16.gmra.mrb[152].mxu0 %vm3417_vm11, %v7431_v29 }
0x186b   :  { %12684 = vmatprep.mubr.msk.bf16.mxu1 %vm3417_vm11, %v7424_v44  ;;  %12694 = vmatprep.mubr.msk.bf16.mxu0 %vm3417_vm11, %v7424_v44 }
0x1872   :  { %12685 = vmatmul.mubr.msk.bf16.vlgmr.msra.gmra.mrb[224].mxu1 %vm3417_vm11, %v15643_v49  ;;  %12695 = vmatmul.mubr.msk.bf16.vlgmr.msra.gmra.mrb[156].mxu0 %vm3417_vm11, %v15643_v49 }
0x1873   :  { %12688 = vmatprep.mubr.msk.bf16.mxu1 %vm3417_vm11, %v7429_v10  ;;  %12698 = vmatprep.mubr.msk.bf16.mxu0 %vm3417_vm11, %v7429_v10 }
0x1874   :  { %12703 = vmatpush3.bf16.msra.mxu1 %v8166_v50 }
0x187a   :  { %12689 = vmatmul.mubr.msk.bf16.gmra.mrb[228].mxu1 %vm3417_vm11, %v7431_v29  ;;  %12699 = vmatmul.mubr.msk.bf16.gmra.mrb[160].mxu0 %vm3417_vm11, %v7431_v29 }
0x187b   :  { %12704 = vmatprep.mubr.msk.bf16.mxu1 %vm3417_vm11, %v7424_v44 }
0x1882   :  { %12705 = vmatmul.mubr.msk.bf16.vlgmr.msra.gmra.mrb[232].mxu1 %vm3417_vm11, %v15643_v49 }
0x1883   :  { %12708 = vmatprep.mubr.msk.bf16.mxu1 %vm3417_vm11, %v7429_v10 }
0x188a   :  { %12709 = vmatmul.mubr.msk.bf16.gmra.mrb[236].mxu1 %vm3417_vm11, %v7431_v29 }
0x18aa   :  { %v15710_v41 = vpop.f32.mrb[200].mxu1 }
0x18ab   :  { %v15712_v16 = vpop.f32.mrb[132].mxu0  ;;  %v15714_v35 = vpop.f32.mrb[201].mxu1 }
0x18ac   :  { %v15716_v27 = vpop.f32.mrb[133].mxu0  ;;  %v15718_v53 = vpop.f32.mrb[202].mxu1 }
0x18ad   :  { %v15720_v26 = vpop.f32.mrb[134].mxu0  ;;  %v15722_v33 = vpop.f32.mrb[203].mxu1 }
0x18ae   :  { %v15724_v28 = vpop.f32.mrb[135].mxu0 }
0x191d   :  { %v12630_v31 = vpop.f32.mrb[204].mxu1  ;;  %v12640_v18 = vpop.f32.mrb[136].mxu0 }
0x191e   :  { %v7498_v46 = vpop.f32.mrb[205].mxu1  ;;  %v7588_v15 = vpop.f32.mrb[137].mxu0 }
0x191f   :  { %v12631_v47 = vpop.f32.mrb[206].mxu1  ;;  %v12641_v24 = vpop.f32.mrb[138].mxu0 }
0x1920   :  { %v13339_v23 = vpack.i.bf16 %v12631_v47, %v12630_v31  ;;  %v13359_v17 = vpack.i.bf16 %v12641_v24, %v12640_v18  ;;  %v7501_v21 = vpop.f32.mrb[207].mxu1  ;;  %v7591_v52 = vpop.f32.mrb[139].mxu0 }
0x1921   :  { %v13324_v7 = vpack.i.bf16 %v7501_v21, %v7498_v46  ;;  %v13344_v42 = vpack.i.bf16 %v7591_v52, %v7588_v15 }
0x1923   :  { %13325 = vrot.lane.b32.xlu1 %v13324_v7, %s13826_s15 }
0x1925   :  { %v15727_v55 = vpop.f32.mrb[208].mxu1  ;;  %v15729_v60 = vpop.f32.mrb[140].mxu0 }
0x1926   :  { %v15731_v4 = vpop.f32.mrb[209].mxu1  ;;  %v15733_v48 = vpop.f32.mrb[141].mxu0 }
0x1927   :  { %v15735_v6 = vpop.f32.mrb[142].mxu0  ;;  %13340 = vrot.lane.b32.xlu1 %v13339_v23, %s13826_s15  ;;  %v15738_v59 = vpop.f32.mrb[210].mxu1 }
0x1928   :  { %v15740_v63 = vpop.f32.mrb[211].mxu1  ;;  %v15742_v49 = vpop.f32.mrb[143].mxu0 }
0x192b   :  { %13345 = vrot.lane.b32.xlu1 %v13344_v42, %s13826_s15 }
0x192d   :  { %v12650_v13 = vpop.f32.mrb[212].mxu1  ;;  %v12660_v44 = vpop.f32.mrb[144].mxu0 }
0x192e   :  { %v7678_v2 = vpop.f32.mrb[213].mxu1  ;;  %v7768_v12 = vpop.f32.mrb[145].mxu0 }
0x192f   :  { %v12661_v58 = vpop.f32.mrb[146].mxu0  ;;  %13360 = vrot.lane.b32.xlu1 %v13359_v17, %s13826_s15  ;;  %v12651_v30 = vpop.f32.mrb[214].mxu1 }
0x1930   :  { %v13399_v10 = vpack.i.bf16 %v12661_v58, %v12660_v44  ;;  %v13379_v29 = vpack.i.bf16 %v12651_v30, %v12650_v13  ;;  %v7681_v32 = vpop.f32.mrb[215].mxu1  ;;  %v7771_v0 = vpop.f32.mrb[147].mxu0 }
0x1931   :  { %v13364_v20 = vpack.i.bf16 %v7681_v32, %v7678_v2  ;;  %v13384_v56 = vpack.i.bf16 %v7771_v0, %v7768_v12 }
0x1933   :  { %13365 = vrot.lane.b32.xlu1 %v13364_v20, %s13826_s15 }
0x1935   :  { %v15747_v57 = vpop.f32.mrb[216].mxu1  ;;  %v15749_v54 = vpop.f32.mrb[148].mxu0 }
0x1936   :  { %v15751_v11 = vpop.f32.mrb[217].mxu1  ;;  %v15753_v50 = vpop.f32.mrb[149].mxu0 }
0x1937   :  { %v15755_v31 = vpop.f32.mrb[150].mxu0  ;;  %13380 = vrot.lane.b32.xlu1 %v13379_v29, %s13826_s15  ;;  %v15758_v18 = vpop.f32.mrb[218].mxu1 }
0x1938   :  { %v15760_v46 = vpop.f32.mrb[219].mxu1  ;;  %v15762_v15 = vpop.f32.mrb[151].mxu0 }
0x193b   :  { %13385 = vrot.lane.b32.xlu1 %v13384_v56, %s13826_s15 }
0x193d   :  { %v12670_v47 = vpop.f32.mrb[220].mxu1  ;;  %v12680_v24 = vpop.f32.mrb[152].mxu0 }
0x193e   :  { %v7858_v23 = vpop.f32.mrb[221].mxu1  ;;  %v7948_v17 = vpop.f32.mrb[153].mxu0 }
0x193f   :  { %v12681_v21 = vpop.f32.mrb[154].mxu0  ;;  %13400 = vrot.lane.b32.xlu1 %v13399_v10, %s13826_s15  ;;  %v12671_v52 = vpop.f32.mrb[222].mxu1 }
0x1940   :  { %v13354_v7 = vpack.i.bf16 %v12681_v21, %v12680_v24  ;;  %v13334_v42 = vpack.i.bf16 %v12671_v52, %v12670_v47  ;;  %v7861_v13 = vpop.f32.mrb[223].mxu1  ;;  %v7951_v44 = vpop.f32.mrb[155].mxu0 }
0x1941   :  { %v13329_v2 = vpack.i.bf16 %v7861_v13, %v7858_v23  ;;  %v13349_v12 = vpack.i.bf16 %v7951_v44, %v7948_v17 }
0x1943   :  { %13330 = vrot.lane.b32.xlu0 %v13329_v2, %s13826_s15 }
0x1945   :  { %v15767_v58 = vpop.f32.mrb[224].mxu1  ;;  %v15769_v30 = vpop.f32.mrb[156].mxu0 }
0x1946   :  { %v15771_v29 = vpop.f32.mrb[225].mxu1  ;;  %v15773_v32 = vpop.f32.mrb[157].mxu0 }
0x1947   :  { %v15775_v0 = vpop.f32.mrb[158].mxu0  ;;  %13335 = vrot.lane.b32.xlu0 %v13334_v42, %s13826_s15  ;;  %v15778_v10 = vpop.f32.mrb[226].mxu1 }
0x1948   :  { %v15780_v20 = vpop.f32.mrb[227].mxu1  ;;  %v15782_v56 = vpop.f32.mrb[159].mxu0 }
0x194b   :  { %13350 = vrot.lane.b32.xlu0 %v13349_v12, %s13826_s15 }
0x194d   :  { %v12690_v47 = vpop.f32.mrb[228].mxu1  ;;  %v12700_v24 = vpop.f32.mrb[160].mxu0 }
0x194e   :  { %v8038_v23 = vpop.f32.mrb[229].mxu1  ;;  %v8128_v17 = vpop.f32.mrb[161].mxu0 }
0x194f   :  { %v12701_v21 = vpop.f32.mrb[162].mxu0  ;;  %13355 = vrot.lane.b32.xlu0 %v13354_v7, %s13826_s15  ;;  %v12691_v52 = vpop.f32.mrb[230].mxu1 }
0x1950   :  { %v13394_v13 = vpack.i.bf16 %v12701_v21, %v12700_v24  ;;  %v13374_v44 = vpack.i.bf16 %v12691_v52, %v12690_v47  ;;  %v8041_v2 = vpop.f32.mrb[231].mxu1  ;;  %v8131_v42 = vpop.f32.mrb[163].mxu0  ;;  %v13689_v52 = vld [vmem:[%s15799_s30 + $0x8] ss:$12 sps:$4 sm:$0xff]  }
0x1951   :  { %v13369_v36 = vpack.i.bf16 %v8041_v2, %v8038_v23  ;;  %v13389_v62 = vpack.i.bf16 %v8131_v42, %v8128_v17  ;;  %v13686_v17 = vld [vmem:[%s15799_s30 + $0x4] ss:$12 sps:$4 sm:$0xff]   ;;  %12716 = vmatprep.mubr.msk.bf16.mxu1 %vm4254_vm10, %v13689_v52  ;;  %v6306_v2 = vld [vmem:[%s15048_s23 + $0x98] sm:$0xff] }
0x1952   :  { %8371 = vmatprep.mubr.bf16.mxu0 %v13686_v17  ;;  %v6307_v42 = vld [vmem:[%s15048_s23 + $0xa0] sm:$0xff]  ;;  %v8281_v17 = vld [vmem:[%s10537_s3 + $0x10] sm:$0xff] }
0x1953   :  { %13370 = vrot.lane.b32.xlu0 %v13369_v36, %s13826_s15 }
0x1955   :  { %v15787_v61 = vpop.f32.mrb[232].mxu1 }
0x1956   :  { %v15789_v19 = vpop.f32.mrb[233].mxu1 }
0x1957   :  { %13375 = vrot.lane.b32.xlu0 %v13374_v44, %s13826_s15  ;;  %v15792_v12 = vpop.f32.mrb[234].mxu1  ;;  %v6303_v44 = vld [vmem:[%s15048_s23 + $0x80] sm:$0xff] }
0x1958   :  { %v15794_v8 = vpop.f32.mrb[235].mxu1 }
0x195b   :  { %13390 = vrot.lane.b32.xlu0 %v13389_v62, %s13826_s15  ;;  %v6304_v62 = vld [vmem:[%s15048_s23 + $0x88] sm:$0xff] }
0x195d   :  { %v12710_v36 = vpop.f32.mrb[236].mxu1 }
0x195e   :  { %v8218_v7 = vpop.f32.mrb[237].mxu1 }
0x195f   :  { %13395 = vrot.lane.b32.xlu0 %v13394_v13, %s13826_s15  ;;  %v12711_v47 = vpop.f32.mrb[238].mxu1  ;;  %v6305_v13 = vld [vmem:[%s15048_s23 + $0x90] sm:$0xff] }
0x1960   :  { %v13409_v24 = vpack.i.bf16 %v12711_v47, %v12710_v36  ;;  %v8221_v23 = vpop.f32.mrb[239].mxu1  ;;  %v6308_v36 = vld [vmem:[%s15048_s23 + $0xa8] sm:$0xff]  ;;  %v6310_v47 = vld [vmem:[%s15048_s23 + $0xb8] sm:$0xff] }
0x1961   :  { %v13404_v21 = vpack.i.bf16 %v8221_v23, %v8218_v7  ;;  %v6309_v7 = vld [vmem:[%s15048_s23 + $0xb0] sm:$0xff]  ;;  %v8280_v23 = vld [vmem:[%s10537_s3 + $0x8] sm:$0xff] }
0x1962   :  { %13410 = vrot.lane.b32.xlu1 %v13409_v24, %s13826_s15  ;;  %v8279_v24 = vld [vmem:[%s10537_s3] sm:$0xff] }
0x1963   :  { %13405 = vrot.lane.b32.xlu0 %v13404_v21, %s13826_s15  ;;  %v8282_v21 = vld [vmem:[%s10537_s3 + $0x18] sm:$0xff]  ;;  %s13863_s15 = smov 27  }
0x1964   :  { %s15947_s7 = sld [smem:[%s16266_s0 + %s13863_s15]]  }
0x1966   :  { %6402 = vperm.xlu1 %13415, %v6304_v62  }
0x1967   :  { %6397 = vperm.xlu0 %13414, %v6303_v44  }
0x196a   :  { %6407 = vperm.xlu1 %13415, %v6305_v13  }
0x196b   :  { %6412 = vperm.xlu0 %13414, %v6306_v2  }
0x196e   :  { %6417 = vperm.xlu1 %13415, %v6307_v42  }
0x196f   :  { %6422 = vperm.xlu0 %13414, %v6308_v36  }
0x1972   :  { %6427 = vperm.xlu1 %13415, %v6309_v7  }
0x1973   :  { %6432 = vperm.xlu0 %13414, %v6310_v47  }
0x1976   :  { %8285 = vperm.xlu1 %13415, %v8279_v24  }
0x1977   :  { %8290 = vperm.xlu0 %13414, %v8280_v23  }
0x197a   :  { %8295 = vperm.xlu1 %13415, %v8281_v17  }
0x197b   :  { %8300 = vperm.xlu0 %13414, %v8282_v21  }
0x1995   :  { %v13326_v52 = vpop.permute.xlu1 %13325 }
0x1996   :  { %v13328_v62 = vunpack.i.h.bf16 %v13326_v52  ;;  %v13327_v44 = vunpack.i.l.bf16 %v13326_v52 }
0x1998   :  { %v7530_v13 = vsel %vm2447_vm4, %v15722_v33, %v13328_v62  ;;  %v7529_v2 = vsel %vm2447_vm4, %v15714_v35, %v13327_v44 }
0x1999   :  { %v8253_v42 = vpack.c.bf16 %v7530_v13, %v7529_v2  ;;  %v13341_v36 = vpop.permute.xlu1 %13340 }
0x199a   :  { %v13343_v7 = vunpack.i.h.bf16 %v13341_v36  ;;  %v13342_v47 = vunpack.i.l.bf16 %v13341_v36 }
0x199c   :  { %v7532_v24 = vsel %vm2447_vm4, %v15718_v53, %v13343_v7  ;;  %v7531_v23 = vsel %vm2447_vm4, %v15710_v41, %v13342_v47 }
0x199d   :  { %v8254_v17 = vpack.c.bf16 %v7532_v24, %v7531_v23  ;;  %v13346_v21 = vpop.permute.xlu1 %13345 }
0x199e   :  { %v13348_v51 = vunpack.i.h.bf16 %v13346_v21  ;;  %v13347_v52 = vunpack.i.l.bf16 %v13346_v21 }
0x19a0   :  { %v7620_v33 = vsel %vm2447_vm4, %v15724_v28, %v13348_v51  ;;  %v7619_v35 = vsel %vm2447_vm4, %v15716_v27, %v13347_v52 }
0x19a1   :  { %v8255_v62 = vpack.c.bf16 %v7620_v33, %v7619_v35  ;;  %v13361_v44 = vpop.permute.xlu1 %13360 }
0x19a2   :  { %v13363_v13 = vunpack.i.h.bf16 %v13361_v44  ;;  %v13362_v2 = vunpack.i.l.bf16 %v13361_v44 }
0x19a4   :  { %v7622_v53 = vsel %vm2447_vm4, %v15720_v26, %v13363_v13  ;;  %v7621_v41 = vsel %vm2447_vm4, %v15712_v16, %v13362_v2 }
0x19a5   :  { %v8256_v36 = vpack.c.bf16 %v7622_v53, %v7621_v41  ;;  %v13366_v7 = vpop.permute.xlu1 %13365 }
0x19a6   :  { %v13368_v47 = vunpack.i.h.bf16 %v13366_v7  ;;  %v13367_v24 = vunpack.i.l.bf16 %v13366_v7 }
0x19a8   :  { %v15837_v51 = vsel %vm2447_vm4, %v15740_v63, %v13368_v47  ;;  %v7709_v27 = vsel %vm2447_vm4, %v15731_v4, %v13367_v24 }
0x19a9   :  { %v8257_v28 = vpack.c.bf16 %v15837_v51, %v7709_v27  ;;  %v13381_v23 = vpop.permute.xlu1 %13380 }
0x19aa   :  { %v13383_v21 = vunpack.i.h.bf16 %v13381_v23  ;;  %v13382_v52 = vunpack.i.l.bf16 %v13381_v23 }
0x19ac   :  { %v15844_v26 = vsel %vm2447_vm4, %v15738_v59, %v13383_v21  ;;  %v15848_v16 = vsel %vm2447_vm4, %v15727_v55, %v13382_v52 }
0x19ad   :  { %v8258_v63 = vpack.c.bf16 %v15844_v26, %v15848_v16  ;;  %v13386_v33 = vpop.permute.xlu1 %13385 }
0x19ae   :  { %v13388_v35 = vunpack.i.h.bf16 %v13386_v33  ;;  %v13387_v44 = vunpack.i.l.bf16 %v13386_v33 }
0x19b0   :  { %v15854_v4 = vsel %vm2447_vm4, %v15742_v49, %v13388_v35  ;;  %v15858_v13 = vsel %vm2447_vm4, %v15733_v48, %v13387_v44 }
0x19b1   :  { %v8259_v59 = vpack.c.bf16 %v15854_v4, %v15858_v13  ;;  %v13401_v2 = vpop.permute.xlu1 %13400 }
0x19b2   :  { %v13403_v55 = vunpack.i.h.bf16 %v13401_v2  ;;  %v13402_v53 = vunpack.i.l.bf16 %v13401_v2 }
0x19b4   :  { %v15864_v41 = vsel %vm2447_vm4, %v15735_v6, %v13403_v55  ;;  %v15868_v7 = vsel %vm2447_vm4, %v15729_v60, %v13402_v53 }
0x19b5   :  { %v8260_v49 = vpack.c.bf16 %v15864_v41, %v15868_v7  ;;  %v13331_v47 = vpop.permute.xlu0 %13330 }
0x19b6   :  { %v13333_v48 = vunpack.i.h.bf16 %v13331_v47  ;;  %v13332_v24 = vunpack.i.l.bf16 %v13331_v47 }
0x19b8   :  { %v7889_v51 = vsel %vm2447_vm4, %v15751_v11, %v13332_v24  ;;  %v7890_v27 = vsel %vm2447_vm4, %v15760_v46, %v13333_v48 }
0x19b9   :  { %v13336_v23 = vpop.permute.xlu0 %13335  ;;  %v8261_v21 = vpack.c.bf16 %v7890_v27, %v7889_v51 }
0x19ba   :  { %v13338_v6 = vunpack.i.h.bf16 %v13336_v23  ;;  %v13337_v52 = vunpack.i.l.bf16 %v13336_v23 }
0x19bb   :  { %12122 = vmatprep.subr.bf16.mxu0 %v8261_v21 }
0x19bc   :  { %12123 = vmatpush3.bf16.msra.mxu0 %v8253_v42  ;;  %v7891_v60 = vsel %vm2447_vm4, %v15747_v57, %v13337_v52  ;;  %v7892_v26 = vsel %vm2447_vm4, %v15758_v18, %v13338_v6 }
0x19bd   :  { %v13351_v16 = vpop.permute.xlu0 %13350  ;;  %v8262_v33 = vpack.c.bf16 %v7892_v26, %v7891_v60 }
0x19be   :  { %v13353_v35 = vunpack.i.h.bf16 %v13351_v16  ;;  %v13352_v44 = vunpack.i.l.bf16 %v13351_v16 }
0x19bf   :  { %12124 = vmatprep.subr.bf16.mxu0 %v8262_v33 }
0x19c0   :  { %12125 = vmatpush3.bf16.msra.mxu0 %v8254_v17  ;;  %v7979_v11 = vsel %vm2447_vm4, %v15753_v50, %v13352_v44  ;;  %v7980_v46 = vsel %vm2447_vm4, %v15762_v15, %v13353_v35 }
0x19c1   :  { %v13356_v2 = vpop.permute.xlu0 %13355  ;;  %v8263_v42 = vpack.c.bf16 %v7980_v46, %v7979_v11  ;;  %v13684_v46 = vld [vmem:[%s15799_s30] ss:$12 sps:$4 sm:$0xff]  }
0x19c2   :  { %v13358_v55 = vunpack.i.h.bf16 %v13356_v2  ;;  %v13357_v53 = vunpack.i.l.bf16 %v13356_v2  ;;  %v13687_v2 = vld [vmem:[%s15799_s30 + $0x1c] ss:$12 sps:$4 sm:$0xff]  }
0x19c3   :  { %12126 = vmatprep.subr.bf16.mxu0 %v8263_v42 }
0x19c4   :  { %12127 = vmatpush3.bf16.msra.mxu0 %v8255_v62  ;;  %v7981_v57 = vsel %vm2447_vm4, %v15749_v54, %v13357_v53  ;;  %v7982_v18 = vsel %vm2447_vm4, %v15755_v31, %v13358_v55  ;;  %v16285_v55 = vmov 0.0  }
0x19c5   :  { %v13371_v47 = vpop.permute.xlu0 %13370  ;;  %v8264_v17 = vpack.c.bf16 %v7982_v18, %v7981_v57  ;;  %v16286_v57 = vmov 1  }
0x19c6   :  { %v13373_v48 = vunpack.i.h.bf16 %v13371_v47  ;;  %v13372_v24 = vunpack.i.l.bf16 %v13371_v47 }
0x19c7   :  { %12128 = vmatprep.subr.bf16.mxu0 %v8264_v17 }
0x19c8   :  { %12129 = vmatpush3.bf16.msra.mxu0 %v8256_v36  ;;  %v8069_v50 = vsel %vm2447_vm4, %v15771_v29, %v13372_v24  ;;  %v8070_v15 = vsel %vm2447_vm4, %v15780_v20, %v13373_v48 }
0x19c9   :  { %v13376_v51 = vpop.permute.xlu0 %13375  ;;  %v8265_v62 = vpack.c.bf16 %v8070_v15, %v8069_v50 }
0x19ca   :  { %v13378_v27 = vunpack.i.h.bf16 %v13376_v51  ;;  %v13377_v23 = vunpack.i.l.bf16 %v13376_v51 }
0x19cb   :  { %12130 = vmatprep.subr.bf16.mxu0 %v8265_v62 }
0x19cc   :  { %12131 = vmatpush3.bf16.msra.mxu0 %v8257_v28  ;;  %v8071_v54 = vsel %vm2447_vm4, %v15767_v58, %v13377_v23  ;;  %v8072_v31 = vsel %vm2447_vm4, %v15778_v10, %v13378_v27 }
0x19cd   :  { %v13391_v21 = vpop.permute.xlu0 %13390  ;;  %v8266_v36 = vpack.c.bf16 %v8072_v31, %v8071_v54 }
0x19ce   :  { %v13393_v6 = vunpack.i.h.bf16 %v13391_v21  ;;  %v13392_v52 = vunpack.i.l.bf16 %v13391_v21 }
0x19cf   :  { %12132 = vmatprep.subr.bf16.mxu0 %v8266_v36 }
0x19d0   :  { %12133 = vmatpush3.bf16.msra.mxu0 %v8258_v63  ;;  %v8159_v29 = vsel %vm2447_vm4, %v15773_v32, %v13392_v52  ;;  %v8160_v20 = vsel %vm2447_vm4, %v15782_v56, %v13393_v6 }
0x19d1   :  { %v13396_v60 = vpop.permute.xlu0 %13395  ;;  %v8267_v28 = vpack.c.bf16 %v8160_v20, %v8159_v29 }
0x19d2   :  { %v13398_v26 = vunpack.i.h.bf16 %v13396_v60  ;;  %v13397_v58 = vunpack.i.l.bf16 %v13396_v60 }
0x19d3   :  { %12134 = vmatprep.subr.bf16.mxu0 %v8267_v28 }
0x19d4   :  { %12135 = vmatpush3.bf16.msra.mxu0 %v8259_v59  ;;  %v13411_v10 = vpop.permute.xlu1 %13410  ;;  %v8161_v63 = vsel %vm2447_vm4, %v15769_v30, %v13397_v58  ;;  %v8162_v32 = vsel %vm2447_vm4, %v15775_v0, %v13398_v26 }
0x19d5   :  { %v13413_v16 = vunpack.i.h.bf16 %v13411_v10  ;;  %v13412_v56 = vunpack.i.l.bf16 %v13411_v10  ;;  %v13406_v33 = vpop.permute.xlu0 %13405  ;;  %v8268_v35 = vpack.c.bf16 %v8162_v32, %v8161_v63 }
0x19d6   :  { %v13408_v44 = vunpack.i.h.bf16 %v13406_v33  ;;  %v13407_v11 = vunpack.i.l.bf16 %v13406_v33 }
0x19d7   :  { %12136 = vmatprep.subr.bf16.mxu0 %v8268_v35  ;;  %v8251_v4 = vsel %vm2447_vm4, %v15787_v61, %v13412_v56  ;;  %v8252_v30 = vsel %vm2447_vm4, %v15792_v12, %v13413_v16  ;;  %v13690_v61 = vld [vmem:[%s15799_s30 + $0x18] ss:$12 sps:$4 sm:$0xff]   ;;  %v13691_v12 = vld [vmem:[%s15799_s30 + $0x20] ss:$12 sps:$4 sm:$0xff]  }
0x19d8   :  { %12137 = vmatpush3.bf16.msra.mxu0 %v8260_v49  ;;  %v8249_v0 = vsel %vm2447_vm4, %v15789_v19, %v13407_v11  ;;  %v8250_v13 = vsel %vm2447_vm4, %v15794_v8, %v13408_v44  ;;  %v8270_v59 = vpack.c.bf16 %v8252_v30, %v8251_v4 }
0x19d9   :  { %v8269_v42 = vpack.c.bf16 %v8250_v13, %v8249_v0 }
0x19db   :  { %8372 = vmatmul.mubr.bf16.vlgmr.msra.gmra.mrb[164].mxu0 %v13684_v46  ;;  %12712 = vmatprep.subr.bf16.mxu1 %v8269_v42 }
0x19dc   :  { %12713 = vmatpush3.bf16.msra.mxu1 %v8269_v42  ;;  %8379 = vmatprep.mubr.bf16.mxu0 %v13687_v2 }
0x19dd   :  { %12714 = vmatprep.subr.bf16.mxu1 %v8270_v59 }
0x19e0   :  { %12715 = vmatpush3.bf16.msra.mxu1 %v8270_v59 }
0x19e1   :  { %12720 = vmatprep.subr.bf16.mxu1 %v16285_v55 }
0x19e3   :  { %8380 = vmatmul.mubr.bf16.gmra.mrb[168].mxu0 %v13690_v61  ;;  %12717 = vmatmul.mubr.msk.bf16.vlgmr.msra.gmra.mrb[240].mxu1 %vm4254_vm10, %v13691_v12 }
0x19e4   :  { %12724 = vmatprep.mubr.msk.bf16.mxu1 %vm13840_vm15, %v16285_v55 }
0x19e5   :  { %v6403_v8 = vpop.permute.xlu1 %6402 }
0x19e6   :  { %v6669_v19 = vadd.f32 %v15592_v3, %v6403_v8  ;;  %v6398_v41 = vpop.permute.xlu0 %6397 }
0x19e7   :  { %v6666_v7 = vadd.f32 %v15587_v5, %v6398_v41 }
0x19e8   :  { %8472 = vperm.xlu0 %13414, %v6669_v19  }
0x19e9   :  { %v6408_v49 = vpop.permute.xlu1 %6407  ;;  %8467 = vperm.xlu1 %13415, %v6666_v7  }
0x19ea   :  { %v6674_v47 = vadd.f32 %v15585_v25, %v6408_v49  ;;  %v6413_v17 = vpop.permute.xlu0 %6412 }
0x19eb   :  { %v6677_v5 = vadd.f32 %v15590_v14, %v6413_v17 }
0x19ed   :  { %v6418_v53 = vpop.permute.xlu1 %6417  ;;  %13416 = vset.pattern.permute.xlu1 %v16286_v57 }
0x19ee   :  { %v6682_v18 = vadd.f32 %v15596_v43, %v6418_v53  ;;  %8486 = vperm.xlu1 %13416, %v6666_v7   ;;  %v6423_v3 = vpop.permute.xlu0 %6422 }
0x19ef   :  { %v6685_v48 = vadd.f32 %v15600_v37, %v6423_v3 }
0x19f0   :  { %8507 = vperm.xlu0 %13414, %v6682_v18  }
0x19f1   :  { %v6428_v43 = vpop.permute.xlu1 %6427 }
0x19f2   :  { %13417 = vset.pattern.permute.xlu1 %v16281_v34  ;;  %v6690_v25 = vadd.f32 %v15594_v45, %v6428_v43  ;;  %v6433_v14 = vpop.permute.xlu0 %6432 }
0x19f3   :  { %8477 = vperm.xlu1 %13417, %v6674_v47   ;;  %v6693_v37 = vadd.f32 %v15598_v22, %v6433_v14 }
0x19f4   :  { %13419 = vset.pattern.permute.xlu0 %v16286_v57 }
0x19f5   :  { %8490 = vperm.xlu0 %13419, %v6669_v19   ;;  %v8286_v45 = vpop.permute.xlu1 %8285 }
0x19f6   :  { %v8291_v62 = vpop.permute.xlu0 %8290 }
0x19f7   :  { %8482 = vperm.xlu1 %13417, %v6677_v5  }
0x19f9   :  { %8494 = vperm.xlu0 %13419, %v6674_v47   ;;  %v8296_v24 = vpop.permute.xlu1 %8295 }
0x19fa   :  { %v8301_v22 = vpop.permute.xlu0 %8300 }
0x19fb   :  { %13418 = vset.pattern.permute.xlu1 %v16286_v57 }
0x19fc   :  { %8498 = vperm.xlu1 %13418, %v6677_v5  }
0x19fd   :  { %8530 = vperm.xlu0 %13419, %v6685_v48  }
0x1a00   :  { %13420 = vset.pattern.permute.xlu1 %v16281_v34 }
0x1a01   :  { %8534 = vperm.xlu0 %13419, %v6690_v25   ;;  %8512 = vperm.xlu1 %13420, %v6685_v48  }
0x1a05   :  { %13421 = vset.pattern.permute.xlu1 %v16286_v57  ;;  %13425 = vset.pattern.permute.xlu0 %v16281_v34 }
0x1a06   :  { %8526 = vperm.xlu1 %13421, %v6682_v18  }
0x1a0a   :  { %13422 = vset.pattern.permute.xlu1 %v16281_v34 }
0x1a0b   :  { %8517 = vperm.xlu1 %13422, %v6690_v25  }
0x1a0f   :  { %8522 = vperm.xlu1 %13422, %v6693_v37  }
0x1a13   :  { %13423 = vset.pattern.permute.xlu1 %v16286_v57 }
0x1a14   :  { %8538 = vperm.xlu1 %13423, %v6693_v37  }
0x1a18   :  { %13424 = vset.pattern.permute.xlu1 %v16281_v34 }
0x1a67   :  { %v8473_v54 = vpop.permute.xlu0 %8472 }
0x1a68   :  { %v8468_v50 = vpop.permute.xlu1 %8467 }
0x1a6d   :  { %v8487_v15 = vpop.permute.xlu1 %8486 }
0x1a6e   :  { %v8501_v42 = vsel %vm2447_vm4, %v8468_v50, %v8487_v15 }
0x1a6f   :  { %v8508_v31 = vpop.permute.xlu0 %8507  ;;  %v8545_v53 = vadd.f32 1.0, %v8501_v42  ;;  %v13695_v42 = vld [vmem:[%s15947_s7 + $0x18] sm:$0xff]  }
0x1a72   :  { %v8478_v51 = vpop.permute.xlu1 %8477 }
0x1a74   :  { %v8491_v28 = vpop.permute.xlu0 %8490 }
0x1a75   :  { %v8502_v12 = vsel %vm2447_vm4, %v8473_v54, %v8491_v28 }
0x1a76   :  { %v8483_v27 = vpop.permute.xlu1 %8482  ;;  %v8546_v17 = vadd.f32 1.0, %v8502_v12  ;;  %v13697_v12 = vld [vmem:[%s15947_s7 + $0x28] sm:$0xff]  }
0x1a78   :  { %v8495_v30 = vpop.permute.xlu0 %8494 }
0x1a7b   :  { %v8499_v23 = vpop.permute.xlu1 %8498 }
0x1a7c   :  { %v8531_v48 = vpop.permute.xlu0 %8530 }
0x1a80   :  { %v15949_v21 = vpop.permute.xlu1 %8512 }
0x1a85   :  { %v8527_v26 = vpop.permute.xlu1 %8526 }
0x1a86   :  { %v8541_v54 = vsel %vm2447_vm4, %v8508_v31, %v8527_v26 }
0x1a8a   :  { %v8518_v0 = vpop.permute.xlu1 %8517 }
0x1a8e   :  { %v8523_v43 = vpop.permute.xlu1 %8522 }
0x1a93   :  { %v8539_v28 = vpop.permute.xlu1 %8538 }
0x1aae   :  { %v12138_v36 = vpop.f32.mrb[164].mxu0 }
0x1aaf   :  { %v12139_v6 = vpop.f32.mrb[165].mxu0 }
0x1ab0   :  { %v12140_v52 = vadd.f32 %v12139_v6, %v12138_v36  ;;  %v12141_v29 = vpop.f32.mrb[166].mxu0 }
0x1ab1   :  { %v12142_v20 = vpop.f32.mrb[167].mxu0 }
0x1ab2   :  { %v12143_v60 = vadd.f32 %v12142_v20, %v12141_v29  ;;  %v8374_v63 = vadd.f32 %v12140_v52, %v8286_v45  ;;  %v8503_v45 = vsel %vm2447_vm4, %v8478_v51, %v8495_v30 }
0x1ab3   :  { %v8547_v52 = vadd.f32 1.0, %v8503_v45 }
0x1ab4   :  { %v8377_v46 = vadd.f32 %v12143_v60, %v8291_v62  ;;  %v8535_v60 = vpop.permute.xlu0 %8534 }
0x1ab5   :  { %v8543_v31 = vsel %vm2447_vm4, %v8518_v0, %v8535_v60 }
0x1ab6   :  { %v12144_v58 = vpop.f32.mrb[168].mxu0  ;;  %v12718_v10 = vpop.f32.mrb[240].mxu1 }
0x1ab7   :  { %v12145_v32 = vpop.f32.mrb[169].mxu0  ;;  %v8422_v16 = vpop.f32.mrb[241].mxu1 }
0x1ab8   :  { %v12146_v56 = vadd.f32 %v12145_v32, %v12144_v58  ;;  %v8423_v33 = vadd.f32 %v8422_v16, %v8374_v63  ;;  %v12147_v35 = vpop.f32.mrb[170].mxu0  ;;  %v12719_v44 = vpop.f32.mrb[242].mxu1  ;;  %v8544_v16 = vsel %vm2447_vm4, %v8523_v43, %v8539_v28 }
0x1ab9   :  { %v12148_v11 = vpop.f32.mrb[171].mxu0  ;;  %v8425_v4 = vpop.f32.mrb[243].mxu1 }
0x1aba   :  { %v8382_v13 = vadd.f32 %v12146_v56, %v8296_v24  ;;  %vm8437_vm11 = vcmp.ge.f32.partialorder %v8423_v33, 0.0  ;;  %v8441_v59 = vmul.f32 0.2, %v8423_v33  ;;  %v12149_v2 = vadd.f32 %v12148_v11, %v12147_v35 }
0x1abb   :  { %v8426_v61 = vadd.f32 %v8425_v4, %v8377_v46 }
0x1abc   :  { %v8431_v8 = vadd.f32 %v12718_v10, %v8382_v13  ;;  %v8445_v19 = vsel %vm8437_vm11, %v8423_v33, %v8441_v59  ;;  %v8385_v41 = vadd.f32 %v12149_v2, %v8301_v22  ;;  %v13692_v13 = vld [vmem:[%s15947_s7] sm:$0xff]   ;;  %v13693_v59 = vld [vmem:[%s15947_s7 + $0x8] sm:$0xff]   ;;  %v13694_v2 = vld [vmem:[%s15947_s7 + $0x10] sm:$0xff]  }
0x1abd   :  { %v8449_v7 = vadd.f32 %v8445_v19, %v14511_v39  ;;  %vm8438_vm1 = vcmp.ge.f32.partialorder %v8426_v61, 0.0  ;;  %v8442_v49 = vmul.f32 0.2, %v8426_v61  ;;  %v8504_v39 = vsel %vm2447_vm4, %v8483_v27, %v8499_v23  ;;  %v13699_v19 = vld [vmem:[%s15947_s7 + $0x38] sm:$0xff]  }
0x1abe   :  { %vm8439_vm2 = vcmp.ge.f32.partialorder %v8431_v8, 0.0  ;;  %v8443_v18 = vmul.f32 0.2, %v8431_v8  ;;  %v8434_v47 = vadd.f32 %v12719_v44, %v8385_v41  ;;  %v8548_v23 = vadd.f32 1.0, %v8504_v39  ;;  %v13700_v41 = vld [vmem:[%s15947_s7 + $0x40] sm:$0xff]  }
0x1abf   :  { %vm8453_vm3 = vcmp.ge.f32.partialorder %v8449_v7, 0.0  ;;  %v8457_v5 = vmul.f32 0.2, %v8449_v7  ;;  %v8446_v3 = vsel %vm8438_vm1, %v8426_v61, %v8442_v49  ;;  %v13696_v61 = vld [vmem:[%s15947_s7 + $0x20] sm:$0xff]  }
0x1ac0   :  { %v8447_v25 = vsel %vm8439_vm2, %v8431_v8, %v8443_v18  ;;  %vm8440_vm5 = vcmp.ge.f32.partialorder %v8434_v47, 0.0  ;;  %v8444_v14 = vmul.f32 0.2, %v8434_v47  ;;  %v8450_v37 = vadd.f32 %v8446_v3, %v14513_v40  ;;  %v13698_v8 = vld [vmem:[%s15947_s7 + $0x30] sm:$0xff]   ;;  %v16009_v18 = vld [vmem:[%s16005_s11] sm:$0xff]  }
0x1ac1   :  { %v8451_v24 = vadd.f32 %v8447_v25, %v14523_v38  ;;  %v8461_v50 = vsel %vm8453_vm3, %v8449_v7, %v8457_v5  ;;  %v8542_v38 = vsel %vm2447_vm4, %v15949_v21, %v8531_v48  ;;  %v13701_v7 = vld [vmem:[%s16005_s11 + $0x8] sm:$0xff]  }
0x1ac2   :  { %v8549_v15 = vmul.f32 %v8545_v53, %v8461_v50  ;;  %v8448_v62 = vsel %vm8440_vm5, %v8434_v47, %v8444_v14  ;;  %vm8454_vm6 = vcmp.ge.f32.partialorder %v8450_v37, 0.0  ;;  %v8458_v22 = vmul.f32 0.2, %v8450_v37  ;;  %12760 = vmatprep.subr.bf16.mxu0 %v13701_v7 }
0x1ac3   :  { %vm8455_vm7 = vcmp.ge.f32.partialorder %v8451_v24, 0.0  ;;  %v8459_v36 = vmul.f32 0.2, %v8451_v24  ;;  %v8452_v6 = vadd.f32 %v8448_v62, %v14525_v1  ;;  %12761 = vmatpush3.bf16.msra.mxu0 %v13701_v7  ;;  %v13707_v7 = vld [vmem:[%s16005_s11 + $0x30] sm:$0xff]  }
0x1ac4   :  { %v8462_v29 = vsel %vm8454_vm6, %v8450_v37, %v8458_v22  ;;  %v8553_v40 = vadd.f32 %v8549_v15, %v8541_v54  ;;  %12766 = vmatprep.subr.bf16.mxu0 %v16009_v18 }
0x1ac5   :  { %v8463_v20 = vsel %vm8455_vm7, %v8451_v24, %v8459_v36  ;;  %vm8456_vm8 = vcmp.ge.f32.partialorder %v8452_v6, 0.0  ;;  %v8460_v51 = vmul.f32 0.2, %v8452_v6  ;;  %v8550_v27 = vmul.f32 %v8546_v17, %v8462_v29 }
0x1ac6   :  { %v8551_v58 = vmul.f32 %v8547_v52, %v8463_v20  ;;  %v8561_v63 = vmul.f32 0.2, %v8553_v40  ;;  %vm8557_vm12 = vcmp.ge.f32.partialorder %v8553_v40, 0.0 }
0x1ac7   :  { %v8464_v26 = vsel %vm8456_vm8, %v8452_v6, %v8460_v51  ;;  %v8554_v10 = vadd.f32 %v8550_v27, %v8542_v38 }
0x1ac8   :  { %v8552_v1 = vmul.f32 %v8548_v23, %v8464_v26  ;;  %v8555_v32 = vadd.f32 %v8551_v58, %v8543_v31  ;;  %v8565_v44 = vsel %vm8557_vm12, %v8553_v40, %v8561_v63 }
0x1ac9   :  { %vm8558_vm13 = vcmp.ge.f32.partialorder %v8554_v10, 0.0  ;;  %v8562_v56 = vmul.f32 0.2, %v8554_v10 }
0x1aca   :  { %v8556_v33 = vadd.f32 %v8552_v1, %v8544_v16  ;;  %v8563_v35 = vmul.f32 0.2, %v8555_v32  ;;  %vm8559_vm14 = vcmp.ge.f32.partialorder %v8555_v32, 0.0 }
0x1acb   :  { %v8566_v21 = vsel %vm8558_vm13, %v8554_v10, %v8562_v56 }
0x1acc   :  { %v8587_v11 = vpack.c.bf16 %v8566_v21, %v8565_v44  ;;  %vm8560_vm11 = vcmp.ge.f32.partialorder %v8556_v33, 0.0  ;;  %v8564_v46 = vmul.f32 0.2, %v8556_v33  ;;  %v8567_v4 = vsel %vm8559_vm14, %v8555_v32, %v8563_v35 }
0x1ace   :  { %12721 = vmatpush3.bf16.msra.mxu1 %v8587_v11  ;;  %v8568_v30 = vsel %vm8560_vm11, %v8556_v33, %v8564_v46  ;;  %v6311_v33 = vld [vmem:[%s15048_s23 + $0xc0] sm:$0xff]  ;;  %v6313_v11 = vld [vmem:[%s15048_s23 + $0xd0] sm:$0xff] }
0x1acf   :  { %12722 = vmatprep.subr.bf16.mxu1 %v16285_v55  ;;  %v8588_v0 = vpack.c.bf16 %v8568_v30, %v8567_v4  ;;  %v6314_v30 = vld [vmem:[%s15048_s23 + $0xd8] sm:$0xff] }
0x1ad2   :  { %12723 = vmatpush3.bf16.msra.mxu1 %v8588_v0  ;;  %v6312_v0 = vld [vmem:[%s15048_s23 + $0xc8] sm:$0xff] }
0x1ad3   :  { %12814 = vmatprep.subr.bf16.mxu1 %v16285_v55 }
0x1ad5   :  { %12725 = vmatmul.mubr.msk.bf16.vlgmr.msra.gmra.mrb[244].mxu1 %vm4254_vm10, %v13692_v13  ;;  %v9416_v13 = vld [vmem:[%s16041_s12 + $0x8] sm:$0xff] }
0x1ad6   :  { %12728 = vmatprep.mubr.msk.bf16.mxu1 %vm13840_vm15, %v16285_v55 }
0x1add   :  { %12729 = vmatmul.mubr.msk.bf16.gmra.mrb[248].mxu1 %vm4254_vm10, %v13693_v59  ;;  %v13703_v59 = vld [vmem:[%s16005_s11 + $0x10] sm:$0xff]  }
0x1ade   :  { %12732 = vmatprep.mubr.msk.bf16.mxu1 %vm13840_vm15, %v16285_v55 }
0x1ae5   :  { %12733 = vmatmul.mubr.msk.bf16.gmra.mrb[252].mxu1 %vm4254_vm10, %v13694_v2 }
0x1ae6   :  { %12736 = vmatprep.mubr.msk.bf16.mxu1 %vm13840_vm15, %v16285_v55 }
0x1aed   :  { %12737 = vmatmul.mubr.msk.bf16.gmra.mrb[0].mxu1 %vm4254_vm10, %v13695_v42  ;;  %v13704_v42 = vld [vmem:[%s16005_s11 + $0x18] sm:$0xff]  }
0x1aee   :  { %12740 = vmatprep.mubr.msk.bf16.mxu1 %vm13840_vm15, %v16285_v55 }
0x1af5   :  { %12741 = vmatmul.mubr.msk.bf16.gmra.mrb[4].mxu1 %vm4254_vm10, %v13696_v61 }
0x1af6   :  { %12744 = vmatprep.mubr.msk.bf16.mxu1 %vm13840_vm15, %v16285_v55 }
0x1afd   :  { %12745 = vmatmul.mubr.msk.bf16.gmra.mrb[8].mxu1 %vm4254_vm10, %v13697_v12  ;;  %v13705_v12 = vld [vmem:[%s16005_s11 + $0x20] sm:$0xff]  }
0x1afe   :  { %12748 = vmatprep.mubr.msk.bf16.mxu1 %vm13840_vm15, %v16285_v55 }
0x1b05   :  { %12749 = vmatmul.mubr.msk.bf16.gmra.mrb[12].mxu1 %vm4254_vm10, %v13698_v8 }
0x1b06   :  { %12752 = vmatprep.mubr.msk.bf16.mxu1 %vm13840_vm15, %v16285_v55 }
0x1b0d   :  { %12753 = vmatmul.mubr.msk.bf16.gmra.mrb[16].mxu1 %vm4254_vm10, %v13699_v19  ;;  %v13706_v19 = vld [vmem:[%s16005_s11 + $0x28] sm:$0xff]  }
0x1b0e   :  { %12756 = vmatprep.mubr.msk.bf16.mxu1 %vm13840_vm15, %v16285_v55 }
0x1b15   :  { %12757 = vmatmul.mubr.msk.bf16.gmra.mrb[20].mxu1 %vm4254_vm10, %v13700_v41 }
0x1b16   :  { %12816 = vmatprep.mubr.msk.bf16.mxu1 %vm13840_vm15, %v16285_v55 }
0x1ba8   :  { %v8695_v49 = vpop.f32.mrb[244].mxu1 }
0x1ba9   :  { %v12726_v53 = vpop.f32.mrb[245].mxu1 }
0x1baa   :  { %v8698_v47 = vpop.f32.mrb[246].mxu1 }
0x1bab   :  { %v16011_v17 = vpack.c.bf16 %v8698_v47, %v8695_v49  ;;  %v12727_v5 = vpop.f32.mrb[247].mxu1  ;;  %v13708_v47 = vld [vmem:[%s16005_s11 + $0x38] sm:$0xff]  }
0x1bad   :  { %8776 = vrot.lane.b32.xlu1 %v16011_v17, %s13828_s17 }
0x1bb0   :  { %v8703_v3 = vpop.f32.mrb[248].mxu1 }
0x1bb1   :  { %v12730_v48 = vpop.f32.mrb[249].mxu1 }
0x1bb2   :  { %v8706_v43 = vpop.f32.mrb[250].mxu1 }
0x1bb3   :  { %v8767_v25 = vpack.c.bf16 %v8706_v43, %v8703_v3  ;;  %v12731_v14 = vpop.f32.mrb[251].mxu1  ;;  %v13709_v43 = vld [vmem:[%s16005_s11 + $0x40] sm:$0xff]  }
0x1bb4   :  { %v16287_v14 = vld [vmem:[#allocation6_spill] sm:$0xff] }
0x1bb5   :  { %8781 = vrot.lane.b32.xlu0 %v8767_v25, %s13828_s17  ;;  %12762 = vmatprep.mubr.msk.bf16.mxu0 %vm2447_vm4, %v8767_v25 }
0x1bb8   :  { %v8711_v37 = vpop.f32.mrb[252].mxu1 }
0x1bb9   :  { %v12734_v45 = vpop.f32.mrb[253].mxu1 }
0x1bba   :  { %v8714_v39 = vpop.f32.mrb[254].mxu1  ;;  %v16288_v45 = vld [vmem:[#allocation4_spill] sm:$0xff] }
0x1bbb   :  { %v8768_v24 = vpack.c.bf16 %v8714_v39, %v8711_v37  ;;  %v12735_v50 = vpop.f32.mrb[255].mxu1 }
0x1bbd   :  { %8909 = vrot.lane.b32.xlu0 %v8768_v24, %s13828_s17 }
0x1bc0   :  { %v8719_v15 = vpop.f32.mrb[0].mxu1 }
0x1bc1   :  { %v12738_v62 = vpop.f32.mrb[1].mxu1 }
0x1bc2   :  { %v8722_v22 = vpop.f32.mrb[2].mxu1 }
0x1bc3   :  { %v8769_v54 = vpack.c.bf16 %v8722_v22, %v8719_v15  ;;  %v12739_v36 = vpop.f32.mrb[3].mxu1 }
0x1bc4   :  { %v16289_v36 = vld [vmem:[#allocation5_spill] sm:$0xff] }
0x1bc5   :  { %8980 = vrot.lane.b32.xlu1 %v8769_v54, %s13828_s17 }
0x1bc8   :  { %v8727_v6 = vpop.f32.mrb[4].mxu1 }
0x1bc9   :  { %v12742_v52 = vpop.f32.mrb[5].mxu1 }
0x1bca   :  { %v8730_v29 = vpop.f32.mrb[6].mxu1 }
0x1bcb   :  { %v8770_v40 = vpack.c.bf16 %v8730_v29, %v8727_v6  ;;  %v12743_v20 = vpop.f32.mrb[7].mxu1 }
0x1bcd   :  { %9051 = vrot.lane.b32.xlu0 %v8770_v40, %s13828_s17 }
0x1bd0   :  { %v8735_v51 = vpop.f32.mrb[8].mxu1 }
0x1bd1   :  { %v12746_v27 = vpop.f32.mrb[9].mxu1 }
0x1bd2   :  { %v8738_v23 = vpop.f32.mrb[10].mxu1 }
0x1bd3   :  { %v8771_v38 = vpack.c.bf16 %v8738_v23, %v8735_v51  ;;  %v12747_v60 = vpop.f32.mrb[11].mxu1 }
0x1bd5   :  { %9122 = vrot.lane.b32.xlu1 %v8771_v38, %s13828_s17 }
0x1bd8   :  { %v8743_v28 = vpop.f32.mrb[12].mxu1 }
0x1bd9   :  { %v12750_v58 = vpop.f32.mrb[13].mxu1 }
0x1bda   :  { %v8746_v31 = vpop.f32.mrb[14].mxu1 }
0x1bdb   :  { %v16022_v26 = vpack.c.bf16 %v8746_v31, %v8743_v28  ;;  %v12751_v10 = vpop.f32.mrb[15].mxu1 }
0x1bdd   :  { %9193 = vrot.lane.b32.xlu0 %v16022_v26, %s13828_s17 }
0x1be0   :  { %v8751_v63 = vpop.f32.mrb[16].mxu1 }
0x1be1   :  { %v12754_v1 = vpop.f32.mrb[17].mxu1 }
0x1be2   :  { %v8754_v32 = vpop.f32.mrb[18].mxu1  ;;  %v16290_v1 = vld [vmem:[#allocation2_spill] sm:$0xff] }
0x1be3   :  { %v16026_v16 = vpack.c.bf16 %v8754_v32, %v8751_v63  ;;  %v12755_v56 = vpop.f32.mrb[19].mxu1 }
0x1be5   :  { %9264 = vrot.lane.b32.xlu1 %v16026_v16, %s13828_s17 }
0x1be8   :  { %v8759_v35 = vpop.f32.mrb[20].mxu1 }
0x1be9   :  { %6437 = vperm.xlu1 %13424, %v6311_v33   ;;  %v12758_v44 = vpop.f32.mrb[21].mxu1 }
0x1bea   :  { %v8762_v21 = vpop.f32.mrb[22].mxu1 }
0x1beb   :  { %v16032_v46 = vpack.c.bf16 %v8762_v21, %v8759_v35  ;;  %v12759_v4 = vpop.f32.mrb[23].mxu1 }
0x1bed   :  { %6447 = vperm.xlu1 %13424, %v6313_v11   ;;  %9335 = vrot.lane.b32.xlu0 %v16032_v46, %s13828_s17  ;;  %s13866_s17 = smov 28  }
0x1bee   :  { %s16090_s24 = sld [smem:[%s16266_s0 + %s13866_s17]]  }
0x1bf1   :  { %6452 = vperm.xlu1 %13424, %v6314_v30   ;;  %6442 = vperm.xlu0 %13425, %v6312_v0  }
0x1bf5   :  { %13426 = vset.pattern.permute.xlu0 %v16286_v57  ;;  %9424 = vperm.xlu1 %13424, %v9416_v13  }
0x1c1f   :  { %v8777_v61 = vpop.permute.xlu1 %8776 }
0x1c27   :  { %v8782_v2 = vpop.permute.xlu0 %8781 }
0x1c28   :  { %12763 = vmatmul.mubr.msk.bf16.vlgmr.msra.gmra.mrb[172].mxu0 %vm2447_vm4, %v8782_v2 }
0x1c29   :  { %12768 = vmatprep.mubr.msk.bf16.mxu0 %vm2447_vm4, %v16011_v17  ;;  %12767 = vmatpush3.bf16.msra.mxu0 %v16009_v18 }
0x1c2a   :  { %12772 = vmatprep.subr.bf16.mxu0 %v13703_v59 }
0x1c2f   :  { %v8910_v8 = vpop.permute.xlu0 %8909 }
0x1c34   :  { %12769 = vmatmul.mubr.msk.bf16.vlgmr.msra.gmra.mrb[172].mxu0 %vm2447_vm4, %v8777_v61 }
0x1c35   :  { %12774 = vmatprep.mubr.msk.bf16.mxu0 %vm2447_vm4, %v8768_v24  ;;  %12773 = vmatpush3.bf16.msra.mxu0 %v13703_v59  ;;  %v9415_v24 = vld [vmem:[%s16041_s12] sm:$0xff] }
0x1c36   :  { %12778 = vmatprep.subr.bf16.mxu0 %v13704_v42 }
0x1c37   :  { %v8981_v41 = vpop.permute.xlu1 %8980 }
0x1c3f   :  { %v9052_v49 = vpop.permute.xlu0 %9051 }
0x1c40   :  { %12775 = vmatmul.mubr.msk.bf16.vlgmr.msra.gmra.mrb[172].mxu0 %vm2447_vm4, %v8910_v8 }
0x1c41   :  { %12780 = vmatprep.mubr.msk.bf16.mxu0 %vm2447_vm4, %v8769_v54  ;;  %12779 = vmatpush3.bf16.msra.mxu0 %v13704_v42 }
0x1c42   :  { %12784 = vmatprep.subr.bf16.mxu0 %v13705_v12 }
0x1c47   :  { %v9123_v53 = vpop.permute.xlu1 %9122 }
0x1c4c   :  { %12781 = vmatmul.mubr.msk.bf16.vlgmr.msra.gmra.mrb[172].mxu0 %vm2447_vm4, %v8981_v41 }
0x1c4d   :  { %12786 = vmatprep.mubr.msk.bf16.mxu0 %vm2447_vm4, %v8770_v40  ;;  %12785 = vmatpush3.bf16.msra.mxu0 %v13705_v12 }
0x1c4e   :  { %12790 = vmatprep.subr.bf16.mxu0 %v13706_v19 }
0x1c4f   :  { %v9194_v17 = vpop.permute.xlu0 %9193 }
0x1c57   :  { %v9265_v18 = vpop.permute.xlu1 %9264 }
0x1c58   :  { %12787 = vmatmul.mubr.msk.bf16.vlgmr.msra.gmra.mrb[172].mxu0 %vm2447_vm4, %v9052_v49 }
0x1c59   :  { %12792 = vmatprep.mubr.msk.bf16.mxu0 %vm2447_vm4, %v8771_v38  ;;  %12791 = vmatpush3.bf16.msra.mxu0 %v13706_v19 }
0x1c5a   :  { %12796 = vmatprep.subr.bf16.mxu0 %v13707_v7 }
0x1c5f   :  { %v9336_v48 = vpop.permute.xlu0 %9335 }
0x1c64   :  { %12793 = vmatmul.mubr.msk.bf16.vlgmr.msra.gmra.mrb[172].mxu0 %vm2447_vm4, %v9123_v53 }
0x1c65   :  { %12798 = vmatprep.mubr.msk.bf16.mxu0 %vm2447_vm4, %v16022_v26  ;;  %12797 = vmatpush3.bf16.msra.mxu0 %v13707_v7 }
0x1c66   :  { %12802 = vmatprep.subr.bf16.mxu0 %v13708_v47 }
0x1c68   :  { %v6438_v5 = vpop.permute.xlu1 %6437 }
0x1c69   :  { %v6698_v3 = vadd.f32 %v15604_v9, %v6438_v5  ;;  %v13711_v5 = vld [vmem:[%s16090_s24 + $0x8] sm:$0xff]  }
0x1c6b   :  { %9454 = vperm.xlu0 %13426, %v6698_v3  }
0x1c6c   :  { %v6448_v9 = vpop.permute.xlu1 %6447 }
0x1c6d   :  { %v6706_v39 = vadd.f32 %v16288_v45, %v6448_v9  ;;  %v13724_v9 = vld [vmem:[%s16113_s9 + $0x74] ss:$8 sps:$4 sm:$0xff]   ;;  %v13722_v45 = vld [vmem:[%s16113_s9 + $0x70] ss:$8 sps:$4 sm:$0xff]  }
0x1c6f   :  { %13427 = vset.pattern.permute.xlu0 %v16281_v34 }
0x1c70   :  { %12799 = vmatmul.mubr.msk.bf16.vlgmr.msra.gmra.mrb[172].mxu0 %vm2447_vm4, %v9194_v17  ;;  %v6443_v25 = vpop.permute.xlu0 %6442  ;;  %9419 = vperm.xlu0 %13427, %v9415_v24   ;;  %v6453_v54 = vpop.permute.xlu1 %6452  ;;  %v13710_v17 = vld [vmem:[%s16090_s24] sm:$0xff]  }
0x1c71   :  { %v6701_v37 = vadd.f32 %v16287_v14, %v6443_v25  ;;  %12804 = vmatprep.mubr.msk.bf16.mxu0 %vm2447_vm4, %v16026_v16  ;;  %12803 = vmatpush3.bf16.msra.mxu0 %v13708_v47  ;;  %v6709_v6 = vadd.f32 %v16289_v36, %v6453_v54  ;;  %v16291_v16 = vld [vmem:[#allocation3_spill] sm:$0xff]  ;;  %v13716_v25 = vld [vmem:[%s16113_s9 + $0x50] ss:$8 sps:$4 sm:$0xff]  }
0x1c72   :  { %12808 = vmatprep.subr.bf16.mxu0 %v13709_v43  ;;  %v13721_v14 = vld [vmem:[%s16113_s9 + $0x64] ss:$8 sps:$4 sm:$0xff]  }
0x1c73   :  { %9450 = vperm.xlu1 %13424, %v6701_v37  }
0x1c77   :  { %13428 = vset.pattern.permute.xlu1 %v16286_v57 }
0x1c78   :  { %9458 = vperm.xlu1 %13428, %v6701_v37   ;;  %v13719_v37 = vld [vmem:[%s16113_s9 + $0x60] ss:$8 sps:$4 sm:$0xff]  }
0x1c7c   :  { %12805 = vmatmul.mubr.msk.bf16.vlgmr.msra.gmra.mrb[172].mxu0 %vm2447_vm4, %v9265_v18  ;;  %13429 = vset.pattern.permute.xlu1 %v16281_v34 }
0x1c7d   :  { %9465 = vperm.xlu1 %13429, %v6706_v39   ;;  %12810 = vmatprep.mubr.msk.bf16.mxu0 %vm2447_vm4, %v16032_v46 }
0x1c7e   :  { %12809 = vmatpush3.bf16.msra.mxu0 %v13709_v43  ;;  %v13718_v43 = vld [vmem:[%s16113_s9 + $0x54] ss:$8 sps:$4 sm:$0xff]  }
0x1c81   :  { %13430 = vset.pattern.permute.xlu1 %v16286_v57  ;;  %v9425_v57 = vpop.permute.xlu1 %9424 }
0x1c88   :  { %12811 = vmatmul.mubr.msk.bf16.vlgmr.msra.gmra.mrb[172].mxu0 %vm2447_vm4, %v9336_v48  ;;  %v13713_v48 = vld [vmem:[%s16113_s9 + $0x40] ss:$8 sps:$4 sm:$0xff]  }
0x1c89   :  { %9686 = vmatprep.mubr.bf16.mxu0 %v16281_v34 }
0x1cea   :  { %v9455_v29 = vpop.permute.xlu0 %9454 }
0x1cef   :  { %v9420_v20 = vpop.permute.xlu0 %9419 }
0x1cf2   :  { %v9451_v52 = vpop.permute.xlu1 %9450 }
0x1cf7   :  { %v9459_v40 = vpop.permute.xlu1 %9458 }
0x1cf8   :  { %v9462_v21 = vsel %vm868_vm0, %v9451_v52, %v9459_v40 }
0x1cf9   :  { %v9484_v13 = vadd.f32 1.0, %v9462_v21  ;;  %v13734_v21 = vld [vmem:[%s16113_s9 + $0x30] ss:$8 sps:$4 sm:$0xff]  }
0x1cfc   :  { %v9466_v51 = vpop.permute.xlu1 %9465 }
0x1d5b   :  { %v12812_v50 = vpop.f32.mrb[172].mxu0 }
0x1d5c   :  { %9407 = vrot.lane.b32.xlu0 %v12812_v50, %s13837_s6  ;;  %v9386_v15 = vpop.f32.mrb[173].mxu0 }
0x1d5d   :  { %v12813_v62 = vpop.f32.mrb[174].mxu0 }
0x1d5e   :  { %9409 = vrot.lane.b32.xlu1 %v12813_v62, %s13837_s6  ;;  %v9389_v22 = vpop.f32.mrb[175].mxu0 }
0x1d60   :  { %9445 = vperm.xlu0 %13427, %v6698_v3   ;;  %v13712_v3 = vld [vmem:[%s16090_s24 + $0x10] ss:$0 sps:$4 sm:$0x33]  }
0x1d62   :  { %9474 = vperm.xlu1 %13430, %v6706_v39   ;;  %v13727_v39 = vld [vmem:[%s16113_s9 + $0x4] ss:$8 sps:$4 sm:$0xff]  }
0x1d64   :  { %9470 = vperm.xlu0 %13427, %v6709_v6  }
0x1d66   :  { %9478 = vperm.xlu1 %13430, %v6709_v6  }
0x1d6a   :  { %13431 = vset.pattern.permute.xlu1 %v16281_v34 }
0x1dce   :  { %v9408_v27 = vpop.permute.xlu0 %9407 }
0x1dcf   :  { %v9413_v23 = vsel %vm868_vm0, %v9386_v15, %v9408_v27 }
0x1dd0   :  { %v9427_v38 = vadd.f32 %v9420_v20, %v9413_v23  ;;  %v9410_v60 = vpop.permute.xlu1 %9409 }
0x1dd1   :  { %v9414_v28 = vsel %vm868_vm0, %v9389_v22, %v9410_v60 }
0x1dd2   :  { %v9428_v58 = vadd.f32 %v9425_v57, %v9414_v28  ;;  %v9431_v31 = vmul.f32 0.2, %v9427_v38  ;;  %vm9429_vm10 = vcmp.ge.f32.partialorder %v9427_v38, 0.0 }
0x1dd4   :  { %vm9430_vm1 = vcmp.ge.f32.partialorder %v9428_v58, 0.0  ;;  %v9432_v26 = vmul.f32 0.2, %v9428_v58  ;;  %v9433_v10 = vsel %vm9429_vm10, %v9427_v38, %v9431_v31 }
0x1dd5   :  { %v9435_v32 = vadd.f32 %v9433_v10, %v16290_v1  ;;  %v13725_v10 = vld [vmem:[%s16113_s9] ss:$8 sps:$4 sm:$0xff]   ;;  %v13730_v1 = vld [vmem:[%s16113_s9 + $0x14] ss:$8 sps:$4 sm:$0xff]  }
0x1dd6   :  { %v9434_v63 = vsel %vm9430_vm1, %v9428_v58, %v9432_v26 }
0x1dd7   :  { %v9436_v56 = vadd.f32 %v9434_v63, %v16291_v16  ;;  %v9439_v33 = vmul.f32 0.2, %v9435_v32  ;;  %vm9437_vm2 = vcmp.ge.f32.partialorder %v9435_v32, 0.0  ;;  %v13728_v16 = vld [vmem:[%s16113_s9 + $0x10] ss:$8 sps:$4 sm:$0xff]  }
0x1dd9   :  { %v9440_v35 = vmul.f32 0.2, %v9436_v56  ;;  %vm9438_vm3 = vcmp.ge.f32.partialorder %v9436_v56, 0.0  ;;  %v9441_v30 = vsel %vm9437_vm2, %v9435_v32, %v9439_v33  ;;  %v13731_v33 = vld [vmem:[%s16113_s9 + $0x20] ss:$8 sps:$4 sm:$0xff]  }
0x1ddb   :  { %v9442_v0 = vsel %vm9438_vm3, %v9436_v56, %v9440_v35  ;;  %v13733_v56 = vld [vmem:[%s16113_s9 + $0x24] ss:$8 sps:$4 sm:$0xff]   ;;  %v13736_v35 = vld [vmem:[%s16113_s9 + $0x34] ss:$8 sps:$4 sm:$0xff]  }
0x1ddc   :  { %v9486_v8 = vmul.f32 %v9484_v13, %v9442_v0  ;;  %v13740_v13 = vld [vmem:[%s16113_s9 + $0x90] ss:$8 sps:$4 sm:$0xff]  }
0x1ddf   :  { %v9446_v44 = vpop.permute.xlu0 %9445 }
0x1de0   :  { %v9461_v11 = vsel %vm868_vm0, %v9446_v44, %v9455_v29 }
0x1de1   :  { %v9483_v46 = vadd.f32 1.0, %v9461_v11  ;;  %v9475_v4 = vpop.permute.xlu1 %9474  ;;  %v13739_v11 = vld [vmem:[%s16113_s9 + $0x84] ss:$8 sps:$4 sm:$0xff]  }
0x1de2   :  { %v9481_v2 = vsel %vm868_vm0, %v9466_v51, %v9475_v4  ;;  %v13737_v4 = vld [vmem:[%s16113_s9 + $0x80] ss:$8 sps:$4 sm:$0xff]  }
0x1de3   :  { %v9485_v59 = vmul.f32 %v9483_v46, %v9441_v30  ;;  %v9471_v61 = vpop.permute.xlu0 %9470  ;;  %v13742_v30 = vld [vmem:[%s16113_s9 + $0x94] ss:$8 sps:$4 sm:$0xff]  }
0x1de5   :  { %v9487_v42 = vadd.f32 %v9485_v59, %v9481_v2  ;;  %v9479_v12 = vpop.permute.xlu1 %9478  ;;  %v13745_v59 = vld [vmem:[%s16113_s9 + $0xa4] ss:$8 sps:$4 sm:$0xff]   ;;  %v13743_v2 = vld [vmem:[%s16113_s9 + $0xa0] ss:$8 sps:$4 sm:$0xff]  }
0x1de6   :  { %v9482_v19 = vsel %vm868_vm0, %v9471_v61, %v9479_v12  ;;  %v13746_v61 = vld [vmem:[%s16113_s9 + $0xb0] ss:$8 sps:$4 sm:$0xff]   ;;  %v13751_v12 = vld [vmem:[%s16113_s9 + $0xc4] ss:$8 sps:$4 sm:$0xff]  }
0x1de7   :  { %v9491_v41 = vmul.f32 0.2, %v9487_v42  ;;  %v9488_v7 = vadd.f32 %v9486_v8, %v9482_v19  ;;  %vm9489_vm5 = vcmp.ge.f32.partialorder %v9487_v42, 0.0  ;;  %v13749_v19 = vld [vmem:[%s16113_s9 + $0xc0] ss:$8 sps:$4 sm:$0xff]  }
0x1de9   :  { %vm9490_vm6 = vcmp.ge.f32.partialorder %v9488_v7, 0.0  ;;  %v9492_v49 = vmul.f32 0.2, %v9488_v7  ;;  %v9493_v53 = vsel %vm9489_vm5, %v9487_v42, %v9491_v41  ;;  %v13748_v42 = vld [vmem:[%s16113_s9 + $0xb4] ss:$8 sps:$4 sm:$0xff]  }
0x1dea   :  { %v13754_v41 = vld [vmem:[%s16113_s9 + $0xd4] ss:$8 sps:$4 sm:$0xff]  }
0x1deb   :  { %v9494_v18 = vsel %vm9490_vm6, %v9488_v7, %v9492_v49  ;;  %v13752_v49 = vld [vmem:[%s16113_s9 + $0xd0] ss:$8 sps:$4 sm:$0xff]  }
0x1dec   :  { %v9500_v47 = vpack.c.bf16 %v9494_v18, %v9493_v53  ;;  %v13757_v53 = vld [vmem:[%s16113_s9 + $0xe4] ss:$8 sps:$4 sm:$0xff]   ;;  %v13755_v18 = vld [vmem:[%s16113_s9 + $0xe0] ss:$8 sps:$4 sm:$0xff]  }
0x1dee   :  { %12815 = vmatpush3.bf16.msra.mxu1 %v9500_v47  ;;  %v13760_v47 = vld [vmem:[%s16113_s9 + $0xf4] ss:$8 sps:$4 sm:$0xff]  }
0x1df1   :  { %12817 = vmatmul.mubr.msk.bf16.vlgmr.msra.gmra.mrb[24].mxu1 %vm2447_vm4, %v13710_v17  ;;  %v13758_v17 = vld [vmem:[%s16113_s9 + $0xf0] ss:$8 sps:$4 sm:$0xff]  }
0x1df2   :  { %12820 = vmatprep.mubr.msk.bf16.mxu1 %vm13840_vm15, %v16285_v55 }
0x1df9   :  { %12821 = vmatmul.mubr.msk.bf16.gmra.mrb[28].mxu1 %vm2447_vm4, %v13711_v5  ;;  %v13763_v5 = vld [vmem:[%s16113_s9 + $0x104] ss:$8 sps:$4 sm:$0xff]  }
0x1dfa   :  { %12824 = vmatprep.mubr.msk.bf16.mxu1 %vm13840_vm15, %v16285_v55  ;;  %v13715_v55 = vld [vmem:[%s16113_s9 + $0x44] ss:$8 sps:$4 sm:$0xff]  }
0x1dfb   :  { %9654 = vmatprep.subr.bf16.mxu0 %v13715_v55  ;;  %v13766_v55 = vld [vmem:[%s16113_s9 + $0x114] ss:$8 sps:$4 sm:$0xff]  }
0x1dfc   :  { %9655 = vmatpush1.bf16.msra.mxu0 %v13713_v48  ;;  %v13761_v48 = vld [vmem:[%s16113_s9 + $0x100] ss:$8 sps:$4 sm:$0xff]  }
0x1dfd   :  { %9656 = vmatprep.subr.bf16.mxu0 %v13718_v43 }
0x1e00   :  { %9657 = vmatpush1.bf16.msra.mxu0 %v13716_v25  ;;  %v13764_v25 = vld [vmem:[%s16113_s9 + $0x110] ss:$8 sps:$4 sm:$0xff]  }
0x1e01   :  { %12825 = vmatmul.mubr.msk.bf16.gmra.mrb[32].mxu1 %vm2447_vm4, %v13712_v3  ;;  %9658 = vmatprep.subr.bf16.mxu0 %v13721_v14  ;;  %v13769_v14 = vld [vmem:[%s16113_s9 + $0x124] ss:$8 sps:$4 sm:$0xff]  }
0x1e04   :  { %9659 = vmatpush1.bf16.msra.mxu0 %v13719_v37  ;;  %v13767_v37 = vld [vmem:[%s16113_s9 + $0x120] ss:$8 sps:$4 sm:$0xff]  }
0x1e05   :  { %9660 = vmatprep.subr.bf16.mxu0 %v13724_v9  ;;  %v13772_v9 = vld [vmem:[%s16113_s9 + $0x134] ss:$8 sps:$4 sm:$0xff]  }
0x1e08   :  { %9661 = vmatpush1.bf16.msra.mxu0 %v13722_v45  ;;  %v13770_v45 = vld [vmem:[%s16113_s9 + $0x130] ss:$8 sps:$4 sm:$0xff]  }
0x1e09   :  { %9737 = vmatprep.subr.bf16.mxu0 %v13727_v39  ;;  %v13775_v39 = vld [vmem:[%s16113_s9 + $0x144] ss:$8 sps:$4 sm:$0xff]  }
0x1ec4   :  { %v9557_v24 = vpop.f32.mrb[24].mxu1 }
0x1ec5   :  { %v12818_v50 = vpop.f32.mrb[25].mxu1 }
0x1ec6   :  { %v9560_v15 = vpop.f32.mrb[26].mxu1  ;;  %v13773_v50 = vld [vmem:[%s16113_s9 + $0x140] ss:$8 sps:$4 sm:$0xff]  }
0x1ec7   :  { %v16124_v62 = vpack.c.bf16 %v9560_v15, %v9557_v24  ;;  %v12819_v22 = vpop.f32.mrb[27].mxu1  ;;  %v13778_v15 = vld [vmem:[%s16113_s9 + $0x154] ss:$8 sps:$4 sm:$0xff]  }
0x1ec8   :  { %v13776_v22 = vld [vmem:[%s16113_s9 + $0x150] ss:$8 sps:$4 sm:$0xff]  }
0x1ec9   :  { %9598 = vrot.lane.b32.xlu0 %v16124_v62, %s13837_s6  ;;  %v9583_v54 = vrot.slane %v16124_v62, 6  ;;  %v9597_v36 = vrot.slane %v16124_v62, 2  ;;  %v9778_v57 = vrot.slane %v16124_v62, 4 }
0x1ecb   :  { %9584 = vrot.lane.b32.xlu1 %v9583_v54, %s13837_s6 }
0x1ecc   :  { %v9565_v6 = vpop.f32.mrb[28].mxu1 }
0x1ecd   :  { %9779 = vrot.lane.b32.xlu0 %v9597_v36, %s13837_s6  ;;  %v12822_v52 = vpop.f32.mrb[29].mxu1 }
0x1ece   :  { %v9568_v29 = vpop.f32.mrb[30].mxu1  ;;  %v13787_v52 = vld [vmem:[%s16113_s9 + $0x184] ss:$8 sps:$4 sm:$0xff]  }
0x1ecf   :  { %9878 = vrot.lane.b32.xlu1 %v9778_v57, %s13837_s6  ;;  %v16138_v40 = vpack.c.bf16 %v9568_v29, %v9565_v6  ;;  %v12823_v20 = vpop.f32.mrb[31].mxu1  ;;  %v13784_v6 = vld [vmem:[%s16113_s9 + $0x174] ss:$8 sps:$4 sm:$0xff]  }
0x1ed0   :  { %v13785_v20 = vld [vmem:[%s16113_s9 + $0x180] ss:$8 sps:$4 sm:$0xff]  }
0x1ed1   :  { %v9978_v51 = vrot.slane %v16138_v40, 6  ;;  %v10178_v27 = vrot.slane %v16138_v40, 4  ;;  %v10078_v23 = vrot.slane %v16138_v40, 2 }
0x1ed3   :  { %10079 = vrot.lane.b32.xlu1 %v16138_v40, %s13837_s6  ;;  %9979 = vrot.lane.b32.xlu0 %v9978_v51, %s13837_s6 }
0x1ed4   :  { %v9573_v38 = vpop.f32.mrb[32].mxu1 }
0x1ed5   :  { %v16148_v60 = vpack.c.bf16 %v9573_v38, %v9573_v38  ;;  %v12826_v28 = vpop.f32.mrb[33].mxu1  ;;  %v13790_v38 = vld [vmem:[%s16113_s9 + $0x194] ss:$8 sps:$4 sm:$0xff]  }
0x1ed6   :  { %v9576_v58 = vpop.f32.mrb[34].mxu1 }
0x1ed7   :  { %10278 = vrot.lane.b32.xlu1 %v10178_v27, %s13837_s6  ;;  %10179 = vrot.lane.b32.xlu0 %v10078_v23, %s13837_s6  ;;  %v10378_v31 = vrot.slane %v16148_v60, 6  ;;  %v12827_v26 = vpop.f32.mrb[35].mxu1  ;;  %v13788_v58 = vld [vmem:[%s16113_s9 + $0x190] ss:$8 sps:$4 sm:$0xff]  }
0x1ed8   :  { %v13791_v26 = vld [vmem:[%s16113_s9 + $0x1a0] ss:$8 sps:$4 sm:$0xff]  }
0x1edb   :  { %10379 = vrot.lane.b32.xlu0 %v10378_v31, %s13837_s6  ;;  %s10539_s6 = sld [smem:[%s16266_s0 + %s13868_s28]]   ;;  %v13793_v31 = vld [vmem:[%s16113_s9 + $0x1a4] ss:$8 sps:$4 sm:$0xff]  }
0x1ee1   :  { %v10484_v44 = vld [vmem:[%s10539_s6] sm:$0xf] }
0x1ee2   :  { %10487 = vperm.xlu1 %13431, %v10484_v44   ;;  %v13803_v44 = vld [vmem:[%s16113_s9 + $0x1e0] ss:$8 sps:$4 sm:$0xff]  }
0x1f3b   :  { %v9599_v63 = vpop.permute.xlu0 %9598 }
0x1f3c   :  { %v9602_v32 = vsel %vm572_vm9, %v9597_v36, %v9599_v63  ;;  %v13779_v36 = vld [vmem:[%s16113_s9 + $0x160] ss:$8 sps:$4 sm:$0xff]   ;;  %v13794_v63 = vld [vmem:[%s16113_s9 + $0x1b0] ss:$8 sps:$4 sm:$0xff]  }
0x1f3d   :  { %11454 = vmatmul.mubr.msk.bf16.vlgmr.msra.gmra.mrb[176].mxu0 %vm868_vm0, %v9602_v32  ;;  %v9585_v46 = vpop.permute.xlu1 %9584  ;;  %v13797_v32 = vld [vmem:[%s16113_s9 + $0x1c0] ss:$8 sps:$4 sm:$0xff]  }
0x1f3e   :  { %9738 = vmatpush1.bf16.msra.mxu0 %v13725_v10  ;;  %9769 = vmatprep.mubr.bf16.mxu0 %v16281_v34  ;;  %v9588_v0 = vsel %vm572_vm9, %v16124_v62, %v9585_v46  ;;  %v13796_v10 = vld [vmem:[%s16113_s9 + $0x1b4] ss:$8 sps:$4 sm:$0xff]  }
0x1f3f   :  { %9739 = vmatprep.subr.bf16.mxu0 %v13730_v1  ;;  %v9780_v8 = vpop.permute.xlu0 %9779 }
0x1f40   :  { %v9783_v7 = vsel %vm572_vm9, %v9778_v57, %v9780_v8  ;;  %v13782_v57 = vld [vmem:[%s16113_s9 + $0x170] ss:$8 sps:$4 sm:$0xff]  }
0x1f41   :  { %v9879_v3 = vpop.permute.xlu1 %9878 }
0x1f42   :  { %9740 = vmatpush1.bf16.msra.mxu0 %v13728_v16  ;;  %v9882_v43 = vsel %vm572_vm9, %v9583_v54, %v9879_v3  ;;  %v13781_v54 = vld [vmem:[%s16113_s9 + $0x164] ss:$8 sps:$4 sm:$0xff]   ;;  %v13802_v16 = vld [vmem:[%s16113_s9 + $0x1d4] ss:$8 sps:$4 sm:$0xff]  }
0x1f43   :  { %9741 = vmatprep.subr.bf16.mxu0 %v13733_v56 }
0x1f45   :  { %v9980_v24 = vpop.permute.xlu0 %9979  ;;  %v10080_v29 = vpop.permute.xlu1 %10079 }
0x1f46   :  { %9742 = vmatpush1.bf16.msra.mxu0 %v13731_v33  ;;  %v9983_v62 = vsel %vm572_vm9, %v16138_v40, %v9980_v24  ;;  %v10083_v28 = vsel %vm572_vm9, %v10078_v23, %v10080_v29  ;;  %v13799_v23 = vld [vmem:[%s16113_s9 + $0x1c4] ss:$8 sps:$4 sm:$0xff]   ;;  %v13800_v33 = vld [vmem:[%s16113_s9 + $0x1d0] ss:$8 sps:$4 sm:$0xff]  }
0x1f47   :  { %9743 = vmatprep.subr.bf16.mxu0 %v13736_v35  ;;  %v13805_v35 = vld [vmem:[%s16113_s9 + $0x1e4] ss:$8 sps:$4 sm:$0xff]  }
0x1f49   :  { %v10180_v1 = vpop.permute.xlu0 %10179  ;;  %v10279_v46 = vpop.permute.xlu1 %10278 }
0x1f4a   :  { %9744 = vmatpush1.bf16.msra.mxu0 %v13734_v21  ;;  %v10183_v56 = vsel %vm572_vm9, %v10178_v27, %v10180_v1  ;;  %v13808_v21 = vld [vmem:[%s16113_s9 + $0x1f4] ss:$8 sps:$4 sm:$0xff]   ;;  %v13811_v27 = vld [vmem:[%s16113_s9 + $0x204] ss:$8 sps:$4 sm:$0xff]  }
0x1f4b   :  { %9835 = vmatprep.subr.bf16.mxu0 %v13739_v11  ;;  %v13806_v11 = vld [vmem:[%s16113_s9 + $0x1f0] ss:$8 sps:$4 sm:$0xff]  }
0x1f4d   :  { %11463 = vmatmul.mubr.msk.bf16.vlgmr.msra.gmra.mrb[176].mxu0 %vm868_vm0, %v9588_v0  ;;  %v10282_v0 = vsel %vm572_vm9, %v9978_v51, %v10279_v46 }
0x1f4e   :  { %9836 = vmatpush1.bf16.msra.mxu0 %v13737_v4  ;;  %9867 = vmatprep.mubr.bf16.mxu0 %v16281_v34  ;;  %v13809_v4 = vld [vmem:[%s16113_s9 + $0x200] ss:$8 sps:$4 sm:$0xff]  }
0x1f4f   :  { %9837 = vmatprep.subr.bf16.mxu0 %v13742_v30  ;;  %v13814_v30 = vld [vmem:[%s16113_s9 + $0x214] ss:$8 sps:$4 sm:$0xff]  }
0x1f52   :  { %9838 = vmatpush1.bf16.msra.mxu0 %v13740_v13  ;;  %v13812_v13 = vld [vmem:[%s16113_s9 + $0x210] ss:$8 sps:$4 sm:$0xff]  }
0x1f53   :  { %9839 = vmatprep.subr.bf16.mxu0 %v13745_v59  ;;  %v13817_v59 = vld [vmem:[%s16113_s9 + $0x224] ss:$8 sps:$4 sm:$0xff]  }
0x1f56   :  { %9840 = vmatpush1.bf16.msra.mxu0 %v13743_v2  ;;  %v13815_v2 = vld [vmem:[%s16113_s9 + $0x220] ss:$8 sps:$4 sm:$0xff]  }
0x1f57   :  { %9841 = vmatprep.subr.bf16.mxu0 %v13748_v42  ;;  %v13820_v42 = vld [vmem:[%s16113_s9 + $0x234] ss:$8 sps:$4 sm:$0xff]  }
0x1f5a   :  { %9842 = vmatpush1.bf16.msra.mxu0 %v13746_v61  ;;  %v13818_v61 = vld [vmem:[%s16113_s9 + $0x230] ss:$8 sps:$4 sm:$0xff]  }
0x1f5b   :  { %9934 = vmatprep.subr.bf16.mxu0 %v13751_v12  ;;  %v10380_v12 = vpop.permute.xlu0 %10379 }
0x1f5c   :  { %v10383_v40 = vsel %vm572_vm9, %v16148_v60, %v10380_v12 }
0x1f5d   :  { %11480 = vmatmul.mubr.msk.bf16.vlgmr.msra.gmra.mrb[176].mxu0 %vm868_vm0, %v9783_v7 }
0x1f5e   :  { %9935 = vmatpush1.bf16.msra.mxu0 %v13749_v19  ;;  %9966 = vmatprep.mubr.bf16.mxu0 %v16281_v34 }
0x1f5f   :  { %9936 = vmatprep.subr.bf16.mxu0 %v13754_v41 }
0x1f61   :  { %v10488_v51 = vpop.permute.xlu1 %10487 }
0x1f62   :  { %9937 = vmatpush1.bf16.msra.mxu0 %v13752_v49 }
0x1f63   :  { %9938 = vmatprep.subr.bf16.mxu0 %v13757_v53 }
0x1f66   :  { %9939 = vmatpush1.bf16.msra.mxu0 %v13755_v18 }
0x1f67   :  { %9940 = vmatprep.subr.bf16.mxu0 %v13760_v47 }
0x1f6a   :  { %9941 = vmatpush1.bf16.msra.mxu0 %v13758_v17 }
0x1f6b   :  { %10035 = vmatprep.subr.bf16.mxu0 %v13763_v5 }
0x1f6d   :  { %11497 = vmatmul.mubr.msk.bf16.vlgmr.msra.gmra.mrb[176].mxu0 %vm868_vm0, %v9882_v43 }
0x1f6e   :  { %10036 = vmatpush1.bf16.msra.mxu0 %v13761_v48  ;;  %10067 = vmatprep.mubr.bf16.mxu0 %v16281_v34 }
0x1f6f   :  { %10037 = vmatprep.subr.bf16.mxu0 %v13766_v55 }
0x1f72   :  { %10038 = vmatpush1.bf16.msra.mxu0 %v13764_v25 }
0x1f73   :  { %10039 = vmatprep.subr.bf16.mxu0 %v13769_v14 }
0x1f76   :  { %10040 = vmatpush1.bf16.msra.mxu0 %v13767_v37 }
0x1f77   :  { %10041 = vmatprep.subr.bf16.mxu0 %v13772_v9 }
0x1f7a   :  { %10042 = vmatpush1.bf16.msra.mxu0 %v13770_v45 }
0x1f7b   :  { %10135 = vmatprep.subr.bf16.mxu0 %v13775_v39 }
0x1f7d   :  { %11514 = vmatmul.mubr.msk.bf16.vlgmr.msra.gmra.mrb[176].mxu0 %vm868_vm0, %v9983_v62 }
0x1f7e   :  { %10136 = vmatpush1.bf16.msra.mxu0 %v13773_v50  ;;  %10167 = vmatprep.mubr.bf16.mxu0 %v16281_v34 }
0x1f7f   :  { %10137 = vmatprep.subr.bf16.mxu0 %v13778_v15 }
0x1f82   :  { %10138 = vmatpush1.bf16.msra.mxu0 %v13776_v22 }
0x1f83   :  { %10139 = vmatprep.subr.bf16.mxu0 %v13781_v54 }
0x1f86   :  { %10140 = vmatpush1.bf16.msra.mxu0 %v13779_v36 }
0x1f87   :  { %10141 = vmatprep.subr.bf16.mxu0 %v13784_v6 }
0x1f8a   :  { %10142 = vmatpush1.bf16.msra.mxu0 %v13782_v57 }
0x1f8b   :  { %10235 = vmatprep.subr.bf16.mxu0 %v13787_v52 }
0x1f8d   :  { %11531 = vmatmul.mubr.msk.bf16.vlgmr.msra.gmra.mrb[176].mxu0 %vm868_vm0, %v10083_v28 }
0x1f8e   :  { %10236 = vmatpush1.bf16.msra.mxu0 %v13785_v20  ;;  %10267 = vmatprep.mubr.bf16.mxu0 %v16281_v34 }
0x1f8f   :  { %10237 = vmatprep.subr.bf16.mxu0 %v13790_v38 }
0x1f92   :  { %10238 = vmatpush1.bf16.msra.mxu0 %v13788_v58 }
0x1f93   :  { %10239 = vmatprep.subr.bf16.mxu0 %v13793_v31 }
0x1f96   :  { %10240 = vmatpush1.bf16.msra.mxu0 %v13791_v26 }
0x1f97   :  { %10241 = vmatprep.subr.bf16.mxu0 %v13796_v10 }
0x1f9a   :  { %10242 = vmatpush1.bf16.msra.mxu0 %v13794_v63 }
0x1f9b   :  { %10334 = vmatprep.subr.bf16.mxu0 %v13799_v23 }
0x1f9d   :  { %11548 = vmatmul.mubr.msk.bf16.vlgmr.msra.gmra.mrb[176].mxu0 %vm868_vm0, %v10183_v56 }
0x1f9e   :  { %10335 = vmatpush1.bf16.msra.mxu0 %v13797_v32  ;;  %10366 = vmatprep.mubr.bf16.mxu0 %v16281_v34 }
0x1f9f   :  { %10336 = vmatprep.subr.bf16.mxu0 %v13802_v16 }
0x1fa2   :  { %10337 = vmatpush1.bf16.msra.mxu0 %v13800_v33 }
0x1fa3   :  { %10338 = vmatprep.subr.bf16.mxu0 %v13805_v35 }
0x1fa6   :  { %10339 = vmatpush1.bf16.msra.mxu0 %v13803_v44 }
0x1fa7   :  { %10340 = vmatprep.subr.bf16.mxu0 %v13808_v21 }
0x1faa   :  { %10341 = vmatpush1.bf16.msra.mxu0 %v13806_v11 }
0x1fab   :  { %10435 = vmatprep.subr.bf16.mxu0 %v13811_v27 }
0x1fad   :  { %11565 = vmatmul.mubr.msk.bf16.vlgmr.msra.gmra.mrb[176].mxu0 %vm868_vm0, %v10282_v0 }
0x1fae   :  { %10436 = vmatpush1.bf16.msra.mxu0 %v13809_v4  ;;  %10467 = vmatprep.mubr.bf16.mxu0 %v16281_v34 }
0x1faf   :  { %10437 = vmatprep.subr.bf16.mxu0 %v13814_v30 }
0x1fb2   :  { %10438 = vmatpush1.bf16.msra.mxu0 %v13812_v13 }
0x1fb3   :  { %10439 = vmatprep.subr.bf16.mxu0 %v13817_v59 }
0x1fb6   :  { %10440 = vmatpush1.bf16.msra.mxu0 %v13815_v2 }
0x1fb7   :  { %10441 = vmatprep.subr.bf16.mxu0 %v13820_v42 }
0x1fba   :  { %10442 = vmatpush1.bf16.msra.mxu0 %v13818_v61 }
0x1fbd   :  { %11582 = vmatmul.mubr.msk.bf16.vlgmr.msra.gmra.mrb[176].mxu0 %vm868_vm0, %v10383_v40 }
0x2090   :  { %v10469_v34 = vpop.f32.mrb[176].mxu0 }
0x2091   :  { %v10480_v8 = vrot.slane %v10469_v34, 4  ;;  %v10490_v19 = vadd.f32 %v10488_v51, %v10469_v34  ;;  %v10471_v41 = vpop.f32.mrb[177].mxu0 }
0x2092   :  { %v10481_v7 = vrot.slane %v10471_v41, 4  ;;  %v10491_v49 = vadd.f32 %v10488_v51, %v10471_v41  ;;  %v10473_v53 = vpop.f32.mrb[178].mxu0 }
0x2093   :  { %v10492_v18 = vadd.f32 %v10488_v51, %v10480_v8  ;;  %v10474_v47 = vpop.f32.mrb[179].mxu0 }
0x2094   :  { %v10493_v17 = vadd.f32 %v10488_v51, %v10481_v7  ;;  %v10498_v5 = vcombine.low %v10490_v19, %v10491_v49 }
0x2096   :  { %v10499_v60 = vcombine.low %v10492_v18, %v10493_v17  ;;  %10502 = vst [vmem:[%s10544_s2] sm:$0xff] %v10498_v5 }
0x2098   :  { %10503 = vst [vmem:[%s10544_s2 + $0x8] sm:$0xff] %v10499_v60 }

</bundles_post_ra>
